<compile_context>
chip_gen: v5e
topology: v5e:2x2
jax: 0.10.0
libtpu: 0.0.40
codegen_flags: <defaults>
</compile_context>

<pallas_src>
import functools

import jax
import jax.numpy as jnp
from jax import lax
from jax.experimental import pallas as pl
from jax.experimental.pallas import tpu as pltpu

EPS = 1e-5


# ---------------------------------------------------------------------------
# In-kernel helpers (trace-time, operate on VMEM values).
# ---------------------------------------------------------------------------
def _pad1(p):
    """Zero-pad a (D, H, W, C) value by 1 on D/H/W, entirely in VMEM."""
    Dh, Hh, Wh, C = p.shape
    z = lambda s: jnp.zeros(s, p.dtype)
    p = jnp.concatenate([z((Dh, Hh, 1, C)), p, z((Dh, Hh, 1, C))], axis=2)
    p = jnp.concatenate([z((Dh, 1, Wh + 2, C)), p, z((Dh, 1, Wh + 2, C))], axis=1)
    p = jnp.concatenate([z((1, Hh + 2, Wh + 2, C)), p, z((1, Hh + 2, Wh + 2, C))], axis=0)
    return p


def _im2col(p, Dh, Hh, Wh):
    """(Dh+2, Hh+2, Wh+2, C) padded volume -> (Dh*Hh*Wh, 27*C) patch matrix."""
    C = p.shape[-1]
    M = Dh * Hh * Wh
    cols = []
    for kd in range(3):
        for kh in range(3):
            for kw in range(3):
                cols.append(p[kd:kd + Dh, kh:kh + Hh, kw:kw + Wh, :].reshape(M, C))
    return jnp.concatenate(cols, axis=1)          # K = 27*C, single MXU matmul


def _stats(y):
    """Per-channel (sum, sum_of_squares) over rows -> (2, C)."""
    return jnp.concatenate(
        [jnp.sum(y, axis=0, keepdims=True),
         jnp.sum(y * y, axis=0, keepdims=True)], axis=0)


# ---------------------------------------------------------------------------
# Kernel A: fused MaxPool3d(2) -> Conv3d(3x3x3, pad 1) -> bias, + BN partial stats.
# ---------------------------------------------------------------------------
def _pool_conv_stats_kernel(x_ref, w_ref, b_ref, o_ref, st_ref):
    # x_ref: (1, D, H, W, Cin)   w_ref: (27*Cin, Cout)   b_ref: (1, Cout)
    # o_ref: (1, M, Cout)        st_ref: (1, 2, Cout)
    _, D, H, W, Cin = x_ref.shape
    Dh, Hh, Wh = D // 2, H // 2, W // 2

    x = x_ref[0]                                           # (D, H, W, Cin)
    # fused 2x2x2 max pool: pairwise max along D, H, W (no HBM relayout pass)
    x = x.reshape(Dh, 2, H, W, Cin)
    x = jnp.maximum(x[:, 0], x[:, 1])                      # (Dh, H, W, Cin)
    x = x.reshape(Dh, Hh, 2, W, Cin)
    x = jnp.maximum(x[:, :, 0], x[:, :, 1])                # (Dh, Hh, W, Cin)
    x = x.reshape(Dh, Hh, Wh, 2, Cin)
    p = jnp.maximum(x[:, :, :, 0], x[:, :, :, 1])          # (Dh, Hh, Wh, Cin)

    patches = _im2col(_pad1(p), Dh, Hh, Wh)                # (M, 27*Cin)
    y = jnp.dot(patches, w_ref[...],
                preferred_element_type=jnp.float32) + b_ref[...]

    st_ref[0] = _stats(y)
    o_ref[0] = y.astype(o_ref.dtype)


# ---------------------------------------------------------------------------
# Kernel B: fused BN1-apply + ReLU -> Conv3d(3x3x3, pad 1) -> bias, + BN partial stats.
# ---------------------------------------------------------------------------
def _bn_relu_conv_stats_kernel(y_ref, s_ref, t_ref, w_ref, b_ref, o_ref, st_ref,
                               *, Dh, Hh, Wh):
    # y_ref: (1, M, Cmid)  s_ref/t_ref: (1, Cmid)  w_ref: (27*Cmid, Cout)  b_ref: (1, Cout)
    # o_ref: (1, M, Cout)  st_ref: (1, 2, Cout)
    Cmid = y_ref.shape[-1]

    a = jnp.maximum(y_ref[0] * s_ref[...] + t_ref[...], 0.0)      # BN1 + ReLU (fused)
    p = _pad1(a.reshape(Dh, Hh, Wh, Cmid))

    patches = _im2col(p, Dh, Hh, Wh)                              # (M, 27*Cmid)
    y = jnp.dot(patches, w_ref[...],
                preferred_element_type=jnp.float32) + b_ref[...]

    st_ref[0] = _stats(y)
    o_ref[0] = y.astype(o_ref.dtype)


# ---------------------------------------------------------------------------
# Kernel C: final BN2-apply + ReLU on a lane-dense (Dh, Hh*Wh*Cout) view.
# scale/shift are channel-tiled in the wrapper so this is a pure lane-wise op.
# ---------------------------------------------------------------------------
def _bn_relu_dense_kernel(y_ref, s_ref, t_ref, o_ref):
    o_ref[0] = jnp.maximum(y_ref[0] * s_ref[...] + t_ref[...], 0.0).astype(o_ref.dtype)


# ---------------------------------------------------------------------------
# Host-side helpers / wrappers.
# ---------------------------------------------------------------------------
def _bn_scale_shift(stats, count, gamma, beta):
    s = jnp.sum(stats[:, 0, :], axis=0)
    sq = jnp.sum(stats[:, 1, :], axis=0)
    mean = s / count
    var = sq / count - mean * mean                 # biased variance (PyTorch BN norm)
    scale = gamma / jnp.sqrt(var + EPS)
    shift = beta - mean * scale
    return scale, shift


def down_forward(x_ncdhw, params):
    N, Cin, D, H, W = x_ncdhw.shape
    Cmid = params["w1"].shape[-1]
    Cout = params["w2"].shape[-1]
    Dh, Hh, Wh = D // 2, H // 2, W // 2
    M = Dh * Hh * Wh
    parallel = pltpu.CompilerParams(dimension_semantics=("parallel",))

    x = jnp.transpose(x_ncdhw, (0, 2, 3, 4, 1))    # NCDHW -> NDHWC (only wrapper relayout)

    # --- pool + conv1 + bias + BN1 stats ------------------------------------
    w1 = params["w1"].reshape(27 * Cin, Cmid)
    y1, st1 = pl.pallas_call(
        _pool_conv_stats_kernel,
        out_shape=(jax.ShapeDtypeStruct((N, M, Cmid), jnp.float32),
                   jax.ShapeDtypeStruct((N, 2, Cmid), jnp.float32)),
        grid=(N,),
        in_specs=[
            pl.BlockSpec((1, D, H, W, Cin), lambda n: (n, 0, 0, 0, 0)),
            pl.BlockSpec((27 * Cin, Cmid), lambda n: (0, 0)),
            pl.BlockSpec((1, Cmid), lambda n: (0, 0)),
        ],
        out_specs=(pl.BlockSpec((1, M, Cmid), lambda n: (n, 0, 0)),
                   pl.BlockSpec((1, 2, Cmid), lambda n: (n, 0, 0))),
        compiler_params=parallel,
    )(x, w1, params["b1"].reshape(1, Cmid))

    scale1, shift1 = _bn_scale_shift(st1, N * M, params["g1"], params["be1"])

    # --- BN1-apply + ReLU + conv2 + bias + BN2 stats (all fused) ------------
    w2 = params["w2"].reshape(27 * Cmid, Cout)
    y2, st2 = pl.pallas_call(
        functools.partial(_bn_relu_conv_stats_kernel, Dh=Dh, Hh=Hh, Wh=Wh),
        out_shape=(jax.ShapeDtypeStruct((N, M, Cout), jnp.float32),
                   jax.ShapeDtypeStruct((N, 2, Cout), jnp.float32)),
        grid=(N,),
        in_specs=[
            pl.BlockSpec((1, M, Cmid), lambda n: (n, 0, 0)),
            pl.BlockSpec((1, Cmid), lambda n: (0, 0)),
            pl.BlockSpec((1, Cmid), lambda n: (0, 0)),
            pl.BlockSpec((27 * Cmid, Cout), lambda n: (0, 0)),
            pl.BlockSpec((1, Cout), lambda n: (0, 0)),
        ],
        out_specs=(pl.BlockSpec((1, M, Cout), lambda n: (n, 0, 0)),
                   pl.BlockSpec((1, 2, Cout), lambda n: (n, 0, 0))),
        compiler_params=parallel,
    )(y1, scale1.reshape(1, Cmid), shift1.reshape(1, Cmid), w2,
      params["b2"].reshape(1, Cout))

    scale2, shift2 = _bn_scale_shift(st2, N * M, params["g2"], params["be2"])

    # --- final BN2-apply + ReLU on a lane-dense view (free bitcast reshape) --
    L = Hh * Wh * Cout
    y2d = y2.reshape(N, Dh, L)
    sc2 = jnp.tile(scale2, Hh * Wh).reshape(1, L)
    sh2 = jnp.tile(shift2, Hh * Wh).reshape(1, L)
    out = pl.pallas_call(
        _bn_relu_dense_kernel,
        out_shape=jax.ShapeDtypeStruct((N, Dh, L), jnp.float32),
        grid=(N,),
        in_specs=[
            pl.BlockSpec((1, Dh, L), lambda n: (n, 0, 0)),
            pl.BlockSpec((1, L), lambda n: (0, 0)),
            pl.BlockSpec((1, L), lambda n: (0, 0)),
        ],
        out_specs=pl.BlockSpec((1, Dh, L), lambda n: (n, 0, 0)),
        compiler_params=parallel,
    )(y2d, sc2, sh2)

    out = out.reshape(N, Dh, Hh, Wh, Cout)
    return jnp.transpose(out, (0, 4, 1, 2, 3))     # NDHWC -> NCDHW


# ---------------------------------------------------------------------------
# Pure-JAX reference (same math, no Pallas) for validation.
# ---------------------------------------------------------------------------
def _ref_forward(x_ncdhw, params):
    x = jnp.transpose(x_ncdhw, (0, 2, 3, 4, 1))
    x = lax.reduce_window(x, -jnp.inf, lax.max,
                          (1, 2, 2, 2, 1), (1, 2, 2, 2, 1), "VALID")

    def conv(x, w, b):
        y = lax.conv_general_dilated(
            x, w, (1, 1, 1), "SAME",
            dimension_numbers=("NDHWC", "DHWIO", "NDHWC"))
        return y + b

    def bnrelu(y, g, be):
        m = jnp.mean(y, axis=(0, 1, 2, 3))
        v = jnp.mean((y - m) ** 2, axis=(0, 1, 2, 3))
        return jnp.maximum((y - m) / jnp.sqrt(v + EPS) * g + be, 0.0)

    x = bnrelu(conv(x, params["w1"], params["b1"]), params["g1"], params["be1"])
    x = bnrelu(conv(x, params["w2"], params["b2"]), params["g2"], params["be2"])
    return jnp.transpose(x, (0, 4, 1, 2, 3))


if __name__ == "__main__":
    N, Cin, Cout = 2, 4, 8
    D = H = W = 8

    key = jax.random.PRNGKey(0)
    kx, kw1, kb1, kw2, kb2 = jax.random.split(key, 5)

    x = jax.random.normal(kx, (N, Cin, D, H, W), dtype=jnp.float32)

    # Deterministic synthetic parameters (shapes from the module __init__).
    # Conv weights stored DHWIO (3,3,3,Cin,Cout); BN gamma=1, beta=0 (PyTorch defaults).
    params = {
        "w1": 0.1 * jax.random.normal(kw1, (3, 3, 3, Cin, Cout), dtype=jnp.float32),
        "b1": 0.1 * jax.random.normal(kb1, (Cout,), dtype=jnp.float32),
        "g1": jnp.ones((Cout,), jnp.float32),
        "be1": jnp.zeros((Cout,), jnp.float32),
        "w2": 0.1 * jax.random.normal(kw2, (3, 3, 3, Cout, Cout), dtype=jnp.float32),
        "b2": 0.1 * jax.random.normal(kb2, (Cout,), dtype=jnp.float32),
        "g2": jnp.ones((Cout,), jnp.float32),
        "be2": jnp.zeros((Cout,), jnp.float32),
    }

    out = jax.block_until_ready(jax.jit(down_forward)(x, params))
    ref = jax.block_until_ready(_ref_forward(x, params))

    assert out.shape == (N, Cout, D // 2, H // 2, W // 2), out.shape
    assert jnp.allclose(out, ref, atol=5e-4, rtol=5e-4), \
        float(jnp.max(jnp.abs(out - ref)))

    print("KERNEL_OK")
</pallas_src>

<mosaic_0001>
module attributes {stable_mosaic.version = 11 : i64} {
  func.func @_pool_conv_stats_kernel(%arg0: i32, %arg1: memref<1x8x8x8x4xf32, #tpu.memory_space<vmem>>, %arg2: memref<108x8xf32, #tpu.memory_space<vmem>>, %arg3: memref<1x8xf32, #tpu.memory_space<vmem>>, %arg4: memref<1x64x8xf32, #tpu.memory_space<vmem>>, %arg5: memref<1x2x8xf32, #tpu.memory_space<vmem>>) attributes {dimension_semantics = [#tpu.dimension_semantics<parallel>], iteration_bounds = array<i64: 2>, scalar_prefetch = 0 : i64, scratch_operands = 0 : i64, tpu.core_type = #tpu.core_type<tc>, window_params = [{transform_indices = @transform_0, window_bounds = array<i64: 1, 8, 8, 8, 4>}, {pipeline_mode = #tpu.pipeline_mode<synchronous>, transform_indices = @transform_1, window_bounds = array<i64: 108, 8>}, {pipeline_mode = #tpu.pipeline_mode<synchronous>, transform_indices = @transform_2, window_bounds = array<i64: 1, 8>}, {transform_indices = @transform_3, window_bounds = array<i64: 1, 64, 8>}, {transform_indices = @transform_4, window_bounds = array<i64: 1, 2, 8>}]} {
    %c0 = arith.constant 0 : index
    %c0_0 = arith.constant 0 : index
    %c0_1 = arith.constant 0 : index
    %c0_2 = arith.constant 0 : index
    %c0_3 = arith.constant 0 : index
    %0 = vector.load %arg1[%c0, %c0_0, %c0_1, %c0_2, %c0_3] : memref<1x8x8x8x4xf32, #tpu.memory_space<vmem>>, vector<1x8x8x8x4xf32>
    %1 = vector.shape_cast %0 : vector<1x8x8x8x4xf32> to vector<8x8x8x4xf32>
    %2 = vector.shape_cast %1 : vector<8x8x8x4xf32> to vector<4x2x8x8x4xf32>
    %3 = vector.extract_strided_slice %2 {offsets = [0, 0, 0, 0, 0], sizes = [4, 1, 8, 8, 4], strides = [1, 1, 1, 1, 1]} : vector<4x2x8x8x4xf32> to vector<4x1x8x8x4xf32>
    %4 = vector.shape_cast %3 : vector<4x1x8x8x4xf32> to vector<4x8x8x4xf32>
    %5 = vector.extract_strided_slice %2 {offsets = [0, 1, 0, 0, 0], sizes = [4, 1, 8, 8, 4], strides = [1, 1, 1, 1, 1]} : vector<4x2x8x8x4xf32> to vector<4x1x8x8x4xf32>
    %6 = vector.shape_cast %5 : vector<4x1x8x8x4xf32> to vector<4x8x8x4xf32>
    %7 = arith.maximumf %4, %6 : vector<4x8x8x4xf32>
    %8 = vector.shape_cast %7 : vector<4x8x8x4xf32> to vector<4x4x2x8x4xf32>
    %9 = vector.extract_strided_slice %8 {offsets = [0, 0, 0, 0, 0], sizes = [4, 4, 1, 8, 4], strides = [1, 1, 1, 1, 1]} : vector<4x4x2x8x4xf32> to vector<4x4x1x8x4xf32>
    %10 = vector.shape_cast %9 : vector<4x4x1x8x4xf32> to vector<4x4x8x4xf32>
    %11 = vector.extract_strided_slice %8 {offsets = [0, 0, 1, 0, 0], sizes = [4, 4, 1, 8, 4], strides = [1, 1, 1, 1, 1]} : vector<4x4x2x8x4xf32> to vector<4x4x1x8x4xf32>
    %12 = vector.shape_cast %11 : vector<4x4x1x8x4xf32> to vector<4x4x8x4xf32>
    %13 = arith.maximumf %10, %12 : vector<4x4x8x4xf32>
    %14 = vector.shape_cast %13 : vector<4x4x8x4xf32> to vector<4x4x4x2x4xf32>
    %15 = vector.extract_strided_slice %14 {offsets = [0, 0, 0, 0, 0], sizes = [4, 4, 4, 1, 4], strides = [1, 1, 1, 1, 1]} : vector<4x4x4x2x4xf32> to vector<4x4x4x1x4xf32>
    %16 = vector.shape_cast %15 : vector<4x4x4x1x4xf32> to vector<4x4x4x4xf32>
    %17 = vector.extract_strided_slice %14 {offsets = [0, 0, 0, 1, 0], sizes = [4, 4, 4, 1, 4], strides = [1, 1, 1, 1, 1]} : vector<4x4x4x2x4xf32> to vector<4x4x4x1x4xf32>
    %18 = vector.shape_cast %17 : vector<4x4x4x1x4xf32> to vector<4x4x4x4xf32>
    %19 = arith.maximumf %16, %18 : vector<4x4x4x4xf32>
    %cst = arith.constant 0.000000e+00 : f32
    %20 = vector.broadcast %cst : f32 to vector<4x4x1x4xf32>
    %cst_4 = arith.constant 0.000000e+00 : f32
    %21 = vector.broadcast %cst_4 : f32 to vector<4x4x1x4xf32>
    %22 = tpu.concatenate %20, %19, %21 in 2 : vector<4x4x1x4xf32>, vector<4x4x4x4xf32>, vector<4x4x1x4xf32> -> vector<4x4x6x4xf32>
    %cst_5 = arith.constant 0.000000e+00 : f32
    %23 = vector.broadcast %cst_5 : f32 to vector<4x1x6x4xf32>
    %cst_6 = arith.constant 0.000000e+00 : f32
    %24 = vector.broadcast %cst_6 : f32 to vector<4x1x6x4xf32>
    %25 = tpu.concatenate %23, %22, %24 in 1 : vector<4x1x6x4xf32>, vector<4x4x6x4xf32>, vector<4x1x6x4xf32> -> vector<4x6x6x4xf32>
    %cst_7 = arith.constant 0.000000e+00 : f32
    %26 = vector.broadcast %cst_7 : f32 to vector<1x6x6x4xf32>
    %cst_8 = arith.constant 0.000000e+00 : f32
    %27 = vector.broadcast %cst_8 : f32 to vector<1x6x6x4xf32>
    %28 = tpu.concatenate %26, %25, %27 in 0 : vector<1x6x6x4xf32>, vector<4x6x6x4xf32>, vector<1x6x6x4xf32> -> vector<6x6x6x4xf32>
    %29 = vector.extract_strided_slice %28 {offsets = [0, 0, 0, 0], sizes = [4, 4, 4, 4], strides = [1, 1, 1, 1]} : vector<6x6x6x4xf32> to vector<4x4x4x4xf32>
    %30 = vector.shape_cast %29 : vector<4x4x4x4xf32> to vector<64x4xf32>
    %31 = vector.extract_strided_slice %28 {offsets = [0, 0, 1, 0], sizes = [4, 4, 4, 4], strides = [1, 1, 1, 1]} : vector<6x6x6x4xf32> to vector<4x4x4x4xf32>
    %32 = vector.shape_cast %31 : vector<4x4x4x4xf32> to vector<64x4xf32>
    %33 = vector.extract_strided_slice %28 {offsets = [0, 0, 2, 0], sizes = [4, 4, 4, 4], strides = [1, 1, 1, 1]} : vector<6x6x6x4xf32> to vector<4x4x4x4xf32>
    %34 = vector.shape_cast %33 : vector<4x4x4x4xf32> to vector<64x4xf32>
    %35 = vector.extract_strided_slice %28 {offsets = [0, 1, 0, 0], sizes = [4, 4, 4, 4], strides = [1, 1, 1, 1]} : vector<6x6x6x4xf32> to vector<4x4x4x4xf32>
    %36 = vector.shape_cast %35 : vector<4x4x4x4xf32> to vector<64x4xf32>
    %37 = vector.extract_strided_slice %28 {offsets = [0, 1, 1, 0], sizes = [4, 4, 4, 4], strides = [1, 1, 1, 1]} : vector<6x6x6x4xf32> to vector<4x4x4x4xf32>
    %38 = vector.shape_cast %37 : vector<4x4x4x4xf32> to vector<64x4xf32>
    %39 = vector.extract_strided_slice %28 {offsets = [0, 1, 2, 0], sizes = [4, 4, 4, 4], strides = [1, 1, 1, 1]} : vector<6x6x6x4xf32> to vector<4x4x4x4xf32>
    %40 = vector.shape_cast %39 : vector<4x4x4x4xf32> to vector<64x4xf32>
    %41 = vector.extract_strided_slice %28 {offsets = [0, 2, 0, 0], sizes = [4, 4, 4, 4], strides = [1, 1, 1, 1]} : vector<6x6x6x4xf32> to vector<4x4x4x4xf32>
    %42 = vector.shape_cast %41 : vector<4x4x4x4xf32> to vector<64x4xf32>
    %43 = vector.extract_strided_slice %28 {offsets = [0, 2, 1, 0], sizes = [4, 4, 4, 4], strides = [1, 1, 1, 1]} : vector<6x6x6x4xf32> to vector<4x4x4x4xf32>
    %44 = vector.shape_cast %43 : vector<4x4x4x4xf32> to vector<64x4xf32>
    %45 = vector.extract_strided_slice %28 {offsets = [0, 2, 2, 0], sizes = [4, 4, 4, 4], strides = [1, 1, 1, 1]} : vector<6x6x6x4xf32> to vector<4x4x4x4xf32>
    %46 = vector.shape_cast %45 : vector<4x4x4x4xf32> to vector<64x4xf32>
    %47 = vector.extract_strided_slice %28 {offsets = [1, 0, 0, 0], sizes = [4, 4, 4, 4], strides = [1, 1, 1, 1]} : vector<6x6x6x4xf32> to vector<4x4x4x4xf32>
    %48 = vector.shape_cast %47 : vector<4x4x4x4xf32> to vector<64x4xf32>
    %49 = vector.extract_strided_slice %28 {offsets = [1, 0, 1, 0], sizes = [4, 4, 4, 4], strides = [1, 1, 1, 1]} : vector<6x6x6x4xf32> to vector<4x4x4x4xf32>
    %50 = vector.shape_cast %49 : vector<4x4x4x4xf32> to vector<64x4xf32>
    %51 = vector.extract_strided_slice %28 {offsets = [1, 0, 2, 0], sizes = [4, 4, 4, 4], strides = [1, 1, 1, 1]} : vector<6x6x6x4xf32> to vector<4x4x4x4xf32>
    %52 = vector.shape_cast %51 : vector<4x4x4x4xf32> to vector<64x4xf32>
    %53 = vector.extract_strided_slice %28 {offsets = [1, 1, 0, 0], sizes = [4, 4, 4, 4], strides = [1, 1, 1, 1]} : vector<6x6x6x4xf32> to vector<4x4x4x4xf32>
    %54 = vector.shape_cast %53 : vector<4x4x4x4xf32> to vector<64x4xf32>
    %55 = vector.extract_strided_slice %28 {offsets = [1, 1, 1, 0], sizes = [4, 4, 4, 4], strides = [1, 1, 1, 1]} : vector<6x6x6x4xf32> to vector<4x4x4x4xf32>
    %56 = vector.shape_cast %55 : vector<4x4x4x4xf32> to vector<64x4xf32>
    %57 = vector.extract_strided_slice %28 {offsets = [1, 1, 2, 0], sizes = [4, 4, 4, 4], strides = [1, 1, 1, 1]} : vector<6x6x6x4xf32> to vector<4x4x4x4xf32>
    %58 = vector.shape_cast %57 : vector<4x4x4x4xf32> to vector<64x4xf32>
    %59 = vector.extract_strided_slice %28 {offsets = [1, 2, 0, 0], sizes = [4, 4, 4, 4], strides = [1, 1, 1, 1]} : vector<6x6x6x4xf32> to vector<4x4x4x4xf32>
    %60 = vector.shape_cast %59 : vector<4x4x4x4xf32> to vector<64x4xf32>
    %61 = vector.extract_strided_slice %28 {offsets = [1, 2, 1, 0], sizes = [4, 4, 4, 4], strides = [1, 1, 1, 1]} : vector<6x6x6x4xf32> to vector<4x4x4x4xf32>
    %62 = vector.shape_cast %61 : vector<4x4x4x4xf32> to vector<64x4xf32>
    %63 = vector.extract_strided_slice %28 {offsets = [1, 2, 2, 0], sizes = [4, 4, 4, 4], strides = [1, 1, 1, 1]} : vector<6x6x6x4xf32> to vector<4x4x4x4xf32>
    %64 = vector.shape_cast %63 : vector<4x4x4x4xf32> to vector<64x4xf32>
    %65 = vector.extract_strided_slice %28 {offsets = [2, 0, 0, 0], sizes = [4, 4, 4, 4], strides = [1, 1, 1, 1]} : vector<6x6x6x4xf32> to vector<4x4x4x4xf32>
    %66 = vector.shape_cast %65 : vector<4x4x4x4xf32> to vector<64x4xf32>
    %67 = vector.extract_strided_slice %28 {offsets = [2, 0, 1, 0], sizes = [4, 4, 4, 4], strides = [1, 1, 1, 1]} : vector<6x6x6x4xf32> to vector<4x4x4x4xf32>
    %68 = vector.shape_cast %67 : vector<4x4x4x4xf32> to vector<64x4xf32>
    %69 = vector.extract_strided_slice %28 {offsets = [2, 0, 2, 0], sizes = [4, 4, 4, 4], strides = [1, 1, 1, 1]} : vector<6x6x6x4xf32> to vector<4x4x4x4xf32>
    %70 = vector.shape_cast %69 : vector<4x4x4x4xf32> to vector<64x4xf32>
    %71 = vector.extract_strided_slice %28 {offsets = [2, 1, 0, 0], sizes = [4, 4, 4, 4], strides = [1, 1, 1, 1]} : vector<6x6x6x4xf32> to vector<4x4x4x4xf32>
    %72 = vector.shape_cast %71 : vector<4x4x4x4xf32> to vector<64x4xf32>
    %73 = vector.extract_strided_slice %28 {offsets = [2, 1, 1, 0], sizes = [4, 4, 4, 4], strides = [1, 1, 1, 1]} : vector<6x6x6x4xf32> to vector<4x4x4x4xf32>
    %74 = vector.shape_cast %73 : vector<4x4x4x4xf32> to vector<64x4xf32>
    %75 = vector.extract_strided_slice %28 {offsets = [2, 1, 2, 0], sizes = [4, 4, 4, 4], strides = [1, 1, 1, 1]} : vector<6x6x6x4xf32> to vector<4x4x4x4xf32>
    %76 = vector.shape_cast %75 : vector<4x4x4x4xf32> to vector<64x4xf32>
    %77 = vector.extract_strided_slice %28 {offsets = [2, 2, 0, 0], sizes = [4, 4, 4, 4], strides = [1, 1, 1, 1]} : vector<6x6x6x4xf32> to vector<4x4x4x4xf32>
    %78 = vector.shape_cast %77 : vector<4x4x4x4xf32> to vector<64x4xf32>
    %79 = vector.extract_strided_slice %28 {offsets = [2, 2, 1, 0], sizes = [4, 4, 4, 4], strides = [1, 1, 1, 1]} : vector<6x6x6x4xf32> to vector<4x4x4x4xf32>
    %80 = vector.shape_cast %79 : vector<4x4x4x4xf32> to vector<64x4xf32>
    %81 = vector.extract_strided_slice %28 {offsets = [2, 2, 2, 0], sizes = [4, 4, 4, 4], strides = [1, 1, 1, 1]} : vector<6x6x6x4xf32> to vector<4x4x4x4xf32>
    %82 = vector.shape_cast %81 : vector<4x4x4x4xf32> to vector<64x4xf32>
    %83 = tpu.concatenate %30, %32, %34, %36, %38, %40, %42, %44, %46, %48, %50, %52, %54, %56, %58, %60 in 1 : vector<64x4xf32>, vector<64x4xf32>, vector<64x4xf32>, vector<64x4xf32>, vector<64x4xf32>, vector<64x4xf32>, vector<64x4xf32>, vector<64x4xf32>, vector<64x4xf32>, vector<64x4xf32>, vector<64x4xf32>, vector<64x4xf32>, vector<64x4xf32>, vector<64x4xf32>, vector<64x4xf32>, vector<64x4xf32> -> vector<64x64xf32>
    %84 = tpu.concatenate %62, %64, %66, %68, %70, %72, %74, %76, %78, %80, %82 in 1 : vector<64x4xf32>, vector<64x4xf32>, vector<64x4xf32>, vector<64x4xf32>, vector<64x4xf32>, vector<64x4xf32>, vector<64x4xf32>, vector<64x4xf32>, vector<64x4xf32>, vector<64x4xf32>, vector<64x4xf32> -> vector<64x44xf32>
    %85 = tpu.concatenate %83, %84 in 1 : vector<64x64xf32>, vector<64x44xf32> -> vector<64x108xf32>
    %c0_9 = arith.constant 0 : index
    %c0_10 = arith.constant 0 : index
    %86 = vector.load %arg2[%c0_9, %c0_10] : memref<108x8xf32, #tpu.memory_space<vmem>>, vector<108x8xf32>
    %cst_11 = arith.constant dense<0.000000e+00> : vector<64x8xf32>
    %87 = tpu.matmul %85, %86, %cst_11 {dimension_numbers = #tpu.dot_dimension_numbers<[1], [0], [0], [1], [0, 0, 1, 1], [], []>} : vector<64x108xf32>, vector<108x8xf32>, vector<64x8xf32> -> vector<64x8xf32>
    %c0_12 = arith.constant 0 : index
    %c0_13 = arith.constant 0 : index
    %88 = vector.load %arg3[%c0_12, %c0_13] : memref<1x8xf32, #tpu.memory_space<vmem>>, vector<1x8xf32>
    %89 = vector.broadcast %88 : vector<1x8xf32> to vector<64x8xf32>
    %90 = arith.addf %87, %89 : vector<64x8xf32>
    %cst_14 = arith.constant dense<0.000000e+00> : vector<8xf32>
    %91 = vector.multi_reduction <add>, %90, %cst_14 [0] : vector<64x8xf32> to vector<8xf32>
    %92 = vector.shape_cast %91 : vector<8xf32> to vector<1x8xf32>
    %93 = arith.mulf %90, %90 : vector<64x8xf32>
    %cst_15 = arith.constant dense<0.000000e+00> : vector<8xf32>
    %94 = vector.multi_reduction <add>, %93, %cst_15 [0] : vector<64x8xf32> to vector<8xf32>
    %95 = vector.shape_cast %94 : vector<8xf32> to vector<1x8xf32>
    %96 = tpu.concatenate %92, %95 in 0 : vector<1x8xf32>, vector<1x8xf32> -> vector<2x8xf32>
    %c0_16 = arith.constant 0 : index
    %c0_17 = arith.constant 0 : index
    %c0_18 = arith.constant 0 : index
    %97 = vector.load %arg5[%c0_16, %c0_17, %c0_18] : memref<1x2x8xf32, #tpu.memory_space<vmem>>, vector<1x2x8xf32>
    %98 = vector.shape_cast %97 : vector<1x2x8xf32> to vector<2x8xf32>
    %99 = vector.shape_cast %96 : vector<2x8xf32> to vector<1x2x8xf32>
    tpu.vector_store %arg5[%c0_16, %c0_17, %c0_18], %99 {strides = array<i32>} : memref<1x2x8xf32, #tpu.memory_space<vmem>>, vector<1x2x8xf32>,
    %c0_19 = arith.constant 0 : index
    %c0_20 = arith.constant 0 : index
    %c0_21 = arith.constant 0 : index
    %100 = vector.load %arg4[%c0_19, %c0_20, %c0_21] : memref<1x64x8xf32, #tpu.memory_space<vmem>>, vector<1x64x8xf32>
    %101 = vector.shape_cast %100 : vector<1x64x8xf32> to vector<64x8xf32>
    %102 = vector.shape_cast %90 : vector<64x8xf32> to vector<1x64x8xf32>
    tpu.vector_store %arg4[%c0_19, %c0_20, %c0_21], %102 {strides = array<i32>} : memref<1x64x8xf32, #tpu.memory_space<vmem>>, vector<1x64x8xf32>,
    return
  }
  func.func @transform_0(%arg0: i32) -> (i32, i32, i32, i32, i32) {
    %c0_i32 = arith.constant 0 : i32
    %c0_i32_0 = arith.constant 0 : i32
    %c0_i32_1 = arith.constant 0 : i32
    %c0_i32_2 = arith.constant 0 : i32
    %c0_i32_3 = arith.constant 0 : i32
    return %arg0, %c0_i32, %c0_i32_0, %c0_i32_1, %c0_i32_2 : i32, i32, i32, i32, i32
  }
  func.func @transform_1(%arg0: i32) -> (i32, i32) {
    %c0_i32 = arith.constant 0 : i32
    %c0_i32_0 = arith.constant 0 : i32
    %c0_i32_1 = arith.constant 0 : i32
    return %c0_i32, %c0_i32_0 : i32, i32
  }
  func.func @transform_2(%arg0: i32) -> (i32, i32) {
    %c0_i32 = arith.constant 0 : i32
    %c0_i32_0 = arith.constant 0 : i32
    %c0_i32_1 = arith.constant 0 : i32
    return %c0_i32, %c0_i32_0 : i32, i32
  }
  func.func @transform_3(%arg0: i32) -> (i32, i32, i32) {
    %c0_i32 = arith.constant 0 : i32
    %c0_i32_0 = arith.constant 0 : i32
    %c0_i32_1 = arith.constant 0 : i32
    return %arg0, %c0_i32, %c0_i32_0 : i32, i32, i32
  }
  func.func @transform_4(%arg0: i32) -> (i32, i32, i32) {
    %c0_i32 = arith.constant 0 : i32
    %c0_i32_0 = arith.constant 0 : i32
    %c0_i32_1 = arith.constant 0 : i32
    return %arg0, %c0_i32, %c0_i32_0 : i32, i32, i32
  }
}

module attributes {stable_mosaic.version = 11 : i64} {
  func.func @_bn_relu_conv_stats_kernel(%arg0: i32, %arg1: memref<1x64x8xf32, #tpu.memory_space<vmem>>, %arg2: memref<1x8xf32, #tpu.memory_space<vmem>>, %arg3: memref<1x8xf32, #tpu.memory_space<vmem>>, %arg4: memref<216x8xf32, #tpu.memory_space<vmem>>, %arg5: memref<1x8xf32, #tpu.memory_space<vmem>>, %arg6: memref<1x64x8xf32, #tpu.memory_space<vmem>>, %arg7: memref<1x2x8xf32, #tpu.memory_space<vmem>>) attributes {dimension_semantics = [#tpu.dimension_semantics<parallel>], iteration_bounds = array<i64: 2>, scalar_prefetch = 0 : i64, scratch_operands = 0 : i64, tpu.core_type = #tpu.core_type<tc>, window_params = [{transform_indices = @transform_0, window_bounds = array<i64: 1, 64, 8>}, {pipeline_mode = #tpu.pipeline_mode<synchronous>, transform_indices = @transform_1, window_bounds = array<i64: 1, 8>}, {pipeline_mode = #tpu.pipeline_mode<synchronous>, transform_indices = @transform_2, window_bounds = array<i64: 1, 8>}, {pipeline_mode = #tpu.pipeline_mode<synchronous>, transform_indices = @transform_3, window_bounds = array<i64: 216, 8>}, {pipeline_mode = #tpu.pipeline_mode<synchronous>, transform_indices = @transform_4, window_bounds = array<i64: 1, 8>}, {transform_indices = @transform_5, window_bounds = array<i64: 1, 64, 8>}, {transform_indices = @transform_6, window_bounds = array<i64: 1, 2, 8>}]} {
    %c0 = arith.constant 0 : index
    %c0_0 = arith.constant 0 : index
    %c0_1 = arith.constant 0 : index
    %0 = vector.load %arg1[%c0, %c0_0, %c0_1] : memref<1x64x8xf32, #tpu.memory_space<vmem>>, vector<1x64x8xf32>
    %1 = vector.shape_cast %0 : vector<1x64x8xf32> to vector<64x8xf32>
    %c0_2 = arith.constant 0 : index
    %c0_3 = arith.constant 0 : index
    %2 = vector.load %arg2[%c0_2, %c0_3] : memref<1x8xf32, #tpu.memory_space<vmem>>, vector<1x8xf32>
    %3 = vector.broadcast %2 : vector<1x8xf32> to vector<64x8xf32>
    %4 = arith.mulf %1, %3 : vector<64x8xf32>
    %c0_4 = arith.constant 0 : index
    %c0_5 = arith.constant 0 : index
    %5 = vector.load %arg3[%c0_4, %c0_5] : memref<1x8xf32, #tpu.memory_space<vmem>>, vector<1x8xf32>
    %6 = vector.broadcast %5 : vector<1x8xf32> to vector<64x8xf32>
    %7 = arith.addf %4, %6 : vector<64x8xf32>
    %cst = arith.constant 0.000000e+00 : f32
    %8 = vector.broadcast %cst : f32 to vector<64x8xf32>
    %9 = arith.maximumf %7, %8 : vector<64x8xf32>
    %10 = vector.shape_cast %9 : vector<64x8xf32> to vector<4x4x4x8xf32>
    %cst_6 = arith.constant 0.000000e+00 : f32
    %11 = vector.broadcast %cst_6 : f32 to vector<4x4x1x8xf32>
    %cst_7 = arith.constant 0.000000e+00 : f32
    %12 = vector.broadcast %cst_7 : f32 to vector<4x4x1x8xf32>
    %13 = tpu.concatenate %11, %10, %12 in 2 : vector<4x4x1x8xf32>, vector<4x4x4x8xf32>, vector<4x4x1x8xf32> -> vector<4x4x6x8xf32>
    %cst_8 = arith.constant 0.000000e+00 : f32
    %14 = vector.broadcast %cst_8 : f32 to vector<4x1x6x8xf32>
    %cst_9 = arith.constant 0.000000e+00 : f32
    %15 = vector.broadcast %cst_9 : f32 to vector<4x1x6x8xf32>
    %16 = tpu.concatenate %14, %13, %15 in 1 : vector<4x1x6x8xf32>, vector<4x4x6x8xf32>, vector<4x1x6x8xf32> -> vector<4x6x6x8xf32>
    %cst_10 = arith.constant 0.000000e+00 : f32
    %17 = vector.broadcast %cst_10 : f32 to vector<1x6x6x8xf32>
    %cst_11 = arith.constant 0.000000e+00 : f32
    %18 = vector.broadcast %cst_11 : f32 to vector<1x6x6x8xf32>
    %19 = tpu.concatenate %17, %16, %18 in 0 : vector<1x6x6x8xf32>, vector<4x6x6x8xf32>, vector<1x6x6x8xf32> -> vector<6x6x6x8xf32>
    %20 = vector.extract_strided_slice %19 {offsets = [0, 0, 0, 0], sizes = [4, 4, 4, 8], strides = [1, 1, 1, 1]} : vector<6x6x6x8xf32> to vector<4x4x4x8xf32>
    %21 = vector.shape_cast %20 : vector<4x4x4x8xf32> to vector<64x8xf32>
    %22 = vector.extract_strided_slice %19 {offsets = [0, 0, 1, 0], sizes = [4, 4, 4, 8], strides = [1, 1, 1, 1]} : vector<6x6x6x8xf32> to vector<4x4x4x8xf32>
    %23 = vector.shape_cast %22 : vector<4x4x4x8xf32> to vector<64x8xf32>
    %24 = vector.extract_strided_slice %19 {offsets = [0, 0, 2, 0], sizes = [4, 4, 4, 8], strides = [1, 1, 1, 1]} : vector<6x6x6x8xf32> to vector<4x4x4x8xf32>
    %25 = vector.shape_cast %24 : vector<4x4x4x8xf32> to vector<64x8xf32>
    %26 = vector.extract_strided_slice %19 {offsets = [0, 1, 0, 0], sizes = [4, 4, 4, 8], strides = [1, 1, 1, 1]} : vector<6x6x6x8xf32> to vector<4x4x4x8xf32>
    %27 = vector.shape_cast %26 : vector<4x4x4x8xf32> to vector<64x8xf32>
    %28 = vector.extract_strided_slice %19 {offsets = [0, 1, 1, 0], sizes = [4, 4, 4, 8], strides = [1, 1, 1, 1]} : vector<6x6x6x8xf32> to vector<4x4x4x8xf32>
    %29 = vector.shape_cast %28 : vector<4x4x4x8xf32> to vector<64x8xf32>
    %30 = vector.extract_strided_slice %19 {offsets = [0, 1, 2, 0], sizes = [4, 4, 4, 8], strides = [1, 1, 1, 1]} : vector<6x6x6x8xf32> to vector<4x4x4x8xf32>
    %31 = vector.shape_cast %30 : vector<4x4x4x8xf32> to vector<64x8xf32>
    %32 = vector.extract_strided_slice %19 {offsets = [0, 2, 0, 0], sizes = [4, 4, 4, 8], strides = [1, 1, 1, 1]} : vector<6x6x6x8xf32> to vector<4x4x4x8xf32>
    %33 = vector.shape_cast %32 : vector<4x4x4x8xf32> to vector<64x8xf32>
    %34 = vector.extract_strided_slice %19 {offsets = [0, 2, 1, 0], sizes = [4, 4, 4, 8], strides = [1, 1, 1, 1]} : vector<6x6x6x8xf32> to vector<4x4x4x8xf32>
    %35 = vector.shape_cast %34 : vector<4x4x4x8xf32> to vector<64x8xf32>
    %36 = vector.extract_strided_slice %19 {offsets = [0, 2, 2, 0], sizes = [4, 4, 4, 8], strides = [1, 1, 1, 1]} : vector<6x6x6x8xf32> to vector<4x4x4x8xf32>
    %37 = vector.shape_cast %36 : vector<4x4x4x8xf32> to vector<64x8xf32>
    %38 = vector.extract_strided_slice %19 {offsets = [1, 0, 0, 0], sizes = [4, 4, 4, 8], strides = [1, 1, 1, 1]} : vector<6x6x6x8xf32> to vector<4x4x4x8xf32>
    %39 = vector.shape_cast %38 : vector<4x4x4x8xf32> to vector<64x8xf32>
    %40 = vector.extract_strided_slice %19 {offsets = [1, 0, 1, 0], sizes = [4, 4, 4, 8], strides = [1, 1, 1, 1]} : vector<6x6x6x8xf32> to vector<4x4x4x8xf32>
    %41 = vector.shape_cast %40 : vector<4x4x4x8xf32> to vector<64x8xf32>
    %42 = vector.extract_strided_slice %19 {offsets = [1, 0, 2, 0], sizes = [4, 4, 4, 8], strides = [1, 1, 1, 1]} : vector<6x6x6x8xf32> to vector<4x4x4x8xf32>
    %43 = vector.shape_cast %42 : vector<4x4x4x8xf32> to vector<64x8xf32>
    %44 = vector.extract_strided_slice %19 {offsets = [1, 1, 0, 0], sizes = [4, 4, 4, 8], strides = [1, 1, 1, 1]} : vector<6x6x6x8xf32> to vector<4x4x4x8xf32>
    %45 = vector.shape_cast %44 : vector<4x4x4x8xf32> to vector<64x8xf32>
    %46 = vector.extract_strided_slice %19 {offsets = [1, 1, 1, 0], sizes = [4, 4, 4, 8], strides = [1, 1, 1, 1]} : vector<6x6x6x8xf32> to vector<4x4x4x8xf32>
    %47 = vector.shape_cast %46 : vector<4x4x4x8xf32> to vector<64x8xf32>
    %48 = vector.extract_strided_slice %19 {offsets = [1, 1, 2, 0], sizes = [4, 4, 4, 8], strides = [1, 1, 1, 1]} : vector<6x6x6x8xf32> to vector<4x4x4x8xf32>
    %49 = vector.shape_cast %48 : vector<4x4x4x8xf32> to vector<64x8xf32>
    %50 = vector.extract_strided_slice %19 {offsets = [1, 2, 0, 0], sizes = [4, 4, 4, 8], strides = [1, 1, 1, 1]} : vector<6x6x6x8xf32> to vector<4x4x4x8xf32>
    %51 = vector.shape_cast %50 : vector<4x4x4x8xf32> to vector<64x8xf32>
    %52 = vector.extract_strided_slice %19 {offsets = [1, 2, 1, 0], sizes = [4, 4, 4, 8], strides = [1, 1, 1, 1]} : vector<6x6x6x8xf32> to vector<4x4x4x8xf32>
    %53 = vector.shape_cast %52 : vector<4x4x4x8xf32> to vector<64x8xf32>
    %54 = vector.extract_strided_slice %19 {offsets = [1, 2, 2, 0], sizes = [4, 4, 4, 8], strides = [1, 1, 1, 1]} : vector<6x6x6x8xf32> to vector<4x4x4x8xf32>
    %55 = vector.shape_cast %54 : vector<4x4x4x8xf32> to vector<64x8xf32>
    %56 = vector.extract_strided_slice %19 {offsets = [2, 0, 0, 0], sizes = [4, 4, 4, 8], strides = [1, 1, 1, 1]} : vector<6x6x6x8xf32> to vector<4x4x4x8xf32>
    %57 = vector.shape_cast %56 : vector<4x4x4x8xf32> to vector<64x8xf32>
    %58 = vector.extract_strided_slice %19 {offsets = [2, 0, 1, 0], sizes = [4, 4, 4, 8], strides = [1, 1, 1, 1]} : vector<6x6x6x8xf32> to vector<4x4x4x8xf32>
    %59 = vector.shape_cast %58 : vector<4x4x4x8xf32> to vector<64x8xf32>
    %60 = vector.extract_strided_slice %19 {offsets = [2, 0, 2, 0], sizes = [4, 4, 4, 8], strides = [1, 1, 1, 1]} : vector<6x6x6x8xf32> to vector<4x4x4x8xf32>
    %61 = vector.shape_cast %60 : vector<4x4x4x8xf32> to vector<64x8xf32>
    %62 = vector.extract_strided_slice %19 {offsets = [2, 1, 0, 0], sizes = [4, 4, 4, 8], strides = [1, 1, 1, 1]} : vector<6x6x6x8xf32> to vector<4x4x4x8xf32>
    %63 = vector.shape_cast %62 : vector<4x4x4x8xf32> to vector<64x8xf32>
    %64 = vector.extract_strided_slice %19 {offsets = [2, 1, 1, 0], sizes = [4, 4, 4, 8], strides = [1, 1, 1, 1]} : vector<6x6x6x8xf32> to vector<4x4x4x8xf32>
    %65 = vector.shape_cast %64 : vector<4x4x4x8xf32> to vector<64x8xf32>
    %66 = vector.extract_strided_slice %19 {offsets = [2, 1, 2, 0], sizes = [4, 4, 4, 8], strides = [1, 1, 1, 1]} : vector<6x6x6x8xf32> to vector<4x4x4x8xf32>
    %67 = vector.shape_cast %66 : vector<4x4x4x8xf32> to vector<64x8xf32>
    %68 = vector.extract_strided_slice %19 {offsets = [2, 2, 0, 0], sizes = [4, 4, 4, 8], strides = [1, 1, 1, 1]} : vector<6x6x6x8xf32> to vector<4x4x4x8xf32>
    %69 = vector.shape_cast %68 : vector<4x4x4x8xf32> to vector<64x8xf32>
    %70 = vector.extract_strided_slice %19 {offsets = [2, 2, 1, 0], sizes = [4, 4, 4, 8], strides = [1, 1, 1, 1]} : vector<6x6x6x8xf32> to vector<4x4x4x8xf32>
    %71 = vector.shape_cast %70 : vector<4x4x4x8xf32> to vector<64x8xf32>
    %72 = vector.extract_strided_slice %19 {offsets = [2, 2, 2, 0], sizes = [4, 4, 4, 8], strides = [1, 1, 1, 1]} : vector<6x6x6x8xf32> to vector<4x4x4x8xf32>
    %73 = vector.shape_cast %72 : vector<4x4x4x8xf32> to vector<64x8xf32>
    %74 = tpu.concatenate %21, %23, %25, %27, %29, %31, %33, %35, %37, %39, %41, %43, %45, %47, %49, %51 in 1 : vector<64x8xf32>, vector<64x8xf32>, vector<64x8xf32>, vector<64x8xf32>, vector<64x8xf32>, vector<64x8xf32>, vector<64x8xf32>, vector<64x8xf32>, vector<64x8xf32>, vector<64x8xf32>, vector<64x8xf32>, vector<64x8xf32>, vector<64x8xf32>, vector<64x8xf32>, vector<64x8xf32>, vector<64x8xf32> -> vector<64x128xf32>
    %75 = tpu.concatenate %53, %55, %57, %59, %61, %63, %65, %67, %69, %71, %73 in 1 : vector<64x8xf32>, vector<64x8xf32>, vector<64x8xf32>, vector<64x8xf32>, vector<64x8xf32>, vector<64x8xf32>, vector<64x8xf32>, vector<64x8xf32>, vector<64x8xf32>, vector<64x8xf32>, vector<64x8xf32> -> vector<64x88xf32>
    %76 = tpu.concatenate %74, %75 in 1 : vector<64x128xf32>, vector<64x88xf32> -> vector<64x216xf32>
    %c0_12 = arith.constant 0 : index
    %c0_13 = arith.constant 0 : index
    %77 = vector.load %arg4[%c0_12, %c0_13] : memref<216x8xf32, #tpu.memory_space<vmem>>, vector<216x8xf32>
    %cst_14 = arith.constant dense<0.000000e+00> : vector<64x8xf32>
    %78 = tpu.matmul %76, %77, %cst_14 {dimension_numbers = #tpu.dot_dimension_numbers<[1], [0], [0], [1], [0, 0, 1, 1], [], []>} : vector<64x216xf32>, vector<216x8xf32>, vector<64x8xf32> -> vector<64x8xf32>
    %c0_15 = arith.constant 0 : index
    %c0_16 = arith.constant 0 : index
    %79 = vector.load %arg5[%c0_15, %c0_16] : memref<1x8xf32, #tpu.memory_space<vmem>>, vector<1x8xf32>
    %80 = vector.broadcast %79 : vector<1x8xf32> to vector<64x8xf32>
    %81 = arith.addf %78, %80 : vector<64x8xf32>
    %cst_17 = arith.constant dense<0.000000e+00> : vector<8xf32>
    %82 = vector.multi_reduction <add>, %81, %cst_17 [0] : vector<64x8xf32> to vector<8xf32>
    %83 = vector.shape_cast %82 : vector<8xf32> to vector<1x8xf32>
    %84 = arith.mulf %81, %81 : vector<64x8xf32>
    %cst_18 = arith.constant dense<0.000000e+00> : vector<8xf32>
    %85 = vector.multi_reduction <add>, %84, %cst_18 [0] : vector<64x8xf32> to vector<8xf32>
    %86 = vector.shape_cast %85 : vector<8xf32> to vector<1x8xf32>
    %87 = tpu.concatenate %83, %86 in 0 : vector<1x8xf32>, vector<1x8xf32> -> vector<2x8xf32>
    %c0_19 = arith.constant 0 : index
    %c0_20 = arith.constant 0 : index
    %c0_21 = arith.constant 0 : index
    %88 = vector.load %arg7[%c0_19, %c0_20, %c0_21] : memref<1x2x8xf32, #tpu.memory_space<vmem>>, vector<1x2x8xf32>
    %89 = vector.shape_cast %88 : vector<1x2x8xf32> to vector<2x8xf32>
    %90 = vector.shape_cast %87 : vector<2x8xf32> to vector<1x2x8xf32>
    tpu.vector_store %arg7[%c0_19, %c0_20, %c0_21], %90 {strides = array<i32>} : memref<1x2x8xf32, #tpu.memory_space<vmem>>, vector<1x2x8xf32>,
    %c0_22 = arith.constant 0 : index
    %c0_23 = arith.constant 0 : index
    %c0_24 = arith.constant 0 : index
    %91 = vector.load %arg6[%c0_22, %c0_23, %c0_24] : memref<1x64x8xf32, #tpu.memory_space<vmem>>, vector<1x64x8xf32>
    %92 = vector.shape_cast %91 : vector<1x64x8xf32> to vector<64x8xf32>
    %93 = vector.shape_cast %81 : vector<64x8xf32> to vector<1x64x8xf32>
    tpu.vector_store %arg6[%c0_22, %c0_23, %c0_24], %93 {strides = array<i32>} : memref<1x64x8xf32, #tpu.memory_space<vmem>>, vector<1x64x8xf32>,
    return
  }
  func.func @transform_0(%arg0: i32) -> (i32, i32, i32) {
    %c0_i32 = arith.constant 0 : i32
    %c0_i32_0 = arith.constant 0 : i32
    %c0_i32_1 = arith.constant 0 : i32
    return %arg0, %c0_i32, %c0_i32_0 : i32, i32, i32
  }
  func.func @transform_1(%arg0: i32) -> (i32, i32) {
    %c0_i32 = arith.constant 0 : i32
    %c0_i32_0 = arith.constant 0 : i32
    %c0_i32_1 = arith.constant 0 : i32
    return %c0_i32, %c0_i32_0 : i32, i32
  }
  func.func @transform_2(%arg0: i32) -> (i32, i32) {
    %c0_i32 = arith.constant 0 : i32
    %c0_i32_0 = arith.constant 0 : i32
    %c0_i32_1 = arith.constant 0 : i32
    return %c0_i32, %c0_i32_0 : i32, i32
  }
  func.func @transform_3(%arg0: i32) -> (i32, i32) {
    %c0_i32 = arith.constant 0 : i32
    %c0_i32_0 = arith.constant 0 : i32
    %c0_i32_1 = arith.constant 0 : i32
    return %c0_i32, %c0_i32_0 : i32, i32
  }
  func.func @transform_4(%arg0: i32) -> (i32, i32) {
    %c0_i32 = arith.constant 0 : i32
    %c0_i32_0 = arith.constant 0 : i32
    %c0_i32_1 = arith.constant 0 : i32
    return %c0_i32, %c0_i32_0 : i32, i32
  }
  func.func @transform_5(%arg0: i32) -> (i32, i32, i32) {
    %c0_i32 = arith.constant 0 : i32
    %c0_i32_0 = arith.constant 0 : i32
    %c0_i32_1 = arith.constant 0 : i32
    return %arg0, %c0_i32, %c0_i32_0 : i32, i32, i32
  }
  func.func @transform_6(%arg0: i32) -> (i32, i32, i32) {
    %c0_i32 = arith.constant 0 : i32
    %c0_i32_0 = arith.constant 0 : i32
    %c0_i32_1 = arith.constant 0 : i32
    return %arg0, %c0_i32, %c0_i32_0 : i32, i32, i32
  }
}

module attributes {stable_mosaic.version = 11 : i64} {
  func.func @_bn_relu_dense_kernel(%arg0: i32, %arg1: memref<1x4x128xf32, #tpu.memory_space<vmem>>, %arg2: memref<1x128xf32, #tpu.memory_space<vmem>>, %arg3: memref<1x128xf32, #tpu.memory_space<vmem>>, %arg4: memref<1x4x128xf32, #tpu.memory_space<vmem>>) attributes {dimension_semantics = [#tpu.dimension_semantics<parallel>], iteration_bounds = array<i64: 2>, scalar_prefetch = 0 : i64, scratch_operands = 0 : i64, tpu.core_type = #tpu.core_type<tc>, window_params = [{transform_indices = @transform_0, window_bounds = array<i64: 1, 4, 128>}, {pipeline_mode = #tpu.pipeline_mode<synchronous>, transform_indices = @transform_1, window_bounds = array<i64: 1, 128>}, {pipeline_mode = #tpu.pipeline_mode<synchronous>, transform_indices = @transform_2, window_bounds = array<i64: 1, 128>}, {transform_indices = @transform_3, window_bounds = array<i64: 1, 4, 128>}]} {
    %c0 = arith.constant 0 : index
    %c0_0 = arith.constant 0 : index
    %c0_1 = arith.constant 0 : index
    %0 = vector.load %arg1[%c0, %c0_0, %c0_1] : memref<1x4x128xf32, #tpu.memory_space<vmem>>, vector<1x4x128xf32>
    %1 = vector.shape_cast %0 : vector<1x4x128xf32> to vector<4x128xf32>
    %c0_2 = arith.constant 0 : index
    %c0_3 = arith.constant 0 : index
    %2 = vector.load %arg2[%c0_2, %c0_3] : memref<1x128xf32, #tpu.memory_space<vmem>>, vector<1x128xf32>
    %3 = vector.broadcast %2 : vector<1x128xf32> to vector<4x128xf32>
    %4 = arith.mulf %1, %3 : vector<4x128xf32>
    %c0_4 = arith.constant 0 : index
    %c0_5 = arith.constant 0 : index
    %5 = vector.load %arg3[%c0_4, %c0_5] : memref<1x128xf32, #tpu.memory_space<vmem>>, vector<1x128xf32>
    %6 = vector.broadcast %5 : vector<1x128xf32> to vector<4x128xf32>
    %7 = arith.addf %4, %6 : vector<4x128xf32>
    %cst = arith.constant 0.000000e+00 : f32
    %8 = vector.broadcast %cst : f32 to vector<4x128xf32>
    %9 = arith.maximumf %7, %8 : vector<4x128xf32>
    %c0_6 = arith.constant 0 : index
    %c0_7 = arith.constant 0 : index
    %c0_8 = arith.constant 0 : index
    %10 = vector.load %arg4[%c0_6, %c0_7, %c0_8] : memref<1x4x128xf32, #tpu.memory_space<vmem>>, vector<1x4x128xf32>
    %11 = vector.shape_cast %10 : vector<1x4x128xf32> to vector<4x128xf32>
    %12 = vector.shape_cast %9 : vector<4x128xf32> to vector<1x4x128xf32>
    tpu.vector_store %arg4[%c0_6, %c0_7, %c0_8], %12 {strides = array<i32>} : memref<1x4x128xf32, #tpu.memory_space<vmem>>, vector<1x4x128xf32>,
    return
  }
  func.func @transform_0(%arg0: i32) -> (i32, i32, i32) {
    %c0_i32 = arith.constant 0 : i32
    %c0_i32_0 = arith.constant 0 : i32
    %c0_i32_1 = arith.constant 0 : i32
    return %arg0, %c0_i32, %c0_i32_0 : i32, i32, i32
  }
  func.func @transform_1(%arg0: i32) -> (i32, i32) {
    %c0_i32 = arith.constant 0 : i32
    %c0_i32_0 = arith.constant 0 : i32
    %c0_i32_1 = arith.constant 0 : i32
    return %c0_i32, %c0_i32_0 : i32, i32
  }
  func.func @transform_2(%arg0: i32) -> (i32, i32) {
    %c0_i32 = arith.constant 0 : i32
    %c0_i32_0 = arith.constant 0 : i32
    %c0_i32_1 = arith.constant 0 : i32
    return %c0_i32, %c0_i32_0 : i32, i32
  }
  func.func @transform_3(%arg0: i32) -> (i32, i32, i32) {
    %c0_i32 = arith.constant 0 : i32
    %c0_i32_0 = arith.constant 0 : i32
    %c0_i32_1 = arith.constant 0 : i32
    return %arg0, %c0_i32, %c0_i32_0 : i32, i32, i32
  }
}

</mosaic_0001>

<bundles_post_ra>
// kernel: tile.18
= control target key start
LH: loop header
LB: loop body
LE: loop exit
PB: predicated region body
PF: predicated region fallthrough
CT: control target
= control target key end

     0   :  { %s28_s0 = inlined_call_operand.vmem [shape: f32[8], index: 0, kind: input, shape index: {}]   ;;  %s29_s1 = inlined_call_operand.vmem [shape: f32[16,8], index: 1, kind: output, shape index: {}]  }
   0x1   :  { %v4_v0 = vld [vmem:[%s28_s0] ss:$0 sm:$0xff] }
   0x2   :  { %5 = vst [vmem:[%s29_s1] sm:$0xff] %v4_v0 }
   0x3   :  { %8 = vst [vmem:[%s29_s1 + $0x8] sm:$0xff] %v4_v0 }

// kernel: tile.19
= control target key start
LH: loop header
LB: loop body
LE: loop exit
PB: predicated region body
PF: predicated region fallthrough
CT: control target
= control target key end

     0   :  { %s131_s10 = smov 120   ;;  %s132_s11 = smov 104   ;;  %vm3_vm0 = vcmask 64512   ;;  %vm9_vm1 = vcmask 1048512   ;;  %vm15_vm2 = vcmask 982912   ;;  %vm21_vm3 = vcmask 917312   ;;  %s207_s0 = inlined_call_operand.vmem [shape: f32[16,8], index: 0, kind: input, shape index: {}]   ;;  %s208_s1 = inlined_call_operand.vmem [shape: f32[1,128], index: 1, kind: output, shape index: {}]  }
   0x1   :  { %v101_v0 = vld [vmem:[%s207_s0 + $0xf] sm:$0x1]   ;;  %v103_v1 = vld [vmem:[%s207_s0 + $0xd] sm:$0x1]   ;;  %v105_v2 = vld [vmem:[%s207_s0 + $0xb] sm:$0x1]  }
   0x2   :  { %7 = vrot.lane.b32.xlu0 %v101_v0, %s131_s10  ;;  %19 = vrot.lane.b32.xlu1 %v103_v1, %s132_s11  ;;  %s133_s14 = smov 88   ;;  %v102_v3 = vld [vmem:[%s207_s0 + $0xe] sm:$0x1]   ;;  %v104_v4 = vld [vmem:[%s207_s0 + $0xc] sm:$0x1]   ;;  %s134_s19 = smov 112  }
   0x3   :  { %31 = vrot.lane.b32.xlu2 %v105_v2, %s133_s14  ;;  %s135_s20 = smov 96   ;;  %v106_v5 = vld [vmem:[%s207_s0 + $0xa] sm:$0x1]   ;;  %s136_s23 = smov 80   ;;  %v107_v6 = vld [vmem:[%s207_s0 + $0x9] sm:$0x1]  }
   0x4   :  { %v108_v7 = vld [vmem:[%s207_s0 + $0x8] sm:$0x1]   ;;  %s137_s28 = smov 72   ;;  %s138_s29 = smov 64   ;;  %v109_v8 = vld [vmem:[%s207_s0 + $0x7] sm:$0x1]  }
   0x5   :  { %s139_s3 = smov 56   ;;  %v110_v9 = vld [vmem:[%s207_s0 + $0x6] sm:$0x1]   ;;  %v111_v10 = vld [vmem:[%s207_s0 + $0x5] sm:$0x1]   ;;  %s140_s8 = smov 48  }
   0x6   :  { %s141_s9 = smov 40   ;;  %v112_v11 = vld [vmem:[%s207_s0 + $0x4] sm:$0x1]   ;;  %s142_s12 = smov 32   ;;  %v113_v12 = vld [vmem:[%s207_s0 + $0x3] sm:$0x1]  }
   0x7   :  { %v114_v13 = vld [vmem:[%s207_s0 + $0x2] sm:$0x1]   ;;  %s143_s17 = smov 24   ;;  %s144_s18 = smov 16   ;;  %v115_v14 = vld [vmem:[%s207_s0 + $0x1] sm:$0x1]  }
   0x8   :  { %s145_s21 = smov 8   ;;  %v2_v15 = vld [vmem:[%s207_s0] sm:$0x1]   ;;  %vm27_vm4 = vcmask 851712   ;;  %vm33_vm5 = vcmask 786112   ;;  %vm39_vm6 = vcmask 720512  }
   0x9   :  { %4 = vst.msk [vmem:[#allocation0] sm:$0x1] %vm3_vm0, %v2_v15   ;;  %vm45_vm7 = vcmask 654912   ;;  %vm51_vm8 = vcmask 589312   ;;  %vm57_vm9 = vcmask 523712   ;;  %vm63_vm10 = vcmask 458112  }
   0xa   :  { %13 = vrot.lane.b32.xlu0 %v102_v3, %s134_s19  ;;  %25 = vrot.lane.b32.xlu1 %v104_v4, %s135_s20  ;;  %vm69_vm11 = vcmask 392512   ;;  %vm75_vm12 = vcmask 326912   ;;  %vm81_vm13 = vcmask 261312   ;;  %vm87_vm14 = vcmask 195712  }
   0xb   :  { %37 = vrot.lane.b32.xlu2 %v106_v5, %s136_s23  ;;  %vm93_vm15 = vcmask 130112  }
  0x12   :  { %43 = vrot.lane.b32.xlu0 %v107_v6, %s137_s28  ;;  %49 = vrot.lane.b32.xlu1 %v108_v7, %s138_s29 }
  0x13   :  { %55 = vrot.lane.b32.xlu2 %v109_v8, %s139_s3 }
  0x1a   :  { %61 = vrot.lane.b32.xlu0 %v110_v9, %s140_s8  ;;  %67 = vrot.lane.b32.xlu1 %v111_v10, %s141_s9 }
  0x1b   :  { %73 = vrot.lane.b32.xlu2 %v112_v11, %s142_s12 }
  0x22   :  { %79 = vrot.lane.b32.xlu0 %v113_v12, %s143_s17  ;;  %85 = vrot.lane.b32.xlu1 %v114_v13, %s144_s18 }
  0x23   :  { %91 = vrot.lane.b32.xlu2 %v115_v14, %s145_s21 }
  0x5d   :  { %v32_v16 = vpop.permute.xlu2 %31  }
  0x65   :  { %v38_v17 = vpop.permute.xlu2 %37  }
  0x6d   :  { %v56_v18 = vpop.permute.xlu2 %55  }
  0x74   :  { %v8_v19 = vpop.permute.xlu0 %7   ;;  %v20_v20 = vpop.permute.xlu1 %19  }
  0x75   :  { %10 = vst.msk [vmem:[#allocation0] sm:$0x1] %vm9_vm1, %v8_v19   ;;  %v74_v21 = vpop.permute.xlu2 %73  }
  0x7c   :  { %v14_v22 = vpop.permute.xlu0 %13   ;;  %v26_v23 = vpop.permute.xlu1 %25  }
  0x7d   :  { %16 = vst.msk [vmem:[#allocation0] sm:$0x1] %vm15_vm2, %v14_v22   ;;  %v92_v24 = vpop.permute.xlu2 %91  }
  0x7e   :  { %22 = vst.msk [vmem:[#allocation0] sm:$0x1] %vm21_vm3, %v20_v20  }
  0x7f   :  { %28 = vst.msk [vmem:[#allocation0] sm:$0x1] %vm27_vm4, %v26_v23  }
  0x80   :  { %34 = vst.msk [vmem:[#allocation0] sm:$0x1] %vm33_vm5, %v32_v16  }
  0x81   :  { %40 = vst.msk [vmem:[#allocation0] sm:$0x1] %vm39_vm6, %v38_v17  }
  0x84   :  { %v44_v25 = vpop.permute.xlu0 %43   ;;  %v50_v26 = vpop.permute.xlu1 %49  }
  0x85   :  { %46 = vst.msk [vmem:[#allocation0] sm:$0x1] %vm45_vm7, %v44_v25  }
  0x86   :  { %52 = vst.msk [vmem:[#allocation0] sm:$0x1] %vm51_vm8, %v50_v26  }
  0x87   :  { %58 = vst.msk [vmem:[#allocation0] sm:$0x1] %vm57_vm9, %v56_v18  }
  0x8c   :  { %v62_v27 = vpop.permute.xlu0 %61   ;;  %v68_v28 = vpop.permute.xlu1 %67  }
  0x8d   :  { %64 = vst.msk [vmem:[#allocation0] sm:$0x1] %vm63_vm10, %v62_v27  }
  0x8e   :  { %70 = vst.msk [vmem:[#allocation0] sm:$0x1] %vm69_vm11, %v68_v28  }
  0x8f   :  { %76 = vst.msk [vmem:[#allocation0] sm:$0x1] %vm75_vm12, %v74_v21  }
  0x94   :  { %v80_v29 = vpop.permute.xlu0 %79   ;;  %v86_v30 = vpop.permute.xlu1 %85  }
  0x95   :  { %82 = vst.msk [vmem:[#allocation0] sm:$0x1] %vm81_vm13, %v80_v29  }
  0x96   :  { %88 = vst.msk [vmem:[#allocation0] sm:$0x1] %vm87_vm14, %v86_v30  }
  0x97   :  { %94 = vst.msk [vmem:[#allocation0] sm:$0x1] %vm93_vm15, %v92_v24  }
  0x9e   :  { %v97_v31 = vld [vmem:[#allocation0] sm:$0x1] }
  0x9f   :  { %100 = vst [vmem:[%s208_s1] sm:$0x1] %v97_v31 }

// kernel: down_forward.5
= control target key start
LH: loop header
LB: loop body
LE: loop exit
PB: predicated region body
PF: predicated region fallthrough
CT: control target
= control target key end

     0   :  { %s255_s12 = smov 0   ;;  %s291_s0 = inlined_call_operand.vmem [shape: f32[2,4,128], index: 0, kind: input, shape index: {}]   ;;  %s292_s1 = inlined_call_operand.vmem [shape: f32[1,128], index: 1, kind: input, shape index: {}]   ;;  %s293_s2 = inlined_call_operand.vmem [shape: f32[1,128], index: 2, kind: input, shape index: {}]   ;;  %s294_s3 = inlined_call_operand.vmem [shape: f32[2,4,128], index: 3, kind: output, shape index: {}]  }
   0x1 LB: > { %s232_s13 = sadd.s32 4294967295, %s257_s12   ;;  %p236_p0 = scmp.ge.s32.totalorder %s257_s12, 1  ;;  %s257_s12 = sphi %s255_s12, %s13_s12  }
   0x2   : > { %p136_p1 = scmp.lt.s32.totalorder %s257_s12, 3 }
   0x4   : > { %p137_p2 = pnand %p236_p0, %p136_p1 }
   0x5   : > { %p158_p3 = scmp.lt.s32.totalorder (!%p137_p2), %s232_s13, 1 }
   0x6   : > { %140 = sbr.rel (%p137_p2) target bundleno = 22 (0x16), region = 32 }
   0xb   : > { %s296_s13 = smov (!%p158_p3, %s232_s13), 1  ;;  %v249_v0 = vld [vmem:[%s292_s1] ss:$0 sm:$0xff] }
   0xc   : > { %s237_s16 = sshll.u32 %s296_s13, 2  ;;  %v250_v1 = vld [vmem:[%s293_s2] ss:$0 sm:$0xff] }
   0xd   : > { %s161_s19 = scalar_lea.vmem %s291_s0, %s237_s16  ;;  %s165_s24 = scalar_lea.vmem %s294_s3, %s237_s16 }
   0xe   : > { %v166_v2 = vld [vmem:[%s161_s19] sm:$0xf] }
   0xf   : > { %v171_v3 = vmul.f32 %v249_v0, %v166_v2 }
  0x11   : > { %v176_v4 = vadd.f32 %v250_v1, %v171_v3 }
  0x13   : > { %v177_v5 = vmax.f32 %v176_v4, 0.0 }
  0x15   : > { %178 = vst [vmem:[%s165_s24] sm:$0xf] %v177_v5 }
  0x16 PF: > { %s13_s12 = sadd.s32 1, %s257_s12  }
  0x17   : > { %p10_p4 = scmp.ge.s32.totalorder %s13_s12, 4  }
  0x19   :  { %12 = sbr.rel (!%p10_p4) target bundleno = 1 (0x1), region = 62 }

// kernel: down_forward.4
= control target key start
LH: loop header
LB: loop body
LE: loop exit
PB: predicated region body
PF: predicated region fallthrough
CT: control target
= control target key end

     0   :  { %s3052_s21 = smov 0   ;;  %s4627_s0 = inlined_call_operand.vmem [shape: f32[2,64,8], index: 0, kind: input, shape index: {}]   ;;  %s4628_s1 = inlined_call_operand.vmem [shape: f32[1,8], index: 1, kind: input, shape index: {}]   ;;  %s4629_s2 = inlined_call_operand.vmem [shape: f32[1,8], index: 2, kind: input, shape index: {}]   ;;  %s4630_s3 = inlined_call_operand.vmem [shape: f32[216,8], index: 3, kind: input, shape index: {}]   ;;  %s4631_s4 = inlined_call_operand.vmem [shape: f32[1,8], index: 4, kind: input, shape index: {}]   ;;  %s4632_s5 = inlined_call_operand.vmem [shape: f32[2,64,8], index: 5, kind: output, shape index: {0}]   ;;  %s4633_s6 = inlined_call_operand.vmem [shape: f32[2,2,8], index: 6, kind: output, shape index: {1}]  }
   0x1 LB: > { %s2548_s22 = sadd.s32 4294967295, %s2999_s21   ;;  %p2552_p0 = scmp.ge.s32.totalorder %s2999_s21, 1  ;;  %s2999_s21 = sphi %s3052_s21, %s17_s21  }
   0x2   : > { %p215_p1 = scmp.lt.s32.totalorder %s2999_s21, 3 }
   0x4   : > { %p216_p2 = pnand %p2552_p0, %p215_p1 }
   0x6   : > { %219 = sbr.rel (%p216_p2) target bundleno = 847 (0x34f), region = 40 }
   0xb   : > { %p249_p3 = scmp.lt.s32.totalorder %s2548_s22, 1  ;;  %v2990_v0 = vld [vmem:[%s4628_s1] ss:$0 sm:$0xff]  ;;  %vm386_vm0 = vcmask 1040384   ;;  %vm403_vm1 = vcmask 1044480   ;;  %v4640_v60 = vmov 0.0  }
   0xc   : > { %v2991_v1 = vld [vmem:[%s4629_s2] ss:$0 sm:$0xff]  ;;  %vm440_vm2 = vcmask 1042432   ;;  %vm441_vm3 = vcmask 1046532   ;;  %vm483_vm5 = vcmask 1041408   ;;  %vm484_vm6 = vcmask 1045508  }
   0xd   : > { %s4756_s22 = smov (!%p249_p3, %s2548_s22), 1  ;;  %vm3149_vm4 = vmor %vm440_vm2, %vm441_vm3  ;;  %s3002_s7 = smov 8   ;;  %vm1460_vm8 = vcmask 64512   ;;  %vm1469_vm9 = vcmask 130048   ;;  %vm1478_vm10 = vcmask 195584   ;;  %vm1487_vm11 = vcmask 261120  }
   0xe   : > { %s2602_s25 = sshll.u32 %s4756_s22, 6  ;;  %vm3261_vm7 = vmor %vm483_vm5, %vm484_vm6  ;;  %s3003_s8 = smov 16   ;;  %vm1496_vm12 = vcmask 326656   ;;  %vm1505_vm13 = vcmask 392192   ;;  %vm1514_vm14 = vcmask 457728   ;;  %vm1523_vm15 = vcmask 523264  }
   0xf   : > { %s3071_s28 = scalar_lea.vmem %s4627_s0, %s2602_s25  ;;  %s3004_s9 = smov 24   ;;  %vm1541_vm2 = vcmask 654336   ;;  %vm1550_vm3 = vcmask 719872   ;;  %vm1568_vm5 = vcmask 850944   ;;  %vm1586_vm6 = vcmask 982016  }
  0x10   : > { %v263_v2 = vld [vmem:[%s3071_s28] sm:$0xff]  ;;  %v264_v3 = vld [vmem:[%s3071_s28 + $0x8] sm:$0xff]  ;;  %v265_v4 = vld [vmem:[%s3071_s28 + $0x10] sm:$0xff]  ;;  %s3005_s10 = smov 32   ;;  %s3006_s11 = smov 40  }
  0x11   : > { %v266_v5 = vld [vmem:[%s3071_s28 + $0x18] sm:$0xff]  ;;  %v275_v6 = vmul.f32 %v2990_v0, %v263_v2  ;;  %v276_v7 = vmul.f32 %v2990_v0, %v264_v3  ;;  %v277_v8 = vmul.f32 %v2990_v0, %v265_v4  ;;  %v267_v14 = vld [vmem:[%s3071_s28 + $0x20] sm:$0xff]  ;;  %v268_v20 = vld [vmem:[%s3071_s28 + $0x28] sm:$0xff]  ;;  %s3007_s12 = smov 48   ;;  %s3008_s13 = smov 56  }
  0x12   : > { %v278_v11 = vmul.f32 %v2990_v0, %v266_v5  ;;  %v279_v18 = vmul.f32 %v2990_v0, %v267_v14  ;;  %v280_v23 = vmul.f32 %v2990_v0, %v268_v20  ;;  %v269_v26 = vld [vmem:[%s3071_s28 + $0x30] sm:$0xff]  ;;  %v270_v29 = vld [vmem:[%s3071_s28 + $0x38] sm:$0xff]  ;;  %v3124_v14 = vrot.slane %v4640_v60, 4  ;;  %s3009_s14 = smov 64   ;;  %s3010_s15 = smov 72  }
  0x13   : > { %v287_v9 = vadd.f32 %v2991_v1, %v275_v6  ;;  %v288_v10 = vadd.f32 %v2991_v1, %v276_v7  ;;  %v289_v12 = vadd.f32 %v2991_v1, %v277_v8  ;;  %v281_v33 = vmul.f32 %v2990_v0, %v269_v26  ;;  %s3011_s16 = smov 80   ;;  %s3012_s17 = smov 88  }
  0x14   : > { %v290_v17 = vadd.f32 %v2991_v1, %v278_v11  ;;  %v291_v24 = vadd.f32 %v2991_v1, %v279_v18  ;;  %v292_v31 = vadd.f32 %v2991_v1, %v280_v23  ;;  %v282_v35 = vmul.f32 %v2990_v0, %v270_v29  ;;  %s3013_s18 = smov 96   ;;  %s3014_s19 = smov 104  }
  0x15   : > { %v295_v13 = vmax.f32 %v287_v9, 0.0  ;;  %v296_v15 = vmax.f32 %v288_v10, 0.0  ;;  %v297_v19 = vmax.f32 %v289_v12, 0.0  ;;  %v293_v38 = vadd.f32 %v2991_v1, %v281_v33  ;;  %s3015_s20 = smov 112   ;;  %s3016_s23 = smov 120  }
  0x16   : > { %v298_v22 = vmax.f32 %v290_v17, 0.0  ;;  %v299_v34 = vmax.f32 %v291_v24, 0.0  ;;  %v300_v37 = vmax.f32 %v292_v31, 0.0  ;;  %v294_v42 = vadd.f32 %v2991_v1, %v282_v35 }
  0x17   : > { %v311_v16 = vrot.slane %v295_v13, 4  ;;  %319 = vst [vmem:[#allocation1] ss:$2 sm:$0xff] %v295_v13  ;;  %v312_v21 = vrot.slane %v296_v15, 4  ;;  %v313_v25 = vrot.slane %v297_v19, 4  ;;  %v301_v45 = vmax.f32 %v293_v38, 0.0 }
  0x18   : > { %325 = vst [vmem:[#allocation1 + $0x20] ss:$2 sm:$0xff] %v296_v15  ;;  %v314_v32 = vrot.slane %v298_v22, 4  ;;  %v315_v39 = vrot.slane %v299_v34, 4  ;;  %v316_v44 = vrot.slane %v300_v37, 4  ;;  %v302_v46 = vmax.f32 %v294_v42, 0.0 }
  0x19   : > { %322 = vst [vmem:[#allocation1 + $0x10] ss:$2 sm:$0xff] %v311_v16  ;;  %v317_v48 = vrot.slane %v301_v45, 4  ;;  %v445_v23 = vrot.slane %v3124_v14, 5 }
  0x1a   : > { %328 = vst [vmem:[#allocation1 + $0x30] ss:$2 sm:$0xff] %v312_v21  ;;  %v318_v50 = vrot.slane %v302_v46, 4 }
  0x1e   : > { %v320_v27 = vld.sshfl [vmem:[#allocation1] sm:$0xff pattern:$0x75316420] }
  0x1f   : > { %v326_v28 = vld.sshfl [vmem:[#allocation1 + $0x20] sm:$0xff pattern:$0x75316420]  ;;  %330 = vst [vmem:[#allocation1] ss:$2 sm:$0xff] %v297_v19  ;;  %v354_v51 = vrot.slane %v320_v27, 7 }
  0x20   : > { %v323_v30 = vld.sshfl [vmem:[#allocation1 + $0x10] sm:$0xff pattern:$0x75316420]  ;;  %334 = vst [vmem:[#allocation1 + $0x20] ss:$2 sm:$0xff] %v298_v22  ;;  %v356_v56 = vrot.slane %v326_v28, 7 }
  0x21   : > { %332 = vst [vmem:[#allocation1 + $0x10] ss:$2 sm:$0xff] %v313_v25  ;;  %v3084_v36 = vld.sshfl [vmem:[#allocation1 + $0x30] sm:$0xff pattern:$0x75316420]  ;;  %v355_v55 = vrot.slane %v323_v30, 7 }
  0x22   : > { %336 = vst [vmem:[#allocation1 + $0x30] ss:$2 sm:$0xff] %v314_v32  ;;  %v387_v57 = vsel %vm386_vm0, 0.0, %v354_v51  ;;  %v389_v62 = vsel %vm386_vm0, 0.0, %v356_v56  ;;  %v2558_v22 = vrot.slane %v4640_v60, 9 }
  0x23   : > { %v388_v61 = vsel %vm386_vm0, 0.0, %v355_v55  ;;  %v3097_v63 = vsel %vm403_vm1, %v387_v57, 0.0  ;;  %v3111_v6 = vsel %vm403_vm1, %v389_v62, 0.0 }
  0x24   : > { %v3108_v5 = vsel %vm403_vm1, %v388_v61, 0.0  ;;  %v431_v25 = vrot.slane %v3097_v63, 4  ;;  %v433_v31 = vrot.slane %v3111_v6, 4  ;;  %v3170_v33 = vsel %vm3149_vm4, %v2558_v22, %v445_v23 }
  0x25   : > { %v432_v30 = vrot.slane %v3108_v5, 4  ;;  %4678 = vst [vmem:[#allocation2_spill] sm:$0xff] %v3170_v33  ;;  %v2559_v35 = vrot.slane %v3097_v63, 9  ;;  %v2560_v38 = vrot.slane %v3108_v5, 9 }
  0x26   : > { %v331_v40 = vld.sshfl [vmem:[#allocation1] sm:$0xff pattern:$0x75316420]  ;;  %v457_v42 = vrot.slane %v433_v31, 5 }
  0x27   : > { %v335_v41 = vld.sshfl [vmem:[#allocation1 + $0x20] sm:$0xff pattern:$0x75316420]  ;;  %338 = vst [vmem:[#allocation1] ss:$2 sm:$0xff] %v299_v34  ;;  %v358_v59 = vrot.slane %v331_v40, 7 }
  0x28   : > { %v333_v43 = vld.sshfl [vmem:[#allocation1 + $0x10] sm:$0xff pattern:$0x75316420]  ;;  %342 = vst [vmem:[#allocation1 + $0x20] ss:$2 sm:$0xff] %v300_v37  ;;  %v360_v2 = vrot.slane %v335_v41, 7 }
  0x29   : > { %340 = vst [vmem:[#allocation1 + $0x10] ss:$2 sm:$0xff] %v315_v39  ;;  %v3086_v47 = vld.sshfl [vmem:[#allocation1 + $0x30] sm:$0xff pattern:$0x75316420]  ;;  %v359_v1 = vrot.slane %v333_v43, 7 }
  0x2a   : > { %344 = vst [vmem:[#allocation1 + $0x30] ss:$2 sm:$0xff] %v316_v44  ;;  %v391_v4 = vsel %vm386_vm0, 0.0, %v358_v59  ;;  %v393_v11 = vsel %vm386_vm0, 0.0, %v360_v2  ;;  %v449_v37 = vrot.slane %v431_v25, 5  ;;  %v453_v40 = vrot.slane %v432_v30, 5 }
  0x2b   : > { %v392_v9 = vsel %vm386_vm0, 0.0, %v359_v1  ;;  %v3121_v13 = vsel %vm403_vm1, %v391_v4, 0.0  ;;  %v3134_v18 = vsel %vm403_vm1, %v393_v11, 0.0  ;;  %v2561_v41 = vrot.slane %v3111_v6, 9 }
  0x2c   : > { %v3128_v15 = vsel %vm403_vm1, %v392_v9, 0.0  ;;  %v434_v34 = vrot.slane %v3121_v13, 4  ;;  %v436_v44 = vrot.slane %v3134_v18, 4  ;;  %v3204_v51 = vsel %vm3149_vm4, %v2560_v38, %v453_v40 }
  0x2d   : > { %v435_v43 = vrot.slane %v3128_v15, 4  ;;  %v2564_v57 = vrot.slane %v3134_v18, 9  ;;  %v488_v38 = vrot.slane %v3124_v14, 6 }
  0x2e   : > { %v339_v49 = vld.sshfl [vmem:[#allocation1] sm:$0xff pattern:$0x75316420]  ;;  %v469_v59 = vrot.slane %v436_v44, 5 }
  0x2f   : > { %346 = vst [vmem:[#allocation1] ss:$2 sm:$0xff] %v301_v45  ;;  %v343_v53 = vld.sshfl [vmem:[#allocation1 + $0x20] sm:$0xff pattern:$0x75316420]  ;;  %v362_v8 = vrot.slane %v339_v49, 7 }
  0x30   : > { %v341_v52 = vld.sshfl [vmem:[#allocation1 + $0x10] sm:$0xff pattern:$0x75316420]  ;;  %350 = vst [vmem:[#allocation1 + $0x20] ss:$2 sm:$0xff] %v302_v46  ;;  %v364_v12 = vrot.slane %v343_v53, 7  ;;  %v3239_v11 = vsel %vm3149_vm4, %v2564_v57, %v469_v59 }
  0x31   : > { %348 = vst [vmem:[#allocation1 + $0x10] ss:$2 sm:$0xff] %v317_v48  ;;  %v3088_v54 = vld.sshfl [vmem:[#allocation1 + $0x30] sm:$0xff pattern:$0x75316420]  ;;  %v363_v10 = vrot.slane %v341_v52, 7  ;;  %v3208_v52 = vsel %vm3149_vm4, %v2561_v41, %v457_v42 }
  0x32   : > { %352 = vst [vmem:[#allocation1 + $0x30] ss:$2 sm:$0xff] %v318_v50  ;;  %v395_v17 = vsel %vm386_vm0, 0.0, %v362_v8  ;;  %v397_v21 = vsel %vm386_vm0, 0.0, %v364_v12  ;;  %v2562_v46 = vrot.slane %v3121_v13, 9  ;;  %v461_v48 = vrot.slane %v434_v34, 5 }
  0x33   : > { %v396_v19 = vsel %vm386_vm0, 0.0, %v363_v10  ;;  %v3146_v24 = vsel %vm403_vm1, %v395_v17, 0.0  ;;  %v3160_v29 = vsel %vm403_vm1, %v397_v21, 0.0  ;;  %v2563_v49 = vrot.slane %v3128_v15, 9  ;;  %4680 = vst [vmem:[#allocation4_spill] sm:$0xff] %v3239_v11 }
  0x34   : > { %v3155_v27 = vsel %vm403_vm1, %v396_v19, 0.0  ;;  %v3199_v50 = vsel %vm3149_vm4, %v2559_v35, %v449_v37  ;;  %v437_v55 = vrot.slane %v3146_v24, 4  ;;  %v465_v56 = vrot.slane %v435_v43, 5 }
  0x35   : > { %v438_v61 = vrot.slane %v3155_v27, 4  ;;  %v439_v1 = vrot.slane %v3160_v29, 4  ;;  %v3227_v2 = vsel %vm3149_vm4, %v2562_v46, %v461_v48  ;;  %v2565_v4 = vrot.slane %v3146_v24, 9 }
  0x36   : > { %v3091_v58 = vld.sshfl [vmem:[#allocation1] sm:$0xff pattern:$0x75316420]  ;;  %4679 = vst [vmem:[#allocation3_spill] sm:$0xff] %v3227_v2  ;;  %v473_v8 = vrot.slane %v437_v55, 5  ;;  %v3235_v10 = vsel %vm3149_vm4, %v2563_v49, %v465_v56  ;;  %v2566_v12 = vrot.slane %v3155_v27, 9 }
  0x37   : > { %596 = vst [vmem:[#allocation1] ss:$2 sm:$0xff] %v4640_v60  ;;  %v3103_v3 = vld.sshfl [vmem:[#allocation1 + $0x20] sm:$0xff pattern:$0x75316420]  ;;  %v477_v17 = vrot.slane %v438_v61, 5 }
  0x38   : > { %v3099_v0 = vld.sshfl [vmem:[#allocation1 + $0x10] sm:$0xff pattern:$0x75316420]  ;;  %598 = vst [vmem:[#allocation1 + $0x1] ss:$2 sm:$0xff] %v4640_v60  ;;  %v2567_v19 = vrot.slane %v3160_v29, 9  ;;  %v3252_v35 = vsel %vm3149_vm4, %v2565_v4, %v473_v8 }
  0x39   : > { %600 = vst [vmem:[#allocation1 + $0x10] ss:$2 sm:$0xff] %v4640_v60  ;;  %v3113_v7 = vld.sshfl [vmem:[#allocation1 + $0x30] sm:$0xff pattern:$0x75316420]  ;;  %v481_v21 = vrot.slane %v439_v1, 5  ;;  %v3259_v41 = vsel %vm3149_vm4, %v2566_v12, %v477_v17 }
  0x3a   : > { %602 = vst [vmem:[#allocation1 + $0x11] ss:$2 sm:$0xff] %v4640_v60  ;;  %v2568_v37 = vrot.slane %v4640_v60, 10  ;;  %v2569_v49 = vrot.slane %v3097_v63, 10  ;;  %v492_v56 = vrot.slane %v431_v25, 6  ;;  %v2570_v4 = vrot.slane %v3108_v5, 10 }
  0x3b   : > { %604 = vst [vmem:[#allocation1 + $0x20] ss:$2 sm:$0xff] %v4640_v60  ;;  %v3269_v46 = vsel %vm3149_vm4, %v2567_v19, %v481_v21  ;;  %v496_v8 = vrot.slane %v432_v30, 6  ;;  %v500_v12 = vrot.slane %v433_v31, 6  ;;  %v2572_v25 = vrot.slane %v3121_v13, 10 }
  0x3c   : > { %606 = vst [vmem:[#allocation1 + $0x21] ss:$2 sm:$0xff] %v3097_v63  ;;  %v3275_v48 = vsel %vm3261_vm7, %v2568_v37, %v488_v38  ;;  %v3293_v21 = vsel %vm3261_vm7, %v2569_v49, %v492_v56  ;;  %v508_v37 = vrot.slane %v435_v43, 6  ;;  %v2574_v38 = vrot.slane %v3134_v18, 10 }
  0x3d   : > { %608 = vst [vmem:[#allocation1 + $0x30] ss:$2 sm:$0xff] %v3108_v5  ;;  %v3301_v31 = vsel %vm3261_vm7, %v2570_v4, %v496_v8  ;;  %v2575_v43 = vrot.slane %v3146_v24, 10  ;;  %v516_v56 = vrot.slane %v437_v55, 6  ;;  %v2576_v4 = vrot.slane %v3155_v27, 10 }
  0x3e   : > { %610 = vst [vmem:[#allocation1 + $0x31] ss:$2 sm:$0xff] %v3111_v6  ;;  %v520_v8 = vrot.slane %v438_v61, 6  ;;  %v2577_v55 = vrot.slane %v3160_v29, 10 }
  0x3f   : > { %v3130_v16 = vld.sshfl [vmem:[#allocation1] sm:$0xff pattern:$0x75316420] }
  0x40   : > { %615 = vst [vmem:[#allocation1] ss:$2 sm:$0xff] %v4640_v60 }
  0x41   : > { %v3138_v20 = vld.sshfl [vmem:[#allocation1 + $0x10] sm:$0xff pattern:$0x75316420]  ;;  %616 = vst [vmem:[#allocation1 + $0x1] ss:$2 sm:$0xff] %v3121_v13 }
  0x42   : > { %617 = vst [vmem:[#allocation1 + $0x10] ss:$2 sm:$0xff] %v3128_v15 }
  0x43   : > { %618 = vst [vmem:[#allocation1 + $0x11] ss:$2 sm:$0xff] %v3134_v18  ;;  %v3157_v28 = vld.sshfl [vmem:[#allocation1 + $0x20] sm:$0xff pattern:$0x75316420] }
  0x44   : > { %619 = vst [vmem:[#allocation1 + $0x20] ss:$2 sm:$0xff] %v4640_v60 }
  0x45   : > { %v3165_v32 = vld.sshfl [vmem:[#allocation1 + $0x30] sm:$0xff pattern:$0x75316420]  ;;  %620 = vst [vmem:[#allocation1 + $0x21] ss:$2 sm:$0xff] %v3146_v24 }
  0x46   : > { %621 = vst [vmem:[#allocation1 + $0x30] ss:$2 sm:$0xff] %v3155_v27 }
  0x47   : > { %622 = vst [vmem:[#allocation1 + $0x31] ss:$2 sm:$0xff] %v3160_v29 }
  0x48   : > { %v3179_v39 = vld.sshfl [vmem:[#allocation1] sm:$0xff pattern:$0x75316420] }
  0x49   : > { %635 = vst [vmem:[#allocation1] ss:$2 sm:$0xff] %v3170_v33 }
  0x4a   : > { %v3189_v45 = vld.sshfl [vmem:[#allocation1 + $0x10] sm:$0xff pattern:$0x75316420]  ;;  %637 = vst [vmem:[#allocation1 + $0x1] ss:$2 sm:$0xff] %v3170_v33 }
  0x4b   : > { %639 = vst [vmem:[#allocation1 + $0x10] ss:$2 sm:$0xff] %v3170_v33 }
  0x4c   : > { %641 = vst [vmem:[#allocation1 + $0x11] ss:$2 sm:$0xff] %v3170_v33  ;;  %v3210_v53 = vld.sshfl [vmem:[#allocation1 + $0x20] sm:$0xff pattern:$0x75316420] }
  0x4d   : > { %643 = vst [vmem:[#allocation1 + $0x20] ss:$2 sm:$0xff] %v3170_v33 }
  0x4e   : > { %v3220_v62 = vld.sshfl [vmem:[#allocation1 + $0x30] sm:$0xff pattern:$0x75316420]  ;;  %645 = vst [vmem:[#allocation1 + $0x21] ss:$2 sm:$0xff] %v3199_v50 }
  0x4f   : > { %647 = vst [vmem:[#allocation1 + $0x30] ss:$2 sm:$0xff] %v3204_v51 }
  0x50   : > { %649 = vst [vmem:[#allocation1 + $0x31] ss:$2 sm:$0xff] %v3208_v52 }
  0x51   : > { %v650_v9 = vld.sshfl [vmem:[#allocation1] sm:$0xff pattern:$0x75316420] }
  0x52   : > { %654 = vst [vmem:[#allocation1] ss:$2 sm:$0xff] %v3170_v33 }
  0x53   : > { %v651_v22 = vld.sshfl [vmem:[#allocation1 + $0x10] sm:$0xff pattern:$0x75316420]  ;;  %655 = vst [vmem:[#allocation1 + $0x1] ss:$2 sm:$0xff] %v3227_v2 }
  0x54   : > { %v2655_v23 = vpack.i.bf16 %v651_v22, %v650_v9  ;;  %656 = vst [vmem:[#allocation1 + $0x10] ss:$2 sm:$0xff] %v3235_v10  ;;  %v2571_v9 = vrot.slane %v3111_v6, 10  ;;  %v504_v22 = vrot.slane %v434_v34, 6 }
  0x55   : > { %657 = vst [vmem:[#allocation1 + $0x11] ss:$2 sm:$0xff] %v3239_v11  ;;  %v652_v40 = vld.sshfl [vmem:[#allocation1 + $0x20] sm:$0xff pattern:$0x75316420] }
  0x56   : > { %2656 = vrot.lane.b32.xlu0 %v2655_v23, %s3002_s7  ;;  %658 = vst [vmem:[#allocation1 + $0x20] ss:$2 sm:$0xff] %v3170_v33  ;;  %v2573_v23 = vrot.slane %v3128_v15, 10  ;;  %v3311_v34 = vsel %vm3261_vm7, %v2571_v9, %v500_v12  ;;  %v3319_v49 = vsel %vm3261_vm7, %v2572_v25, %v504_v22  ;;  %v524_v12 = vrot.slane %v439_v1, 6 }
  0x57   : > { %v653_v14 = vld.sshfl [vmem:[#allocation1 + $0x30] sm:$0xff pattern:$0x75316420]  ;;  %659 = vst [vmem:[#allocation1 + $0x21] ss:$2 sm:$0xff] %v3252_v35  ;;  %v3350_v25 = vsel %vm3261_vm7, %v2576_v4, %v520_v8  ;;  %v365_v8 = vrot.slane %v3088_v54, 7 }
  0x58   : > { %660 = vst [vmem:[#allocation1 + $0x30] ss:$2 sm:$0xff] %v3259_v41  ;;  %v2660_v59 = vpack.i.bf16 %v653_v14, %v652_v40  ;;  %v512_v14 = vrot.slane %v436_v44, 6  ;;  %v3354_v1 = vsel %vm3261_vm7, %v2577_v55, %v524_v12 }
  0x59   : > { %661 = vst [vmem:[#allocation1 + $0x31] ss:$2 sm:$0xff] %v3269_v46 }
  0x5a   : > { %v662_v57 = vld.sshfl [vmem:[#allocation1] sm:$0xff pattern:$0x75316420]  ;;  %4683 = vst [vmem:[#allocation5_spill] sm:$0xff] %v3319_v49  ;;  %v3334_v9 = vsel %vm3261_vm7, %v2574_v38, %v512_v14 }
  0x5b   : > { %690 = vst [vmem:[#allocation1] ss:$2 sm:$0xff] %v3275_v48 }
  0x5c   : > { %v663_v17 = vld.sshfl [vmem:[#allocation1 + $0x10] sm:$0xff pattern:$0x75316420]  ;;  %692 = vst [vmem:[#allocation1 + $0x1] ss:$2 sm:$0xff] %v3275_v48 }
  0x5d   : > { %v2665_v19 = vpack.i.bf16 %v663_v17, %v662_v57  ;;  %694 = vst [vmem:[#allocation1 + $0x10] ss:$2 sm:$0xff] %v3275_v48 }
  0x5e   : > { %2661 = vrot.lane.b32.xlu0 %v2660_v59, %s3002_s7  ;;  %v664_v30 = vld.sshfl [vmem:[#allocation1 + $0x20] sm:$0xff pattern:$0x75316420]  ;;  %696 = vst [vmem:[#allocation1 + $0x11] ss:$2 sm:$0xff] %v3275_v48  ;;  %v3327_v59 = vsel %vm3261_vm7, %v2573_v23, %v508_v37  ;;  %v357_v23 = vrot.slane %v3084_v36, 7 }
  0x5f   : > { %2666 = vrot.lane.b32.xlu1 %v2665_v19, %s3002_s7  ;;  %698 = vst [vmem:[#allocation1 + $0x20] ss:$2 sm:$0xff] %v3275_v48  ;;  %v3344_v19 = vsel %vm3261_vm7, %v2575_v43, %v516_v56  ;;  %v361_v56 = vrot.slane %v3086_v47, 7 }
  0x60   : > { %v665_v40 = vld.sshfl [vmem:[#allocation1 + $0x30] sm:$0xff pattern:$0x75316420]  ;;  %700 = vst [vmem:[#allocation1 + $0x21] ss:$2 sm:$0xff] %v3293_v21  ;;  %v390_v14 = vsel %vm386_vm0, 0.0, %v357_v23 }
  0x61   : > { %702 = vst [vmem:[#allocation1 + $0x30] ss:$2 sm:$0xff] %v3301_v31  ;;  %v2670_v57 = vpack.i.bf16 %v665_v40, %v664_v30  ;;  %v3372_v36 = vsel %vm403_vm1, %v390_v14, 0.0  ;;  %v394_v47 = vsel %vm386_vm0, 0.0, %v361_v56 }
  0x62   : > { %704 = vst [vmem:[#allocation1 + $0x31] ss:$2 sm:$0xff] %v3311_v34  ;;  %v3381_v12 = vsel %vm403_vm1, %v394_v47, 0.0  ;;  %v2578_v14 = vrot.slane %v3372_v36, 9 }
  0x63   : > { %v705_v44 = vld.sshfl [vmem:[#allocation1] sm:$0xff pattern:$0x75316420]  ;;  %4684 = vst [vmem:[#allocation6_spill] sm:$0xff] %v3334_v9 }
  0x64   : > { %709 = vst [vmem:[#allocation1] ss:$2 sm:$0xff] %v3275_v48 }
  0x65   : > { %v706_v17 = vld.sshfl [vmem:[#allocation1 + $0x10] sm:$0xff pattern:$0x75316420]  ;;  %710 = vst [vmem:[#allocation1 + $0x1] ss:$2 sm:$0xff] %v3319_v49 }
  0x66   : > { %711 = vst [vmem:[#allocation1 + $0x10] ss:$2 sm:$0xff] %v3327_v59  ;;  %v2675_v61 = vpack.i.bf16 %v706_v17, %v705_v44 }
  0x67   : > { %4685 = vst [vmem:[#allocation7_spill] sm:$0xff] %v3344_v19  ;;  %2671 = vrot.lane.b32.xlu1 %v2670_v57, %s3002_s7  ;;  %v707_v30 = vld.sshfl [vmem:[#allocation1 + $0x20] sm:$0xff pattern:$0x75316420] }
  0x68   : > { %712 = vst [vmem:[#allocation1 + $0x11] ss:$2 sm:$0xff] %v3334_v9  ;;  %2676 = vrot.lane.b32.xlu2 %v2675_v61, %s3003_s8  ;;  %v398_v61 = vsel %vm386_vm0, 0.0, %v365_v8 }
  0x69   : > { %4686 = vst [vmem:[#allocation8_spill] sm:$0xff] %v3350_v25  ;;  %v708_v22 = vld.sshfl [vmem:[#allocation1 + $0x30] sm:$0xff pattern:$0x75316420]  ;;  %v3390_v54 = vsel %vm403_vm1, %v398_v61, 0.0 }
  0x6a   : > { %4687 = vst [vmem:[#allocation9_spill] sm:$0xff] %v3354_v1  ;;  %v2680_v38 = vpack.i.bf16 %v708_v22, %v707_v30  ;;  %v531_v8 = vrot.slane %v3390_v54, 4 }
  0x6b   : > { %713 = vst [vmem:[#allocation1 + $0x20] ss:$2 sm:$0xff] %v3275_v48 }
  0x6c   : > { %714 = vst [vmem:[#allocation1 + $0x21] ss:$2 sm:$0xff] %v3344_v19  ;;  %v717_v37 = vld.sshfl [vmem:[#allocation1] sm:$0xff pattern:$0x75316420] }
  0x6d   : > { %715 = vst [vmem:[#allocation1 + $0x30] ss:$2 sm:$0xff] %v3350_v25 }
  0x6e   : > { %716 = vst [vmem:[#allocation1 + $0x31] ss:$2 sm:$0xff] %v3354_v1 }
  0x6f   : > { %745 = vst [vmem:[#allocation1] ss:$2 sm:$0xff] %v4640_v60  ;;  %v718_v40 = vld.sshfl [vmem:[#allocation1 + $0x10] sm:$0xff pattern:$0x75316420] }
  0x70   : > { %747 = vst [vmem:[#allocation1 + $0x1] ss:$2 sm:$0xff] %v4640_v60  ;;  %v2685_v43 = vpack.i.bf16 %v718_v40, %v717_v37  ;;  %2681 = vrot.lane.b32.xlu2 %v2680_v38, %s3003_s8  ;;  %v529_v37 = vrot.slane %v3372_v36, 4 }
  0x71   : > { %749 = vst [vmem:[#allocation1 + $0x10] ss:$2 sm:$0xff] %v4640_v60 }
  0x72   : > { %751 = vst [vmem:[#allocation1 + $0x11] ss:$2 sm:$0xff] %v4640_v60  ;;  %2686 = vrot.lane.b32.xlu0 %v2685_v43, %s3003_s8  ;;  %v534_v43 = vrot.slane %v529_v37, 5 }
  0x73   : > { %v719_v57 = vld.sshfl [vmem:[#allocation1 + $0x20] sm:$0xff pattern:$0x75316420] }
  0x74   : > { %753 = vst [vmem:[#allocation1 + $0x20] ss:$2 sm:$0xff] %v3097_v63  ;;  %v3407_v47 = vsel %vm3149_vm4, %v2578_v14, %v534_v43 }
  0x75   : > { %v720_v44 = vld.sshfl [vmem:[#allocation1 + $0x30] sm:$0xff pattern:$0x75316420]  ;;  %755 = vst [vmem:[#allocation1 + $0x21] ss:$2 sm:$0xff] %v3108_v5 }
  0x76   : > { %v2690_v4 = vpack.i.bf16 %v720_v44, %v719_v57  ;;  %757 = vst [vmem:[#allocation1 + $0x30] ss:$2 sm:$0xff] %v3111_v6  ;;  %v530_v57 = vrot.slane %v3381_v12, 4 }
  0x77   : > { %759 = vst [vmem:[#allocation1 + $0x31] ss:$2 sm:$0xff] %v3372_v36  ;;  %v760_v55 = vld.sshfl [vmem:[#allocation1] sm:$0xff pattern:$0x75316420] }
  0x78   : > { %2691 = vrot.lane.b32.xlu1 %v2690_v4, %s3003_s8  ;;  %764 = vst [vmem:[#allocation1] ss:$2 sm:$0xff] %v3121_v13  ;;  %v538_v61 = vrot.slane %v530_v57, 5 }
  0x79   : > { %v761_v17 = vld.sshfl [vmem:[#allocation1 + $0x10] sm:$0xff pattern:$0x75316420]  ;;  %765 = vst [vmem:[#allocation1 + $0x1] ss:$2 sm:$0xff] %v3128_v15 }
  0x7a   : > { %766 = vst [vmem:[#allocation1 + $0x10] ss:$2 sm:$0xff] %v3134_v18  ;;  %v2695_v30 = vpack.i.bf16 %v761_v17, %v760_v55  ;;  %v2579_v55 = vrot.slane %v3381_v12, 9 }
  0x7b   : > { %767 = vst [vmem:[#allocation1 + $0x11] ss:$2 sm:$0xff] %v3381_v12 }
  0x7c   : > { %v762_v22 = vld.sshfl [vmem:[#allocation1 + $0x20] sm:$0xff pattern:$0x75316420]  ;;  %2696 = vrot.lane.b32.xlu2 %v2695_v30, %s3004_s9  ;;  %4688 = vst [vmem:[#allocation10_spill] sm:$0xff] %v3407_v47 }
  0x7d   : > { %768 = vst [vmem:[#allocation1 + $0x20] ss:$2 sm:$0xff] %v3146_v24 }
  0x7e   : > { %v763_v23 = vld.sshfl [vmem:[#allocation1 + $0x30] sm:$0xff pattern:$0x75316420]  ;;  %769 = vst [vmem:[#allocation1 + $0x21] ss:$2 sm:$0xff] %v3155_v27 }
  0x7f   : > { %v2700_v38 = vpack.i.bf16 %v763_v23, %v762_v22  ;;  %770 = vst [vmem:[#allocation1 + $0x30] ss:$2 sm:$0xff] %v3160_v29  ;;  %v2580_v23 = vrot.slane %v3390_v54, 9 }
  0x80   : > { %771 = vst [vmem:[#allocation1 + $0x31] ss:$2 sm:$0xff] %v3390_v54  ;;  %v772_v40 = vld.sshfl [vmem:[#allocation1] sm:$0xff pattern:$0x75316420] }
  0x81   : > { %2701 = vrot.lane.b32.xlu0 %v2700_v38, %s3004_s9  ;;  %800 = vst [vmem:[#allocation1] ss:$2 sm:$0xff] %v3170_v33  ;;  %v542_v38 = vrot.slane %v531_v8, 5 }
  0x82   : > { %v773_v56 = vld.sshfl [vmem:[#allocation1 + $0x10] sm:$0xff pattern:$0x75316420]  ;;  %802 = vst [vmem:[#allocation1 + $0x1] ss:$2 sm:$0xff] %v3170_v33 }
  0x83   : > { %v2705_v44 = vpack.i.bf16 %v773_v56, %v772_v40  ;;  %804 = vst [vmem:[#allocation1 + $0x10] ss:$2 sm:$0xff] %v3170_v33  ;;  %v3420_v40 = vsel %vm3149_vm4, %v2579_v55, %v538_v61  ;;  %v2581_v61 = vrot.slane %v3372_v36, 10 }
  0x84   : > { %806 = vst [vmem:[#allocation1 + $0x11] ss:$2 sm:$0xff] %v3170_v33 }
  0x85   : > { %v774_v4 = vld.sshfl [vmem:[#allocation1 + $0x20] sm:$0xff pattern:$0x75316420]  ;;  %2706 = vrot.lane.b32.xlu1 %v2705_v44, %s3004_s9  ;;  %4689 = vst [vmem:[#allocation11_spill] sm:$0xff] %v3420_v40  ;;  %v3429_v44 = vsel %vm3149_vm4, %v2580_v23, %v542_v38 }
  0x86   : > { %808 = vst [vmem:[#allocation1 + $0x20] ss:$2 sm:$0xff] %v3199_v50 }
  0x87   : > { %v775_v17 = vld.sshfl [vmem:[#allocation1 + $0x30] sm:$0xff pattern:$0x75316420]  ;;  %810 = vst [vmem:[#allocation1 + $0x21] ss:$2 sm:$0xff] %v3204_v51 }
  0x88   : > { %812 = vst [vmem:[#allocation1 + $0x30] ss:$2 sm:$0xff] %v3208_v52  ;;  %v2710_v30 = vpack.i.bf16 %v775_v17, %v774_v4 }
  0x89   : > { %814 = vst [vmem:[#allocation1 + $0x31] ss:$2 sm:$0xff] %v3407_v47  ;;  %v815_v22 = vld.sshfl [vmem:[#allocation1] sm:$0xff pattern:$0x75316420] }
  0x8a   : > { %2711 = vrot.lane.b32.xlu2 %v2710_v30, %s3004_s9  ;;  %819 = vst [vmem:[#allocation1] ss:$2 sm:$0xff] %v3227_v2  ;;  %v546_v30 = vrot.slane %v529_v37, 6 }
  0x8b   : > { %v816_v14 = vld.sshfl [vmem:[#allocation1 + $0x10] sm:$0xff pattern:$0x75316420]  ;;  %820 = vst [vmem:[#allocation1 + $0x1] ss:$2 sm:$0xff] %v3235_v10 }
  0x8c   : > { %v2715_v43 = vpack.i.bf16 %v816_v14, %v815_v22  ;;  %821 = vst [vmem:[#allocation1 + $0x10] ss:$2 sm:$0xff] %v3239_v11  ;;  %v2582_v14 = vrot.slane %v3381_v12, 10 }
  0x8d   : > { %822 = vst [vmem:[#allocation1 + $0x11] ss:$2 sm:$0xff] %v3420_v40 }
  0x8e   : > { %v817_v56 = vld.sshfl [vmem:[#allocation1 + $0x20] sm:$0xff pattern:$0x75316420]  ;;  %2716 = vrot.lane.b32.xlu0 %v2715_v43, %s3005_s10  ;;  %4690 = vst [vmem:[#allocation12_spill] sm:$0xff] %v3429_v44  ;;  %v3444_v43 = vsel %vm3261_vm7, %v2581_v61, %v546_v30  ;;  %v2583_v61 = vrot.slane %v3390_v54, 10  ;;  %v554_v30 = vrot.slane %v531_v8, 6 }
  0x8f   : > { %823 = vst [vmem:[#allocation1 + $0x20] ss:$2 sm:$0xff] %v3252_v35 }
  0x90   : > { %v818_v4 = vld.sshfl [vmem:[#allocation1 + $0x30] sm:$0xff pattern:$0x75316420]  ;;  %824 = vst [vmem:[#allocation1 + $0x21] ss:$2 sm:$0xff] %v3259_v41 }
  0x91   : > { %v2720_v55 = vpack.i.bf16 %v818_v4, %v817_v56  ;;  %825 = vst [vmem:[#allocation1 + $0x30] ss:$2 sm:$0xff] %v3269_v46  ;;  %v550_v56 = vrot.slane %v530_v57, 6 }
  0x92   : > { %826 = vst [vmem:[#allocation1 + $0x31] ss:$2 sm:$0xff] %v3429_v44  ;;  %v827_v17 = vld.sshfl [vmem:[#allocation1] sm:$0xff pattern:$0x75316420] }
  0x93   : > { %2721 = vrot.lane.b32.xlu1 %v2720_v55, %s3005_s10  ;;  %855 = vst [vmem:[#allocation1] ss:$2 sm:$0xff] %v3275_v48 }
  0x94   : > { %v828_v22 = vld.sshfl [vmem:[#allocation1 + $0x10] sm:$0xff pattern:$0x75316420]  ;;  %857 = vst [vmem:[#allocation1 + $0x1] ss:$2 sm:$0xff] %v3275_v48 }
  0x95   : > { %859 = vst [vmem:[#allocation1 + $0x10] ss:$2 sm:$0xff] %v3275_v48  ;;  %v2725_v23 = vpack.i.bf16 %v828_v22, %v827_v17  ;;  %v3454_v17 = vsel %vm3261_vm7, %v2582_v14, %v550_v56 }
  0x96   : > { %861 = vst [vmem:[#allocation1 + $0x11] ss:$2 sm:$0xff] %v3275_v48 }
  0x97   : > { %v829_v38 = vld.sshfl [vmem:[#allocation1 + $0x20] sm:$0xff pattern:$0x75316420]  ;;  %4691 = vst [vmem:[#allocation13_spill] sm:$0xff] %v3444_v43  ;;  %2726 = vrot.lane.b32.xlu2 %v2725_v23, %s3005_s10 }
  0x98   : > { %863 = vst [vmem:[#allocation1 + $0x20] ss:$2 sm:$0xff] %v3293_v21 }
  0x99   : > { %v830_v37 = vld.sshfl [vmem:[#allocation1 + $0x30] sm:$0xff pattern:$0x75316420]  ;;  %865 = vst [vmem:[#allocation1 + $0x21] ss:$2 sm:$0xff] %v3301_v31 }
  0x9a   : > { %v2730_v4 = vpack.i.bf16 %v830_v37, %v829_v38  ;;  %867 = vst [vmem:[#allocation1 + $0x30] ss:$2 sm:$0xff] %v3311_v34  ;;  %v3463_v38 = vsel %vm3261_vm7, %v2583_v61, %v554_v30 }
  0x9b   : > { %869 = vst [vmem:[#allocation1 + $0x31] ss:$2 sm:$0xff] %v3444_v43  ;;  %v870_v55 = vld.sshfl [vmem:[#allocation1] sm:$0xff pattern:$0x75316420] }
  0x9c   : > { %2731 = vrot.lane.b32.xlu0 %v2730_v4, %s3005_s10  ;;  %874 = vst [vmem:[#allocation1] ss:$2 sm:$0xff] %v3319_v49 }
  0x9d   : > { %4692 = vst [vmem:[#allocation14_spill] sm:$0xff] %v3454_v17  ;;  %v871_v22 = vld.sshfl [vmem:[#allocation1 + $0x10] sm:$0xff pattern:$0x75316420] }
  0x9e   : > { %875 = vst [vmem:[#allocation1 + $0x1] ss:$2 sm:$0xff] %v3327_v59  ;;  %v2735_v57 = vpack.i.bf16 %v871_v22, %v870_v55 }
  0x9f   : > { %876 = vst [vmem:[#allocation1 + $0x10] ss:$2 sm:$0xff] %v3334_v9 }
  0xa0   : > { %877 = vst [vmem:[#allocation1 + $0x11] ss:$2 sm:$0xff] %v3454_v17  ;;  %v872_v23 = vld.sshfl [vmem:[#allocation1 + $0x20] sm:$0xff pattern:$0x75316420]  ;;  %2736 = vrot.lane.b32.xlu1 %v2735_v57, %s3006_s11 }
  0xa1   : > { %4693 = vst [vmem:[#allocation15_spill] sm:$0xff] %v3463_v38 }
  0xa2   : > { %878 = vst [vmem:[#allocation1 + $0x20] ss:$2 sm:$0xff] %v3344_v19  ;;  %v873_v14 = vld.sshfl [vmem:[#allocation1 + $0x30] sm:$0xff pattern:$0x75316420] }
  0xa3   : > { %879 = vst [vmem:[#allocation1 + $0x21] ss:$2 sm:$0xff] %v3350_v25  ;;  %v2740_v8 = vpack.i.bf16 %v873_v14, %v872_v23 }
  0xa4   : > { %880 = vst [vmem:[#allocation1 + $0x30] ss:$2 sm:$0xff] %v3354_v1 }
  0xa5   : > { %881 = vst [vmem:[#allocation1 + $0x31] ss:$2 sm:$0xff] %v3463_v38  ;;  %v882_v37 = vld.sshfl [vmem:[#allocation1] sm:$0xff pattern:$0x75316420]  ;;  %2741 = vrot.lane.b32.xlu2 %v2740_v8, %s3006_s11 }
  0xa6   : > { %910 = vst [vmem:[#allocation1] ss:$2 sm:$0xff] %v4640_v60 }
  0xa7   : > { %v883_v56 = vld.sshfl [vmem:[#allocation1 + $0x10] sm:$0xff pattern:$0x75316420]  ;;  %912 = vst [vmem:[#allocation1 + $0x1] ss:$2 sm:$0xff] %v4640_v60 }
  0xa8   : > { %v2745_v4 = vpack.i.bf16 %v883_v56, %v882_v37  ;;  %914 = vst [vmem:[#allocation1 + $0x10] ss:$2 sm:$0xff] %v4640_v60 }
  0xa9   : > { %916 = vst [vmem:[#allocation1 + $0x11] ss:$2 sm:$0xff] %v4640_v60 }
  0xaa   : > { %v884_v55 = vld.sshfl [vmem:[#allocation1 + $0x20] sm:$0xff pattern:$0x75316420]  ;;  %2746 = vrot.lane.b32.xlu0 %v2745_v4, %s3006_s11 }
  0xab   : > { %918 = vst [vmem:[#allocation1 + $0x20] ss:$2 sm:$0xff] %v3108_v5 }
  0xac   : > { %v885_v61 = vld.sshfl [vmem:[#allocation1 + $0x30] sm:$0xff pattern:$0x75316420]  ;;  %920 = vst [vmem:[#allocation1 + $0x21] ss:$2 sm:$0xff] %v3111_v6 }
  0xad   : > { %v2750_v30 = vpack.i.bf16 %v885_v61, %v884_v55  ;;  %922 = vst [vmem:[#allocation1 + $0x30] ss:$2 sm:$0xff] %v3372_v36 }
  0xae   : > { %924 = vst [vmem:[#allocation1 + $0x31] ss:$2 sm:$0xff] %v4640_v60  ;;  %v925_v22 = vld.sshfl [vmem:[#allocation1] sm:$0xff pattern:$0x75316420] }
  0xaf   : > { %2751 = vrot.lane.b32.xlu1 %v2750_v30, %s3006_s11  ;;  %929 = vst [vmem:[#allocation1] ss:$2 sm:$0xff] %v3128_v15 }
  0xb0   : > { %v926_v57 = vld.sshfl [vmem:[#allocation1 + $0x10] sm:$0xff pattern:$0x75316420]  ;;  %930 = vst [vmem:[#allocation1 + $0x1] ss:$2 sm:$0xff] %v3134_v18 }
  0xb1   : > { %931 = vst [vmem:[#allocation1 + $0x10] ss:$2 sm:$0xff] %v3381_v12  ;;  %v2755_v23 = vpack.i.bf16 %v926_v57, %v925_v22 }
  0xb2   : > { %932 = vst [vmem:[#allocation1 + $0x11] ss:$2 sm:$0xff] %v4640_v60 }
  0xb3   : > { %v927_v14 = vld.sshfl [vmem:[#allocation1 + $0x20] sm:$0xff pattern:$0x75316420]  ;;  %2756 = vrot.lane.b32.xlu2 %v2755_v23, %s3007_s12 }
  0xb4   : > { %933 = vst [vmem:[#allocation1 + $0x20] ss:$2 sm:$0xff] %v3155_v27 }
  0xb5   : > { %v928_v8 = vld.sshfl [vmem:[#allocation1 + $0x30] sm:$0xff pattern:$0x75316420]  ;;  %934 = vst [vmem:[#allocation1 + $0x21] ss:$2 sm:$0xff] %v3160_v29 }
  0xb6   : > { %v2760_v37 = vpack.i.bf16 %v928_v8, %v927_v14  ;;  %935 = vst [vmem:[#allocation1 + $0x30] ss:$2 sm:$0xff] %v3390_v54 }
  0xb7   : > { %936 = vst [vmem:[#allocation1 + $0x31] ss:$2 sm:$0xff] %v4640_v60  ;;  %v937_v56 = vld.sshfl [vmem:[#allocation1] sm:$0xff pattern:$0x75316420] }
  0xb8   : > { %2761 = vrot.lane.b32.xlu0 %v2760_v37, %s3007_s12  ;;  %965 = vst [vmem:[#allocation1] ss:$2 sm:$0xff] %v3170_v33 }
  0xb9   : > { %v938_v4 = vld.sshfl [vmem:[#allocation1 + $0x10] sm:$0xff pattern:$0x75316420]  ;;  %967 = vst [vmem:[#allocation1 + $0x1] ss:$2 sm:$0xff] %v3170_v33 }
  0xba   : > { %v2765_v55 = vpack.i.bf16 %v938_v4, %v937_v56  ;;  %969 = vst [vmem:[#allocation1 + $0x10] ss:$2 sm:$0xff] %v3170_v33 }
  0xbb   : > { %971 = vst [vmem:[#allocation1 + $0x11] ss:$2 sm:$0xff] %v3170_v33 }
  0xbc   : > { %v939_v61 = vld.sshfl [vmem:[#allocation1 + $0x20] sm:$0xff pattern:$0x75316420]  ;;  %2766 = vrot.lane.b32.xlu1 %v2765_v55, %s3007_s12 }
  0xbd   : > { %973 = vst [vmem:[#allocation1 + $0x20] ss:$2 sm:$0xff] %v3204_v51 }
  0xbe   : > { %v940_v30 = vld.sshfl [vmem:[#allocation1 + $0x30] sm:$0xff pattern:$0x75316420]  ;;  %975 = vst [vmem:[#allocation1 + $0x21] ss:$2 sm:$0xff] %v3208_v52 }
  0xbf   : > { %977 = vst [vmem:[#allocation1 + $0x30] ss:$2 sm:$0xff] %v3407_v47  ;;  %v2770_v22 = vpack.i.bf16 %v940_v30, %v939_v61 }
  0xc0   : > { %979 = vst [vmem:[#allocation1 + $0x31] ss:$2 sm:$0xff] %v3170_v33  ;;  %v980_v57 = vld.sshfl [vmem:[#allocation1] sm:$0xff pattern:$0x75316420] }
  0xc1   : > { %2771 = vrot.lane.b32.xlu2 %v2770_v22, %s3007_s12  ;;  %984 = vst [vmem:[#allocation1] ss:$2 sm:$0xff] %v3235_v10 }
  0xc2   : > { %v981_v23 = vld.sshfl [vmem:[#allocation1 + $0x10] sm:$0xff pattern:$0x75316420]  ;;  %985 = vst [vmem:[#allocation1 + $0x1] ss:$2 sm:$0xff] %v3239_v11 }
  0xc3   : > { %v2775_v14 = vpack.i.bf16 %v981_v23, %v980_v57  ;;  %986 = vst [vmem:[#allocation1 + $0x10] ss:$2 sm:$0xff] %v3420_v40 }
  0xc4   : > { %987 = vst [vmem:[#allocation1 + $0x11] ss:$2 sm:$0xff] %v3170_v33 }
  0xc5   : > { %v982_v8 = vld.sshfl [vmem:[#allocation1 + $0x20] sm:$0xff pattern:$0x75316420]  ;;  %2776 = vrot.lane.b32.xlu0 %v2775_v14, %s3008_s13 }
  0xc6   : > { %988 = vst [vmem:[#allocation1 + $0x20] ss:$2 sm:$0xff] %v3259_v41 }
  0xc7   : > { %v983_v37 = vld.sshfl [vmem:[#allocation1 + $0x30] sm:$0xff pattern:$0x75316420]  ;;  %989 = vst [vmem:[#allocation1 + $0x21] ss:$2 sm:$0xff] %v3269_v46 }
  0xc8   : > { %v2780_v56 = vpack.i.bf16 %v983_v37, %v982_v8  ;;  %990 = vst [vmem:[#allocation1 + $0x30] ss:$2 sm:$0xff] %v3429_v44 }
  0xc9   : > { %991 = vst [vmem:[#allocation1 + $0x31] ss:$2 sm:$0xff] %v3170_v33  ;;  %v992_v4 = vld.sshfl [vmem:[#allocation1] sm:$0xff pattern:$0x75316420] }
  0xca   : > { %2781 = vrot.lane.b32.xlu1 %v2780_v56, %s3008_s13  ;;  %1020 = vst [vmem:[#allocation1] ss:$2 sm:$0xff] %v3275_v48 }
  0xcb   : > { %v993_v55 = vld.sshfl [vmem:[#allocation1 + $0x10] sm:$0xff pattern:$0x75316420]  ;;  %1022 = vst [vmem:[#allocation1 + $0x1] ss:$2 sm:$0xff] %v3275_v48 }
  0xcc   : > { %1024 = vst [vmem:[#allocation1 + $0x10] ss:$2 sm:$0xff] %v3275_v48  ;;  %v2785_v61 = vpack.i.bf16 %v993_v55, %v992_v4 }
  0xcd   : > { %1026 = vst [vmem:[#allocation1 + $0x11] ss:$2 sm:$0xff] %v3275_v48 }
  0xce   : > { %v994_v30 = vld.sshfl [vmem:[#allocation1 + $0x20] sm:$0xff pattern:$0x75316420]  ;;  %2786 = vrot.lane.b32.xlu2 %v2785_v61, %s3008_s13 }
  0xcf   : > { %1028 = vst [vmem:[#allocation1 + $0x20] ss:$2 sm:$0xff] %v3301_v31 }
  0xd0   : > { %v995_v22 = vld.sshfl [vmem:[#allocation1 + $0x30] sm:$0xff pattern:$0x75316420]  ;;  %1030 = vst [vmem:[#allocation1 + $0x21] ss:$2 sm:$0xff] %v3311_v34 }
  0xd1   : > { %v2790_v57 = vpack.i.bf16 %v995_v22, %v994_v30  ;;  %1032 = vst [vmem:[#allocation1 + $0x30] ss:$2 sm:$0xff] %v3444_v43 }
  0xd2   : > { %1034 = vst [vmem:[#allocation1 + $0x31] ss:$2 sm:$0xff] %v3275_v48  ;;  %v1035_v23 = vld.sshfl [vmem:[#allocation1] sm:$0xff pattern:$0x75316420] }
  0xd3   : > { %2791 = vrot.lane.b32.xlu0 %v2790_v57, %s3008_s13  ;;  %1039 = vst [vmem:[#allocation1] ss:$2 sm:$0xff] %v3327_v59  ;;  %v366_v57 = vrot.slane %v3091_v58, 7 }
  0xd4   : > { %v1036_v14 = vld.sshfl [vmem:[#allocation1 + $0x10] sm:$0xff pattern:$0x75316420]  ;;  %1040 = vst [vmem:[#allocation1 + $0x1] ss:$2 sm:$0xff] %v3334_v9 }
  0xd5   : > { %v2795_v8 = vpack.i.bf16 %v1036_v14, %v1035_v23  ;;  %1041 = vst [vmem:[#allocation1 + $0x10] ss:$2 sm:$0xff] %v3454_v17  ;;  %v2677_v23 = vpop.permute.xlu2 %2676  ;;  %v2657_v14 = vpop.permute.xlu0 %2656  ;;  %v399_v58 = vsel %vm386_vm0, 0.0, %v366_v57 }
  0xd6   : > { %1042 = vst [vmem:[#allocation1 + $0x11] ss:$2 sm:$0xff] %v3275_v48 }
  0xd7   : > { %v1037_v37 = vld.sshfl [vmem:[#allocation1 + $0x20] sm:$0xff pattern:$0x75316420]  ;;  %2796 = vrot.lane.b32.xlu1 %v2795_v8, %s3009_s14  ;;  %v367_v8 = vrot.slane %v3099_v0, 7 }
  0xd8   : > { %1043 = vst [vmem:[#allocation1 + $0x20] ss:$2 sm:$0xff] %v3350_v25 }
  0xd9   : > { %v1038_v56 = vld.sshfl [vmem:[#allocation1 + $0x30] sm:$0xff pattern:$0x75316420]  ;;  %1044 = vst [vmem:[#allocation1 + $0x21] ss:$2 sm:$0xff] %v3354_v1 }
  0xda   : > { %1045 = vst [vmem:[#allocation1 + $0x30] ss:$2 sm:$0xff] %v3463_v38  ;;  %v2800_v4 = vpack.i.bf16 %v1038_v56, %v1037_v37  ;;  %v368_v56 = vrot.slane %v3103_v3, 7  ;;  %v3549_v3 = vsel %vm403_vm1, %v399_v58, 0.0 }
  0xdb   : > { %1046 = vst [vmem:[#allocation1 + $0x31] ss:$2 sm:$0xff] %v3275_v48  ;;  %v1047_v55 = vld.sshfl [vmem:[#allocation1] sm:$0xff pattern:$0x75316420] }
  0xdc   : > { %2801 = vrot.lane.b32.xlu2 %v2800_v4, %s3009_s14  ;;  %1075 = vst [vmem:[#allocation1] ss:$2 sm:$0xff] %v4640_v60  ;;  %v401_v0 = vsel %vm386_vm0, 0.0, %v368_v56 }
  0xdd   : > { %v1048_v61 = vld.sshfl [vmem:[#allocation1 + $0x10] sm:$0xff pattern:$0x75316420]  ;;  %1077 = vst [vmem:[#allocation1 + $0x1] ss:$2 sm:$0xff] %v3097_v63  ;;  %v3556_v56 = vpop.permute.xlu2 %2681  ;;  %v3561_v58 = vsel %vm403_vm1, %v401_v0, 0.0 }
  0xde   : > { %v2805_v30 = vpack.i.bf16 %v1048_v61, %v1047_v55  ;;  %1079 = vst [vmem:[#allocation1 + $0x10] ss:$2 sm:$0xff] %v3108_v5  ;;  %v400_v61 = vsel %vm386_vm0, 0.0, %v367_v8  ;;  %v2667_v8 = vpop.permute.xlu1 %2666 }
  0xdf   : > { %1081 = vst [vmem:[#allocation1 + $0x11] ss:$2 sm:$0xff] %v3111_v6  ;;  %v3553_v57 = vsel %vm403_vm1, %v400_v61, 0.0  ;;  %v2668_v44 = vunpack.i.l.bf16 %v2667_v8 }
  0xe0   : > { %v1049_v22 = vld.sshfl [vmem:[#allocation1 + $0x20] sm:$0xff pattern:$0x75316420]  ;;  %2806 = vrot.lane.b32.xlu0 %v2805_v30, %s3009_s14 }
  0xe1   : > { %1083 = vst [vmem:[#allocation1 + $0x20] ss:$2 sm:$0xff] %v4640_v60 }
  0xe2   : > { %v1050_v37 = vld.sshfl [vmem:[#allocation1 + $0x30] sm:$0xff pattern:$0x75316420]  ;;  %1085 = vst [vmem:[#allocation1 + $0x21] ss:$2 sm:$0xff] %v3121_v13 }
  0xe3   : > { %v2810_v4 = vpack.i.bf16 %v1050_v37, %v1049_v22  ;;  %1087 = vst [vmem:[#allocation1 + $0x30] ss:$2 sm:$0xff] %v3128_v15  ;;  %v2659_v37 = vunpack.i.h.bf16 %v2657_v14 }
  0xe4   : > { %1089 = vst [vmem:[#allocation1 + $0x31] ss:$2 sm:$0xff] %v3134_v18  ;;  %v1090_v55 = vld.sshfl [vmem:[#allocation1] sm:$0xff pattern:$0x75316420] }
  0xe5   : > { %2811 = vrot.lane.b32.xlu1 %v2810_v4, %s3009_s14  ;;  %1094 = vst [vmem:[#allocation1] ss:$2 sm:$0xff] %v4640_v60  ;;  %v2658_v4 = vunpack.i.l.bf16 %v2657_v14  ;;  %v2679_v14 = vunpack.i.h.bf16 %v2677_v23  ;;  %v1462_v43 = vsel %vm1460_vm8, %v3138_v20, %v2659_v37  ;;  %v2584_v37 = vrot.slane %v3549_v3, 9 }
  0xe6   : > { %v1091_v30 = vld.sshfl [vmem:[#allocation1 + $0x10] sm:$0xff pattern:$0x75316420]  ;;  %1095 = vst [vmem:[#allocation1 + $0x1] ss:$2 sm:$0xff] %v3146_v24 }
  0xe7   : > { %1096 = vst [vmem:[#allocation1 + $0x10] ss:$2 sm:$0xff] %v3155_v27  ;;  %v2815_v22 = vpack.i.bf16 %v1091_v30, %v1090_v55  ;;  %v3563_v55 = vpop.permute.xlu0 %2661  ;;  %v2678_v30 = vunpack.i.l.bf16 %v2677_v23  ;;  %v1471_v23 = vsel %vm1469_vm9, %v1462_v43, %v2679_v14  ;;  %v1465_v14 = vsel %vm1460_vm8, %v3179_v39, %v2668_v44 }
  0xe8   : > { %1097 = vst [vmem:[#allocation1 + $0x11] ss:$2 sm:$0xff] %v3160_v29  ;;  %v2664_v47 = vunpack.i.h.bf16 %v3563_v55 }
  0xe9   : > { %v1092_v38 = vld.sshfl [vmem:[#allocation1 + $0x20] sm:$0xff pattern:$0x75316420]  ;;  %2816 = vrot.lane.b32.xlu2 %v2815_v22, %s3010_s15  ;;  %v2669_v22 = vunpack.i.h.bf16 %v2667_v8  ;;  %v2697_v8 = vpop.permute.xlu2 %2696 }
  0xea   : > { %1098 = vst [vmem:[#allocation1 + $0x20] ss:$2 sm:$0xff] %v4640_v60  ;;  %v1461_v60 = vsel %vm1460_vm8, %v3130_v16, %v2658_v4  ;;  %v2672_v4 = vpop.permute.xlu1 %2671 }
  0xeb   : > { %v1093_v61 = vld.sshfl [vmem:[#allocation1 + $0x30] sm:$0xff pattern:$0x75316420]  ;;  %1099 = vst [vmem:[#allocation1 + $0x21] ss:$2 sm:$0xff] %v3549_v3  ;;  %v1466_v43 = vsel %vm1460_vm8, %v3189_v45, %v2669_v22  ;;  %v2663_v45 = vunpack.i.l.bf16 %v3563_v55  ;;  %v2585_v55 = vrot.slane %v3553_v57, 9 }
  0xec   : > { %v2820_v17 = vpack.i.bf16 %v1093_v61, %v1092_v38  ;;  %1100 = vst [vmem:[#allocation1 + $0x30] ss:$2 sm:$0xff] %v3553_v57  ;;  %v1470_v38 = vsel %vm1469_vm9, %v1461_v60, %v2678_v30  ;;  %v2699_v30 = vunpack.i.h.bf16 %v2697_v8 }
  0xed   : > { %1101 = vst [vmem:[#allocation1 + $0x31] ss:$2 sm:$0xff] %v3561_v58  ;;  %v1102_v0 = vld.sshfl [vmem:[#allocation1] sm:$0xff pattern:$0x75316420] }
  0xee   : > { %2821 = vrot.lane.b32.xlu0 %v2820_v17, %s3010_s15  ;;  %1130 = vst [vmem:[#allocation1] ss:$2 sm:$0xff] %v3170_v33  ;;  %v3593_v39 = vsel %vm1478_vm10, %v1471_v23, %v2699_v30  ;;  %v4695_v23 = vrot.slane %v3553_v57, 4  ;;  %v2586_v30 = vrot.slane %v3561_v58, 9 }
  0xef   : > { %v1103_v61 = vld.sshfl [vmem:[#allocation1 + $0x10] sm:$0xff pattern:$0x75316420]  ;;  %1132 = vst [vmem:[#allocation1 + $0x1] ss:$2 sm:$0xff] %v3199_v50 }
  0xf0   : > { %v2825_v16 = vpack.i.bf16 %v1103_v61, %v1102_v0  ;;  %1134 = vst [vmem:[#allocation1 + $0x10] ss:$2 sm:$0xff] %v3204_v51  ;;  %v2698_v0 = vunpack.i.l.bf16 %v2697_v8  ;;  %v2687_v61 = vpop.permute.xlu0 %2686 }
  0xf1   : > { %1136 = vst [vmem:[#allocation1 + $0x11] ss:$2 sm:$0xff] %v3208_v52  ;;  %v2689_v17 = vunpack.i.h.bf16 %v2687_v61  ;;  %v2688_v20 = vunpack.i.l.bf16 %v2687_v61 }
  0xf2   : > { %v1104_v60 = vld.sshfl [vmem:[#allocation1 + $0x20] sm:$0xff pattern:$0x75316420]  ;;  %2826 = vrot.lane.b32.xlu1 %v2825_v16, %s3010_s15  ;;  %v3596_v44 = vsel %vm1478_vm10, %v1470_v38, %v2698_v0  ;;  %v4694_v16 = vrot.slane %v3549_v3, 4  ;;  %v568_v38 = vrot.slane %v4695_v23, 5  ;;  %v1463_v23 = vsel %vm1460_vm8, %v3157_v28, %v2663_v45 }
  0xf3   : > { %1138 = vst [vmem:[#allocation1 + $0x20] ss:$2 sm:$0xff] %v3170_v33  ;;  %v3602_v61 = vsel %vm1469_vm9, %v1466_v43, %v2689_v17  ;;  %v2684_v17 = vunpack.i.h.bf16 %v3556_v56  ;;  %v2674_v43 = vunpack.i.h.bf16 %v2672_v4 }
  0xf4   : > { %v1105_v40 = vld.sshfl [vmem:[#allocation1 + $0x30] sm:$0xff pattern:$0x75316420]  ;;  %1140 = vst [vmem:[#allocation1 + $0x21] ss:$2 sm:$0xff] %v3227_v2  ;;  %v564_v8 = vrot.slane %v4694_v16, 5  ;;  %v3605_v2 = vsel %vm1469_vm9, %v1465_v14, %v2688_v20  ;;  %v2683_v20 = vunpack.i.l.bf16 %v3556_v56  ;;  %v2673_v14 = vunpack.i.l.bf16 %v2672_v4  ;;  %v2692_v4 = vpop.permute.xlu1 %2691 }
  0xf5   : > { %1142 = vst [vmem:[#allocation1 + $0x30] ss:$2 sm:$0xff] %v3235_v10  ;;  %v2830_v22 = vpack.i.bf16 %v1105_v40, %v1104_v60  ;;  %v4696_v40 = vrot.slane %v3561_v58, 4  ;;  %v1464_v16 = vsel %vm1460_vm8, %v3165_v32, %v2664_v47  ;;  %v3630_v56 = vsel %vm3149_vm4, %v2585_v55, %v568_v38 }
  0xf6   : > { %1144 = vst [vmem:[#allocation1 + $0x31] ss:$2 sm:$0xff] %v3239_v11  ;;  %v1145_v0 = vld.sshfl [vmem:[#allocation1] sm:$0xff pattern:$0x75316420]  ;;  %v1467_v47 = vsel %vm1460_vm8, %v3210_v53, %v2673_v14  ;;  %v1472_v45 = vsel %vm1469_vm9, %v1463_v23, %v2683_v20  ;;  %v2694_v55 = vunpack.i.h.bf16 %v2692_v4  ;;  %v2693_v38 = vunpack.i.l.bf16 %v2692_v4 }
  0xf7   : > { %v572_v60 = vrot.slane %v4696_v40, 5  ;;  %2831 = vrot.lane.b32.xlu2 %v2830_v22, %s3010_s15  ;;  %1149 = vst [vmem:[#allocation1] ss:$2 sm:$0xff] %v3170_v33  ;;  %v3626_v22 = vsel %vm3149_vm4, %v2584_v37, %v564_v8  ;;  %v2712_v37 = vpop.permute.xlu2 %2711  ;;  %v1473_v8 = vsel %vm1469_vm9, %v1464_v16, %v2684_v17 }
  0xf8   : > { %v1146_v11 = vld.sshfl [vmem:[#allocation1 + $0x10] sm:$0xff pattern:$0x75316420]  ;;  %1150 = vst [vmem:[#allocation1 + $0x1] ss:$2 sm:$0xff] %v3252_v35  ;;  %v1476_v17 = vsel %vm1469_vm9, %v1467_v47, %v2693_v38 }
  0xf9   : > { %v2835_v40 = vpack.i.bf16 %v1146_v11, %v1145_v0  ;;  %1151 = vst [vmem:[#allocation1 + $0x10] ss:$2 sm:$0xff] %v3259_v41  ;;  %v3634_v32 = vsel %vm3149_vm4, %v2586_v30, %v572_v60  ;;  %v1468_v11 = vsel %vm1460_vm8, %v3220_v62, %v2674_v43  ;;  %v2714_v30 = vunpack.i.h.bf16 %v2712_v37  ;;  %v2702_v0 = vpop.permute.xlu0 %2701 }
  0xfa   : > { %4697 = vst [vmem:[#allocation16_spill] sm:$0xff] %v3626_v22  ;;  %v2713_v60 = vunpack.i.l.bf16 %v2712_v37  ;;  %v2704_v53 = vunpack.i.h.bf16 %v2702_v0  ;;  %v2703_v43 = vunpack.i.l.bf16 %v2702_v0  ;;  %v1477_v20 = vsel %vm1469_vm9, %v1468_v11, %v2694_v55 }
  0xfb   : > { %1152 = vst [vmem:[#allocation1 + $0x11] ss:$2 sm:$0xff] %v3269_v46  ;;  %v1147_v28 = vld.sshfl [vmem:[#allocation1 + $0x20] sm:$0xff pattern:$0x75316420]  ;;  %2836 = vrot.lane.b32.xlu0 %v2835_v40, %s3011_s16  ;;  %v3651_v16 = vsel %vm1478_vm10, %v1477_v20, %v2714_v30  ;;  %v2587_v37 = vrot.slane %v3549_v3, 10 }
  0xfc   : > { %1153 = vst [vmem:[#allocation1 + $0x20] ss:$2 sm:$0xff] %v3170_v33  ;;  %v3654_v23 = vsel %vm1478_vm10, %v1476_v17, %v2713_v60  ;;  %v3657_v40 = vsel %vm1478_vm10, %v1473_v8, %v2704_v53  ;;  %v3660_v4 = vsel %vm1478_vm10, %v1472_v45, %v2703_v43  ;;  %v4698_v55 = vrot.slane %v3549_v3, 4  ;;  %v2707_v45 = vpop.permute.xlu1 %2706 }
  0xfd   : > { %v1148_v62 = vld.sshfl [vmem:[#allocation1 + $0x30] sm:$0xff pattern:$0x75316420]  ;;  %1154 = vst [vmem:[#allocation1 + $0x21] ss:$2 sm:$0xff] %v3626_v22  ;;  %v2709_v60 = vunpack.i.h.bf16 %v2707_v45  ;;  %v2708_v0 = vunpack.i.l.bf16 %v2707_v45  ;;  %v2588_v17 = vrot.slane %v3553_v57, 10 }
  0xfe   : > { %v2840_v14 = vpack.i.bf16 %v1148_v62, %v1147_v28  ;;  %1155 = vst [vmem:[#allocation1 + $0x30] ss:$2 sm:$0xff] %v3630_v56  ;;  %v576_v8 = vrot.slane %v4698_v55, 6  ;;  %v4699_v55 = vrot.slane %v3553_v57, 4 }
  0xff   : > { %1156 = vst [vmem:[#allocation1 + $0x31] ss:$2 sm:$0xff] %v3634_v32  ;;  %v1157_v28 = vld.sshfl [vmem:[#allocation1] sm:$0xff pattern:$0x75316420]  ;;  %v2727_v30 = vpop.permute.xlu2 %2726  ;;  %v1483_v45 = vsel %vm1478_vm10, %v3605_v2, %v2708_v0  ;;  %v2589_v2 = vrot.slane %v3561_v58, 10 }
 0x100   : > { %2841 = vrot.lane.b32.xlu1 %v2840_v14, %s3011_s16  ;;  %1185 = vst [vmem:[#allocation1] ss:$2 sm:$0xff] %v3275_v48  ;;  %v2729_v62 = vunpack.i.h.bf16 %v2727_v30  ;;  %v2728_v53 = vunpack.i.l.bf16 %v2727_v30  ;;  %v580_v33 = vrot.slane %v4699_v55, 6 }
 0x101   : > { %1187 = vst [vmem:[#allocation1 + $0x1] ss:$2 sm:$0xff] %v3293_v21  ;;  %v2717_v43 = vpop.permute.xlu0 %2716 }
 0x102   : > { %v1158_v11 = vld.sshfl [vmem:[#allocation1 + $0x10] sm:$0xff pattern:$0x75316420]  ;;  %v2719_v20 = vunpack.i.h.bf16 %v2717_v43 }
 0x103   : > { %1189 = vst [vmem:[#allocation1 + $0x10] ss:$2 sm:$0xff] %v3301_v31  ;;  %v2845_v47 = vpack.i.bf16 %v1158_v11, %v1157_v28  ;;  %v2718_v28 = vunpack.i.l.bf16 %v2717_v43 }
 0x104   : > { %v1159_v38 = vld.sshfl [vmem:[#allocation1 + $0x20] sm:$0xff pattern:$0x75316420]  ;;  %1191 = vst [vmem:[#allocation1 + $0x11] ss:$2 sm:$0xff] %v3311_v34 }
 0x105   : > { %1193 = vst [vmem:[#allocation1 + $0x20] ss:$2 sm:$0xff] %v3275_v48  ;;  %2846 = vrot.lane.b32.xlu2 %v2845_v47, %s3011_s16  ;;  %v1484_v47 = vsel %vm1478_vm10, %v3602_v61, %v2709_v60  ;;  %v3694_v43 = vsel %vm1487_vm11, %v3596_v44, %v2718_v28  ;;  %v4700_v60 = vrot.slane %v3561_v58, 4  ;;  %v3709_v44 = vsel %vm3261_vm7, %v2588_v17, %v580_v33 }
 0x106   : > { %v1160_v14 = vld.sshfl [vmem:[#allocation1 + $0x30] sm:$0xff pattern:$0x75316420]  ;;  %1195 = vst [vmem:[#allocation1 + $0x21] ss:$2 sm:$0xff] %v3319_v49  ;;  %v3683_v30 = vsel %vm1487_vm11, %v1484_v47, %v2729_v62  ;;  %v3686_v49 = vsel %vm1487_vm11, %v1483_v45, %v2728_v53 }
 0x107   : > { %v2850_v11 = vpack.i.bf16 %v1160_v14, %v1159_v38  ;;  %1197 = vst [vmem:[#allocation1 + $0x30] ss:$2 sm:$0xff] %v3327_v59  ;;  %v3690_v38 = vsel %vm1487_vm11, %v3593_v39, %v2719_v20  ;;  %v584_v0 = vrot.slane %v4700_v60, 6  ;;  %v3705_v39 = vsel %vm3261_vm7, %v2587_v37, %v576_v8  ;;  %v2722_v14 = vpop.permute.xlu1 %2721  ;;  %v2742_v20 = vpop.permute.xlu2 %2741 }
 0x108   : > { %1199 = vst [vmem:[#allocation1 + $0x31] ss:$2 sm:$0xff] %v3334_v9  ;;  %v1200_v61 = vld.sshfl [vmem:[#allocation1] sm:$0xff pattern:$0x75316420]  ;;  %v2723_v55 = vunpack.i.l.bf16 %v2722_v14  ;;  %v2744_v47 = vunpack.i.h.bf16 %v2742_v20  ;;  %v2743_v45 = vunpack.i.l.bf16 %v2742_v20 }
 0x109   : > { %2851 = vrot.lane.b32.xlu0 %v2850_v11, %s3011_s16  ;;  %1204 = vst [vmem:[#allocation1] ss:$2 sm:$0xff] %v3275_v48  ;;  %v2724_v11 = vunpack.i.h.bf16 %v2722_v14  ;;  %v3715_v37 = vsel %vm3261_vm7, %v2589_v2, %v584_v0 }
 0x10a   : > { %1205 = vst [vmem:[#allocation1 + $0x1] ss:$2 sm:$0xff] %v3344_v19  ;;  %v1490_v17 = vsel %vm1487_vm11, %v3660_v4, %v2723_v55 }
 0x10b   : > { %v1201_v62 = vld.sshfl [vmem:[#allocation1 + $0x10] sm:$0xff pattern:$0x75316420]  ;;  %4701 = vst [vmem:[#allocation17_spill] sm:$0xff] %v3705_v39  ;;  %v1491_v8 = vsel %vm1487_vm11, %v3657_v40, %v2724_v11  ;;  %v3728_v2 = vsel %vm1496_vm12, %v1490_v17, %v2743_v45  ;;  %v369_v17 = vrot.slane %v3113_v7, 7 }
 0x10c   : > { %v2855_v53 = vpack.i.bf16 %v1201_v62, %v1200_v61  ;;  %1206 = vst [vmem:[#allocation1 + $0x10] ss:$2 sm:$0xff] %v3350_v25  ;;  %v3725_v62 = vsel %vm1496_vm12, %v1491_v8, %v2744_v47 }
 0x10d   : > { %4702 = vst [vmem:[#allocation18_spill] sm:$0xff] %v3709_v44  ;;  %v1202_v28 = vld.sshfl [vmem:[#allocation1 + $0x20] sm:$0xff pattern:$0x75316420] }
 0x10e   : > { %1207 = vst [vmem:[#allocation1 + $0x11] ss:$2 sm:$0xff] %v3354_v1  ;;  %2856 = vrot.lane.b32.xlu1 %v2855_v53, %s3012_s17  ;;  %v2732_v61 = vpop.permute.xlu0 %2731 }
 0x10f   : > { %4703 = vst [vmem:[#allocation19_spill] sm:$0xff] %v3715_v37  ;;  %v1203_v33 = vld.sshfl [vmem:[#allocation1 + $0x30] sm:$0xff pattern:$0x75316420]  ;;  %v2734_v0 = vunpack.i.h.bf16 %v2732_v61  ;;  %v2733_v53 = vunpack.i.l.bf16 %v2732_v61  ;;  %v2757_v47 = vpop.permute.xlu2 %2756 }
 0x110   : > { %1208 = vst [vmem:[#allocation1 + $0x20] ss:$2 sm:$0xff] %v3275_v48  ;;  %v2860_v60 = vpack.i.bf16 %v1203_v33, %v1202_v28  ;;  %v2759_v45 = vunpack.i.h.bf16 %v2757_v47 }
 0x111   : > { %1209 = vst [vmem:[#allocation1 + $0x21] ss:$2 sm:$0xff] %v3705_v39  ;;  %v1212_v14 = vld.sshfl [vmem:[#allocation1] sm:$0xff pattern:$0x75316420]  ;;  %v1495_v40 = vsel %vm1487_vm11, %v3651_v16, %v2734_v0  ;;  %v1494_v4 = vsel %vm1487_vm11, %v3654_v23, %v2733_v53  ;;  %v2758_v23 = vunpack.i.l.bf16 %v2757_v47 }
 0x112   : > { %1210 = vst [vmem:[#allocation1 + $0x30] ss:$2 sm:$0xff] %v3709_v44  ;;  %2861 = vrot.lane.b32.xlu2 %v2860_v60, %s3012_s17  ;;  %v2737_v55 = vpop.permute.xlu1 %2736 }
 0x113   : > { %1211 = vst [vmem:[#allocation1 + $0x31] ss:$2 sm:$0xff] %v3715_v37  ;;  %v2738_v16 = vunpack.i.l.bf16 %v2737_v55 }
 0x114   : > { %1240 = vst [vmem:[#allocation1] ss:$2 sm:$0xff] %v3097_v63  ;;  %v2739_v63 = vunpack.i.h.bf16 %v2737_v55 }
 0x115   : > { %v1213_v20 = vld.sshfl [vmem:[#allocation1 + $0x10] sm:$0xff pattern:$0x75316420]  ;;  %1242 = vst [vmem:[#allocation1 + $0x1] ss:$2 sm:$0xff] %v3108_v5  ;;  %v1497_v60 = vsel %vm1496_vm12, %v3694_v43, %v2738_v16 }
 0x116   : > { %v2865_v28 = vpack.i.bf16 %v1213_v20, %v1212_v14  ;;  %1244 = vst [vmem:[#allocation1 + $0x10] ss:$2 sm:$0xff] %v3111_v6  ;;  %v1498_v61 = vsel %vm1496_vm12, %v3690_v38, %v2739_v63  ;;  %v3754_v53 = vsel %vm1505_vm13, %v1497_v60, %v2758_v23  ;;  %v402_v38 = vsel %vm386_vm0, 0.0, %v369_v17 }
 0x117   : > { %1246 = vst [vmem:[#allocation1 + $0x11] ss:$2 sm:$0xff] %v3372_v36  ;;  %v3751_v0 = vsel %vm1505_vm13, %v1498_v61, %v2759_v45  ;;  %v3765_v47 = vsel %vm403_vm1, %v402_v38, 0.0  ;;  %vm1532_vm1 = vcmask 588800  }
 0x118   : > { %v1214_v11 = vld.sshfl [vmem:[#allocation1 + $0x20] sm:$0xff pattern:$0x75316420]  ;;  %2866 = vrot.lane.b32.xlu0 %v2865_v28, %s3012_s17  ;;  %4704 = vst [vmem:[#allocation20_spill] sm:$0xff] %v3754_v53 }
 0x119   : > { %1248 = vst [vmem:[#allocation1 + $0x20] ss:$2 sm:$0xff] %v3121_v13 }
 0x11a   : > { %v1215_v33 = vld.sshfl [vmem:[#allocation1 + $0x30] sm:$0xff pattern:$0x75316420]  ;;  %1250 = vst [vmem:[#allocation1 + $0x21] ss:$2 sm:$0xff] %v3128_v15 }
 0x11b   : > { %v2870_v8 = vpack.i.bf16 %v1215_v33, %v1214_v11  ;;  %1252 = vst [vmem:[#allocation1 + $0x30] ss:$2 sm:$0xff] %v3134_v18  ;;  %v2772_v45 = vpop.permute.xlu2 %2771 }
 0x11c   : > { %1254 = vst [vmem:[#allocation1 + $0x31] ss:$2 sm:$0xff] %v3381_v12  ;;  %v1255_v14 = vld.sshfl [vmem:[#allocation1] sm:$0xff pattern:$0x75316420]  ;;  %v2747_v20 = vpop.permute.xlu0 %2746  ;;  %v2773_v17 = vunpack.i.l.bf16 %v2772_v45 }
 0x11d   : > { %2871 = vrot.lane.b32.xlu1 %v2870_v8, %s3012_s17  ;;  %1259 = vst [vmem:[#allocation1] ss:$2 sm:$0xff] %v3146_v24  ;;  %v2749_v28 = vunpack.i.h.bf16 %v2747_v20  ;;  %v2748_v11 = vunpack.i.l.bf16 %v2747_v20  ;;  %v2774_v8 = vunpack.i.h.bf16 %v2772_v45 }
 0x11e   : > { %v1256_v7 = vld.sshfl [vmem:[#allocation1 + $0x10] sm:$0xff pattern:$0x75316420]  ;;  %1260 = vst [vmem:[#allocation1 + $0x1] ss:$2 sm:$0xff] %v3155_v27 }
 0x11f   : > { %1261 = vst [vmem:[#allocation1 + $0x10] ss:$2 sm:$0xff] %v3160_v29  ;;  %v2875_v43 = vpack.i.bf16 %v1256_v7, %v1255_v14  ;;  %v1502_v63 = vsel %vm1496_vm12, %v3683_v30, %v2749_v28  ;;  %v1501_v16 = vsel %vm1496_vm12, %v3686_v49, %v2748_v11  ;;  %v4705_v11 = vld [vmem:[#allocation10_spill] sm:$0xff] }
 0x120   : > { %1262 = vst [vmem:[#allocation1 + $0x11] ss:$2 sm:$0xff] %v3390_v54 }
 0x121   : > { %v1257_v55 = vld.sshfl [vmem:[#allocation1 + $0x20] sm:$0xff pattern:$0x75316420]  ;;  %2876 = vrot.lane.b32.xlu2 %v2875_v43, %s3013_s18  ;;  %v2752_v33 = vpop.permute.xlu1 %2751 }
 0x122   : > { %1263 = vst [vmem:[#allocation1 + $0x20] ss:$2 sm:$0xff] %v3549_v3  ;;  %v2754_v60 = vunpack.i.h.bf16 %v2752_v33  ;;  %v2753_v14 = vunpack.i.l.bf16 %v2752_v33 }
 0x123   : > { %v1258_v23 = vld.sshfl [vmem:[#allocation1 + $0x30] sm:$0xff pattern:$0x75316420]  ;;  %1264 = vst [vmem:[#allocation1 + $0x21] ss:$2 sm:$0xff] %v3553_v57 }
 0x124   : > { %v2880_v61 = vpack.i.bf16 %v1258_v23, %v1257_v55  ;;  %1265 = vst [vmem:[#allocation1 + $0x30] ss:$2 sm:$0xff] %v3561_v58  ;;  %v1504_v7 = vsel %vm1496_vm12, %v1495_v40, %v2754_v60  ;;  %v1503_v49 = vsel %vm1496_vm12, %v1494_v4, %v2753_v14  ;;  %v4706_v40 = vld [vmem:[#allocation3_spill] sm:$0xff]  ;;  %v4656_v4 = vrot.slane %v3765_v47, 4  ;;  %v4707_v23 = vld [vmem:[#allocation4_spill] sm:$0xff] }
 0x125   : > { %1266 = vst [vmem:[#allocation1 + $0x31] ss:$2 sm:$0xff] %v3765_v47  ;;  %v1267_v30 = vld.sshfl [vmem:[#allocation1] sm:$0xff pattern:$0x75316420]  ;;  %v3779_v38 = vsel %vm1505_vm13, %v1504_v7, %v2774_v8  ;;  %v3782_v20 = vsel %vm1505_vm13, %v1503_v49, %v2773_v17  ;;  %v2590_v7 = vrot.slane %v3765_v47, 9 }
 0x126   : > { %2881 = vrot.lane.b32.xlu0 %v2880_v61, %s3013_s18  ;;  %1295 = vst [vmem:[#allocation1] ss:$2 sm:$0xff] %v3199_v50  ;;  %v4708_v61 = vld [vmem:[#allocation11_spill] sm:$0xff]  ;;  %v590_v49 = vrot.slane %v4656_v4, 5 }
 0x127   : > { %v1268_v43 = vld.sshfl [vmem:[#allocation1 + $0x10] sm:$0xff pattern:$0x75316420]  ;;  %1297 = vst [vmem:[#allocation1 + $0x1] ss:$2 sm:$0xff] %v3204_v51 }
 0x128   : > { %v2885_v28 = vpack.i.bf16 %v1268_v43, %v1267_v30  ;;  %1299 = vst [vmem:[#allocation1 + $0x10] ss:$2 sm:$0xff] %v3208_v52  ;;  %v2787_v43 = vpop.permute.xlu2 %2786  ;;  %v3809_v4 = vsel %vm3149_vm4, %v2590_v7, %v590_v49  ;;  %vm1559_vm4 = vcmask 785408  }
 0x129   : > { %1301 = vst [vmem:[#allocation1 + $0x11] ss:$2 sm:$0xff] %v4705_v11 }
 0x12a   : > { %v1269_v55 = vld.sshfl [vmem:[#allocation1 + $0x20] sm:$0xff pattern:$0x75316420]  ;;  %2886 = vrot.lane.b32.xlu1 %v2885_v28, %s3013_s18  ;;  %v2762_v45 = vpop.permute.xlu0 %2761 }
 0x12b   : > { %1303 = vst [vmem:[#allocation1 + $0x20] ss:$2 sm:$0xff] %v4706_v40  ;;  %v2764_v8 = vunpack.i.h.bf16 %v2762_v45  ;;  %v2763_v17 = vunpack.i.l.bf16 %v2762_v45  ;;  %v2788_v45 = vunpack.i.l.bf16 %v2787_v43 }
 0x12c   : > { %v1270_v50 = vld.sshfl [vmem:[#allocation1 + $0x30] sm:$0xff pattern:$0x75316420]  ;;  %1305 = vst [vmem:[#allocation1 + $0x21] ss:$2 sm:$0xff] %v3235_v10 }
 0x12d   : > { %1307 = vst [vmem:[#allocation1 + $0x30] ss:$2 sm:$0xff] %v4707_v23  ;;  %v2890_v33 = vpack.i.bf16 %v1270_v50, %v1269_v55  ;;  %v1509_v14 = vsel %vm1505_vm13, %v3725_v62, %v2764_v8  ;;  %v1508_v30 = vsel %vm1505_vm13, %v3728_v2, %v2763_v17  ;;  %v2789_v50 = vunpack.i.h.bf16 %v2787_v43  ;;  %v4709_v2 = vld [vmem:[#allocation12_spill] sm:$0xff] }
 0x12e   : > { %1309 = vst [vmem:[#allocation1 + $0x31] ss:$2 sm:$0xff] %v4708_v61  ;;  %v1310_v60 = vld.sshfl [vmem:[#allocation1] sm:$0xff pattern:$0x75316420]  ;;  %v2767_v55 = vpop.permute.xlu1 %2766 }
 0x12f   : > { %2891 = vrot.lane.b32.xlu2 %v2890_v33, %s3013_s18  ;;  %1314 = vst [vmem:[#allocation1] ss:$2 sm:$0xff] %v3252_v35  ;;  %v2769_v62 = vunpack.i.h.bf16 %v2767_v55  ;;  %v2768_v8 = vunpack.i.l.bf16 %v2767_v55 }
 0x130   : > { %v1311_v28 = vld.sshfl [vmem:[#allocation1 + $0x10] sm:$0xff pattern:$0x75316420]  ;;  %1315 = vst [vmem:[#allocation1 + $0x1] ss:$2 sm:$0xff] %v3259_v41 }
 0x131   : > { %v2895_v33 = vpack.i.bf16 %v1311_v28, %v1310_v60  ;;  %1316 = vst [vmem:[#allocation1 + $0x10] ss:$2 sm:$0xff] %v3269_v46  ;;  %v1511_v53 = vsel %vm1505_vm13, %v1502_v63, %v2769_v62  ;;  %v1510_v60 = vsel %vm1505_vm13, %v1501_v16, %v2768_v8 }
 0x132   : > { %1317 = vst [vmem:[#allocation1 + $0x11] ss:$2 sm:$0xff] %v4709_v2  ;;  %v3815_v28 = vsel %vm1514_vm14, %v1511_v53, %v2789_v50  ;;  %v3818_v55 = vsel %vm1514_vm14, %v1510_v60, %v2788_v45  ;;  %v4711_v50 = vld [vmem:[#allocation13_spill] sm:$0xff] }
 0x133   : > { %v1312_v17 = vld.sshfl [vmem:[#allocation1 + $0x20] sm:$0xff pattern:$0x75316420]  ;;  %2896 = vrot.lane.b32.xlu0 %v2895_v33, %s3014_s19 }
 0x134   : > { %1318 = vst [vmem:[#allocation1 + $0x20] ss:$2 sm:$0xff] %v3626_v22  ;;  %v4712_v45 = vld [vmem:[#allocation5_spill] sm:$0xff] }
 0x135   : > { %v1313_v43 = vld.sshfl [vmem:[#allocation1 + $0x30] sm:$0xff pattern:$0x75316420]  ;;  %1319 = vst [vmem:[#allocation1 + $0x21] ss:$2 sm:$0xff] %v3630_v56 }
 0x136   : > { %v2900_v33 = vpack.i.bf16 %v1313_v43, %v1312_v17  ;;  %1320 = vst [vmem:[#allocation1 + $0x30] ss:$2 sm:$0xff] %v3634_v32  ;;  %v2802_v62 = vpop.permute.xlu2 %2801 }
 0x137   : > { %1321 = vst [vmem:[#allocation1 + $0x31] ss:$2 sm:$0xff] %v3809_v4  ;;  %v1322_v26 = vld.sshfl [vmem:[#allocation1] sm:$0xff pattern:$0x75316420]  ;;  %v3825_v16 = vpop.permute.xlu0 %2776  ;;  %v2804_v60 = vunpack.i.h.bf16 %v2802_v62  ;;  %v2803_v43 = vunpack.i.l.bf16 %v2802_v62 }
 0x138   : > { %2901 = vrot.lane.b32.xlu1 %v2900_v33, %s3014_s19  ;;  %1350 = vst [vmem:[#allocation1] ss:$2 sm:$0xff] %v3293_v21  ;;  %v2779_v7 = vunpack.i.h.bf16 %v3825_v16 }
 0x139   : > { %v1323_v63 = vld.sshfl [vmem:[#allocation1 + $0x10] sm:$0xff pattern:$0x75316420]  ;;  %1352 = vst [vmem:[#allocation1 + $0x1] ss:$2 sm:$0xff] %v3301_v31 }
 0x13a   : > { %4710 = vst [vmem:[#allocation10_spill] sm:$0xff] %v3825_v16  ;;  %v2905_v53 = vpack.i.bf16 %v1323_v63, %v1322_v26  ;;  %v1516_v21 = vsel %vm1514_vm14, %v3751_v0, %v2779_v7  ;;  %v4713_v16 = vld [vmem:[#allocation14_spill] sm:$0xff] }
 0x13b   : > { %1354 = vst [vmem:[#allocation1 + $0x10] ss:$2 sm:$0xff] %v3311_v34 }
 0x13c   : > { %v1324_v49 = vld.sshfl [vmem:[#allocation1 + $0x20] sm:$0xff pattern:$0x75316420]  ;;  %1356 = vst [vmem:[#allocation1 + $0x11] ss:$2 sm:$0xff] %v4711_v50  ;;  %2906 = vrot.lane.b32.xlu2 %v2905_v53, %s3014_s19  ;;  %v2782_v17 = vpop.permute.xlu1 %2781 }
 0x13d   : > { %1358 = vst [vmem:[#allocation1 + $0x20] ss:$2 sm:$0xff] %v4712_v45  ;;  %v2784_v26 = vunpack.i.h.bf16 %v2782_v17  ;;  %v2783_v63 = vunpack.i.l.bf16 %v2782_v17  ;;  %v2591_v45 = vrot.slane %v3765_v47, 10 }
 0x13e   : > { %v1325_v8 = vld.sshfl [vmem:[#allocation1 + $0x30] sm:$0xff pattern:$0x75316420]  ;;  %1360 = vst [vmem:[#allocation1 + $0x21] ss:$2 sm:$0xff] %v3327_v59 }
 0x13f   : > { %v2910_v33 = vpack.i.bf16 %v1325_v8, %v1324_v49  ;;  %1362 = vst [vmem:[#allocation1 + $0x30] ss:$2 sm:$0xff] %v3334_v9  ;;  %v1518_v0 = vsel %vm1514_vm14, %v1509_v14, %v2784_v26  ;;  %v1517_v7 = vsel %vm1514_vm14, %v1508_v30, %v2783_v63  ;;  %v4714_v49 = vrot.slane %v3765_v47, 4  ;;  %v4716_v14 = vld [vmem:[#allocation15_spill] sm:$0xff] }
 0x140   : > { %1364 = vst [vmem:[#allocation1 + $0x31] ss:$2 sm:$0xff] %v4713_v16  ;;  %v1365_v53 = vld.sshfl [vmem:[#allocation1] sm:$0xff pattern:$0x75316420]  ;;  %v3845_v8 = vsel %vm1523_vm15, %v1518_v0, %v2804_v60  ;;  %v3848_v17 = vsel %vm1523_vm15, %v1517_v7, %v2803_v43 }
 0x141   : > { %2911 = vrot.lane.b32.xlu0 %v2910_v33, %s3014_s19  ;;  %1369 = vst [vmem:[#allocation1] ss:$2 sm:$0xff] %v3344_v19  ;;  %v594_v62 = vrot.slane %v4714_v49, 6 }
 0x142   : > { %4715 = vst [vmem:[#allocation3_spill] sm:$0xff] %v3848_v17 }
 0x143   : > { %v1366_v22 = vld.sshfl [vmem:[#allocation1 + $0x10] sm:$0xff pattern:$0x75316420]  ;;  %1370 = vst [vmem:[#allocation1 + $0x1] ss:$2 sm:$0xff] %v3350_v25  ;;  %v3856_v26 = vsel %vm3261_vm7, %v2591_v45, %v594_v62  ;;  %v3862_v0 = vpop.permute.xlu2 %2816  ;;  %vm1577_vm7 = vcmask 916480  }
 0x144   : > { %v2915_v33 = vpack.i.bf16 %v1366_v22, %v1365_v53  ;;  %1371 = vst [vmem:[#allocation1 + $0x10] ss:$2 sm:$0xff] %v3354_v1 }
 0x145   : > { %1372 = vst [vmem:[#allocation1 + $0x11] ss:$2 sm:$0xff] %v4716_v14  ;;  %v1367_v30 = vld.sshfl [vmem:[#allocation1 + $0x20] sm:$0xff pattern:$0x75316420]  ;;  %v2792_v43 = vpop.permute.xlu0 %2791 }
 0x146   : > { %2916 = vrot.lane.b32.xlu1 %v2915_v33, %s3015_s20  ;;  %4717 = vst [vmem:[#allocation4_spill] sm:$0xff] %v3856_v26  ;;  %v2794_v63 = vunpack.i.h.bf16 %v2792_v43  ;;  %v2793_v53 = vunpack.i.l.bf16 %v2792_v43  ;;  %v2819_v33 = vunpack.i.h.bf16 %v3862_v0  ;;  %v4718_v43 = vmov 0.0  }
 0x147   : > { %1373 = vst [vmem:[#allocation1 + $0x20] ss:$2 sm:$0xff] %v3705_v39  ;;  %v1368_v60 = vld.sshfl [vmem:[#allocation1 + $0x30] sm:$0xff pattern:$0x75316420] }
 0x148   : > { %1374 = vst [vmem:[#allocation1 + $0x21] ss:$2 sm:$0xff] %v3709_v44  ;;  %v2920_v22 = vpack.i.bf16 %v1368_v60, %v1367_v30  ;;  %v1522_v42 = vsel %vm1514_vm14, %v3779_v38, %v2794_v63  ;;  %v1521_v45 = vsel %vm1514_vm14, %v3782_v20, %v2793_v53 }
 0x149   : > { %1375 = vst [vmem:[#allocation1 + $0x30] ss:$2 sm:$0xff] %v3715_v37  ;;  %v3871_v62 = vpop.permute.xlu1 %2796 }
 0x14a   : > { %1376 = vst [vmem:[#allocation1 + $0x31] ss:$2 sm:$0xff] %v3856_v26  ;;  %v1377_v7 = vld.sshfl [vmem:[#allocation1] sm:$0xff pattern:$0x75316420]  ;;  %2921 = vrot.lane.b32.xlu2 %v2920_v22, %s3015_s20  ;;  %v2799_v60 = vunpack.i.h.bf16 %v3871_v62 }
 0x14b   : > { %1405 = vst [vmem:[#allocation1] ss:$2 sm:$0xff] %v3108_v5 }
 0x14c   : > { %v1378_v49 = vld.sshfl [vmem:[#allocation1 + $0x10] sm:$0xff pattern:$0x75316420]  ;;  %1407 = vst [vmem:[#allocation1 + $0x1] ss:$2 sm:$0xff] %v3111_v6  ;;  %v1525_v5 = vsel %vm1523_vm15, %v1516_v21, %v2799_v60 }
 0x14d   : > { %v2925_v30 = vpack.i.bf16 %v1378_v49, %v1377_v7  ;;  %1409 = vst [vmem:[#allocation1 + $0x10] ss:$2 sm:$0xff] %v3372_v36  ;;  %v3882_v20 = vsel %vm1532_vm1, %v1525_v5, %v2819_v33 }
 0x14e   : > { %1411 = vst [vmem:[#allocation1 + $0x11] ss:$2 sm:$0xff] %v4718_v43 }
 0x14f   : > { %v1379_v38 = vld.sshfl [vmem:[#allocation1 + $0x20] sm:$0xff pattern:$0x75316420]  ;;  %2926 = vrot.lane.b32.xlu0 %v2925_v30, %s3015_s20 }
 0x150   : > { %1413 = vst [vmem:[#allocation1 + $0x20] ss:$2 sm:$0xff] %v3128_v15 }
 0x151   : > { %v1380_v6 = vld.sshfl [vmem:[#allocation1 + $0x30] sm:$0xff pattern:$0x75316420]  ;;  %1415 = vst [vmem:[#allocation1 + $0x21] ss:$2 sm:$0xff] %v3134_v18  ;;  %v2832_v33 = vpop.permute.xlu2 %2831 }
 0x152   : > { %v2930_v22 = vpack.i.bf16 %v1380_v6, %v1379_v38  ;;  %1417 = vst [vmem:[#allocation1 + $0x30] ss:$2 sm:$0xff] %v3381_v12  ;;  %v2807_v21 = vpop.permute.xlu0 %2806 }
 0x153   : > { %1419 = vst [vmem:[#allocation1 + $0x31] ss:$2 sm:$0xff] %v4718_v43  ;;  %v1420_v36 = vld.sshfl [vmem:[#allocation1] sm:$0xff pattern:$0x75316420]  ;;  %v2809_v7 = vunpack.i.h.bf16 %v2807_v21  ;;  %v2808_v49 = vunpack.i.l.bf16 %v2807_v21 }
 0x154   : > { %2931 = vrot.lane.b32.xlu1 %v2930_v22, %s3015_s20  ;;  %1424 = vst [vmem:[#allocation1] ss:$2 sm:$0xff] %v3155_v27  ;;  %v2834_v22 = vunpack.i.h.bf16 %v2832_v33 }
 0x155   : > { %v1421_v63 = vld.sshfl [vmem:[#allocation1 + $0x10] sm:$0xff pattern:$0x75316420]  ;;  %1425 = vst [vmem:[#allocation1 + $0x1] ss:$2 sm:$0xff] %v3160_v29  ;;  %v1529_v60 = vsel %vm1523_vm15, %v3815_v28, %v2809_v7  ;;  %v1528_v38 = vsel %vm1523_vm15, %v3818_v55, %v2808_v49 }
 0x156   : > { %1426 = vst [vmem:[#allocation1 + $0x10] ss:$2 sm:$0xff] %v3390_v54  ;;  %v2935_v53 = vpack.i.bf16 %v1421_v63, %v1420_v36  ;;  %v2833_v36 = vunpack.i.l.bf16 %v2832_v33 }
 0x157   : > { %1427 = vst [vmem:[#allocation1 + $0x11] ss:$2 sm:$0xff] %v4718_v43  ;;  %v2812_v6 = vpop.permute.xlu1 %2811 }
 0x158   : > { %v1422_v30 = vld.sshfl [vmem:[#allocation1 + $0x20] sm:$0xff pattern:$0x75316420]  ;;  %2936 = vrot.lane.b32.xlu2 %v2935_v53, %s3016_s23  ;;  %v2814_v21 = vunpack.i.h.bf16 %v2812_v6  ;;  %v2813_v17 = vunpack.i.l.bf16 %v2812_v6 }
 0x159   : > { %1428 = vst [vmem:[#allocation1 + $0x20] ss:$2 sm:$0xff] %v3553_v57 }
 0x15a   : > { %v1423_v5 = vld.sshfl [vmem:[#allocation1 + $0x30] sm:$0xff pattern:$0x75316420]  ;;  %1429 = vst [vmem:[#allocation1 + $0x21] ss:$2 sm:$0xff] %v3561_v58  ;;  %v1531_v28 = vsel %vm1523_vm15, %v1522_v42, %v2814_v21  ;;  %v1530_v55 = vsel %vm1523_vm15, %v1521_v45, %v2813_v17 }
 0x15b   : > { %v2940_v63 = vpack.i.bf16 %v1423_v5, %v1422_v30  ;;  %1430 = vst [vmem:[#allocation1 + $0x30] ss:$2 sm:$0xff] %v3765_v47  ;;  %v3905_v7 = vsel %vm1532_vm1, %v1531_v28, %v2834_v22  ;;  %v3908_v49 = vsel %vm1532_vm1, %v1530_v55, %v2833_v36  ;;  %v4719_v5 = vld [vmem:[#allocation2_spill] sm:$0xff] }
 0x15c   : > { %1431 = vst [vmem:[#allocation1 + $0x31] ss:$2 sm:$0xff] %v4718_v43  ;;  %v1432_v53 = vld.sshfl [vmem:[#allocation1] sm:$0xff pattern:$0x75316420] }
 0x15d   : > { %2941 = vrot.lane.b32.xlu0 %v2940_v63, %s3016_s23  ;;  %1595 = vst [vmem:[#allocation1] ss:$2 sm:$0xff] %v3204_v51 }
 0x15e   : > { %v1433_v33 = vld.sshfl [vmem:[#allocation1 + $0x10] sm:$0xff pattern:$0x75316420]  ;;  %1597 = vst [vmem:[#allocation1 + $0x1] ss:$2 sm:$0xff] %v3208_v52 }
 0x15f   : > { %v2945_v30 = vpack.i.bf16 %v1433_v33, %v1432_v53  ;;  %1599 = vst [vmem:[#allocation1 + $0x10] ss:$2 sm:$0xff] %v4705_v11  ;;  %v2847_v42 = vpop.permute.xlu2 %2846 }
 0x160   : > { %1601 = vst [vmem:[#allocation1 + $0x11] ss:$2 sm:$0xff] %v4719_v5  ;;  %v2849_v45 = vunpack.i.h.bf16 %v2847_v42  ;;  %v2848_v22 = vunpack.i.l.bf16 %v2847_v42  ;;  %v3932_v33 = vpop.permute.xlu0 %2821 }
 0x161   : > { %v1434_v6 = vld.sshfl [vmem:[#allocation1 + $0x20] sm:$0xff pattern:$0x75316420]  ;;  %2946 = vrot.lane.b32.xlu1 %v2945_v30, %s3016_s23 }
 0x162   : > { %1603 = vst [vmem:[#allocation1 + $0x20] ss:$2 sm:$0xff] %v3235_v10 }
 0x163   : > { %v1435_v51 = vld.sshfl [vmem:[#allocation1 + $0x30] sm:$0xff pattern:$0x75316420]  ;;  %1605 = vst [vmem:[#allocation1 + $0x21] ss:$2 sm:$0xff] %v4707_v23 }
 0x164   : > { %v2950_v17 = vpack.i.bf16 %v1435_v51, %v1434_v6  ;;  %1607 = vst [vmem:[#allocation1 + $0x30] ss:$2 sm:$0xff] %v4708_v61  ;;  %v2827_v11 = vpop.permute.xlu1 %2826 }
 0x165   : > { %1609 = vst [vmem:[#allocation1 + $0x31] ss:$2 sm:$0xff] %v4719_v5  ;;  %v3919_v52 = vld.sshfl [vmem:[#allocation1] sm:$0xff pattern:$0x75316420]  ;;  %v2829_v63 = vunpack.i.h.bf16 %v2827_v11  ;;  %v2828_v21 = vunpack.i.l.bf16 %v2827_v11 }
 0x166   : > { %2951 = vrot.lane.b32.xlu2 %v2950_v17, %s3016_s23  ;;  %4720 = vst [vmem:[#allocation11_spill] sm:$0xff] %v3919_v52 }
 0x167   : > { %1614 = vst [vmem:[#allocation1] ss:$2 sm:$0xff] %v3259_v41  ;;  %v3923_v36 = vld.sshfl [vmem:[#allocation1 + $0x10] sm:$0xff pattern:$0x75316420]  ;;  %v1538_v28 = vsel %vm1532_vm1, %v1529_v60, %v2829_v63  ;;  %v1537_v55 = vsel %vm1532_vm1, %v1528_v38, %v2828_v21 }
 0x168   : > { %1615 = vst [vmem:[#allocation1 + $0x1] ss:$2 sm:$0xff] %v3269_v46  ;;  %v3935_v30 = vsel %vm1541_vm2, %v1538_v28, %v2849_v45  ;;  %v3938_v6 = vsel %vm1541_vm2, %v1537_v55, %v2848_v22 }
 0x169   : > { %4721 = vst [vmem:[#allocation12_spill] sm:$0xff] %v3923_v36 }
 0x16a   : > { %1616 = vst [vmem:[#allocation1 + $0x10] ss:$2 sm:$0xff] %v4709_v2  ;;  %v3927_v53 = vld.sshfl [vmem:[#allocation1 + $0x20] sm:$0xff pattern:$0x75316420] }
 0x16b   : > { %1617 = vst [vmem:[#allocation1 + $0x11] ss:$2 sm:$0xff] %v4719_v5 }
 0x16c   : > { %4722 = vst [vmem:[#allocation13_spill] sm:$0xff] %v3927_v53  ;;  %v3941_v51 = vld.sshfl [vmem:[#allocation1 + $0x30] sm:$0xff pattern:$0x75316420] }
 0x16d   : > { %1618 = vst [vmem:[#allocation1 + $0x20] ss:$2 sm:$0xff] %v3630_v56  ;;  %v3955_v42 = vpop.permute.xlu0 %2836 }
 0x16e   : > { %1619 = vst [vmem:[#allocation1 + $0x21] ss:$2 sm:$0xff] %v3634_v32 }
 0x16f   : > { %4723 = vst [vmem:[#allocation2_spill] sm:$0xff] %v3941_v51  ;;  %v3945_v60 = vld.sshfl [vmem:[#allocation1] sm:$0xff pattern:$0x75316420] }
 0x170   : > { %1620 = vst [vmem:[#allocation1 + $0x30] ss:$2 sm:$0xff] %v3809_v4 }
 0x171   : > { %1621 = vst [vmem:[#allocation1 + $0x31] ss:$2 sm:$0xff] %v4719_v5 }
 0x172   : > { %4724 = vst [vmem:[#allocation21_spill] sm:$0xff] %v3945_v60  ;;  %v3949_v38 = vld.sshfl [vmem:[#allocation1 + $0x10] sm:$0xff pattern:$0x75316420]  ;;  %v3973_v22 = vpop.permute.xlu1 %2841 }
 0x173   : > { %1634 = vst [vmem:[#allocation1] ss:$2 sm:$0xff] %v3301_v31 }
 0x174   : > { %1636 = vst [vmem:[#allocation1 + $0x1] ss:$2 sm:$0xff] %v3311_v34 }
 0x175   : > { %4725 = vst [vmem:[#allocation22_spill] sm:$0xff] %v3949_v38  ;;  %v3953_v17 = vld.sshfl [vmem:[#allocation1 + $0x20] sm:$0xff pattern:$0x75316420] }
 0x176   : > { %1638 = vst [vmem:[#allocation1 + $0x10] ss:$2 sm:$0xff] %v4711_v50  ;;  %v3968_v50 = vpop.permute.xlu2 %2861 }
 0x177   : > { %1640 = vst [vmem:[#allocation1 + $0x11] ss:$2 sm:$0xff] %v3275_v48 }
 0x178   : > { %4726 = vst [vmem:[#allocation23_spill] sm:$0xff] %v3953_v17  ;;  %v3959_v11 = vld.sshfl [vmem:[#allocation1 + $0x30] sm:$0xff pattern:$0x75316420] }
 0x179   : > { %1642 = vst [vmem:[#allocation1 + $0x20] ss:$2 sm:$0xff] %v3327_v59 }
 0x17a   : > { %1644 = vst [vmem:[#allocation1 + $0x21] ss:$2 sm:$0xff] %v3334_v9 }
 0x17b   : > { %4727 = vst [vmem:[#allocation24_spill] sm:$0xff] %v3959_v11  ;;  %v1649_v31 = vld.sshfl [vmem:[#allocation1] sm:$0xff pattern:$0x75316420]  ;;  %v2852_v21 = vpop.permute.xlu0 %2851  ;;  %v2275_v11 = vld [vmem:[%s4630_s3 + $0x58] sm:$0xff] }
 0x17c   : > { %1646 = vst [vmem:[#allocation1 + $0x30] ss:$2 sm:$0xff] %v4713_v16  ;;  %1665 = vrot.lane.b32.xlu0 %v1649_v31, %s3002_s7  ;;  %v2854_v28 = vunpack.i.h.bf16 %v2852_v21  ;;  %v2853_v55 = vunpack.i.l.bf16 %v2852_v21 }
 0x17d   : > { %1648 = vst [vmem:[#allocation1 + $0x31] ss:$2 sm:$0xff] %v3275_v48 }
 0x17e   : > { %1653 = vst [vmem:[#allocation1] ss:$2 sm:$0xff] %v3350_v25  ;;  %v1650_v34 = vld.sshfl [vmem:[#allocation1 + $0x10] sm:$0xff pattern:$0x75316420]  ;;  %v1549_v31 = vsel %vm1541_vm2, %v3905_v7, %v2854_v28  ;;  %v3985_v38 = vpop.permute.xlu2 %2876 }
 0x17f   : > { %1654 = vst [vmem:[#allocation1 + $0x1] ss:$2 sm:$0xff] %v3354_v1  ;;  %1667 = vrot.lane.b32.xlu1 %v1650_v34, %s3002_s7  ;;  %v1548_v34 = vsel %vm1541_vm2, %v3908_v49, %v2853_v55  ;;  %v2279_v49 = vld [vmem:[%s4630_s3 + $0x78] sm:$0xff]  ;;  %v2277_v55 = vld [vmem:[%s4630_s3 + $0x68] sm:$0xff] }
 0x180   : > { %1655 = vst [vmem:[#allocation1 + $0x10] ss:$2 sm:$0xff] %v4716_v14  ;;  %v3992_v7 = vpop.permute.xlu1 %2856  ;;  %2319 = vmatpush.msra.mxu0 %v2279_v49  ;;  %2604 = vmatpush.msra.mxu2 %v2279_v49  ;;  %v2273_v14 = vld [vmem:[%s4630_s3 + $0x48] sm:$0xff] }
 0x181   : > { %1656 = vst [vmem:[#allocation1 + $0x11] ss:$2 sm:$0xff] %v3275_v48  ;;  %v1651_v45 = vld.sshfl [vmem:[#allocation1 + $0x20] sm:$0xff pattern:$0x75316420] }
 0x182   : > { %1669 = vrot.lane.b32.xlu2 %v1651_v45, %s3002_s7  ;;  %1657 = vst [vmem:[#allocation1 + $0x20] ss:$2 sm:$0xff] %v3709_v44 }
 0x183   : > { %1658 = vst [vmem:[#allocation1 + $0x21] ss:$2 sm:$0xff] %v3715_v37 }
 0x184   : > { %v1652_v63 = vld.sshfl [vmem:[#allocation1 + $0x30] sm:$0xff pattern:$0x75316420] }
 0x185   : > { %1659 = vst [vmem:[#allocation1 + $0x30] ss:$2 sm:$0xff] %v3856_v26  ;;  %1671 = vrot.lane.b32.xlu0 %v1652_v63, %s3002_s7  ;;  %v2278_v63 = vld [vmem:[%s4630_s3 + $0x70] sm:$0xff] }
 0x186   : > { %1660 = vst [vmem:[#allocation1 + $0x31] ss:$2 sm:$0xff] %v3275_v48  ;;  %v1661_v45 = vld.sshfl [vmem:[#allocation1] sm:$0xff pattern:$0x75316420]  ;;  %2320 = vmatpush.msra.mxu0 %v2278_v63  ;;  %2605 = vmatpush.msra.mxu2 %v2278_v63 }
 0x187   : > { %1689 = vst [vmem:[#allocation1] ss:$2 sm:$0xff] %v4718_v43 }
 0x188   : > { %1691 = vst [vmem:[#allocation1 + $0x1] ss:$2 sm:$0xff] %v3121_v13  ;;  %v1662_v60 = vld.sshfl [vmem:[#allocation1 + $0x10] sm:$0xff pattern:$0x75316420]  ;;  %2321 = vmatpush.msra.mxu0 %v2277_v55  ;;  %2606 = vmatpush.msra.mxu2 %v2277_v55  ;;  %v2276_v55 = vld [vmem:[%s4630_s3 + $0x60] sm:$0xff] }
 0x189   : > { %1693 = vst [vmem:[#allocation1 + $0x10] ss:$2 sm:$0xff] %v3128_v15  ;;  %v2892_v49 = vpop.permute.xlu2 %2891 }
 0x18a   : > { %v1663_v21 = vld.sshfl [vmem:[#allocation1 + $0x20] sm:$0xff pattern:$0x75316420]  ;;  %1673 = vrot.lane.b32.xlu2 %v1661_v45, %s3002_s7  ;;  %1695 = vst [vmem:[#allocation1 + $0x11] ss:$2 sm:$0xff] %v3134_v18  ;;  %v2894_v51 = vunpack.i.h.bf16 %v2892_v49  ;;  %v2893_v52 = vunpack.i.l.bf16 %v2892_v49  ;;  %2322 = vmatpush.msra.mxu0 %v2276_v55  ;;  %v2274_v49 = vld [vmem:[%s4630_s3 + $0x50] sm:$0xff] }
 0x18b   : > { %1677 = vrot.lane.b32.xlu1 %v1663_v21, %s3002_s7  ;;  %1697 = vst [vmem:[#allocation1 + $0x20] ss:$2 sm:$0xff] %v4718_v43  ;;  %2607 = vmatpush.msra.mxu2 %v2276_v55 }
 0x18c   : > { %1699 = vst [vmem:[#allocation1 + $0x21] ss:$2 sm:$0xff] %v3146_v24  ;;  %2323 = vmatpush.msra.mxu0 %v2275_v11 }
 0x18d   : > { %v1664_v28 = vld.sshfl [vmem:[#allocation1 + $0x30] sm:$0xff pattern:$0x75316420]  ;;  %2608 = vmatpush.msra.mxu2 %v2275_v11 }
 0x18e   : > { %1701 = vst [vmem:[#allocation1 + $0x30] ss:$2 sm:$0xff] %v3155_v27  ;;  %1679 = vrot.lane.b32.xlu0 %v1664_v28, %s3002_s7  ;;  %2324 = vmatpush.msra.mxu0 %v2274_v49 }
 0x18f   : > { %1703 = vst [vmem:[#allocation1 + $0x31] ss:$2 sm:$0xff] %v3160_v29  ;;  %v1704_v45 = vld.sshfl [vmem:[#allocation1] sm:$0xff pattern:$0x75316420]  ;;  %v2872_v53 = vpop.permute.xlu1 %2871  ;;  %2609 = vmatpush.msra.mxu2 %v2274_v49 }
 0x190   : > { %1708 = vst [vmem:[#allocation1] ss:$2 sm:$0xff] %v4718_v43  ;;  %2325 = vmatpush.msra.mxu0 %v2273_v14 }
 0x191   : > { %v1705_v21 = vld.sshfl [vmem:[#allocation1 + $0x10] sm:$0xff pattern:$0x75316420]  ;;  %1709 = vst [vmem:[#allocation1 + $0x1] ss:$2 sm:$0xff] %v3549_v3  ;;  %2610 = vmatpush.msra.mxu2 %v2273_v14 }
 0x192   : > { %1722 = vrot.lane.b32.xlu2 %v1705_v21, %s3003_s8  ;;  %1710 = vst [vmem:[#allocation1 + $0x10] ss:$2 sm:$0xff] %v3553_v57  ;;  %v2873_v21 = vunpack.i.l.bf16 %v2872_v53 }
 0x193   : > { %1675 = vrot.lane.b32.xlu1 %v1662_v60, %s3002_s7  ;;  %1711 = vst [vmem:[#allocation1 + $0x11] ss:$2 sm:$0xff] %v3561_v58  ;;  %v1706_v28 = vld.sshfl [vmem:[#allocation1 + $0x20] sm:$0xff pattern:$0x75316420]  ;;  %v2874_v60 = vunpack.i.h.bf16 %v2872_v53 }
 0x194   : > { %1712 = vst [vmem:[#allocation1 + $0x20] ss:$2 sm:$0xff] %v4718_v43  ;;  %v1557_v17 = vsel %vm1550_vm3, %v1548_v34, %v2873_v21  ;;  %v2270_v34 = vld [vmem:[%s4630_s3 + $0x30] sm:$0xff]  ;;  %v2268_v21 = vld [vmem:[%s4630_s3 + $0x20] sm:$0xff] }
 0x195   : > { %1713 = vst [vmem:[#allocation1 + $0x21] ss:$2 sm:$0xff] %v4718_v43  ;;  %v4033_v26 = vsel %vm1559_vm4, %v1557_v17, %v2893_v52  ;;  %v2272_v52 = vld [vmem:[%s4630_s3 + $0x40] sm:$0xff]  ;;  %v2271_v17 = vld [vmem:[%s4630_s3 + $0x38] sm:$0xff] }
 0x196   : > { %v1707_v63 = vld.sshfl [vmem:[#allocation1 + $0x30] sm:$0xff pattern:$0x75316420]  ;;  %1720 = vrot.lane.b32.xlu0 %v1704_v45, %s3003_s8  ;;  %v1558_v45 = vsel %vm1550_vm3, %v1549_v31, %v2874_v60  ;;  %4729 = vst [vmem:[#allocation26_spill] sm:$0xff] %v4033_v26  ;;  %2326 = vmatpush.msra.mxu0 %v2272_v52 }
 0x197   : > { %1714 = vst [vmem:[#allocation1 + $0x30] ss:$2 sm:$0xff] %v4718_v43  ;;  %v4030_v53 = vsel %vm1559_vm4, %v1558_v45, %v2894_v51  ;;  %2611 = vmatpush.msra.mxu2 %v2272_v52  ;;  %v2267_v45 = vld [vmem:[%s4630_s3 + $0x18] sm:$0xff]  ;;  %v2266_v52 = vld [vmem:[%s4630_s3 + $0x10] sm:$0xff] }
 0x198   : > { %1715 = vst [vmem:[#allocation1 + $0x31] ss:$2 sm:$0xff] %v4718_v43  ;;  %v1716_v36 = vld.sshfl [vmem:[#allocation1] sm:$0xff pattern:$0x75316420]  ;;  %2327 = vmatpush.msra.mxu0 %v2271_v17 }
 0x199   : > { %4728 = vst [vmem:[#allocation25_spill] sm:$0xff] %v4030_v53  ;;  %2612 = vmatpush.msra.mxu2 %v2271_v17  ;;  %v4083_v17 = vpop.permute.xlu2 %2906 }
 0x19a   : > { %1744 = vst [vmem:[#allocation1] ss:$2 sm:$0xff] %v4719_v5  ;;  %v1717_v55 = vld.sshfl [vmem:[#allocation1 + $0x10] sm:$0xff pattern:$0x75316420]  ;;  %2328 = vmatpush.msra.mxu0 %v2270_v34 }
 0x19b   : > { %1746 = vst [vmem:[#allocation1 + $0x1] ss:$2 sm:$0xff] %v4706_v40  ;;  %1726 = vrot.lane.b32.xlu1 %v1707_v63, %s3003_s8  ;;  %v4730_v63 = vld [vmem:[#allocation16_spill] sm:$0xff]  ;;  %2613 = vmatpush.msra.mxu2 %v2270_v34  ;;  %v4731_v34 = vld [vmem:[#allocation5_spill] sm:$0xff] }
 0x19c   : > { %1748 = vst [vmem:[#allocation1 + $0x10] ss:$2 sm:$0xff] %v3235_v10  ;;  %v1718_v51 = vld.sshfl [vmem:[#allocation1 + $0x20] sm:$0xff pattern:$0x75316420] }
 0x19d   : > { %1750 = vst [vmem:[#allocation1 + $0x11] ss:$2 sm:$0xff] %v4707_v23 }
 0x19e   : > { %1752 = vst [vmem:[#allocation1 + $0x20] ss:$2 sm:$0xff] %v4719_v5  ;;  %1724 = vrot.lane.b32.xlu0 %v1706_v28, %s3003_s8  ;;  %v2269_v28 = vld [vmem:[%s4630_s3 + $0x28] sm:$0xff] }
 0x19f   : > { %v1719_v11 = vld.sshfl [vmem:[#allocation1 + $0x30] sm:$0xff pattern:$0x75316420]  ;;  %1754 = vst [vmem:[#allocation1 + $0x21] ss:$2 sm:$0xff] %v3252_v35  ;;  %2329 = vmatpush.msra.mxu0 %v2269_v28  ;;  %2614 = vmatpush.msra.mxu2 %v2269_v28 }
 0x1a0   : > { %v2955_v31 = vpack.i.bf16 %v1719_v11, %v1718_v51  ;;  %1756 = vst [vmem:[#allocation1 + $0x30] ss:$2 sm:$0xff] %v3259_v41 }
 0x1a1   : > { %1758 = vst [vmem:[#allocation1 + $0x31] ss:$2 sm:$0xff] %v3269_v46  ;;  %2330 = vmatpush.msra.mxu0 %v2268_v21  ;;  %2615 = vmatpush.msra.mxu2 %v2268_v21  ;;  %v2264_v21 = vld [vmem:[%s4630_s3] sm:$0xff] }
 0x1a2   : > { %2956 = vrot.lane.b32.xlu2 %v2955_v31, %s3003_s8  ;;  %v1759_v14 = vld.sshfl [vmem:[#allocation1] sm:$0xff pattern:$0x75316420]  ;;  %v4090_v31 = vpop.permute.xlu1 %2886 }
 0x1a3   : > { %1763 = vst [vmem:[#allocation1] ss:$2 sm:$0xff] %v4719_v5  ;;  %1730 = vrot.lane.b32.xlu1 %v1717_v55, %s3003_s8  ;;  %v4072_v55 = vpop.permute.xlu0 %2866  ;;  %2331 = vmatpush.msra.mxu0 %v2267_v45 }
 0x1a4   : > { %1764 = vst [vmem:[#allocation1 + $0x1] ss:$2 sm:$0xff] %v4730_v63  ;;  %v1760_v60 = vld.sshfl [vmem:[#allocation1 + $0x10] sm:$0xff pattern:$0x75316420]  ;;  %2616 = vmatpush.msra.mxu2 %v2267_v45  ;;  %v4108_v26 = vpop.permute.xlu2 %2921 }
 0x1a5   : > { %1765 = vst [vmem:[#allocation1 + $0x10] ss:$2 sm:$0xff] %v3630_v56  ;;  %2332 = vmatpush.msra.mxu0 %v2266_v52 }
 0x1a6   : > { %v1761_v49 = vld.sshfl [vmem:[#allocation1 + $0x20] sm:$0xff pattern:$0x75316420]  ;;  %1766 = vst [vmem:[#allocation1 + $0x11] ss:$2 sm:$0xff] %v3634_v32  ;;  %1728 = vrot.lane.b32.xlu0 %v1716_v36, %s3003_s8  ;;  %v2265_v36 = vld [vmem:[%s4630_s3 + $0x8] sm:$0xff]  ;;  %2617 = vmatpush.msra.mxu2 %v2266_v52 }
 0x1a7   : > { %1767 = vst [vmem:[#allocation1 + $0x20] ss:$2 sm:$0xff] %v4719_v5  ;;  %2333 = vmatpush.msra.mxu0 %v2265_v36  ;;  %v4732_v52 = vld [vmem:[#allocation10_spill] sm:$0xff] }
 0x1a8   : > { %v1762_v51 = vld.sshfl [vmem:[#allocation1 + $0x30] sm:$0xff pattern:$0x75316420]  ;;  %1768 = vst [vmem:[#allocation1 + $0x21] ss:$2 sm:$0xff] %v4719_v5  ;;  %2618 = vmatpush.msra.mxu2 %v2265_v36  ;;  %v2778_v53 = vunpack.i.l.bf16 %v4732_v52  ;;  %v2818_v52 = vunpack.i.l.bf16 %v3862_v0 }
 0x1a9   : > { %1769 = vst [vmem:[#allocation1 + $0x30] ss:$2 sm:$0xff] %v4719_v5  ;;  %2334 = vmatpush.msra.mxu0 %v2264_v21 }
 0x1aa   : > { %1781 = vrot.lane.b32.xlu2 %v1762_v51, %s3004_s9  ;;  %1770 = vst [vmem:[#allocation1 + $0x31] ss:$2 sm:$0xff] %v4719_v5  ;;  %2619 = vmatpush.msra.mxu2 %v2264_v21 }
 0x1ab   : > { %v1771_v11 = vld.sshfl [vmem:[#allocation1] sm:$0xff pattern:$0x75316420]  ;;  %1775 = vrot.lane.b32.xlu1 %v1759_v14, %s3004_s9  ;;  %v4100_v14 = vpop.permute.xlu0 %2881 }
 0x1ac   : > { %1799 = vst [vmem:[#allocation1] ss:$2 sm:$0xff] %v3275_v48 }
 0x1ad   : > { %1801 = vst [vmem:[#allocation1 + $0x1] ss:$2 sm:$0xff] %v4731_v34  ;;  %v1772_v28 = vld.sshfl [vmem:[#allocation1 + $0x10] sm:$0xff pattern:$0x75316420] }
 0x1ae   : > { %1803 = vst [vmem:[#allocation1 + $0x10] ss:$2 sm:$0xff] %v3327_v59  ;;  %1779 = vrot.lane.b32.xlu0 %v1761_v49, %s3004_s9  ;;  %v2798_v49 = vunpack.i.l.bf16 %v3871_v62 }
 0x1af   : > { %v1773_v45 = vld.sshfl [vmem:[#allocation1 + $0x20] sm:$0xff pattern:$0x75316420]  ;;  %1805 = vst [vmem:[#allocation1 + $0x11] ss:$2 sm:$0xff] %v3334_v9 }
 0x1b0   : > { %1807 = vst [vmem:[#allocation1 + $0x20] ss:$2 sm:$0xff] %v3275_v48 }
 0x1b1   : > { %1809 = vst [vmem:[#allocation1 + $0x21] ss:$2 sm:$0xff] %v3344_v19  ;;  %v1774_v51 = vld.sshfl [vmem:[#allocation1 + $0x30] sm:$0xff pattern:$0x75316420]  ;;  %v4733_v19 = vld [vmem:[#allocation20_spill] sm:$0xff] }
 0x1b2   : > { %1811 = vst [vmem:[#allocation1 + $0x30] ss:$2 sm:$0xff] %v3350_v25  ;;  %v1515_v25 = vsel %vm1514_vm14, %v4733_v19, %v2778_v53  ;;  %v2960_v53 = vpack.i.bf16 %v1774_v51, %v1773_v45  ;;  %v2859_v45 = vunpack.i.h.bf16 %v3992_v7 }
 0x1b3   : > { %1813 = vst [vmem:[#allocation1 + $0x31] ss:$2 sm:$0xff] %v3354_v1  ;;  %1777 = vrot.lane.b32.xlu1 %v1760_v60, %s3004_s9  ;;  %v4116_v1 = vpop.permute.xlu1 %2901  ;;  %v1524_v62 = vsel %vm1523_vm15, %v1515_v25, %v2798_v49  ;;  %v2838_v60 = vunpack.i.l.bf16 %v3955_v42  ;;  %v2897_v16 = vpop.permute.xlu0 %2896 }
 0x1b4   : > { %v1814_v36 = vld.sshfl [vmem:[#allocation1] sm:$0xff pattern:$0x75316420]  ;;  %v1533_v0 = vsel %vm1532_vm1, %v1524_v62, %v2818_v52  ;;  %v2937_v49 = vpop.permute.xlu2 %2936  ;;  %v2839_v52 = vunpack.i.h.bf16 %v3955_v42 }
 0x1b5   : > { %1830 = vrot.lane.b32.xlu2 %v1814_v36, %s3005_s10  ;;  %1818 = vst [vmem:[#allocation1] ss:$2 sm:$0xff] %v3275_v48  ;;  %v1542_v25 = vsel %vm1541_vm2, %v1533_v0, %v2838_v60  ;;  %v2938_v62 = vunpack.i.l.bf16 %v2937_v49 }
 0x1b6   : > { %1819 = vst [vmem:[#allocation1 + $0x1] ss:$2 sm:$0xff] %v3705_v39  ;;  %v1815_v21 = vld.sshfl [vmem:[#allocation1 + $0x10] sm:$0xff pattern:$0x75316420]  ;;  %1783 = vrot.lane.b32.xlu0 %v1771_v11, %s3004_s9  ;;  %v2858_v39 = vunpack.i.l.bf16 %v3992_v7  ;;  %v2878_v11 = vunpack.i.l.bf16 %v3985_v38  ;;  %v1543_v7 = vsel %vm1541_vm2, %v3882_v20, %v2839_v52  ;;  %v2939_v20 = vunpack.i.h.bf16 %v2937_v49 }
 0x1b7   : > { %1820 = vst [vmem:[#allocation1 + $0x10] ss:$2 sm:$0xff] %v3709_v44  ;;  %v2898_v44 = vunpack.i.l.bf16 %v2897_v16  ;;  %v1552_v0 = vsel %vm1550_vm3, %v1543_v7, %v2859_v45  ;;  %v2844_v49 = vunpack.i.h.bf16 %v3973_v22  ;;  %v2864_v7 = vunpack.i.h.bf16 %v3968_v50 }
 0x1b8   : > { %v1816_v36 = vld.sshfl [vmem:[#allocation1 + $0x20] sm:$0xff pattern:$0x75316420]  ;;  %1821 = vst [vmem:[#allocation1 + $0x11] ss:$2 sm:$0xff] %v3715_v37  ;;  %v1551_v37 = vsel %vm1550_vm3, %v1542_v25, %v2858_v39 }
 0x1b9   : > { %1822 = vst [vmem:[#allocation1 + $0x20] ss:$2 sm:$0xff] %v3275_v48  ;;  %v1560_v60 = vsel %vm1559_vm4, %v1551_v37, %v2878_v11 }
 0x1ba   : > { %1823 = vst [vmem:[#allocation1 + $0x21] ss:$2 sm:$0xff] %v3275_v48  ;;  %v1817_v19 = vld.sshfl [vmem:[#allocation1 + $0x30] sm:$0xff pattern:$0x75316420] }
 0x1bb   : > { %1824 = vst [vmem:[#allocation1 + $0x30] ss:$2 sm:$0xff] %v3275_v48  ;;  %1785 = vrot.lane.b32.xlu1 %v1772_v28, %s3004_s9  ;;  %v2917_v51 = vpop.permute.xlu1 %2916  ;;  %v4149_v25 = vpop.permute.xlu0 %2911 }
 0x1bc   : > { %1825 = vst [vmem:[#allocation1 + $0x31] ss:$2 sm:$0xff] %v3275_v48  ;;  %v2918_v39 = vunpack.i.l.bf16 %v2917_v51 }
 0x1bd   : > { %1834 = vrot.lane.b32.xlu2 %v1816_v36, %s3005_s10  ;;  %v1826_v9 = vld.sshfl [vmem:[#allocation1] sm:$0xff pattern:$0x75316420]  ;;  %v2879_v36 = vunpack.i.h.bf16 %v3985_v38 }
 0x1be   : > { %1854 = vst [vmem:[#allocation1] ss:$2 sm:$0xff] %v3121_v13  ;;  %2961 = vrot.lane.b32.xlu0 %v2960_v53, %s3004_s9  ;;  %v1569_v13 = vsel %vm1568_vm5, %v1560_v60, %v2898_v44  ;;  %v2899_v53 = vunpack.i.h.bf16 %v2897_v16  ;;  %v2919_v60 = vunpack.i.h.bf16 %v2917_v51  ;;  %v2823_v51 = vunpack.i.l.bf16 %v3932_v33 }
 0x1bf   : > { %v1827_v28 = vld.sshfl [vmem:[#allocation1 + $0x10] sm:$0xff pattern:$0x75316420]  ;;  %1856 = vst [vmem:[#allocation1 + $0x1] ss:$2 sm:$0xff] %v3128_v15  ;;  %v1578_v37 = vsel %vm1577_vm7, %v1569_v13, %v2918_v39 }
 0x1c0   : > { %1858 = vst [vmem:[#allocation1 + $0x10] ss:$2 sm:$0xff] %v3134_v18  ;;  %v1587_v44 = vsel %vm1586_vm6, %v1578_v37, %v2938_v62 }
 0x1c1   : > { %1860 = vst [vmem:[#allocation1 + $0x11] ss:$2 sm:$0xff] %v3381_v12  ;;  %v1828_v42 = vld.sshfl [vmem:[#allocation1 + $0x20] sm:$0xff pattern:$0x75316420]  ;;  %2335 = vmatmul.f32.vlgmr.msra.gmra.mxu0 %v1587_v44  ;;  %v2903_v44 = vunpack.i.l.bf16 %v4116_v1 }
 0x1c2   : > { %1862 = vst [vmem:[#allocation1 + $0x20] ss:$2 sm:$0xff] %v3146_v24  ;;  %v1561_v24 = vsel %vm1559_vm4, %v1552_v0, %v2879_v36  ;;  %v2863_v36 = vunpack.i.l.bf16 %v3968_v50  ;;  %v2884_v0 = vunpack.i.h.bf16 %v4100_v14 }
 0x1c3   : > { %v1829_v11 = vld.sshfl [vmem:[#allocation1 + $0x30] sm:$0xff pattern:$0x75316420]  ;;  %1864 = vst [vmem:[#allocation1 + $0x21] ss:$2 sm:$0xff] %v3155_v27  ;;  %1836 = vrot.lane.b32.xlu1 %v1817_v19, %s3005_s10  ;;  %v1570_v38 = vsel %vm1568_vm5, %v1561_v24, %v2899_v53  ;;  %v2883_v53 = vunpack.i.l.bf16 %v4100_v14 }
 0x1c4   : > { %1866 = vst [vmem:[#allocation1 + $0x30] ss:$2 sm:$0xff] %v3160_v29  ;;  %v1579_v19 = vsel %vm1577_vm7, %v1570_v38, %v2919_v60  ;;  %v2965_v45 = vpack.i.bf16 %v1829_v11, %v1828_v42  ;;  %v2904_v11 = vunpack.i.h.bf16 %v4116_v1  ;;  %v2924_v1 = vunpack.i.h.bf16 %v4108_v26 }
 0x1c5   : > { %1832 = vrot.lane.b32.xlu2 %v1815_v21, %s3005_s10  ;;  %1868 = vst [vmem:[#allocation1 + $0x31] ss:$2 sm:$0xff] %v3390_v54  ;;  %v2824_v21 = vunpack.i.h.bf16 %v3932_v33  ;;  %v1588_v39 = vsel %vm1586_vm6, %v1579_v19, %v2939_v20  ;;  %v2868_v20 = vunpack.i.l.bf16 %v4072_v55 }
 0x1c6   : > { %v1869_v16 = vld.sshfl [vmem:[#allocation1] sm:$0xff pattern:$0x75316420]  ;;  %1840 = vrot.lane.b32.xlu0 %v1827_v28, %s3005_s10  ;;  %v4169_v28 = vpop.permute.xlu0 %2926  ;;  %v4198_v38 = vpop.permute.xlu1 %2931 }
 0x1c7   : > { %1873 = vst [vmem:[#allocation1] ss:$2 sm:$0xff] %v3549_v3  ;;  %v2843_v3 = vunpack.i.l.bf16 %v3973_v22  ;;  %v1536_v33 = vsel %vm1532_vm1, %v3845_v8, %v2824_v21  ;;  %v4734_v22 = vld [vmem:[#allocation3_spill] sm:$0xff] }
 0x1c8   : > { %1874 = vst [vmem:[#allocation1 + $0x1] ss:$2 sm:$0xff] %v3553_v57  ;;  %v1870_v52 = vld.sshfl [vmem:[#allocation1 + $0x10] sm:$0xff pattern:$0x75316420]  ;;  %v1535_v13 = vsel %vm1532_vm1, %v4734_v22, %v2823_v51  ;;  %v2888_v51 = vunpack.i.l.bf16 %v4090_v31 }
 0x1c9   : > { %1875 = vst [vmem:[#allocation1 + $0x10] ss:$2 sm:$0xff] %v3561_v58  ;;  %2338 = vmatmul.f32.gmra.mxu0 %v1588_v39  ;;  %v1544_v37 = vsel %vm1541_vm2, %v1535_v13, %v2843_v3  ;;  %v2908_v13 = vunpack.i.l.bf16 %v4083_v17 }
 0x1ca   : > { %v1871_v62 = vld.sshfl [vmem:[#allocation1 + $0x20] sm:$0xff pattern:$0x75316420]  ;;  %1876 = vst [vmem:[#allocation1 + $0x11] ss:$2 sm:$0xff] %v3765_v47  ;;  %v1553_v24 = vsel %vm1550_vm3, %v1544_v37, %v2863_v36 }
 0x1cb   : > { %1877 = vst [vmem:[#allocation1 + $0x20] ss:$2 sm:$0xff] %v4718_v43  ;;  %1838 = vrot.lane.b32.xlu1 %v1826_v9, %s3005_s10  ;;  %v1545_v9 = vsel %vm1541_vm2, %v1536_v33, %v2844_v49 }
 0x1cc   : > { %1878 = vst [vmem:[#allocation1 + $0x21] ss:$2 sm:$0xff] %v4718_v43  ;;  %v4175_v42 = vld.sshfl [vmem:[#allocation1 + $0x30] sm:$0xff pattern:$0x75316420]  ;;  %v1554_v60 = vsel %vm1550_vm3, %v1545_v9, %v2864_v7 }
 0x1cd   : > { %2966 = vrot.lane.b32.xlu2 %v2965_v45, %s3005_s10  ;;  %1879 = vst [vmem:[#allocation1 + $0x30] ss:$2 sm:$0xff] %v4718_v43  ;;  %v1563_v14 = vsel %vm1559_vm4, %v1554_v60, %v2884_v0 }
 0x1ce   : > { %1880 = vst [vmem:[#allocation1 + $0x31] ss:$2 sm:$0xff] %v4718_v43  ;;  %1885 = vrot.lane.b32.xlu0 %v1869_v16, %s3006_s11  ;;  %v1562_v16 = vsel %vm1559_vm4, %v1553_v24, %v2883_v53  ;;  %v1572_v45 = vsel %vm1568_vm5, %v1563_v14, %v2904_v11 }
 0x1cf   : > { %v1881_v8 = vld.sshfl [vmem:[#allocation1] sm:$0xff pattern:$0x75316420]  ;;  %v1571_v21 = vsel %vm1568_vm5, %v1562_v16, %v2903_v44  ;;  %v2942_v49 = vpop.permute.xlu0 %2941  ;;  %v2889_v16 = vunpack.i.h.bf16 %v4090_v31  ;;  %v2929_v31 = vunpack.i.h.bf16 %v4169_v28 }
 0x1d0   : > { %1909 = vst [vmem:[#allocation1] ss:$2 sm:$0xff] %v4706_v40  ;;  %v2923_v40 = vunpack.i.l.bf16 %v4108_v26  ;;  %v4213_v26 = vpop.permute.xlu2 %2951  ;;  %v2944_v39 = vunpack.i.h.bf16 %v2942_v49  ;;  %v2943_v33 = vunpack.i.l.bf16 %v2942_v49 }
 0x1d1   : > { %1911 = vst [vmem:[#allocation1 + $0x1] ss:$2 sm:$0xff] %v3235_v10  ;;  %v1882_v50 = vld.sshfl [vmem:[#allocation1 + $0x10] sm:$0xff pattern:$0x75316420] }
 0x1d2   : > { %1913 = vst [vmem:[#allocation1 + $0x10] ss:$2 sm:$0xff] %v4707_v23  ;;  %v1580_v22 = vsel %vm1577_vm7, %v1571_v21, %v2923_v40 }
 0x1d3   : > { %1915 = vst [vmem:[#allocation1 + $0x11] ss:$2 sm:$0xff] %v4708_v61  ;;  %v1883_v19 = vld.sshfl [vmem:[#allocation1 + $0x20] sm:$0xff pattern:$0x75316420]  ;;  %1889 = vrot.lane.b32.xlu1 %v1871_v62, %s3006_s11  ;;  %v1555_v62 = vsel %vm1550_vm3, %v3938_v6, %v2868_v20  ;;  %v1589_v9 = vsel %vm1586_vm6, %v1580_v22, %v2943_v33  ;;  %v2928_v6 = vunpack.i.l.bf16 %v4169_v28  ;;  %v4740_v22 = vld [vmem:[#allocation15_spill] sm:$0xff] }
 0x1d4   : > { %1917 = vst [vmem:[#allocation1 + $0x20] ss:$2 sm:$0xff] %v3252_v35  ;;  %v1581_v35 = vsel %vm1577_vm7, %v1572_v45, %v2924_v1  ;;  %v1564_v0 = vsel %vm1559_vm4, %v1555_v62, %v2888_v51  ;;  %2341 = vmatmul.f32.gmra.mxu0 %v1589_v9  ;;  %v2909_v1 = vunpack.i.h.bf16 %v4083_v17  ;;  %v4735_v45 = vld [vmem:[#allocation6_spill] sm:$0xff]  ;;  %v4738_v51 = vld [vmem:[#allocation8_spill] sm:$0xff]  ;;  %v4739_v62 = vld [vmem:[#allocation9_spill] sm:$0xff]  ;;  %v2953_v9 = vunpack.i.l.bf16 %v4213_v26 }
 0x1d5   : > { %1893 = vrot.lane.b32.xlu2 %v1881_v8, %s3006_s11  ;;  %v1884_v3 = vld.sshfl [vmem:[#allocation1 + $0x30] sm:$0xff pattern:$0x75316420]  ;;  %1919 = vst [vmem:[#allocation1 + $0x21] ss:$2 sm:$0xff] %v3259_v41  ;;  %v1590_v7 = vsel %vm1586_vm6, %v1581_v35, %v2944_v39  ;;  %v1573_v11 = vsel %vm1568_vm5, %v1564_v0, %v2908_v13  ;;  %v2933_v35 = vunpack.i.l.bf16 %v4198_v38  ;;  %v4743_v0 = vld [vmem:[#allocation26_spill] sm:$0xff] }
 0x1d6   : > { %1921 = vst [vmem:[#allocation1 + $0x30] ss:$2 sm:$0xff] %v3269_v46  ;;  %1887 = vrot.lane.b32.xlu0 %v1870_v52, %s3006_s11  ;;  %v2970_v36 = vpack.i.bf16 %v1884_v3, %v1883_v19  ;;  %2344 = vmatmul.f32.vlgmr.msra.gmra.mxu2 %v1590_v7  ;;  %v2947_v52 = vpop.permute.xlu1 %2946  ;;  %v1582_v60 = vsel %vm1577_vm7, %v1573_v11, %v2928_v6  ;;  %v2913_v3 = vunpack.i.l.bf16 %v4149_v25  ;;  %v4741_v7 = vld [vmem:[#allocation17_spill] sm:$0xff]  ;;  %v4744_v11 = vld [vmem:[#allocation19_spill] sm:$0xff] }
 0x1d7   : > { %1923 = vst [vmem:[#allocation1 + $0x31] ss:$2 sm:$0xff] %v4709_v2  ;;  %v2948_v8 = vunpack.i.l.bf16 %v2947_v52  ;;  %v2949_v19 = vunpack.i.h.bf16 %v2947_v52 }
 0x1d8   : > { %v1924_v37 = vld.sshfl [vmem:[#allocation1] sm:$0xff pattern:$0x75316420]  ;;  %v1575_v6 = vsel %vm1568_vm5, %v4743_v0, %v2913_v3 }
 0x1d9   : > { %1928 = vst [vmem:[#allocation1] ss:$2 sm:$0xff] %v4730_v63  ;;  %v2869_v63 = vunpack.i.h.bf16 %v4072_v55  ;;  %v1591_v20 = vsel %vm1586_vm6, %v1582_v60, %v2948_v8  ;;  %v1584_v8 = vsel %vm1577_vm7, %v1575_v6, %v2933_v35  ;;  %v4745_v60 = vld [vmem:[#allocation4_spill] sm:$0xff] }
 0x1da   : > { %1929 = vst [vmem:[#allocation1 + $0x1] ss:$2 sm:$0xff] %v3630_v56  ;;  %v1925_v53 = vld.sshfl [vmem:[#allocation1 + $0x10] sm:$0xff pattern:$0x75316420] }
 0x1db   : > { %1930 = vst [vmem:[#allocation1 + $0x10] ss:$2 sm:$0xff] %v3634_v32  ;;  %2971 = vrot.lane.b32.xlu1 %v2970_v36, %s3006_s11  ;;  %v1556_v55 = vsel %vm1550_vm3, %v3935_v30, %v2869_v63  ;;  %v4736_v30 = vld [vmem:[#allocation14_spill] sm:$0xff]  ;;  %v2914_v63 = vunpack.i.h.bf16 %v4149_v25  ;;  %v2954_v25 = vunpack.i.h.bf16 %v4213_v26 }
 0x1dc   : > { %v1926_v44 = vld.sshfl [vmem:[#allocation1 + $0x20] sm:$0xff pattern:$0x75316420]  ;;  %1931 = vst [vmem:[#allocation1 + $0x11] ss:$2 sm:$0xff] %v3809_v4  ;;  %v4238_v14 = vpop.permute.xlu2 %1669  ;;  %v1565_v40 = vsel %vm1559_vm4, %v1556_v55, %v2889_v16 }
 0x1dd   : > { %1895 = vrot.lane.b32.xlu2 %v1882_v50, %s3006_s11  ;;  %1932 = vst [vmem:[#allocation1 + $0x20] ss:$2 sm:$0xff] %v4719_v5  ;;  %v1574_v17 = vsel %vm1568_vm5, %v1565_v40, %v2909_v1 }
 0x1de   : > { %v1927_v24 = vld.sshfl [vmem:[#allocation1 + $0x30] sm:$0xff pattern:$0x75316420]  ;;  %1933 = vst [vmem:[#allocation1 + $0x21] ss:$2 sm:$0xff] %v4719_v5  ;;  %1891 = vrot.lane.b32.xlu0 %v4175_v42, %s3006_s11  ;;  %2347 = vmatmul.f32.gmra.mxu2 %v1591_v20  ;;  %v1583_v28 = vsel %vm1577_vm7, %v1574_v17, %v2929_v31  ;;  %v2934_v20 = vunpack.i.h.bf16 %v4198_v38  ;;  %v4746_v31 = vld [vmem:[#allocation12_spill] sm:$0xff] }
 0x1df   : > { %1934 = vst [vmem:[#allocation1 + $0x30] ss:$2 sm:$0xff] %v4719_v5  ;;  %v1592_v39 = vsel %vm1586_vm6, %v1583_v28, %v2949_v19  ;;  %v4747_v19 = vld [vmem:[#allocation25_spill] sm:$0xff] }
 0x1e0   : > { %1935 = vst [vmem:[#allocation1 + $0x31] ss:$2 sm:$0xff] %v4719_v5 }
 0x1e1   : > { %v4246_v50 = vld.sshfl [vmem:[#allocation1] sm:$0xff pattern:$0x75316420] }
 0x1e2   : > { %1964 = vst [vmem:[#allocation1] ss:$2 sm:$0xff] %v4731_v34  ;;  %v4737_v34 = vld [vmem:[#allocation7_spill] sm:$0xff] }
 0x1e3   : > { %1966 = vst [vmem:[#allocation1 + $0x1] ss:$2 sm:$0xff] %v3327_v59  ;;  %v1937_v42 = vld.sshfl [vmem:[#allocation1 + $0x10] sm:$0xff pattern:$0x75316420]  ;;  %1940 = vrot.lane.b32.xlu1 %v1924_v37, %s3007_s12  ;;  %v4742_v37 = vld [vmem:[#allocation18_spill] sm:$0xff] }
 0x1e4   : > { %1968 = vst [vmem:[#allocation1 + $0x10] ss:$2 sm:$0xff] %v4735_v45  ;;  %v4266_v33 = vpop.permute.xlu2 %1673 }
 0x1e5   : > { %1946 = vrot.lane.b32.xlu2 %v1927_v24, %s3007_s12  ;;  %v1938_v21 = vld.sshfl [vmem:[#allocation1 + $0x20] sm:$0xff pattern:$0x75316420]  ;;  %1970 = vst [vmem:[#allocation1 + $0x11] ss:$2 sm:$0xff] %v4736_v30 }
 0x1e6   : > { %1972 = vst [vmem:[#allocation1 + $0x20] ss:$2 sm:$0xff] %v4737_v34  ;;  %1944 = vrot.lane.b32.xlu0 %v1926_v44, %s3007_s12  ;;  %2350 = vmatmul.f32.gmra.mxu2 %v1592_v39 }
 0x1e7   : > { %1974 = vst [vmem:[#allocation1 + $0x21] ss:$2 sm:$0xff] %v4738_v51  ;;  %v1939_v49 = vld.sshfl [vmem:[#allocation1 + $0x30] sm:$0xff pattern:$0x75316420] }
 0x1e8   : > { %1976 = vst [vmem:[#allocation1 + $0x30] ss:$2 sm:$0xff] %v4739_v62  ;;  %v2975_v36 = vpack.i.bf16 %v1939_v49, %v1938_v21  ;;  %v1576_v21 = vsel %vm1568_vm5, %v4747_v19, %v2914_v63  ;;  %v4750_v63 = vld [vmem:[#allocation11_spill] sm:$0xff] }
 0x1e9   : > { %1978 = vst [vmem:[#allocation1 + $0x31] ss:$2 sm:$0xff] %v4740_v22  ;;  %v1585_v34 = vsel %vm1577_vm7, %v1576_v21, %v2934_v20 }
 0x1ea   : > { %v1979_v13 = vld.sshfl [vmem:[#allocation1] sm:$0xff pattern:$0x75316420]  ;;  %v1594_v26 = vsel %vm1586_vm6, %v1585_v34, %v2954_v25 }
 0x1eb   : > { %1983 = vst [vmem:[#allocation1] ss:$2 sm:$0xff] %v4741_v7  ;;  %1942 = vrot.lane.b32.xlu1 %v1925_v53, %s3007_s12  ;;  %v1593_v53 = vsel %vm1586_vm6, %v1584_v8, %v2953_v9  ;;  %v4749_v9 = vld [vmem:[#allocation24_spill] sm:$0xff] }
 0x1ec   : > { %1984 = vst [vmem:[#allocation1 + $0x1] ss:$2 sm:$0xff] %v4742_v37  ;;  %v1980_v52 = vld.sshfl [vmem:[#allocation1 + $0x10] sm:$0xff pattern:$0x75316420]  ;;  %v1723_v55 = vpop.permute.xlu2 %1722 }
 0x1ed   : > { %1995 = vrot.lane.b32.xlu2 %v1979_v13, %s3008_s13  ;;  %1985 = vst [vmem:[#allocation1 + $0x10] ss:$2 sm:$0xff] %v4744_v11  ;;  %v4748_v13 = vld [vmem:[#allocation23_spill] sm:$0xff] }
 0x1ee   : > { %v1981_v44 = vld.sshfl [vmem:[#allocation1 + $0x20] sm:$0xff pattern:$0x75316420]  ;;  %1986 = vst [vmem:[#allocation1 + $0x11] ss:$2 sm:$0xff] %v4745_v60  ;;  %2976 = vrot.lane.b32.xlu0 %v2975_v36, %s3007_s12  ;;  %v4287_v16 = vpop.permute.xlu0 %1665  ;;  %2353 = vmatmul.f32.gmra.mxu2 %v1593_v53 }
 0x1ef   : > { %1987 = vst [vmem:[#allocation1 + $0x20] ss:$2 sm:$0xff] %v3275_v48 }
 0x1f0   : > { %1988 = vst [vmem:[#allocation1 + $0x21] ss:$2 sm:$0xff] %v3275_v48  ;;  %v1982_v24 = vld.sshfl [vmem:[#allocation1 + $0x30] sm:$0xff pattern:$0x75316420] }
 0x1f1   : > { %1989 = vst [vmem:[#allocation1 + $0x30] ss:$2 sm:$0xff] %v3275_v48  ;;  %v1668_v40 = vpop.permute.xlu1 %1667 }
 0x1f2   : > { %1990 = vst [vmem:[#allocation1 + $0x31] ss:$2 sm:$0xff] %v3275_v48  ;;  %v2185_v38 = vsel %vm1460_vm8, %v4746_v31, %v1668_v40  ;;  %v4752_v31 = vld [vmem:[#allocation13_spill] sm:$0xff] }
 0x1f3   : > { %v4291_v1 = vld.sshfl [vmem:[#allocation1] sm:$0xff pattern:$0x75316420]  ;;  %1950 = vrot.lane.b32.xlu1 %v1937_v42, %s3007_s12  ;;  %v4304_v28 = vsel %vm1469_vm9, %v2185_v38, %v1723_v55  ;;  %v2186_v38 = vsel %vm1460_vm8, %v4752_v31, %v4238_v14 }
 0x1f4   : > { %2019 = vst [vmem:[#allocation1] ss:$2 sm:$0xff] %v3128_v15 }
 0x1f5   : > { %2021 = vst [vmem:[#allocation1 + $0x1] ss:$2 sm:$0xff] %v3134_v18  ;;  %1999 = vrot.lane.b32.xlu2 %v1981_v44, %s3008_s13  ;;  %v1992_v17 = vld.sshfl [vmem:[#allocation1 + $0x10] sm:$0xff pattern:$0x75316420] }
 0x1f6   : > { %2023 = vst [vmem:[#allocation1 + $0x10] ss:$2 sm:$0xff] %v3381_v12  ;;  %2005 = vrot.lane.b32.xlu0 %v1992_v17, %s3008_s13  ;;  %2356 = vmatmul.f32.gmra.mxu2 %v1594_v26 }
 0x1f7   : > { %2025 = vst [vmem:[#allocation1 + $0x11] ss:$2 sm:$0xff] %v4718_v43  ;;  %v1993_v15 = vld.sshfl [vmem:[#allocation1 + $0x20] sm:$0xff pattern:$0x75316420]  ;;  %v1672_v18 = vpop.permute.xlu0 %1671 }
 0x1f8   : > { %2027 = vst [vmem:[#allocation1 + $0x20] ss:$2 sm:$0xff] %v3155_v27 }
 0x1f9   : > { %v1994_v42 = vld.sshfl [vmem:[#allocation1 + $0x30] sm:$0xff pattern:$0x75316420]  ;;  %2029 = vst [vmem:[#allocation1 + $0x21] ss:$2 sm:$0xff] %v3160_v29 }
 0x1fa   : > { %2031 = vst [vmem:[#allocation1 + $0x30] ss:$2 sm:$0xff] %v3390_v54  ;;  %v2980_v36 = vpack.i.bf16 %v1994_v42, %v1993_v15 }
 0x1fb   : > { %2033 = vst [vmem:[#allocation1 + $0x31] ss:$2 sm:$0xff] %v4718_v43  ;;  %2001 = vrot.lane.b32.xlu1 %v1982_v24, %s3008_s13 }
 0x1fc   : > { %v2957_v49 = vpop.permute.xlu2 %2956  ;;  %v2034_v12 = vld.sshfl [vmem:[#allocation1] sm:$0xff pattern:$0x75316420] }
 0x1fd   : > { %1997 = vrot.lane.b32.xlu2 %v1980_v52, %s3008_s13  ;;  %v2958_v3 = vunpack.i.l.bf16 %v2957_v49  ;;  %2038 = vst [vmem:[#allocation1] ss:$2 sm:$0xff] %v3553_v57  ;;  %v1678_v39 = vpop.permute.xlu1 %1677  ;;  %v2959_v35 = vunpack.i.h.bf16 %v2957_v49 }
 0x1fe   : > { %2039 = vst [vmem:[#allocation1 + $0x1] ss:$2 sm:$0xff] %v3561_v58  ;;  %v2035_v27 = vld.sshfl [vmem:[#allocation1 + $0x10] sm:$0xff pattern:$0x75316420]  ;;  %v2190_v29 = vsel %vm1460_vm8, %v4748_v13, %v1678_v39  ;;  %2050 = vrot.lane.b32.xlu0 %v2034_v12, %s3009_s14 }
 0x1ff   : > { %2040 = vst [vmem:[#allocation1 + $0x10] ss:$2 sm:$0xff] %v3765_v47  ;;  %v4323_v54 = vsel %vm1469_vm9, %v2190_v29, %v2958_v3 }
 0x200   : > { %v2036_v7 = vld.sshfl [vmem:[#allocation1 + $0x20] sm:$0xff pattern:$0x75316420]  ;;  %2041 = vst [vmem:[#allocation1 + $0x11] ss:$2 sm:$0xff] %v4718_v43  ;;  %v1680_v57 = vpop.permute.xlu0 %1679 }
 0x201   : > { %2042 = vst [vmem:[#allocation1 + $0x20] ss:$2 sm:$0xff] %v4718_v43  ;;  %v2191_v0 = vsel %vm1460_vm8, %v4749_v9, %v1680_v57 }
 0x202   : > { %v2037_v58 = vld.sshfl [vmem:[#allocation1 + $0x30] sm:$0xff pattern:$0x75316420]  ;;  %2043 = vst [vmem:[#allocation1 + $0x21] ss:$2 sm:$0xff] %v4718_v43  ;;  %v4332_v47 = vsel %vm1469_vm9, %v2191_v0, %v2959_v35 }
 0x203   : > { %2044 = vst [vmem:[#allocation1 + $0x30] ss:$2 sm:$0xff] %v4718_v43  ;;  %2054 = vrot.lane.b32.xlu1 %v2036_v7, %s3009_s14 }
 0x204   : > { %2045 = vst [vmem:[#allocation1 + $0x31] ss:$2 sm:$0xff] %v4718_v43  ;;  %v1782_v52 = vpop.permute.xlu2 %1781  ;;  %v2184_v43 = vsel %vm1460_vm8, %v4750_v63, %v4287_v16 }
 0x205   : > { %v4336_v6 = vld.sshfl [vmem:[#allocation1] sm:$0xff pattern:$0x75316420]  ;;  %2981 = vrot.lane.b32.xlu2 %v2980_v36, %s3008_s13  ;;  %v1676_v8 = vpop.permute.xlu1 %1675 }
 0x206   : > { %2074 = vst [vmem:[#allocation1] ss:$2 sm:$0xff] %v3235_v10  ;;  %2052 = vrot.lane.b32.xlu0 %v2035_v27, %s3009_s14 }
 0x207   : > { %2076 = vst [vmem:[#allocation1 + $0x1] ss:$2 sm:$0xff] %v4707_v23  ;;  %v2047_v44 = vld.sshfl [vmem:[#allocation1 + $0x10] sm:$0xff pattern:$0x75316420] }
 0x208   : > { %2078 = vst [vmem:[#allocation1 + $0x10] ss:$2 sm:$0xff] %v4708_v61  ;;  %v1721_v53 = vpop.permute.xlu0 %1720  ;;  %v4751_v61 = vld [vmem:[#allocation2_spill] sm:$0xff] }
 0x209   : > { %2080 = vst [vmem:[#allocation1 + $0x11] ss:$2 sm:$0xff] %v4719_v5  ;;  %v2048_v24 = vld.sshfl [vmem:[#allocation1 + $0x20] sm:$0xff pattern:$0x75316420]  ;;  %v2192_v20 = vsel %vm1469_vm9, %v2184_v43, %v1721_v53  ;;  %v2187_v16 = vsel %vm1460_vm8, %v4751_v61, %v1672_v18 }
 0x20a   : > { %2082 = vst [vmem:[#allocation1 + $0x20] ss:$2 sm:$0xff] %v3259_v41  ;;  %v4754_v18 = vld [vmem:[#allocation21_spill] sm:$0xff] }
 0x20b   : > { %v2049_v10 = vld.sshfl [vmem:[#allocation1 + $0x30] sm:$0xff pattern:$0x75316420]  ;;  %2084 = vst [vmem:[#allocation1 + $0x21] ss:$2 sm:$0xff] %v3269_v46  ;;  %v2188_v42 = vsel %vm1460_vm8, %v4754_v18, %v4266_v33 }
 0x20c   : > { %v2985_v23 = vpack.i.bf16 %v2049_v10, %v2048_v24  ;;  %2086 = vst [vmem:[#allocation1 + $0x30] ss:$2 sm:$0xff] %v4709_v2 }
 0x20d   : > { %2060 = vrot.lane.b32.xlu2 %v2047_v44, %s3009_s14  ;;  %2088 = vst [vmem:[#allocation1 + $0x31] ss:$2 sm:$0xff] %v4719_v5  ;;  %v1727_v55 = vpop.permute.xlu1 %1726 }
 0x20e   : > { %2986 = vrot.lane.b32.xlu1 %v2985_v23, %s3009_s14  ;;  %v2089_v40 = vld.sshfl [vmem:[#allocation1] sm:$0xff pattern:$0x75316420]  ;;  %v2195_v41 = vsel %vm1469_vm9, %v2187_v16, %v1727_v55  ;;  %2056 = vrot.lane.b32.xlu0 %v2037_v58, %s3009_s14 }
 0x20f   : > { %v1831_v25 = vpop.permute.xlu2 %1830  ;;  %2093 = vst [vmem:[#allocation1] ss:$2 sm:$0xff] %v3630_v56  ;;  %v4361_v2 = vsel %vm1478_vm10, %v2195_v41, %v1782_v52 }
 0x210   : > { %2094 = vst [vmem:[#allocation1 + $0x1] ss:$2 sm:$0xff] %v3634_v32  ;;  %v2090_v46 = vld.sshfl [vmem:[#allocation1 + $0x10] sm:$0xff pattern:$0x75316420]  ;;  %v1725_v19 = vpop.permute.xlu0 %1724  ;;  %v4753_v32 = vld [vmem:[#allocation22_spill] sm:$0xff] }
 0x211   : > { %2095 = vst [vmem:[#allocation1 + $0x10] ss:$2 sm:$0xff] %v3809_v4  ;;  %v2194_v17 = vsel %vm1469_vm9, %v2186_v38, %v1725_v19  ;;  %v2189_v14 = vsel %vm1460_vm8, %v4753_v32, %v1676_v8 }
 0x212   : > { %v2091_v21 = vld.sshfl [vmem:[#allocation1 + $0x20] sm:$0xff pattern:$0x75316420]  ;;  %2096 = vst [vmem:[#allocation1 + $0x11] ss:$2 sm:$0xff] %v4719_v5 }
 0x213   : > { %2097 = vst [vmem:[#allocation1 + $0x20] ss:$2 sm:$0xff] %v4719_v5 }
 0x214   : > { %2098 = vst [vmem:[#allocation1 + $0x21] ss:$2 sm:$0xff] %v4719_v5  ;;  %v2092_v56 = vld.sshfl [vmem:[#allocation1 + $0x30] sm:$0xff pattern:$0x75316420] }
 0x215   : > { %2109 = vrot.lane.b32.xlu2 %v2091_v21, %s3010_s15  ;;  %2099 = vst [vmem:[#allocation1 + $0x30] ss:$2 sm:$0xff] %v4719_v5  ;;  %v1731_v4 = vpop.permute.xlu1 %1730 }
 0x216   : > { %2105 = vrot.lane.b32.xlu1 %v2089_v40, %s3010_s15  ;;  %2100 = vst [vmem:[#allocation1 + $0x31] ss:$2 sm:$0xff] %v4719_v5  ;;  %v2197_v26 = vsel %vm1469_vm9, %v2189_v14, %v1731_v4 }
 0x217   : > { %v1835_v34 = vpop.permute.xlu2 %1834  ;;  %v4377_v15 = vld.sshfl [vmem:[#allocation1] sm:$0xff pattern:$0x75316420] }
 0x218   : > { %2129 = vst [vmem:[#allocation1] ss:$2 sm:$0xff] %v3327_v59  ;;  %v1729_v12 = vpop.permute.xlu0 %1728 }
 0x219   : > { %2131 = vst [vmem:[#allocation1 + $0x1] ss:$2 sm:$0xff] %v4735_v45  ;;  %v2102_v49 = vld.sshfl [vmem:[#allocation1 + $0x10] sm:$0xff pattern:$0x75316420]  ;;  %v2196_v5 = vsel %vm1469_vm9, %v2188_v42, %v1729_v12  ;;  %vm2452_vm9 = vcmask 58368  }
 0x21a   : > { %2115 = vrot.lane.b32.xlu0 %v2102_v49, %s3010_s15  ;;  %2133 = vst [vmem:[#allocation1 + $0x10] ss:$2 sm:$0xff] %v4736_v30 }
 0x21b   : > { %2135 = vst [vmem:[#allocation1 + $0x11] ss:$2 sm:$0xff] %v3275_v48  ;;  %v2103_v3 = vld.sshfl [vmem:[#allocation1 + $0x20] sm:$0xff pattern:$0x75316420] }
 0x21c   : > { %2137 = vst [vmem:[#allocation1 + $0x20] ss:$2 sm:$0xff] %v4738_v51 }
 0x21d   : > { %2107 = vrot.lane.b32.xlu2 %v2090_v46, %s3010_s15  ;;  %v2104_v59 = vld.sshfl [vmem:[#allocation1 + $0x30] sm:$0xff pattern:$0x75316420]  ;;  %2139 = vst [vmem:[#allocation1 + $0x21] ss:$2 sm:$0xff] %v4739_v62  ;;  %v1776_v45 = vpop.permute.xlu1 %1775 }
 0x21e   : > { %2111 = vrot.lane.b32.xlu1 %v2092_v56, %s3010_s15  ;;  %2141 = vst [vmem:[#allocation1 + $0x30] ss:$2 sm:$0xff] %v4740_v22  ;;  %v2200_v30 = vsel %vm1478_vm10, %v2192_v20, %v1776_v45 }
 0x21f   : > { %v1833_v33 = vpop.permute.xlu2 %1832  ;;  %2143 = vst [vmem:[#allocation1 + $0x31] ss:$2 sm:$0xff] %v3275_v48  ;;  %v2208_v27 = vsel %vm1487_vm11, %v2200_v30, %v1831_v25  ;;  %v2289_v30 = vld [vmem:[%s4630_s3 + $0xc8] sm:$0xff] }
 0x220   : > { %v2144_v39 = vld.sshfl [vmem:[#allocation1] sm:$0xff pattern:$0x75316420]  ;;  %v1780_v51 = vpop.permute.xlu0 %1779 }
 0x221   : > { %2148 = vst [vmem:[#allocation1] ss:$2 sm:$0xff] %v4742_v37  ;;  %v2202_v62 = vsel %vm1478_vm10, %v2194_v17, %v1780_v51 }
 0x222   : > { %2160 = vrot.lane.b32.xlu0 %v2144_v39, %s3011_s16  ;;  %2149 = vst [vmem:[#allocation1 + $0x1] ss:$2 sm:$0xff] %v4744_v11  ;;  %v2145_v35 = vld.sshfl [vmem:[#allocation1 + $0x10] sm:$0xff pattern:$0x75316420]  ;;  %v2210_v22 = vsel %vm1487_vm11, %v2202_v62, %v1835_v34 }
 0x223   : > { %2150 = vst [vmem:[#allocation1 + $0x10] ss:$2 sm:$0xff] %v4745_v60 }
 0x224   : > { %v2146_v13 = vld.sshfl [vmem:[#allocation1 + $0x20] sm:$0xff pattern:$0x75316420]  ;;  %2151 = vst [vmem:[#allocation1 + $0x11] ss:$2 sm:$0xff] %v3275_v48 }
 0x225   : > { %2117 = vrot.lane.b32.xlu2 %v2103_v3, %s3010_s15  ;;  %2152 = vst [vmem:[#allocation1 + $0x20] ss:$2 sm:$0xff] %v3275_v48  ;;  %v1778_v29 = vpop.permute.xlu1 %1777 }
 0x226   : > { %2153 = vst [vmem:[#allocation1 + $0x21] ss:$2 sm:$0xff] %v3275_v48  ;;  %v2147_v37 = vld.sshfl [vmem:[#allocation1 + $0x30] sm:$0xff pattern:$0x75316420]  ;;  %v2201_v11 = vsel %vm1478_vm10, %v4304_v28, %v1778_v29  ;;  %v2285_v29 = vld [vmem:[%s4630_s3 + $0xa8] sm:$0xff] }
 0x227   : > { %v2967_v7 = vpop.permute.xlu2 %2966  ;;  %2166 = vrot.lane.b32.xlu1 %v2147_v37, %s3011_s16  ;;  %2154 = vst [vmem:[#allocation1 + $0x30] ss:$2 sm:$0xff] %v3275_v48  ;;  %v2209_v60 = vsel %vm1487_vm11, %v2201_v11, %v1833_v33  ;;  %v2290_v33 = vld [vmem:[%s4630_s3 + $0xd0] sm:$0xff] }
 0x228   : > { %2155 = vst [vmem:[#allocation1 + $0x31] ss:$2 sm:$0xff] %v3275_v48  ;;  %v1784_v36 = vpop.permute.xlu0 %1783  ;;  %v2969_v28 = vunpack.i.h.bf16 %v2967_v7  ;;  %v2968_v8 = vunpack.i.l.bf16 %v2967_v7  ;;  %2365 = vmatpush.msra.mxu1 %v2290_v33  ;;  %2620 = vmatpush.msra.mxu3 %v2290_v33  ;;  %v2286_v37 = vld [vmem:[%s4630_s3 + $0xb0] sm:$0xff] }
 0x229   : > { %v2204_v57 = vsel %vm1478_vm10, %v2196_v5, %v1784_v36  ;;  %v2156_v31 = vld.sshfl [vmem:[#allocation1] sm:$0xff pattern:$0x75316420] }
 0x22a   : > { %1948 = vrot.lane.b32.xlu0 %v4246_v50, %s3007_s12  ;;  %2366 = vmatpush.msra.mxu1 %v2289_v30 }
 0x22b   : > { %v2157_v58 = vld.sshfl [vmem:[#allocation1 + $0x10] sm:$0xff pattern:$0x75316420]  ;;  %2621 = vmatpush.msra.mxu3 %v2289_v30 }
 0x22d   : > { %2162 = vrot.lane.b32.xlu2 %v2145_v35, %s3011_s16  ;;  %v1786_v9 = vpop.permute.xlu1 %1785  ;;  %v2158_v44 = vld.sshfl [vmem:[#allocation1 + $0x20] sm:$0xff pattern:$0x75316420] }
 0x22e   : > { %v2205_v52 = vsel %vm1478_vm10, %v2197_v26, %v1786_v9  ;;  %v2288_v35 = vld [vmem:[%s4630_s3 + $0xc0] sm:$0xff]  ;;  %v2281_v9 = vld [vmem:[%s4630_s3 + $0x88] sm:$0xff] }
 0x22f   : > { %v1894_v0 = vpop.permute.xlu2 %1893  ;;  %2170 = vrot.lane.b32.xlu1 %v2157_v58, %s3011_s16  ;;  %v2159_v25 = vld.sshfl [vmem:[#allocation1 + $0x30] sm:$0xff pattern:$0x75316420]  ;;  %2367 = vmatpush.msra.mxu1 %v2288_v35 }
 0x230   : > { %v2962_v48 = vpop.permute.xlu0 %2961  ;;  %2622 = vmatpush.msra.mxu3 %v2288_v35  ;;  %v2282_v58 = vld [vmem:[%s4630_s3 + $0x90] sm:$0xff] }
 0x231   : > { %v2964_v63 = vunpack.i.h.bf16 %v2962_v48  ;;  %v2963_v43 = vunpack.i.l.bf16 %v2962_v48 }
 0x232   : > { %2164 = vrot.lane.b32.xlu0 %v2146_v13, %s3011_s16  ;;  %v2287_v13 = vld [vmem:[%s4630_s3 + $0xb8] sm:$0xff] }
 0x233   : > { %v2207_v50 = vsel %vm1478_vm10, %v4332_v47, %v2964_v63  ;;  %v2206_v53 = vsel %vm1478_vm10, %v4323_v54, %v2963_v43  ;;  %2368 = vmatpush.msra.mxu1 %v2287_v13  ;;  %2623 = vmatpush.msra.mxu3 %v2287_v13 }
 0x234   : > { %v2214_v24 = vsel %vm1487_vm11, %v2206_v53, %v2968_v8  ;;  %v2215_v20 = vsel %vm1487_vm11, %v2207_v50, %v2969_v28 }
 0x235   : > { %2172 = vrot.lane.b32.xlu2 %v2158_v44, %s3011_s16  ;;  %v1837_v10 = vpop.permute.xlu1 %1836  ;;  %2369 = vmatpush.msra.mxu1 %v2286_v37 }
 0x236   : > { %v2211_v61 = vsel %vm1487_vm11, %v4361_v2, %v1837_v10  ;;  %2624 = vmatpush.msra.mxu3 %v2286_v37 }
 0x237   : > { %v1896_v23 = vpop.permute.xlu2 %1895  ;;  %2003 = vrot.lane.b32.xlu1 %v4291_v1, %s3008_s13  ;;  %2370 = vmatpush.msra.mxu1 %v2285_v29 }
 0x238   : > { %v1841_v16 = vpop.permute.xlu0 %1840  ;;  %2625 = vmatpush.msra.mxu3 %v2285_v29 }
 0x239   : > { %v2213_v54 = vsel %vm1487_vm11, %v2205_v52, %v1841_v16 }
 0x23a   : > { %2113 = vrot.lane.b32.xlu0 %v4377_v15, %s3010_s15  ;;  %v4435_v47 = vsel %vm1496_vm12, %v2213_v54, %v1896_v23 }
 0x23d   : > { %2058 = vrot.lane.b32.xlu2 %v4336_v6, %s3009_s14  ;;  %v1839_v55 = vpop.permute.xlu1 %1838  ;;  %s4585_s14 = scalar_lea.vmem %s4632_s5, %s2602_s25  ;;  %s2557_s25 = sshll.u32 %s4756_s22, 1 }
 0x23e   : > { %v2212_v1 = vsel %vm1487_vm11, %v2204_v57, %v1839_v55  ;;  %v2283_v57 = vld [vmem:[%s4630_s3 + $0x98] sm:$0xff]  ;;  %s262_s18 = scalar_lea.vmem %s4633_s6, %s2557_s25 }
 0x23f   : > { %v1947_v40 = vpop.permute.xlu2 %1946  ;;  %2119 = vrot.lane.b32.xlu1 %v2104_v59, %s3010_s15  ;;  %v4442_v41 = vsel %vm1496_vm12, %v2212_v1, %v1894_v0  ;;  %v2280_v0 = vld [vmem:[%s4630_s3 + $0x80] sm:$0xff] }
 0x240   : > { %v1886_v46 = vpop.permute.xlu0 %1885 }
 0x241   : > { %v4446_v2 = vsel %vm1496_vm12, %v2208_v27, %v1886_v46 }
 0x242   : > { %2174 = vrot.lane.b32.xlu0 %v2159_v25, %s3011_s16 }
 0x245   : > { %2168 = vrot.lane.b32.xlu2 %v2156_v31, %s3011_s16  ;;  %v1890_v6 = vpop.permute.xlu1 %1889 }
 0x246   : > { %v2218_v19 = vsel %vm1496_vm12, %v2210_v22, %v1890_v6 }
 0x247   : > { %v4449_v38 = vpop.permute.xlu2 %1995 }
 0x248   : > { %v1888_v21 = vpop.permute.xlu0 %1887 }
 0x249   : > { %v4453_v17 = vsel %vm1496_vm12, %v2209_v60, %v1888_v21  ;;  %v2284_v60 = vld [vmem:[%s4630_s3 + $0xa0] sm:$0xff] }
 0x24a   : > { %2371 = vmatpush.msra.mxu1 %v2284_v60  ;;  %2626 = vmatpush.msra.mxu3 %v2284_v60 }
 0x24c   : > { %2372 = vmatpush.msra.mxu1 %v2283_v57  ;;  %2627 = vmatpush.msra.mxu3 %v2283_v57 }
 0x24d   : > { %v2972_v56 = vpop.permute.xlu1 %2971 }
 0x24e   : > { %v2974_v32 = vunpack.i.h.bf16 %v2972_v56  ;;  %v2973_v14 = vunpack.i.l.bf16 %v2972_v56  ;;  %2373 = vmatpush.msra.mxu1 %v2282_v58  ;;  %2628 = vmatpush.msra.mxu3 %v2282_v58 }
 0x24f   : > { %v4455_v4 = vpop.permute.xlu2 %1999 }
 0x250   : > { %v2223_v34 = vsel %vm1496_vm12, %v2215_v20, %v2974_v32  ;;  %v4459_v15 = vsel %vm1496_vm12, %v2214_v24, %v2973_v14  ;;  %v1892_v26 = vpop.permute.xlu0 %1891  ;;  %2374 = vmatpush.msra.mxu1 %v2281_v9  ;;  %2629 = vmatpush.msra.mxu3 %v2281_v9 }
 0x251   : > { %v2219_v18 = vsel %vm1496_vm12, %v2211_v61, %v1892_v26 }
 0x252   : > { %v4463_v42 = vsel %vm1505_vm13, %v2219_v18, %v1947_v40  ;;  %2375 = vmatpush.msra.mxu1 %v2280_v0  ;;  %2630 = vmatpush.msra.mxu3 %v2280_v0 }
 0x255   : > { %v1941_v49 = vpop.permute.xlu1 %1940 }
 0x256   : > { %v2224_v24 = vsel %vm1505_vm13, %v4446_v2, %v1941_v49 }
 0x257   : > { %v4465_v5 = vpop.permute.xlu2 %1997  ;;  %v2232_v10 = vsel %vm1514_vm14, %v2224_v24, %v4449_v38 }
 0x258   : > { %v1945_v12 = vpop.permute.xlu0 %1944 }
 0x259   : > { %v4468_v3 = vsel %vm1505_vm13, %v2218_v19, %v1945_v12 }
 0x25d   : > { %v1943_v59 = vpop.permute.xlu1 %1942 }
 0x25e   : > { %v2225_v54 = vsel %vm1505_vm13, %v4453_v17, %v1943_v59  ;;  %v2234_v17 = vsel %vm1514_vm14, %v4468_v3, %v4455_v4 }
 0x25f   : > { %v4479_v27 = vpop.permute.xlu2 %2981  ;;  %v2233_v1 = vsel %vm1514_vm14, %v2225_v54, %v4465_v5 }
 0x260   : > { %v4470_v45 = vpop.permute.xlu0 %2976 }
 0x261   : > { %v2979_v39 = vunpack.i.h.bf16 %v4470_v45  ;;  %v2978_v21 = vunpack.i.l.bf16 %v4470_v45 }
 0x263   : > { %v4482_v51 = vsel %vm1505_vm13, %v2223_v34, %v2979_v39  ;;  %v2230_v18 = vsel %vm1505_vm13, %v4459_v15, %v2978_v21 }
 0x265   : > { %v1951_v62 = vpop.permute.xlu1 %1950 }
 0x266   : > { %v2229_v2 = vsel %vm1505_vm13, %v4435_v47, %v1951_v62  ;;  %v2983_v47 = vunpack.i.l.bf16 %v4479_v27 }
 0x267   : > { %v2061_v7 = vpop.permute.xlu2 %2060 }
 0x268   : > { %v2006_v22 = vpop.permute.xlu0 %2005  ;;  %v2238_v59 = vsel %vm1514_vm14, %v2230_v18, %v2983_v47 }
 0x269   : > { %v2237_v38 = vsel %vm1514_vm14, %v2229_v2, %v2006_v22 }
 0x26a   : > { %v2245_v32 = vsel %vm1523_vm15, %v2237_v38, %v2061_v7  ;;  %v2984_v7 = vunpack.i.h.bf16 %v4479_v27 }
 0x26d   : > { %v4496_v11 = vpop.permute.xlu1 %2001 }
 0x26e   : > { %v2235_v39 = vsel %vm1514_vm14, %v4463_v42, %v4496_v11 }
 0x26f   : > { %v2110_v28 = vpop.permute.xlu2 %2109 }
 0x270   : > { %v2051_v36 = vpop.permute.xlu0 %2050 }
 0x271   : > { %v2240_v23 = vsel %vm1523_vm15, %v2232_v10, %v2051_v36 }
 0x275   : > { %v2055_v52 = vpop.permute.xlu1 %2054 }
 0x276   : > { %v2242_v14 = vsel %vm1523_vm15, %v2234_v17, %v2055_v52 }
 0x277   : > { %v2108_v44 = vpop.permute.xlu2 %2107  ;;  %v2250_v5 = vsel %vm1532_vm1, %v2242_v14, %v2110_v28 }
 0x278   : > { %v2053_v8 = vpop.permute.xlu0 %2052 }
 0x279   : > { %v2241_v25 = vsel %vm1523_vm15, %v2233_v1, %v2053_v8  ;;  %v2336_v8 = vpop.f32.mrf.mxu0 }
 0x27a   : > { %v2249_v6 = vsel %vm1532_vm1, %v2241_v25, %v2108_v44  ;;  %v2992_v44 = vld [vmem:[%s4631_s4] ss:$0 sm:$0xff] }
 0x27f   : > { %v2118_v50 = vpop.permute.xlu2 %2117 }
 0x280   : > { %v4513_v48 = vpop.permute.xlu1 %2986  ;;  %v2057_v63 = vpop.permute.xlu0 %2056 }
 0x281   : > { %v2988_v49 = vunpack.i.l.bf16 %v4513_v48  ;;  %v2243_v35 = vsel %vm1523_vm15, %v2235_v39, %v2057_v63  ;;  %v2989_v42 = vunpack.i.h.bf16 %v4513_v48  ;;  %v2345_v48 = vpop.f32.mrf.mxu2 }
 0x283   : > { %v2246_v45 = vsel %vm1523_vm15, %v2238_v59, %v2988_v49 }
 0x284   : > { %v2254_v15 = vsel %vm1532_vm1, %v2246_v45, %v2118_v50  ;;  %v2339_v50 = vpop.f32.mrf.mxu0 }
 0x285   : > { %v2340_v24 = vadd.f32 %v2992_v44, %v2339_v50 }
 0x287   : > { %v2163_v40 = vpop.permute.xlu2 %2162 }
 0x288   : > { %v2106_v43 = vpop.permute.xlu1 %2105  ;;  %v2257_v19 = vsel %vm1541_vm2, %v2249_v6, %v2163_v40 }
 0x289   : > { %v2248_v61 = vsel %vm1532_vm1, %v2240_v23, %v2106_v43 }
 0x28c   : > { %v2116_v53 = vpop.permute.xlu0 %2115  ;;  %v2342_v23 = vpop.f32.mrf.mxu0 }
 0x28d   : > { %v2253_v34 = vsel %vm1532_vm1, %v2245_v32, %v2116_v53  ;;  %v2348_v53 = vpop.f32.mrf.mxu2 }
 0x28f   : > { %v2173_v56 = vpop.permute.xlu2 %2172 }
 0x290   : > { %v2112_v20 = vpop.permute.xlu1 %2111  ;;  %v2262_v62 = vsel %vm1541_vm2, %v2254_v15, %v2173_v56 }
 0x291   : > { %v2251_v22 = vsel %vm1532_vm1, %v2243_v35, %v2112_v20 }
 0x294   : > { %v2161_v16 = vpop.permute.xlu0 %2160 }
 0x295   : > { %v2256_v55 = vsel %vm1541_vm2, %v2248_v61, %v2161_v16  ;;  %v2351_v61 = vpop.f32.mrf.mxu2  ;;  %v2343_v16 = vadd.f32 %v2992_v44, %v2342_v23 }
 0x296   : > { %2592 = vmatmul.msk.f32.vlgmr.msra.gmra.mxu1 %vm1550_vm3, %v2256_v55  ;;  %v2352_v40 = vadd.f32 %v2992_v44, %v2351_v61 }
 0x297   : > { %v2059_v33 = vpop.permute.xlu2 %2058 }
 0x299   : > { %v2167_v46 = vpop.permute.xlu1 %2166 }
 0x29a   : > { %v2259_v29 = vsel %vm1541_vm2, %v2251_v22, %v2167_v46  ;;  %v2346_v46 = vadd.f32 %v2992_v44, %v2345_v48 }
 0x29c   : > { %v1949_v31 = vpop.permute.xlu0 %1948 }
 0x29d   : > { %v2228_v37 = vsel %vm1505_vm13, %v4442_v41, %v1949_v31  ;;  %v2239_v41 = vsel %vm1514_vm14, %v4482_v51, %v2984_v7  ;;  %v2337_v51 = vadd.f32 %v2992_v44, %v2336_v8  ;;  %v2354_v2 = vpop.f32.mrf.mxu2 }
 0x29e   : > { %2593 = vmatmul.msk.f32.gmra.mxu1 %vm1550_vm3, %v2257_v19  ;;  %v2247_v9 = vsel %vm1523_vm15, %v2239_v41, %v2989_v42  ;;  %v2355_v19 = vadd.f32 %v2992_v44, %v2354_v2 }
 0x29f   : > { %v2169_v58 = vpop.permute.xlu2 %2168 }
 0x2a1   : > { %v2171_v26 = vpop.permute.xlu1 %2170 }
 0x2a2   : > { %v2261_v12 = vsel %vm1541_vm2, %v2253_v34, %v2171_v26 }
 0x2a3   : > { %2597 = vmatmul.msk.f32.vlgmr.msra.gmra.mxu3 %vm1550_vm3, %v2261_v12  ;;  %v2349_v12 = vadd.f32 %v2992_v44, %v2348_v53 }
 0x2a4   : > { %v2165_v4 = vpop.permute.xlu0 %2164 }
 0x2a5   : > { %v2258_v3 = vsel %vm1541_vm2, %v2250_v5, %v2165_v4  ;;  %v2357_v39 = vpop.f32.mrf.mxu2 }
 0x2a6   : > { %2594 = vmatmul.msk.f32.gmra.mxu1 %vm1550_vm3, %v2258_v3 }
 0x2a9   : > { %v2004_v30 = vpop.permute.xlu1 %2003 }
 0x2aa   : > { %v2236_v60 = vsel %vm1514_vm14, %v2228_v37, %v2004_v30 }
 0x2ab   : > { %2598 = vmatmul.msk.f32.gmra.mxu3 %vm1550_vm3, %v2262_v62  ;;  %v2244_v11 = vsel %vm1523_vm15, %v2236_v60, %v2059_v33  ;;  %v2358_v60 = vadd.f32 %v2992_v44, %v2357_v39 }
 0x2ac   : > { %v2114_v13 = vpop.permute.xlu0 %2113 }
 0x2ad   : > { %v2252_v57 = vsel %vm1532_vm1, %v2244_v11, %v2114_v13 }
 0x2ae   : > { %2595 = vmatmul.msk.f32.gmra.mxu1 %vm1550_vm3, %v2259_v29  ;;  %v2260_v52 = vsel %vm1541_vm2, %v2252_v57, %v2169_v58 }
 0x2b1   : > { %v2120_v36 = vpop.permute.xlu1 %2119 }
 0x2b2   : > { %v2255_v27 = vsel %vm1532_vm1, %v2247_v9, %v2120_v36 }
 0x2b4   : > { %v2175_v0 = vpop.permute.xlu0 %2174 }
 0x2b5   : > { %v2263_v28 = vsel %vm1541_vm2, %v2255_v27, %v2175_v0 }
 0x2b6   : > { %2596 = vmatmul.msk.f32.gmra.mxu1 %vm1550_vm3, %v2260_v52  ;;  %2599 = vmatmul.msk.f32.gmra.mxu3 %vm1550_vm3, %v2263_v28 }
 0x313   : > { %v2377_v63 = vpop.f32.mrf.mxu1 }
 0x314   : > { %v2378_v43 = vadd.f32 %v2377_v63, %v2337_v51 }
 0x316   : > { %2454 = vst.msk [vmem:[%s4585_s14] sm:$0xff] %vm1460_vm8, %v2378_v43  ;;  %v2422_v21 = vmul.f32 %v2378_v43, %v2378_v43  ;;  %v2401_v14 = vsel %vm1460_vm8, %v2378_v43, 0.0 }
 0x318   : > { %v2430_v4 = vsel %vm1460_vm8, %v2422_v21, 0.0 }
 0x31b   : > { %v2380_v20 = vpop.f32.mrf.mxu1 }
 0x31c   : > { %v2381_v10 = vadd.f32 %v2380_v20, %v2340_v24 }
 0x31e   : > { %2455 = vst.msk [vmem:[%s4585_s14 + $0x8] sm:$0xff] %vm1460_vm8, %v2381_v10  ;;  %v2423_v6 = vmul.f32 %v2381_v10, %v2381_v10  ;;  %v2402_v17 = vsel %vm1460_vm8, %v2381_v10, 0.0 }
 0x31f   : > { %v2403_v49 = vadd.f32 %v2402_v17, %v2401_v14 }
 0x320   : > { %v2431_v34 = vsel %vm1460_vm8, %v2423_v6, 0.0 }
 0x321   : > { %v2432_v59 = vadd.f32 %v2431_v34, %v2430_v4 }
 0x323   : > { %v2383_v54 = vpop.f32.mrf.mxu1 }
 0x324   : > { %v2384_v55 = vadd.f32 %v2383_v54, %v2343_v16 }
 0x326   : > { %2456 = vst.msk [vmem:[%s4585_s14 + $0x10] sm:$0xff] %vm1460_vm8, %v2384_v55  ;;  %v2392_v1 = vpop.f32.mrf.mxu3  ;;  %v2424_v56 = vmul.f32 %v2384_v55, %v2384_v55  ;;  %v2404_v26 = vsel %vm1460_vm8, %v2384_v55, 0.0 }
 0x327   : > { %v2393_v25 = vadd.f32 %v2392_v1, %v2352_v40  ;;  %v2405_v45 = vadd.f32 %v2404_v26, %v2403_v49 }
 0x328   : > { %v2433_v5 = vsel %vm1460_vm8, %v2424_v56, 0.0 }
 0x329   : > { %2459 = vst.msk [vmem:[%s4585_s14 + $0x28] sm:$0xff] %vm1460_vm8, %v2393_v25  ;;  %v2434_v62 = vadd.f32 %v2433_v5, %v2432_v59  ;;  %v2427_v22 = vmul.f32 %v2393_v25, %v2393_v25  ;;  %v2410_v42 = vsel %vm1460_vm8, %v2393_v25, 0.0 }
 0x32b   : > { %v2386_v31 = vpop.f32.mrf.mxu1  ;;  %v2439_v9 = vsel %vm1460_vm8, %v2427_v22, 0.0 }
 0x32c   : > { %v2387_v38 = vadd.f32 %v2386_v31, %v2346_v46 }
 0x32e   : > { %2457 = vst.msk [vmem:[%s4585_s14 + $0x18] sm:$0xff] %vm1460_vm8, %v2387_v38  ;;  %v2395_v32 = vpop.f32.mrf.mxu3  ;;  %v2425_v18 = vmul.f32 %v2387_v38, %v2387_v38  ;;  %v2406_v3 = vsel %vm1460_vm8, %v2387_v38, 0.0 }
 0x32f   : > { %v2396_v47 = vadd.f32 %v2395_v32, %v2355_v19  ;;  %v2407_v35 = vadd.f32 %v2406_v3, %v2405_v45 }
 0x330   : > { %v2435_v30 = vsel %vm1460_vm8, %v2425_v18, 0.0 }
 0x331   : > { %2460 = vst.msk [vmem:[%s4585_s14 + $0x30] sm:$0xff] %vm1460_vm8, %v2396_v47  ;;  %v2436_v29 = vadd.f32 %v2435_v30, %v2434_v62  ;;  %v2428_v11 = vmul.f32 %v2396_v47, %v2396_v47  ;;  %v2412_v27 = vsel %vm1460_vm8, %v2396_v47, 0.0 }
 0x333   : > { %v2389_v33 = vpop.f32.mrf.mxu1  ;;  %v2441_v8 = vsel %vm1460_vm8, %v2428_v11, 0.0 }
 0x334   : > { %v2390_v15 = vadd.f32 %v2389_v33, %v2349_v12 }
 0x336   : > { %v2408_v13 = vsel %vm1460_vm8, %v2390_v15, 0.0  ;;  %v2426_v37 = vmul.f32 %v2390_v15, %v2390_v15  ;;  %2458 = vst.msk [vmem:[%s4585_s14 + $0x20] sm:$0xff] %vm1460_vm8, %v2390_v15 }
 0x337   : > { %v2409_v7 = vadd.f32 %v2408_v13, %v2407_v35 }
 0x338   : > { %v2437_v36 = vsel %vm1460_vm8, %v2426_v37, 0.0 }
 0x339   : > { %v2411_v57 = vadd.f32 %v2410_v42, %v2409_v7  ;;  %v2438_v58 = vadd.f32 %v2437_v36, %v2436_v29  ;;  %v2398_v41 = vpop.f32.mrf.mxu3 }
 0x33a   : > { %v2399_v0 = vadd.f32 %v2398_v41, %v2358_v60 }
 0x33b   : > { %v2440_v52 = vadd.f32 %v2439_v9, %v2438_v58  ;;  %v2413_v28 = vadd.f32 %v2412_v27, %v2411_v57 }
 0x33c   : > { %v2414_v48 = vsel %vm1460_vm8, %v2399_v0, 0.0  ;;  %v2429_v44 = vmul.f32 %v2399_v0, %v2399_v0  ;;  %2461 = vst.msk [vmem:[%s4585_s14 + $0x38] sm:$0xff] %vm1460_vm8, %v2399_v0 }
 0x33d   : > { %v2415_v51 = vadd.f32 %v2414_v48, %v2413_v28  ;;  %v2442_v63 = vadd.f32 %v2441_v8, %v2440_v52 }
 0x33e   : > { %v2443_v43 = vsel %vm1460_vm8, %v2429_v44, 0.0 }
 0x33f   : > { %v2416_v50 = vrot.slane %v2415_v51, 4  ;;  %v2444_v53 = vadd.f32 %v2443_v43, %v2442_v63 }
 0x341   : > { %v2417_v24 = vadd.f32 %v2416_v50, %v2415_v51  ;;  %v2445_v20 = vrot.slane %v2444_v53, 4 }
 0x343   : > { %v2418_v10 = vrot.slane %v2417_v24, 2  ;;  %v2446_v23 = vadd.f32 %v2445_v20, %v2444_v53 }
 0x345   : > { %v2419_v61 = vadd.f32 %v2418_v10, %v2417_v24  ;;  %v2447_v16 = vrot.slane %v2446_v23, 2 }
 0x347   : > { %v2420_v54 = vrot.slane %v2419_v61, 1  ;;  %v2448_v55 = vadd.f32 %v2447_v16, %v2446_v23 }
 0x349   : > { %v2449_v40 = vrot.slane %v2448_v55, 1  ;;  %v2421_v1 = vadd.f32 %v2420_v54, %v2419_v61 }
 0x34b   : > { %v2450_v25 = vadd.f32 %v2449_v40, %v2448_v55 }
 0x34d   : > { %v2451_v46 = vsel %vm386_vm0, %v2421_v1, %v2450_v25 }
 0x34e   : > { %2453 = vst.msk [vmem:[%s262_s18] sm:$0x3] %vm2452_vm9, %v2451_v46 }
 0x34f PF: > { %s17_s21 = sadd.s32 1, %s2999_s21  }
 0x350   : > { %p14_p4 = scmp.ge.s32.totalorder %s17_s21, 4  }
 0x352   :  { %16 = sbr.rel (!%p14_p4) target bundleno = 1 (0x1), region = 274 }

// kernel: down_forward.3
= control target key start
LH: loop header
LB: loop body
LE: loop exit
PB: predicated region body
PF: predicated region fallthrough
CT: control target
= control target key end

     0   :  { %s3352_s15 = smov 0   ;;  %s5338_s0 = inlined_call_operand.vmem [shape: f32[2,8,8,8,4], index: 0, kind: input, shape index: {}]   ;;  %s5339_s1 = inlined_call_operand.vmem [shape: f32[108,8], index: 1, kind: input, shape index: {}]   ;;  %s5340_s2 = inlined_call_operand.vmem [shape: f32[1,8], index: 2, kind: input, shape index: {}]   ;;  %s5341_s3 = inlined_call_operand.vmem [shape: f32[2,64,8], index: 3, kind: output, shape index: {0}]   ;;  %s5342_s4 = inlined_call_operand.vmem [shape: f32[2,2,8], index: 4, kind: output, shape index: {1}]  }
   0x1 LB: > { %s3038_s16 = sadd.s32 4294967295, %s3308_s15   ;;  %p3042_p0 = scmp.ge.s32.totalorder %s3308_s15, 1  ;;  %s3308_s15 = sphi %s3352_s15, %s15_s15  }
   0x2   : > { %p165_p1 = scmp.lt.s32.totalorder %s3308_s15, 3 }
   0x4   : > { %p166_p2 = pnand %p3042_p0, %p165_p1 }
   0x6   : > { %169 = sbr.rel (%p166_p2) target bundleno = 1012 (0x3f4), region = 32 }
   0xb   : > { %p195_p3 = scmp.lt.s32.totalorder %s3038_s16, 1  ;;  %vm938_vm0 = vcmask 1042432   ;;  %vm939_vm1 = vcmask 1046532   ;;  %v5345_v0 = vmov 0.0   ;;  %vm817_vm3 = vcmask 1042434   ;;  %s3311_s21 = smov 4  }
   0xc   : > { %1094 = vst [vmem:[#allocation1] ss:$2 sm:$0xff] %v5345_v0  ;;  %v3366_v1 = vrot.slane %v5345_v0, 4  ;;  %vm3374_vm2 = vmor %vm938_vm0, %vm939_vm1  ;;  %v3112_v12 = vrot.slane %v5345_v0, 9  ;;  %vm819_vm4 = vcmask 1043459   ;;  %vm821_vm5 = vcmask 1044484  }
   0xd   : > { %s5617_s16 = smov (!%p195_p3, %s3038_s16), 1  ;;  %1096 = vst [vmem:[#allocation1 + $0x1] ss:$2 sm:$0xff] %v5345_v0  ;;  %vm884_vm6 = vcmask 1040384   ;;  %vm901_vm7 = vcmask 1044480   ;;  %vm981_vm8 = vcmask 1041408  }
   0xe   : > { %s3157_s17 = sshll.u32 %s5617_s16, 9  ;;  %1098 = vst [vmem:[#allocation1 + $0x10] ss:$2 sm:$0xff] %v5345_v0  ;;  %v943_v13 = vrot.slane %v3366_v1, 5  ;;  %vm982_vm9 = vcmask 1045508   ;;  %s3312_s22 = smov 8  }
   0xf   : > { %s3372_s20 = scalar_lea.vmem %s5338_s0, %s3157_s17  ;;  %1100 = vst [vmem:[#allocation1 + $0x11] ss:$2 sm:$0xff] %v5345_v0  ;;  %vm3587_vm10 = vmor %vm981_vm8, %vm982_vm9  ;;  %s3313_s23 = smov 12   ;;  %vm1958_vm11 = vcmask 31744   ;;  %vm1967_vm12 = vcmask 64512   ;;  %vm1976_vm13 = vcmask 97280  }
  0x10   : > { %v225_v3 = vld [vmem:[%s3372_s20 + $0x80] sm:$0xff]  ;;  %v226_v4 = vld [vmem:[%s3372_s20 + $0x88] sm:$0xff]  ;;  %v227_v5 = vld [vmem:[%s3372_s20 + $0x90] sm:$0xff]  ;;  %1102 = vst [vmem:[#allocation1 + $0x20] ss:$2 sm:$0xff] %v5345_v0  ;;  %v3405_v29 = vsel %vm3374_vm2, %v3112_v12, %v943_v13  ;;  %s3314_s24 = smov 16  }
  0x11   : > { %v228_v6 = vld [vmem:[%s3372_s20 + $0x98] sm:$0xff]  ;;  %v229_v7 = vld [vmem:[%s3372_s20 + $0xa0] sm:$0xff]  ;;  %v230_v8 = vld [vmem:[%s3372_s20 + $0xa8] sm:$0xff]  ;;  %5433 = vst [vmem:[#allocation3_spill] sm:$0xff] %v3405_v29  ;;  %s3315_s25 = smov 20   ;;  %s3316_s26 = smov 24  }
  0x12   : > { %v233_v9 = vld [vmem:[%s3372_s20 + $0xc0] sm:$0xff]  ;;  %v234_v10 = vld [vmem:[%s3372_s20 + $0xc8] sm:$0xff]  ;;  %v235_v11 = vld [vmem:[%s3372_s20 + $0xd0] sm:$0xff]  ;;  %s3317_s27 = smov 28   ;;  %s3318_s28 = smov 32   ;;  %vm1985_vm14 = vcmask 130048  }
  0x13   : > { %v236_v14 = vld [vmem:[%s3372_s20 + $0xd8] sm:$0xff]  ;;  %v237_v15 = vld [vmem:[%s3372_s20 + $0xe0] sm:$0xff]  ;;  %v238_v16 = vld [vmem:[%s3372_s20 + $0xe8] sm:$0xff]  ;;  %v281_v17 = vmax.f32 %v225_v3, %v233_v9  ;;  %v282_v18 = vmax.f32 %v226_v4, %v234_v10  ;;  %v283_v19 = vmax.f32 %v227_v5, %v235_v11  ;;  %s3319_s29 = smov 36   ;;  %s3320_s30 = smov 40   ;;  %vm1994_vm15 = vcmask 162816  }
  0x14   : > { %v284_v20 = vmax.f32 %v228_v6, %v236_v14  ;;  %v285_v21 = vmax.f32 %v229_v7, %v237_v15  ;;  %v286_v22 = vmax.f32 %v230_v8, %v238_v16  ;;  %v3394_v23 = vld.sshfl [vmem:[#allocation1] sm:$0xff pattern:$0x75316420]  ;;  %v3397_v24 = vld [vmem:[%s3372_s20 + $0x10] sm:$0xff]  ;;  %v212_v6 = vld [vmem:[%s3372_s20 + $0x18] sm:$0xff]  ;;  %s3321_s5 = smov 44  }
  0x15   : > { %5432 = vst [vmem:[#allocation2_spill] sm:$0xff] %v3394_v23  ;;  %v309_v25 = vmax.f32 %v281_v17, %v282_v18  ;;  %v3401_v26 = vld [vmem:[%s3372_s20 + $0x50] sm:$0xff]  ;;  %v220_v7 = vld [vmem:[%s3372_s20 + $0x58] sm:$0xff]  ;;  %v213_v12 = vld [vmem:[%s3372_s20 + $0x20] sm:$0xff]  ;;  %s3322_s6 = smov 48   ;;  %s3323_s7 = smov 52  }
  0x16   : > { %1113 = vst [vmem:[#allocation1] ss:$2 sm:$0xff] %v5345_v0  ;;  %v310_v27 = vmax.f32 %v283_v19, %v284_v20  ;;  %v311_v28 = vmax.f32 %v285_v21, %v286_v22  ;;  %v275_v30 = vmax.f32 %v3397_v24, %v3401_v26  ;;  %v221_v13 = vld [vmem:[%s3372_s20 + $0x60] sm:$0xff]  ;;  %v214_v18 = vld [vmem:[%s3372_s20 + $0x28] sm:$0xff]  ;;  %vm2003_vm0 = vcmask 195584   ;;  %s3324_s8 = smov 56  }
  0x17   : > { %v349_v31 = vrot.slane %v309_v25, 2  ;;  %v350_v32 = vrot.slane %v309_v25, 4  ;;  %v351_v33 = vrot.slane %v309_v25, 6  ;;  %v3064_v34 = vrot.slane %v309_v25, 9  ;;  %v222_v19 = vld [vmem:[%s3372_s20 + $0x68] sm:$0xff]  ;;  %s3325_s9 = smov 60  }
  0x18   : > { %v352_v35 = vrot.slane %v310_v27, 2  ;;  %v353_v36 = vrot.slane %v310_v27, 4  ;;  %v354_v37 = vrot.slane %v310_v27, 6  ;;  %v355_v38 = vrot.slane %v311_v28, 2  ;;  %s3326_s10 = smov 64  }
  0x19   : > { %v356_v39 = vrot.slane %v311_v28, 4  ;;  %v357_v40 = vrot.slane %v311_v28, 6  ;;  %v3065_v41 = vrot.slane %v349_v31, 9  ;;  %v3066_v42 = vrot.slane %v350_v32, 9 }
  0x1a   : > { %v3067_v43 = vrot.slane %v351_v33, 9  ;;  %v3068_v44 = vrot.slane %v310_v27, 9  ;;  %v3069_v45 = vrot.slane %v352_v35, 9  ;;  %v3070_v46 = vrot.slane %v353_v36, 9 }
  0x1b   : > { %v3071_v47 = vrot.slane %v354_v37, 9  ;;  %v3072_v48 = vrot.slane %v311_v28, 9  ;;  %v3073_v49 = vrot.slane %v355_v38, 9  ;;  %v3074_v50 = vrot.slane %v356_v39, 9 }
  0x1c   : > { %v3075_v51 = vrot.slane %v357_v40, 9  ;;  %v641_v52 = vmax.f32 %v309_v25, %v3064_v34  ;;  %v642_v53 = vmax.f32 %v349_v31, %v3065_v41  ;;  %v643_v54 = vmax.f32 %v350_v32, %v3066_v42  ;;  %v243_v25 = vld [vmem:[%s3372_s20 + $0x110] sm:$0xff]  ;;  %v244_v34 = vld [vmem:[%s3372_s20 + $0x118] sm:$0xff]  ;;  %v245_v41 = vld [vmem:[%s3372_s20 + $0x120] sm:$0xff] }
  0x1d   : > { %v644_v55 = vmax.f32 %v351_v33, %v3067_v43  ;;  %v645_v56 = vmax.f32 %v310_v27, %v3068_v44  ;;  %v646_v57 = vmax.f32 %v352_v35, %v3069_v45  ;;  %v647_v58 = vmax.f32 %v353_v36, %v3070_v46  ;;  %v251_v27 = vld [vmem:[%s3372_s20 + $0x150] sm:$0xff]  ;;  %v252_v35 = vld [vmem:[%s3372_s20 + $0x158] sm:$0xff]  ;;  %v253_v42 = vld [vmem:[%s3372_s20 + $0x160] sm:$0xff] }
  0x1e   : > { %v648_v59 = vmax.f32 %v354_v37, %v3071_v47  ;;  %v649_v60 = vmax.f32 %v311_v28, %v3072_v48  ;;  %v650_v61 = vmax.f32 %v355_v38, %v3073_v49  ;;  %v651_v62 = vmax.f32 %v356_v39, %v3074_v50  ;;  %v246_v47 = vld [vmem:[%s3372_s20 + $0x128] sm:$0xff] }
  0x1f   : > { %v652_v63 = vmax.f32 %v357_v40, %v3075_v51  ;;  %v769_v3 = vperm.slane %v641_v52, 0  ;;  %v770_v4 = vperm.slane %v642_v53, 0  ;;  %v771_v5 = vperm.slane %v643_v54, 0  ;;  %v3427_v40 = vld.sshfl [vmem:[#allocation1 + $0x10] sm:$0xff pattern:$0x75316420] }
  0x20   : > { %v772_v8 = vperm.slane %v644_v55, 0  ;;  %v773_v9 = vperm.slane %v645_v56, 0  ;;  %v774_v10 = vperm.slane %v646_v57, 0  ;;  %v775_v11 = vperm.slane %v647_v58, 0  ;;  %5434 = vst [vmem:[#allocation4_spill] sm:$0xff] %v3427_v40  ;;  %v254_v48 = vld [vmem:[%s3372_s20 + $0x168] sm:$0xff] }
  0x21   : > { %v776_v14 = vperm.slane %v648_v59, 0  ;;  %v777_v15 = vperm.slane %v649_v60, 0  ;;  %v778_v16 = vperm.slane %v650_v61, 0  ;;  %v779_v17 = vperm.slane %v651_v62, 0  ;;  %v3444_v54 = vld [vmem:[%s3372_s20] sm:$0xff] }
  0x22   : > { %v780_v20 = vperm.slane %v652_v63, 0  ;;  %v832_v21 = vsel %vm817_vm3, %v770_v4, %v769_v3  ;;  %v835_v22 = vsel %vm817_vm3, %v774_v10, %v773_v9  ;;  %v276_v28 = vmax.f32 %v212_v6, %v220_v7  ;;  %v3447_v55 = vld [vmem:[%s3372_s20 + $0x40] sm:$0xff] }
  0x23   : > { %v833_v31 = vsel %vm819_vm4, %v771_v5, %v832_v21  ;;  %v836_v32 = vsel %vm819_vm4, %v775_v11, %v835_v22  ;;  %v838_v33 = vsel %vm817_vm3, %v778_v16, %v777_v15  ;;  %v277_v36 = vmax.f32 %v213_v12, %v221_v13  ;;  %v3473_v12 = vld [vmem:[%s3372_s20 + $0x8] sm:$0xff] }
  0x24   : > { %v834_v37 = vsel %vm821_vm5, %v772_v8, %v833_v31  ;;  %v837_v38 = vsel %vm821_vm5, %v776_v14, %v836_v32  ;;  %v839_v39 = vsel %vm819_vm4, %v779_v17, %v838_v33  ;;  %v278_v43 = vmax.f32 %v214_v18, %v222_v19  ;;  %v3476_v13 = vld [vmem:[%s3372_s20 + $0x48] sm:$0xff] }
  0x25   : > { %v840_v44 = vsel %vm821_vm5, %v780_v20, %v839_v39  ;;  %v889_v45 = vsel %vm884_vm6, 0.0, %v834_v37  ;;  %v890_v46 = vsel %vm884_vm6, 0.0, %v837_v38  ;;  %v291_v49 = vmax.f32 %v243_v25, %v251_v27 }
  0x26   : > { %v891_v50 = vsel %vm884_vm6, 0.0, %v840_v44  ;;  %v3438_v51 = vsel %vm901_vm7, %v889_v45, 0.0  ;;  %v3441_v52 = vsel %vm901_vm7, %v890_v46, 0.0  ;;  %v292_v53 = vmax.f32 %v244_v34, %v252_v35 }
  0x27   : > { %5435 = vst [vmem:[#allocation5_spill] sm:$0xff] %v3438_v51  ;;  %v3450_v56 = vsel %vm901_vm7, %v891_v50, 0.0  ;;  %v5344_v57 = vrot.slane %v3441_v52, 4  ;;  %v3117_v58 = vrot.slane %v3441_v52, 9  ;;  %v293_v59 = vmax.f32 %v245_v41, %v253_v42 }
  0x28   : > { %1114 = vst [vmem:[#allocation1 + $0x1] ss:$2 sm:$0xff] %v3438_v51  ;;  %v5343_v60 = vrot.slane %v3450_v56, 4  ;;  %v3118_v61 = vrot.slane %v3450_v56, 9  ;;  %v294_v62 = vmax.f32 %v246_v47, %v254_v48  ;;  %v306_v63 = vmax.f32 %v275_v30, %v276_v28 }
  0x29   : > { %1115 = vst [vmem:[#allocation1 + $0x10] ss:$2 sm:$0xff] %v3441_v52  ;;  %v963_v3 = vrot.slane %v5344_v57, 5  ;;  %v307_v4 = vmax.f32 %v277_v36, %v278_v43  ;;  %v314_v5 = vmax.f32 %v291_v49, %v292_v53  ;;  %v274_v31 = vmax.f32 %v3473_v12, %v3476_v13 }
  0x2a   : > { %1116 = vst [vmem:[#allocation1 + $0x11] ss:$2 sm:$0xff] %v3450_v56  ;;  %v967_v7 = vrot.slane %v5343_v60, 5  ;;  %v315_v8 = vmax.f32 %v293_v59, %v294_v62  ;;  %v340_v9 = vrot.slane %v306_v63, 2  ;;  %v341_v10 = vrot.slane %v306_v63, 4 }
  0x2b   : > { %v3470_v24 = vsel %vm3374_vm2, %v3117_v58, %v963_v3  ;;  %v342_v26 = vrot.slane %v306_v63, 6  ;;  %v343_v30 = vrot.slane %v307_v4, 2  ;;  %v344_v11 = vrot.slane %v307_v4, 4 }
  0x2c   : > { %v3480_v14 = vsel %vm3374_vm2, %v3118_v61, %v967_v7  ;;  %v345_v15 = vrot.slane %v307_v4, 6  ;;  %v364_v16 = vrot.slane %v314_v5, 2  ;;  %v365_v17 = vrot.slane %v314_v5, 4  ;;  %v241_v7 = vld [vmem:[%s3372_s20 + $0x100] sm:$0xff] }
  0x2d   : > { %5436 = vst [vmem:[#allocation6_spill] sm:$0xff] %v3480_v14  ;;  %v366_v18 = vrot.slane %v314_v5, 6  ;;  %v367_v19 = vrot.slane %v315_v8, 2  ;;  %v368_v20 = vrot.slane %v315_v8, 4  ;;  %v369_v21 = vrot.slane %v315_v8, 6 }
  0x2e   : > { %v3052_v25 = vrot.slane %v306_v63, 9  ;;  %v3053_v27 = vrot.slane %v340_v9, 9  ;;  %v3054_v28 = vrot.slane %v341_v10, 9  ;;  %v3055_v32 = vrot.slane %v342_v26, 9 }
  0x2f   : > { %v3482_v22 = vld.sshfl [vmem:[#allocation1] sm:$0xff pattern:$0x75316420]  ;;  %v3056_v33 = vrot.slane %v307_v4, 9  ;;  %v3057_v34 = vrot.slane %v343_v30, 9  ;;  %v3058_v35 = vrot.slane %v344_v11, 9 }
  0x30   : > { %5437 = vst [vmem:[#allocation7_spill] sm:$0xff] %v3482_v22  ;;  %v3059_v37 = vrot.slane %v345_v15, 9  ;;  %v629_v38 = vmax.f32 %v306_v63, %v3052_v25  ;;  %v630_v39 = vmax.f32 %v340_v9, %v3053_v27  ;;  %v631_v41 = vmax.f32 %v341_v10, %v3054_v28  ;;  %v249_v9 = vld [vmem:[%s3372_s20 + $0x140] sm:$0xff] }
  0x31   : > { %1133 = vst [vmem:[#allocation1] ss:$2 sm:$0xff] %v3405_v29  ;;  %v3487_v36 = vld.sshfl [vmem:[#allocation1 + $0x10] sm:$0xff pattern:$0x75316420]  ;;  %v3084_v42 = vrot.slane %v314_v5, 9  ;;  %v632_v50 = vmax.f32 %v342_v26, %v3055_v32  ;;  %v633_v53 = vmax.f32 %v307_v4, %v3056_v33  ;;  %v634_v58 = vmax.f32 %v343_v30, %v3057_v34 }
  0x32   : > { %5438 = vst [vmem:[#allocation8_spill] sm:$0xff] %v3487_v36  ;;  %v3085_v43 = vrot.slane %v364_v16, 9  ;;  %v3086_v44 = vrot.slane %v365_v17, 9  ;;  %v3087_v45 = vrot.slane %v366_v18, 9  ;;  %v3088_v46 = vrot.slane %v315_v8, 9  ;;  %v242_v26 = vld [vmem:[%s3372_s20 + $0x108] sm:$0xff] }
  0x33   : > { %1135 = vst [vmem:[#allocation1 + $0x1] ss:$2 sm:$0xff] %v3405_v29  ;;  %v3089_v47 = vrot.slane %v367_v19, 9  ;;  %v3090_v48 = vrot.slane %v368_v20, 9  ;;  %v3091_v49 = vrot.slane %v369_v21, 9  ;;  %v635_v59 = vmax.f32 %v344_v11, %v3058_v35  ;;  %v250_v4 = vld [vmem:[%s3372_s20 + $0x148] sm:$0xff] }
  0x34   : > { %1137 = vst [vmem:[#allocation1 + $0x10] ss:$2 sm:$0xff] %v3405_v29  ;;  %v636_v61 = vmax.f32 %v345_v15, %v3059_v37  ;;  %v661_v62 = vmax.f32 %v314_v5, %v3084_v42  ;;  %v662_v63 = vmax.f32 %v364_v16, %v3085_v43  ;;  %v663_v3 = vmax.f32 %v365_v17, %v3086_v44 }
  0x35   : > { %1139 = vst [vmem:[#allocation1 + $0x11] ss:$2 sm:$0xff] %v3405_v29  ;;  %v664_v10 = vmax.f32 %v366_v18, %v3087_v45  ;;  %v665_v25 = vmax.f32 %v315_v8, %v3088_v46  ;;  %v666_v27 = vmax.f32 %v367_v19, %v3089_v47  ;;  %v667_v28 = vmax.f32 %v368_v20, %v3090_v48 }
  0x36   : > { %v668_v60 = vmax.f32 %v369_v21, %v3091_v49  ;;  %v757_v57 = vperm.slane %v629_v38, 0  ;;  %v758_v0 = vperm.slane %v630_v39, 0  ;;  %v759_v6 = vperm.slane %v631_v41, 0 }
  0x37   : > { %v760_v32 = vperm.slane %v632_v50, 0  ;;  %v761_v11 = vperm.slane %v633_v53, 0  ;;  %v762_v33 = vperm.slane %v634_v58, 0  ;;  %v289_v15 = vmax.f32 %v241_v7, %v249_v9 }
  0x38   : > { %v763_v5 = vperm.slane %v635_v59, 0  ;;  %v764_v16 = vperm.slane %v636_v61, 0  ;;  %v789_v17 = vperm.slane %v661_v62, 0  ;;  %v790_v18 = vperm.slane %v662_v63, 0 }
  0x39   : > { %v791_v19 = vperm.slane %v663_v3, 0  ;;  %v792_v20 = vperm.slane %v664_v10, 0  ;;  %v793_v21 = vperm.slane %v665_v25, 0  ;;  %v823_v34 = vsel %vm817_vm3, %v758_v0, %v757_v57 }
  0x3a   : > { %v1148_v30 = vld.sshfl [vmem:[#allocation1] sm:$0xff pattern:$0x75316420]  ;;  %v794_v37 = vperm.slane %v666_v27, 0  ;;  %v795_v38 = vperm.slane %v667_v28, 0  ;;  %v796_v39 = vperm.slane %v668_v60, 0  ;;  %v824_v41 = vsel %vm819_vm4, %v759_v6, %v823_v34 }
  0x3b   : > { %1152 = vst [vmem:[#allocation1] ss:$2 sm:$0xff] %v3405_v29  ;;  %v826_v42 = vsel %vm817_vm3, %v762_v33, %v761_v11  ;;  %v847_v43 = vsel %vm817_vm3, %v790_v18, %v789_v17  ;;  %v290_v44 = vmax.f32 %v242_v26, %v250_v4  ;;  %v825_v0 = vsel %vm821_vm5, %v760_v32, %v824_v41 }
  0x3c   : > { %v1149_v8 = vld.sshfl [vmem:[#allocation1 + $0x10] sm:$0xff pattern:$0x75316420]  ;;  %v827_v57 = vsel %vm819_vm4, %v763_v5, %v826_v42  ;;  %v848_v45 = vsel %vm819_vm4, %v791_v19, %v847_v43  ;;  %v850_v60 = vsel %vm817_vm3, %v794_v37, %v793_v21  ;;  %v886_v48 = vsel %vm884_vm6, 0.0, %v825_v0 }
  0x3d   : > { %v3226_v35 = vpack.i.bf16 %v1149_v8, %v1148_v30  ;;  %1154 = vst [vmem:[#allocation1 + $0x10] ss:$2 sm:$0xff] %v3470_v24  ;;  %v828_v46 = vsel %vm821_vm5, %v764_v16, %v827_v57  ;;  %v849_v6 = vsel %vm821_vm5, %v792_v20, %v848_v45  ;;  %v851_v47 = vsel %vm819_vm4, %v795_v38, %v850_v60 }
  0x3e   : > { %1155 = vst [vmem:[#allocation1 + $0x11] ss:$2 sm:$0xff] %v3480_v14  ;;  %v852_v49 = vsel %vm821_vm5, %v796_v39, %v851_v47  ;;  %v887_v50 = vsel %vm884_vm6, 0.0, %v828_v46  ;;  %v3515_v53 = vsel %vm901_vm7, %v886_v48, 0.0  ;;  %v894_v58 = vsel %vm884_vm6, 0.0, %v849_v6 }
  0x3f   : > { %3227 = vrot.lane.b32.xlu0 %v3226_v35, %s3311_s21  ;;  %5439 = vst [vmem:[#allocation9_spill] sm:$0xff] %v3515_v53  ;;  %v3519_v59 = vsel %vm901_vm7, %v887_v50, 0.0  ;;  %v895_v61 = vsel %vm884_vm6, 0.0, %v852_v49  ;;  %v5441_v62 = vmax.f32 %v3444_v54, %v3447_v55  ;;  %v313_v3 = vmax.f32 %v289_v15, %v290_v44 }
  0x40   : > { %5440 = vst [vmem:[#allocation10_spill] sm:$0xff] %v3519_v59  ;;  %v3531_v9 = vsel %vm901_vm7, %v894_v58, 0.0  ;;  %v930_v10 = vrot.slane %v3515_v53, 4  ;;  %v3536_v25 = vsel %vm901_vm7, %v895_v61, 0.0  ;;  %v931_v12 = vrot.slane %v3519_v59, 4 }
  0x41   : > { %1106 = vst [vmem:[#allocation1 + $0x30] ss:$2 sm:$0xff] %v3515_v53  ;;  %v305_v63 = vmax.f32 %v5441_v62, %v274_v31  ;;  %v361_v13 = vrot.slane %v313_v3, 2  ;;  %v362_v54 = vrot.slane %v313_v3, 4  ;;  %v363_v55 = vrot.slane %v313_v3, 6 }
  0x42   : > { %1108 = vst [vmem:[#allocation1 + $0x31] ss:$2 sm:$0xff] %v3519_v59  ;;  %v3080_v11 = vrot.slane %v313_v3, 9  ;;  %v3114_v20 = vrot.slane %v3515_v53, 9  ;;  %v951_v42 = vrot.slane %v930_v10, 5  ;;  %v3115_v43 = vrot.slane %v3519_v59, 9 }
  0x43   : > { %5442 = vst [vmem:[#allocation11_spill] sm:$0xff] %v3531_v9  ;;  %v337_v27 = vrot.slane %v305_v63, 2  ;;  %v338_v28 = vrot.slane %v305_v63, 4  ;;  %v339_v26 = vrot.slane %v305_v63, 6  ;;  %v3048_v31 = vrot.slane %v305_v63, 9 }
  0x44   : > { %5443 = vst [vmem:[#allocation12_spill] sm:$0xff] %v3536_v25  ;;  %v3081_v33 = vrot.slane %v361_v13, 9  ;;  %v3082_v15 = vrot.slane %v362_v54, 9  ;;  %v3083_v5 = vrot.slane %v363_v55, 9  ;;  %v657_v21 = vmax.f32 %v313_v3, %v3080_v11 }
  0x45   : > { %v1161_v7 = vld.sshfl [vmem:[#allocation1 + $0x10] sm:$0xff pattern:$0x75316420]  ;;  %v3049_v4 = vrot.slane %v337_v27, 9  ;;  %v3050_v30 = vrot.slane %v338_v28, 9  ;;  %v3051_v32 = vrot.slane %v339_v26, 9  ;;  %v625_v17 = vmax.f32 %v305_v63, %v3048_v31 }
  0x46   : > { %1174 = vrot.lane.b32.xlu2 %v1161_v7, %s3311_s21  ;;  %v658_v34 = vmax.f32 %v361_v13, %v3081_v33  ;;  %v659_v35 = vmax.f32 %v362_v54, %v3082_v15  ;;  %v785_v44 = vperm.slane %v657_v21, 0  ;;  %v955_v57 = vrot.slane %v931_v12, 5 }
  0x47   : > { %v626_v18 = vmax.f32 %v337_v27, %v3049_v4  ;;  %v627_v8 = vmax.f32 %v338_v28, %v3050_v30  ;;  %v628_v19 = vmax.f32 %v339_v26, %v3051_v32  ;;  %v753_v37 = vperm.slane %v625_v17, 0 }
  0x48   : > { %v786_v0 = vperm.slane %v658_v34, 0  ;;  %v660_v45 = vmax.f32 %v363_v55, %v3083_v5  ;;  %v932_v46 = vrot.slane %v3438_v51, 4  ;;  %v787_v6 = vperm.slane %v659_v35, 0 }
  0x49   : > { %v3539_v16 = vld.sshfl [vmem:[#allocation1 + $0x30] sm:$0xff pattern:$0x75316420]  ;;  %v754_v38 = vperm.slane %v626_v18, 0  ;;  %v755_v39 = vperm.slane %v627_v8, 0  ;;  %v756_v41 = vperm.slane %v628_v19, 0  ;;  %v3559_v61 = vsel %vm3374_vm2, %v3114_v20, %v951_v42 }
  0x4a   : > { %5444 = vst [vmem:[#allocation13_spill] sm:$0xff] %v3539_v16  ;;  %v844_v49 = vsel %vm817_vm3, %v786_v0, %v785_v44  ;;  %v3116_v50 = vrot.slane %v3438_v51, 9  ;;  %v959_v58 = vrot.slane %v932_v46, 5  ;;  %v3564_v63 = vsel %vm3374_vm2, %v3115_v43, %v955_v57 }
  0x4b   : > { %1119 = vst [vmem:[#allocation1 + $0x30] ss:$2 sm:$0xff] %v3531_v9  ;;  %v818_v60 = vsel %vm817_vm3, %v754_v38, %v753_v37  ;;  %v788_v3 = vperm.slane %v660_v45, 0  ;;  %v936_v7 = vrot.slane %v3531_v9, 4  ;;  %v845_v28 = vsel %vm819_vm4, %v787_v6, %v844_v49  ;;  %v215_v45 = vld [vmem:[%s3372_s20 + $0x30] sm:$0xff]  ;;  %v216_v49 = vld [vmem:[%s3372_s20 + $0x38] sm:$0xff] }
  0x4c   : > { %1120 = vst [vmem:[#allocation1 + $0x31] ss:$2 sm:$0xff] %v3536_v25  ;;  %v820_v47 = vsel %vm819_vm4, %v755_v39, %v818_v60  ;;  %v3576_v13 = vsel %vm3374_vm2, %v3116_v50, %v959_v58  ;;  %v937_v54 = vrot.slane %v3536_v25, 4  ;;  %v5448_v55 = vmov 0.0   ;;  %v223_v50 = vld [vmem:[%s3372_s20 + $0x70] sm:$0xff] }
  0x4d   : > { %v822_v48 = vsel %vm821_vm5, %v756_v41, %v820_v47  ;;  %5447 = vst [vmem:[#allocation16_spill] sm:$0xff] %v3576_v13  ;;  %v3122_v31 = vrot.slane %v5448_v55, 10  ;;  %v986_v4 = vrot.slane %v3366_v1, 6  ;;  %v846_v30 = vsel %vm821_vm5, %v788_v3, %v845_v28  ;;  %v231_v28 = vld [vmem:[%s3372_s20 + $0xb0] sm:$0xff] }
  0x4e   : > { %v885_v62 = vsel %vm884_vm6, 0.0, %v822_v48  ;;  %v3120_v32 = vrot.slane %v3531_v9, 9  ;;  %v975_v11 = vrot.slane %v936_v7, 5  ;;  %v5449_v33 = vmov 0  ;;  %1153 = vst [vmem:[#allocation1 + $0x1] ss:$2 sm:$0xff] %v3576_v13 }
  0x4f   : > { %v3571_v26 = vsel %vm901_vm7, %v885_v62, 0.0  ;;  %v5450_v33 = vsel %vm3587_vm10, 4294967295, %v5449_v33  ;;  %v3594_v15 = vsel %vm3587_vm10, %v3122_v31, %v986_v4  ;;  %v893_v1 = vsel %vm884_vm6, 0.0, %v846_v30  ;;  %v224_v62 = vld [vmem:[%s3372_s20 + $0x78] sm:$0xff] }
  0x50   : > { %5446 = vst [vmem:[#allocation15_spill] sm:$0xff] %v3571_v26  ;;  %v3121_v5 = vrot.slane %v3536_v25, 9  ;;  %v979_v17 = vrot.slane %v937_v54, 5  ;;  %v3604_v18 = vsel %vm3374_vm2, %v3120_v32, %v975_v11  ;;  %v3607_v19 = vsel %vm901_vm7, %v893_v1, 0.0  ;;  %v232_v31 = vld [vmem:[%s3372_s20 + $0xb8] sm:$0xff]  ;;  %v239_v11 = vld [vmem:[%s3372_s20 + $0xf0] sm:$0xff] }
  0x51   : > { %1104 = vst [vmem:[#allocation1 + $0x21] ss:$2 sm:$0xff] %v3571_v26  ;;  %v5348_v20 = vrot.slane %v3571_v26, 4  ;;  %v3113_v21 = vrot.slane %v3571_v26, 9  ;;  %v5347_v38 = vrot.slane %v3607_v19, 4  ;;  %v3127_v39 = vrot.slane %v3441_v52, 10 }
  0x52   : > { %5451 = vst [vmem:[#allocation17_spill] sm:$0xff] %v5450_v33  ;;  %v3616_v35 = vsel %vm3374_vm2, %v3121_v5, %v979_v17  ;;  %v5455_v41 = vrot.slane %v3441_v52, 4  ;;  %v3128_v43 = vrot.slane %v3450_v56, 10  ;;  %v5456_v44 = vrot.slane %v3450_v56, 4  ;;  %v240_v1 = vld [vmem:[%s3372_s20 + $0xf8] sm:$0xff] }
  0x53   : > { %v3567_v27 = vld.sshfl [vmem:[#allocation1 + $0x30] sm:$0xff pattern:$0x75316420]  ;;  %5452 = vst [vmem:[#allocation18_spill] sm:$0xff] %v3594_v15  ;;  %v947_v60 = vrot.slane %v5348_v20, 5  ;;  %v3124_v6 = vrot.slane %v3515_v53, 10  ;;  %v279_v3 = vmax.f32 %v215_v45, %v223_v50  ;;  %v280_v32 = vmax.f32 %v216_v49, %v224_v62 }
  0x54   : > { %5445 = vst [vmem:[#allocation14_spill] sm:$0xff] %v3567_v27  ;;  %v1006_v42 = vrot.slane %v5455_v41, 6  ;;  %v1010_v0 = vrot.slane %v5456_v44, 6  ;;  %v994_v58 = vrot.slane %v930_v10, 6  ;;  %v3125_v4 = vrot.slane %v3519_v59, 10  ;;  %v256_v20 = vld [vmem:[%s3372_s20 + $0x178] sm:$0xff] }
  0x55   : > { %1145 = vst [vmem:[#allocation1 + $0x30] ss:$2 sm:$0xff] %v3559_v61  ;;  %v1160_v37 = vld.sshfl [vmem:[#allocation1] sm:$0xff pattern:$0x75316420]  ;;  %v998_v30 = vrot.slane %v931_v12, 6  ;;  %v287_v5 = vmax.f32 %v231_v28, %v239_v11  ;;  %v288_v17 = vmax.f32 %v232_v31, %v240_v1  ;;  %v3661_v10 = vsel %vm3374_vm2, %v3113_v21, %v947_v60 }
  0x56   : > { %1147 = vst [vmem:[#allocation1 + $0x31] ss:$2 sm:$0xff] %v3564_v63  ;;  %v3638_v47 = vsel %vm3587_vm10, %v3127_v39, %v1006_v42  ;;  %v3642_v48 = vsel %vm3587_vm10, %v3128_v43, %v1010_v0  ;;  %v1002_v12 = vrot.slane %v932_v46, 6  ;;  %v308_v39 = vmax.f32 %v279_v3, %v280_v32 }
  0x57   : > { %1192 = vst [vmem:[#allocation1 + $0x10] ss:$2 sm:$0xff] %v3594_v15  ;;  %v3119_v42 = vrot.slane %v3607_v19, 9  ;;  %v971_v43 = vrot.slane %v5347_v38, 5  ;;  %v3674_v44 = vsel %vm3587_vm10, %v3124_v6, %v994_v58  ;;  %v3682_v46 = vsel %vm3587_vm10, %v3125_v4, %v998_v30  ;;  %v255_v4 = vld [vmem:[%s3372_s20 + $0x170] sm:$0xff] }
  0x58   : > { %1194 = vst [vmem:[#allocation1 + $0x11] ss:$2 sm:$0xff] %v3594_v15  ;;  %v3612_v34 = vld.sshfl [vmem:[#allocation1 + $0x20] sm:$0xff pattern:$0x75316420]  ;;  %v312_v0 = vmax.f32 %v287_v5, %v288_v17  ;;  %v3130_v45 = vrot.slane %v3531_v9, 10 }
  0x59   : > { %5453 = vst [vmem:[#allocation19_spill] sm:$0xff] %v3607_v19  ;;  %v1018_v60 = vrot.slane %v936_v7, 6  ;;  %v3131_v6 = vrot.slane %v3536_v25, 10  ;;  %v346_v49 = vrot.slane %v308_v39, 2  ;;  %v347_v62 = vrot.slane %v308_v39, 4  ;;  %v247_v7 = vld [vmem:[%s3372_s20 + $0x130] sm:$0xff] }
  0x5a   : > { %5454 = vst [vmem:[#allocation20_spill] sm:$0xff] %v3612_v34  ;;  %v1022_v28 = vrot.slane %v937_v54, 6  ;;  %v348_v31 = vrot.slane %v308_v39, 6  ;;  %v3702_v30 = vsel %vm3374_vm2, %v3119_v42, %v971_v43  ;;  %v3060_v11 = vrot.slane %v308_v39, 9 }
  0x5b   : > { %1117 = vst [vmem:[#allocation1 + $0x20] ss:$2 sm:$0xff] %v5448_v55  ;;  %v295_v1 = vmax.f32 %v247_v7, %v255_v4  ;;  %v3062_v5 = vrot.slane %v347_v62, 9  ;;  %v358_v17 = vrot.slane %v312_v0, 2  ;;  %v360_v42 = vrot.slane %v312_v0, 6 }
  0x5c   : > { %1118 = vst [vmem:[#allocation1 + $0x21] ss:$2 sm:$0xff] %v3607_v19  ;;  %v3063_v54 = vrot.slane %v348_v31, 9  ;;  %v3076_v43 = vrot.slane %v312_v0, 9  ;;  %vm2012_vm1 = vcmask 228352   ;;  %vm2066_vm8 = vcmask 424960  }
  0x5d   : > { %v1151_v8 = vld.sshfl [vmem:[#allocation1 + $0x30] sm:$0xff pattern:$0x75316420]  ;;  %1188 = vst [vmem:[#allocation1] ss:$2 sm:$0xff] %v3594_v15  ;;  %v639_v7 = vmax.f32 %v347_v62, %v3062_v5  ;;  %v3077_v38 = vrot.slane %v358_v17, 9 }
  0x5e   : > { %1170 = vrot.lane.b32.xlu1 %v1151_v8, %s3311_s21  ;;  %1158 = vst [vmem:[#allocation1 + $0x30] ss:$2 sm:$0xff] %v3604_v18  ;;  %v3126_v8 = vrot.slane %v3438_v51, 10  ;;  %v640_v4 = vmax.f32 %v348_v31, %v3063_v54  ;;  %v3079_v27 = vrot.slane %v360_v42, 9  ;;  %v5462_v54 = vrot.slane %v3571_v26, 4 }
  0x5f   : > { %1159 = vst [vmem:[#allocation1 + $0x31] ss:$2 sm:$0xff] %v3616_v35  ;;  %v3629_v57 = vld.sshfl [vmem:[#allocation1 + $0x10] sm:$0xff pattern:$0x75316420]  ;;  %v654_v62 = vmax.f32 %v358_v17, %v3077_v38  ;;  %v5464_v17 = vrot.slane %v3571_v26, 10 }
  0x60   : > { %5457 = vst [vmem:[#allocation21_spill] sm:$0xff] %v3642_v48  ;;  %v3692_v58 = vsel %vm3587_vm10, %v3126_v8, %v1002_v12  ;;  %v637_v8 = vmax.f32 %v308_v39, %v3060_v11  ;;  %v359_v12 = vrot.slane %v312_v0, 4  ;;  %v3717_v39 = vsel %vm3587_vm10, %v3130_v45, %v1018_v60 }
  0x61   : > { %1190 = vst [vmem:[#allocation1 + $0x1] ss:$2 sm:$0xff] %v3594_v15  ;;  %v656_v11 = vmax.f32 %v360_v42, %v3079_v27  ;;  %v782_v16 = vperm.slane %v654_v62, 0  ;;  %v3725_v45 = vsel %vm3587_vm10, %v3131_v6, %v1022_v28  ;;  %vm2075_vm9 = vcmask 457728  }
  0x62   : > { %1209 = vst [vmem:[#allocation1 + $0x10] ss:$2 sm:$0xff] %v3638_v47  ;;  %v765_v34 = vperm.slane %v637_v8, 0  ;;  %v3078_v40 = vrot.slane %v359_v12, 9 }
  0x63   : > { %1210 = vst [vmem:[#allocation1 + $0x11] ss:$2 sm:$0xff] %v3642_v48  ;;  %v3667_v41 = vld.sshfl [vmem:[#allocation1 + $0x20] sm:$0xff pattern:$0x75316420] }
  0x64   : > { %5458 = vst [vmem:[#allocation22_spill] sm:$0xff] %v3667_v41  ;;  %v653_v41 = vmax.f32 %v312_v0, %v3076_v43  ;;  %v655_v31 = vmax.f32 %v359_v12, %v3078_v40  ;;  %v990_v0 = vrot.slane %v5462_v54, 6 }
  0x65   : > { %1141 = vst [vmem:[#allocation1 + $0x20] ss:$2 sm:$0xff] %v3405_v29 }
  0x66   : > { %1172 = vrot.lane.b32.xlu1 %v1160_v37, %s3311_s21  ;;  %v3677_v21 = vld.sshfl [vmem:[#allocation1 + $0x30] sm:$0xff pattern:$0x75316420]  ;;  %1143 = vst [vmem:[#allocation1 + $0x21] ss:$2 sm:$0xff] %v3661_v10  ;;  %v248_v37 = vld [vmem:[%s3372_s20 + $0x138] sm:$0xff] }
  0x67   : > { %1200 = vst [vmem:[#allocation1 + $0x30] ss:$2 sm:$0xff] %v3674_v44  ;;  %v296_v5 = vmax.f32 %v248_v37, %v256_v20  ;;  %v783_v27 = vperm.slane %v655_v31, 0  ;;  %v784_v20 = vperm.slane %v656_v11, 0 }
  0x68   : > { %v1203_v50 = vld.sshfl [vmem:[#allocation1] sm:$0xff pattern:$0x75316420]  ;;  %5459 = vst [vmem:[#allocation23_spill] sm:$0xff] %v3692_v58 }
  0x69   : > { %v3231_v3 = vpack.i.bf16 %v3629_v57, %v1203_v50  ;;  %1207 = vst [vmem:[#allocation1] ss:$2 sm:$0xff] %v3594_v15  ;;  %v3061_v57 = vrot.slane %v346_v49, 9  ;;  %v316_v38 = vmax.f32 %v295_v1, %v296_v5  ;;  %v3129_v5 = vrot.slane %v3607_v19, 10 }
  0x6a   : > { %5460 = vst [vmem:[#allocation24_spill] sm:$0xff] %v3702_v30  ;;  %v3705_v32 = vld.sshfl [vmem:[#allocation1 + $0x10] sm:$0xff pattern:$0x75316420] }
  0x6b   : > { %1202 = vst [vmem:[#allocation1 + $0x31] ss:$2 sm:$0xff] %v3682_v46  ;;  %v638_v50 = vmax.f32 %v346_v49, %v3061_v57  ;;  %v767_v49 = vperm.slane %v639_v7, 0  ;;  %v781_v57 = vperm.slane %v653_v41, 0  ;;  %v370_v28 = vrot.slane %v316_v38, 2 }
  0x6c   : > { %1208 = vst [vmem:[#allocation1 + $0x1] ss:$2 sm:$0xff] %v3692_v58  ;;  %v371_v1 = vrot.slane %v316_v38, 4  ;;  %v372_v12 = vrot.slane %v316_v38, 6  ;;  %v3092_v42 = vrot.slane %v316_v38, 9 }
  0x6d   : > { %1247 = vst [vmem:[#allocation1 + $0x10] ss:$2 sm:$0xff] %v5448_v55  ;;  %v1150_v22 = vld.sshfl [vmem:[#allocation1 + $0x20] sm:$0xff pattern:$0x75316420]  ;;  %v841_v41 = vsel %vm817_vm3, %v782_v16, %v781_v57  ;;  %v3743_v16 = vsel %vm3587_vm10, %v5464_v17, %v990_v0 }
  0x6e   : > { %3232 = vrot.lane.b32.xlu1 %v3231_v3, %s3312_s22  ;;  %1249 = vst [vmem:[#allocation1 + $0x11] ss:$2 sm:$0xff] %v5448_v55  ;;  %1168 = vrot.lane.b32.xlu0 %v1150_v22, %s3311_s21  ;;  %v766_v3 = vperm.slane %v638_v50, 0  ;;  %v768_v22 = vperm.slane %v640_v4, 0  ;;  %v842_v37 = vsel %vm819_vm4, %v783_v27, %v841_v41  ;;  %v3093_v4 = vrot.slane %v370_v28, 9 }
  0x6f   : > { %1156 = vst [vmem:[#allocation1 + $0x20] ss:$2 sm:$0xff] %v3405_v29  ;;  %v843_v6 = vsel %vm821_vm5, %v784_v20, %v842_v37  ;;  %v3095_v62 = vrot.slane %v372_v12, 9  ;;  %v669_v31 = vmax.f32 %v316_v38, %v3092_v42 }
  0x70   : > { %5461 = vst [vmem:[#allocation25_spill] sm:$0xff] %v3717_v39  ;;  %v829_v43 = vsel %vm817_vm3, %v766_v3, %v765_v34  ;;  %v3094_v3 = vrot.slane %v371_v1, 9  ;;  %v670_v11 = vmax.f32 %v370_v28, %v3093_v4 }
  0x71   : > { %1157 = vst [vmem:[#allocation1 + $0x21] ss:$2 sm:$0xff] %v3702_v30  ;;  %v830_v40 = vsel %vm819_vm4, %v767_v49, %v829_v43  ;;  %v672_v0 = vmax.f32 %v372_v12, %v3095_v62 }
  0x72   : > { %v1206_v8 = vld.sshfl [vmem:[#allocation1 + $0x30] sm:$0xff pattern:$0x75316420]  ;;  %5463 = vst [vmem:[#allocation26_spill] sm:$0xff] %v3725_v45  ;;  %v831_v60 = vsel %vm821_vm5, %v768_v22, %v830_v40  ;;  %v671_v57 = vmax.f32 %v371_v1, %v3094_v3  ;;  %v797_v22 = vperm.slane %v669_v31, 0  ;;  %v798_v27 = vperm.slane %v670_v11, 0 }
  0x73   : > { %v1215_v23 = vld.sshfl [vmem:[#allocation1] sm:$0xff pattern:$0x75316420]  ;;  %1213 = vst [vmem:[#allocation1 + $0x30] ss:$2 sm:$0xff] %v3717_v39  ;;  %v888_v49 = vsel %vm884_vm6, 0.0, %v831_v60 }
  0x74   : > { %1243 = vst [vmem:[#allocation1] ss:$2 sm:$0xff] %v5448_v55  ;;  %v3761_v40 = vsel %vm901_vm7, %v888_v49, 0.0  ;;  %v799_v20 = vperm.slane %v671_v57, 0  ;;  %v800_v41 = vperm.slane %v672_v0, 0  ;;  %v853_v37 = vsel %vm817_vm3, %v798_v27, %v797_v22 }
  0x75   : > { %1245 = vst [vmem:[#allocation1 + $0x1] ss:$2 sm:$0xff] %v5448_v55  ;;  %v3733_v34 = vld.sshfl [vmem:[#allocation1 + $0x10] sm:$0xff pattern:$0x75316420]  ;;  %v1027_v62 = vrot.slane %v3761_v40, 4 }
  0x76   : > { %1227 = vrot.lane.b32.xlu1 %v1215_v23, %s3312_s22  ;;  %1214 = vst [vmem:[#allocation1 + $0x31] ss:$2 sm:$0xff] %v3725_v45  ;;  %v892_v23 = vsel %vm884_vm6, 0.0, %v843_v6  ;;  %1178 = vrot.lane.b32.xlu0 %v3677_v21, %s3311_s21  ;;  %v5466_v21 = vrot.slane %v3607_v19, 4  ;;  %v854_v60 = vsel %vm819_vm4, %v799_v20, %v853_v37  ;;  %v3132_v57 = vrot.slane %v3761_v40, 9 }
  0x77   : > { %1264 = vst [vmem:[#allocation1 + $0x10] ss:$2 sm:$0xff] %v3450_v56  ;;  %v3750_v7 = vsel %vm901_vm7, %v892_v23, 0.0  ;;  %v855_v28 = vsel %vm821_vm5, %v800_v41, %v854_v60 }
  0x78   : > { %v1162_v50 = vld.sshfl [vmem:[#allocation1 + $0x20] sm:$0xff pattern:$0x75316420]  ;;  %5465 = vst [vmem:[#allocation27_spill] sm:$0xff] %v3750_v7  ;;  %v1014_v54 = vrot.slane %v5466_v21, 6  ;;  %v896_v23 = vsel %vm884_vm6, 0.0, %v855_v28 }
  0x79   : > { %1176 = vrot.lane.b32.xlu2 %v1162_v50, %s3311_s21  ;;  %1196 = vst [vmem:[#allocation1 + $0x20] ss:$2 sm:$0xff] %v3594_v15  ;;  %v3784_v42 = vsel %vm901_vm7, %v896_v23, 0.0  ;;  %v3133_v50 = vrot.slane %v3750_v7, 9  ;;  %v3136_v41 = vrot.slane %v3750_v7, 10 }
  0x7a   : > { %1198 = vst [vmem:[#allocation1 + $0x21] ss:$2 sm:$0xff] %v3743_v16  ;;  %v3772_v6 = vsel %vm3587_vm10, %v3129_v5, %v1014_v54  ;;  %v1032_v5 = vrot.slane %v1027_v62, 5  ;;  %v3134_v27 = vrot.slane %v3784_v42, 9 }
  0x7b   : > { %1265 = vst [vmem:[#allocation1 + $0x11] ss:$2 sm:$0xff] %v3750_v7 }
  0x7c   : > { %v1258_v43 = vld.sshfl [vmem:[#allocation1] sm:$0xff pattern:$0x75316420]  ;;  %5467 = vst [vmem:[#allocation28_spill] sm:$0xff] %v3761_v40  ;;  %v3812_v22 = vsel %vm3374_vm2, %v3132_v57, %v1032_v5 }
  0x7d   : > { %v1218_v38 = vld.sshfl [vmem:[#allocation1 + $0x30] sm:$0xff pattern:$0x75316420]  ;;  %1262 = vst [vmem:[#allocation1] ss:$2 sm:$0xff] %v3438_v51 }
  0x7e   : > { %1233 = vrot.lane.b32.xlu1 %v1218_v38, %s3312_s22  ;;  %1255 = vst [vmem:[#allocation1 + $0x30] ss:$2 sm:$0xff] %v3519_v59  ;;  %1225 = vrot.lane.b32.xlu0 %v1206_v8, %s3312_s22  ;;  %v1028_v8 = vrot.slane %v3750_v7, 4 }
  0x7f   : > { %1263 = vst [vmem:[#allocation1 + $0x1] ss:$2 sm:$0xff] %v3441_v52 }
  0x80   : > { %5468 = vst [vmem:[#allocation29_spill] sm:$0xff] %v3772_v6  ;;  %v1036_v3 = vrot.slane %v1028_v8, 5  ;;  %v1048_v37 = vrot.slane %v1028_v8, 6 }
  0x81   : > { %1257 = vst [vmem:[#allocation1 + $0x31] ss:$2 sm:$0xff] %v3761_v40  ;;  %v1205_v1 = vld.sshfl [vmem:[#allocation1 + $0x20] sm:$0xff pattern:$0x75316420] }
  0x82   : > { %1223 = vrot.lane.b32.xlu2 %v1205_v1, %s3312_s22  ;;  %1211 = vst [vmem:[#allocation1 + $0x20] ss:$2 sm:$0xff] %v3594_v15  ;;  %v1271_v17 = vld.sshfl [vmem:[#allocation1 + $0x10] sm:$0xff pattern:$0x75316420]  ;;  %v3799_v31 = vsel %vm3374_vm2, %v3133_v50, %v1036_v3  ;;  %v1044_v50 = vrot.slane %v1027_v62, 6 }
  0x83   : > { %1212 = vst [vmem:[#allocation1 + $0x21] ss:$2 sm:$0xff] %v3772_v6 }
  0x84   : > { %1302 = vst [vmem:[#allocation1 + $0x10] ss:$2 sm:$0xff] %v3405_v29 }
  0x85   : > { %1304 = vst [vmem:[#allocation1 + $0x11] ss:$2 sm:$0xff] %v3405_v29 }
  0x86   : > { %v1270_v12 = vld.sshfl [vmem:[#allocation1] sm:$0xff pattern:$0x75316420]  ;;  %5469 = vst [vmem:[#allocation30_spill] sm:$0xff] %v3784_v42 }
  0x87   : > { %1298 = vst [vmem:[#allocation1] ss:$2 sm:$0xff] %v3405_v29 }
  0x88   : > { %v1261_v4 = vld.sshfl [vmem:[#allocation1 + $0x30] sm:$0xff pattern:$0x75316420]  ;;  %1300 = vst [vmem:[#allocation1 + $0x1] ss:$2 sm:$0xff] %v3405_v29 }
  0x89   : > { %1280 = vrot.lane.b32.xlu1 %v1261_v4, %s3313_s23  ;;  %1268 = vst [vmem:[#allocation1 + $0x30] ss:$2 sm:$0xff] %v3536_v25 }
  0x8a   : > { %1229 = vrot.lane.b32.xlu2 %v3705_v32, %s3312_s22  ;;  %v1217_v49 = vld.sshfl [vmem:[#allocation1 + $0x20] sm:$0xff pattern:$0x75316420]  ;;  %1269 = vst [vmem:[#allocation1 + $0x31] ss:$2 sm:$0xff] %v3784_v42  ;;  %v3236_v32 = vpack.i.bf16 %v3733_v34, %v1258_v43  ;;  %v1029_v43 = vrot.slane %v3784_v42, 4 }
  0x8b   : > { %1231 = vrot.lane.b32.xlu0 %v1217_v49, %s3312_s22  ;;  %1251 = vst [vmem:[#allocation1 + $0x20] ss:$2 sm:$0xff] %v3571_v26 }
  0x8c   : > { %5470 = vst [vmem:[#allocation31_spill] sm:$0xff] %v3799_v31  ;;  %v1314_v11 = vld.sshfl [vmem:[#allocation1 + $0x10] sm:$0xff pattern:$0x75316420]  ;;  %v1040_v20 = vrot.slane %v1029_v43, 5  ;;  %v1052_v57 = vrot.slane %v1029_v43, 6 }
  0x8d   : > { %1253 = vst [vmem:[#allocation1 + $0x21] ss:$2 sm:$0xff] %v3515_v53 }
  0x8e   : > { %1319 = vst [vmem:[#allocation1 + $0x10] ss:$2 sm:$0xff] %v3480_v14  ;;  %v3831_v28 = vsel %vm3374_vm2, %v3134_v27, %v1040_v20 }
  0x8f   : > { %1320 = vst [vmem:[#allocation1 + $0x11] ss:$2 sm:$0xff] %v3799_v31  ;;  %v1313_v21 = vld.sshfl [vmem:[#allocation1] sm:$0xff pattern:$0x75316420] }
  0x90   : > { %1317 = vst [vmem:[#allocation1] ss:$2 sm:$0xff] %v3576_v13  ;;  %v3241_v8 = vpack.i.bf16 %v1314_v11, %v1313_v21 }
  0x91   : > { %v1273_v54 = vld.sshfl [vmem:[#allocation1 + $0x30] sm:$0xff pattern:$0x75316420]  ;;  %1318 = vst [vmem:[#allocation1 + $0x1] ss:$2 sm:$0xff] %v3470_v24 }
  0x92   : > { %3237 = vrot.lane.b32.xlu2 %v3236_v32, %s3313_s23  ;;  %1310 = vst [vmem:[#allocation1 + $0x30] ss:$2 sm:$0xff] %v3564_v63  ;;  %v3137_v32 = vrot.slane %v3784_v42, 10 }
  0x93   : > { %5471 = vst [vmem:[#allocation32_spill] sm:$0xff] %v3812_v22 }
  0x94   : > { %v1260_v0 = vld.sshfl [vmem:[#allocation1 + $0x20] sm:$0xff pattern:$0x75316420]  ;;  %1312 = vst [vmem:[#allocation1 + $0x31] ss:$2 sm:$0xff] %v3812_v22 }
  0x95   : > { %1278 = vrot.lane.b32.xlu0 %v1260_v0, %s3313_s23  ;;  %1266 = vst [vmem:[#allocation1 + $0x20] ss:$2 sm:$0xff] %v3607_v19 }
  0x96   : > { %1267 = vst [vmem:[#allocation1 + $0x21] ss:$2 sm:$0xff] %v3531_v9  ;;  %v1326_v34 = vld.sshfl [vmem:[#allocation1 + $0x10] sm:$0xff pattern:$0x75316420] }
  0x97   : > { %1357 = vst [vmem:[#allocation1 + $0x10] ss:$2 sm:$0xff] %v3594_v15 }
  0x98   : > { %1359 = vst [vmem:[#allocation1 + $0x11] ss:$2 sm:$0xff] %v3594_v15  ;;  %v1325_v38 = vld.sshfl [vmem:[#allocation1] sm:$0xff pattern:$0x75316420] }
  0x99   : > { %1353 = vst [vmem:[#allocation1] ss:$2 sm:$0xff] %v3594_v15 }
  0x9a   : > { %1282 = vrot.lane.b32.xlu2 %v1270_v12, %s3313_s23  ;;  %1355 = vst [vmem:[#allocation1 + $0x1] ss:$2 sm:$0xff] %v3594_v15  ;;  %v3135_v12 = vrot.slane %v3761_v40, 10 }
  0x9b   : > { %5472 = vst [vmem:[#allocation33_spill] sm:$0xff] %v3831_v28  ;;  %v1316_v1 = vld.sshfl [vmem:[#allocation1 + $0x30] sm:$0xff pattern:$0x75316420] }
  0x9c   : > { %1323 = vst [vmem:[#allocation1 + $0x30] ss:$2 sm:$0xff] %v3616_v35  ;;  %v3851_v49 = vsel %vm3587_vm10, %v3135_v12, %v1044_v50 }
  0x9d   : > { %1284 = vrot.lane.b32.xlu0 %v1271_v17, %s3313_s23  ;;  %v1272_v60 = vld.sshfl [vmem:[#allocation1 + $0x20] sm:$0xff pattern:$0x75316420]  ;;  %v3837_v17 = vsel %vm3587_vm10, %v3136_v41, %v1048_v37  ;;  %1324 = vst [vmem:[#allocation1 + $0x31] ss:$2 sm:$0xff] %v3831_v28 }
  0x9e   : > { %1286 = vrot.lane.b32.xlu1 %v1272_v60, %s3313_s23  ;;  %1306 = vst [vmem:[#allocation1 + $0x20] ss:$2 sm:$0xff] %v3661_v10 }
  0x9f   : > { %1308 = vst [vmem:[#allocation1 + $0x21] ss:$2 sm:$0xff] %v3559_v61  ;;  %v1369_v23 = vld.sshfl [vmem:[#allocation1 + $0x10] sm:$0xff pattern:$0x75316420] }
  0xa0   : > { %5473 = vst [vmem:[#allocation34_spill] sm:$0xff] %v3837_v17  ;;  %v3900_v50 = vpop.permute.xlu2 %1174 }
  0xa1   : > { %1374 = vst [vmem:[#allocation1 + $0x10] ss:$2 sm:$0xff] %v3642_v48  ;;  %v1368_v4 = vld.sshfl [vmem:[#allocation1] sm:$0xff pattern:$0x75316420] }
  0xa2   : > { %1288 = vrot.lane.b32.xlu2 %v1273_v54, %s3313_s23  ;;  %1375 = vst [vmem:[#allocation1 + $0x11] ss:$2 sm:$0xff] %v3837_v17  ;;  %v3867_v54 = vsel %vm3587_vm10, %v3137_v32, %v1052_v57  ;;  %v3246_v43 = vpack.i.bf16 %v1369_v23, %v1368_v4 }
  0xa3   : > { %1372 = vst [vmem:[#allocation1] ss:$2 sm:$0xff] %v3692_v58 }
  0xa4   : > { %1373 = vst [vmem:[#allocation1 + $0x1] ss:$2 sm:$0xff] %v3638_v47  ;;  %v1328_v62 = vld.sshfl [vmem:[#allocation1 + $0x30] sm:$0xff pattern:$0x75316420] }
  0xa5   : > { %3242 = vrot.lane.b32.xlu0 %v3241_v8, %s3314_s24  ;;  %5474 = vst [vmem:[#allocation35_spill] sm:$0xff] %v3851_v49 }
  0xa6   : > { %v1315_v3 = vld.sshfl [vmem:[#allocation1 + $0x20] sm:$0xff pattern:$0x75316420]  ;;  %1365 = vst [vmem:[#allocation1 + $0x30] ss:$2 sm:$0xff] %v3682_v46 }
  0xa7   : > { %1333 = vrot.lane.b32.xlu1 %v1315_v3, %s3314_s24  ;;  %1321 = vst [vmem:[#allocation1 + $0x20] ss:$2 sm:$0xff] %v3702_v30 }
  0xa8   : > { %1322 = vst [vmem:[#allocation1 + $0x21] ss:$2 sm:$0xff] %v3604_v18 }
  0xa9   : > { %1367 = vst [vmem:[#allocation1 + $0x31] ss:$2 sm:$0xff] %v3851_v49  ;;  %v1381_v11 = vld.sshfl [vmem:[#allocation1 + $0x10] sm:$0xff pattern:$0x75316420] }
  0xaa   : > { %1335 = vrot.lane.b32.xlu2 %v1316_v1, %s3314_s24  ;;  %1412 = vst [vmem:[#allocation1 + $0x10] ss:$2 sm:$0xff] %v5448_v55 }
  0xab   : > { %1414 = vst [vmem:[#allocation1 + $0x11] ss:$2 sm:$0xff] %v5448_v55  ;;  %v1380_v5 = vld.sshfl [vmem:[#allocation1] sm:$0xff pattern:$0x75316420] }
  0xac   : > { %1408 = vst [vmem:[#allocation1] ss:$2 sm:$0xff] %v5448_v55 }
  0xad   : > { %1337 = vrot.lane.b32.xlu0 %v1325_v38, %s3314_s24  ;;  %1410 = vst [vmem:[#allocation1 + $0x1] ss:$2 sm:$0xff] %v5448_v55 }
  0xae   : > { %5475 = vst [vmem:[#allocation36_spill] sm:$0xff] %v3867_v54 }
  0xaf   : > { %1339 = vrot.lane.b32.xlu1 %v1326_v34, %s3314_s24  ;;  %v1327_v21 = vld.sshfl [vmem:[#allocation1 + $0x20] sm:$0xff pattern:$0x75316420]  ;;  %5476 = vst [vmem:[#allocation37_spill] sm:$0xff] %v3900_v50 }
  0xb0   : > { %1361 = vst [vmem:[#allocation1 + $0x20] ss:$2 sm:$0xff] %v3743_v16  ;;  %v1371_v0 = vld.sshfl [vmem:[#allocation1 + $0x30] sm:$0xff pattern:$0x75316420] }
  0xb1   : > { %1363 = vst [vmem:[#allocation1 + $0x21] ss:$2 sm:$0xff] %v3674_v44 }
  0xb2   : > { %1378 = vst [vmem:[#allocation1 + $0x30] ss:$2 sm:$0xff] %v3725_v45  ;;  %1341 = vrot.lane.b32.xlu2 %v1327_v21, %s3314_s24  ;;  %v1424_v34 = vld.sshfl [vmem:[#allocation1 + $0x10] sm:$0xff pattern:$0x75316420] }
  0xb3   : > { %1379 = vst [vmem:[#allocation1 + $0x31] ss:$2 sm:$0xff] %v3867_v54 }
  0xb4   : > { %1429 = vst [vmem:[#allocation1 + $0x10] ss:$2 sm:$0xff] %v3750_v7  ;;  %v1423_v27 = vld.sshfl [vmem:[#allocation1] sm:$0xff pattern:$0x75316420] }
  0xb5   : > { %1343 = vrot.lane.b32.xlu0 %v1328_v62, %s3314_s24  ;;  %1430 = vst [vmem:[#allocation1 + $0x11] ss:$2 sm:$0xff] %v5448_v55  ;;  %v3251_v8 = vpack.i.bf16 %v1424_v34, %v1423_v27  ;;  %v3932_v34 = vpop.permute.xlu0 %3227  ;;  %v257_v27 = vld [vmem:[%s3372_s20 + $0x180] sm:$0xff] }
  0xb6   : > { %1427 = vst [vmem:[#allocation1] ss:$2 sm:$0xff] %v3441_v52 }
  0xb7   : > { %3247 = vrot.lane.b32.xlu1 %v3246_v43, %s3315_s25  ;;  %1428 = vst [vmem:[#allocation1 + $0x1] ss:$2 sm:$0xff] %v3450_v56 }
  0xb8   : > { %v1370_v20 = vld.sshfl [vmem:[#allocation1 + $0x20] sm:$0xff pattern:$0x75316420]  ;;  %5479 = vst [vmem:[#allocation40_spill] sm:$0xff] %v3932_v34  ;;  %v270_v34 = vld [vmem:[%s3372_s20 + $0x1e8] sm:$0xff] }
  0xb9   : > { %1376 = vst [vmem:[#allocation1 + $0x20] ss:$2 sm:$0xff] %v3772_v6 }
  0xba   : > { %1377 = vst [vmem:[#allocation1 + $0x21] ss:$2 sm:$0xff] %v3717_v39  ;;  %v1383_v38 = vld.sshfl [vmem:[#allocation1 + $0x30] sm:$0xff pattern:$0x75316420]  ;;  %1388 = vrot.lane.b32.xlu2 %v1370_v20, %s3315_s25  ;;  %v258_v20 = vld [vmem:[%s3372_s20 + $0x188] sm:$0xff] }
  0xbb   : > { %1420 = vst [vmem:[#allocation1 + $0x30] ss:$2 sm:$0xff] %v3761_v40 }
  0xbc   : > { %1422 = vst [vmem:[#allocation1 + $0x31] ss:$2 sm:$0xff] %v5448_v55  ;;  %v1436_v41 = vld.sshfl [vmem:[#allocation1 + $0x10] sm:$0xff pattern:$0x75316420] }
  0xbd   : > { %1390 = vrot.lane.b32.xlu0 %v1371_v0, %s3315_s25  ;;  %1467 = vst [vmem:[#allocation1 + $0x10] ss:$2 sm:$0xff] %v3405_v29 }
  0xbe   : > { %1469 = vst [vmem:[#allocation1 + $0x11] ss:$2 sm:$0xff] %v3405_v29  ;;  %v1435_v37 = vld.sshfl [vmem:[#allocation1] sm:$0xff pattern:$0x75316420] }
  0xbf   : > { %1392 = vrot.lane.b32.xlu1 %v1380_v5, %s3315_s25  ;;  %1463 = vst [vmem:[#allocation1] ss:$2 sm:$0xff] %v3405_v29 }
  0xc0   : > { %1465 = vst [vmem:[#allocation1 + $0x1] ss:$2 sm:$0xff] %v3405_v29 }
  0xc1   : > { %v1382_v60 = vld.sshfl [vmem:[#allocation1 + $0x20] sm:$0xff pattern:$0x75316420] }
  0xc2   : > { %1416 = vst [vmem:[#allocation1 + $0x20] ss:$2 sm:$0xff] %v3515_v53  ;;  %1394 = vrot.lane.b32.xlu2 %v1381_v11, %s3315_s25 }
  0xc3   : > { %1418 = vst [vmem:[#allocation1 + $0x21] ss:$2 sm:$0xff] %v3519_v59  ;;  %v1426_v1 = vld.sshfl [vmem:[#allocation1 + $0x30] sm:$0xff pattern:$0x75316420] }
  0xc4   : > { %1433 = vst [vmem:[#allocation1 + $0x30] ss:$2 sm:$0xff] %v3784_v42 }
  0xc5   : > { %1396 = vrot.lane.b32.xlu0 %v1382_v60, %s3315_s25  ;;  %1434 = vst [vmem:[#allocation1 + $0x31] ss:$2 sm:$0xff] %v5448_v55  ;;  %v1479_v23 = vld.sshfl [vmem:[#allocation1 + $0x10] sm:$0xff pattern:$0x75316420] }
  0xc6   : > { %1484 = vst [vmem:[#allocation1 + $0x10] ss:$2 sm:$0xff] %v3799_v31 }
  0xc7   : > { %1398 = vrot.lane.b32.xlu1 %v1383_v38, %s3315_s25  ;;  %1485 = vst [vmem:[#allocation1 + $0x11] ss:$2 sm:$0xff] %v3405_v29  ;;  %v1478_v12 = vld.sshfl [vmem:[#allocation1] sm:$0xff pattern:$0x75316420] }
  0xc8   : > { %1482 = vst [vmem:[#allocation1] ss:$2 sm:$0xff] %v3470_v24  ;;  %v3256_v43 = vpack.i.bf16 %v1479_v23, %v1478_v12  ;;  %v265_v38 = vld [vmem:[%s3372_s20 + $0x1c0] sm:$0xff]  ;;  %v259_v23 = vld [vmem:[%s3372_s20 + $0x190] sm:$0xff] }
  0xc9   : > { %1483 = vst [vmem:[#allocation1 + $0x1] ss:$2 sm:$0xff] %v3480_v14  ;;  %v297_v60 = vmax.f32 %v257_v27, %v265_v38  ;;  %v261_v12 = vld [vmem:[%s3372_s20 + $0x1a0] sm:$0xff]  ;;  %v267_v27 = vld [vmem:[%s3372_s20 + $0x1d0] sm:$0xff]  ;;  %v268_v38 = vld [vmem:[%s3372_s20 + $0x1d8] sm:$0xff] }
  0xca   : > { %v1425_v4 = vld.sshfl [vmem:[#allocation1 + $0x20] sm:$0xff pattern:$0x75316420]  ;;  %3252 = vrot.lane.b32.xlu2 %v3251_v8, %s3316_s26  ;;  %v260_v8 = vld [vmem:[%s3372_s20 + $0x198] sm:$0xff]  ;;  %v299_v36 = vmax.f32 %v259_v23, %v267_v27 }
  0xcb   : > { %1431 = vst [vmem:[#allocation1 + $0x20] ss:$2 sm:$0xff] %v3531_v9  ;;  %v300_v50 = vmax.f32 %v260_v8, %v268_v38 }
  0xcc   : > { %1432 = vst [vmem:[#allocation1 + $0x21] ss:$2 sm:$0xff] %v3536_v25  ;;  %v1438_v3 = vld.sshfl [vmem:[#allocation1 + $0x30] sm:$0xff pattern:$0x75316420] }
  0xcd   : > { %1443 = vrot.lane.b32.xlu0 %v1425_v4, %s3316_s26  ;;  %1475 = vst [vmem:[#allocation1 + $0x30] ss:$2 sm:$0xff] %v3812_v22  ;;  %v318_v23 = vmax.f32 %v299_v36, %v300_v50 }
  0xce   : > { %1477 = vst [vmem:[#allocation1 + $0x31] ss:$2 sm:$0xff] %v3405_v29  ;;  %v3909_v62 = vld.sshfl [vmem:[#allocation1 + $0x10] sm:$0xff pattern:$0x75316420] }
  0xcf   : > { %1445 = vrot.lane.b32.xlu1 %v1426_v1, %s3316_s26  ;;  %1522 = vst [vmem:[#allocation1 + $0x10] ss:$2 sm:$0xff] %v3594_v15  ;;  %v376_v38 = vrot.slane %v318_v23, 2 }
  0xd0   : > { %1524 = vst [vmem:[#allocation1 + $0x11] ss:$2 sm:$0xff] %v3594_v15  ;;  %v3914_v11 = vld.sshfl [vmem:[#allocation1] sm:$0xff pattern:$0x75316420]  ;;  %v3922_v5 = vpop.permute.xlu1 %1170 }
  0xd1   : > { %1518 = vst [vmem:[#allocation1] ss:$2 sm:$0xff] %v3594_v15  ;;  %v3101_v42 = vrot.slane %v376_v38, 9 }
  0xd2   : > { %1447 = vrot.lane.b32.xlu2 %v1435_v37, %s3316_s26  ;;  %1520 = vst [vmem:[#allocation1 + $0x1] ss:$2 sm:$0xff] %v3594_v15  ;;  %v266_v37 = vld [vmem:[%s3372_s20 + $0x1c8] sm:$0xff] }
  0xd3   : > { %v1437_v32 = vld.sshfl [vmem:[#allocation1 + $0x20] sm:$0xff pattern:$0x75316420]  ;;  %v3919_v57 = vpop.permute.xlu2 %1176  ;;  %5478 = vst [vmem:[#allocation39_spill] sm:$0xff] %v3922_v5  ;;  %v298_v1 = vmax.f32 %v258_v20, %v266_v37 }
  0xd4   : > { %5477 = vst [vmem:[#allocation38_spill] sm:$0xff] %v3919_v57  ;;  %v269_v20 = vld [vmem:[%s3372_s20 + $0x1e0] sm:$0xff] }
  0xd5   : > { %1471 = vst [vmem:[#allocation1 + $0x20] ss:$2 sm:$0xff] %v3559_v61  ;;  %1449 = vrot.lane.b32.xlu0 %v1436_v41, %s3316_s26  ;;  %v1481_v21 = vld.sshfl [vmem:[#allocation1 + $0x30] sm:$0xff pattern:$0x75316420] }
  0xd6   : > { %1473 = vst [vmem:[#allocation1 + $0x21] ss:$2 sm:$0xff] %v3564_v63 }
  0xd7   : > { %1488 = vst [vmem:[#allocation1 + $0x30] ss:$2 sm:$0xff] %v3831_v28  ;;  %1451 = vrot.lane.b32.xlu1 %v1437_v32, %s3316_s26  ;;  %v3929_v0 = vld.sshfl [vmem:[#allocation1 + $0x10] sm:$0xff pattern:$0x75316420]  ;;  %v262_v32 = vld [vmem:[%s3372_s20 + $0x1a8] sm:$0xff] }
  0xd8   : > { %1489 = vst [vmem:[#allocation1 + $0x31] ss:$2 sm:$0xff] %v3405_v29  ;;  %v3958_v37 = vpop.permute.xlu1 %1172 }
  0xd9   : > { %1539 = vst [vmem:[#allocation1 + $0x10] ss:$2 sm:$0xff] %v3837_v17  ;;  %v3938_v41 = vld.sshfl [vmem:[#allocation1] sm:$0xff pattern:$0x75316420] }
  0xda   : > { %1540 = vst [vmem:[#allocation1 + $0x11] ss:$2 sm:$0xff] %v3594_v15  ;;  %1453 = vrot.lane.b32.xlu2 %v1438_v3, %s3316_s26  ;;  %v3952_v3 = vmax.f32 %v297_v60, %v298_v1  ;;  %v301_v60 = vmax.f32 %v261_v12, %v269_v20  ;;  %v302_v1 = vmax.f32 %v262_v32, %v270_v34  ;;  %v377_v20 = vrot.slane %v318_v23, 4 }
  0xdb   : > { %1537 = vst [vmem:[#allocation1] ss:$2 sm:$0xff] %v3638_v47 }
  0xdc   : > { %1538 = vst [vmem:[#allocation1 + $0x1] ss:$2 sm:$0xff] %v3642_v48  ;;  %v3948_v57 = vpop.permute.xlu2 %1223  ;;  %v3096_v12 = vrot.slane %v3952_v3, 9  ;;  %v319_v34 = vmax.f32 %v301_v60, %v302_v1  ;;  %v375_v50 = vrot.slane %v3952_v3, 6  ;;  %v378_v1 = vrot.slane %v318_v23, 6 }
  0xdd   : > { %v1480_v4 = vld.sshfl [vmem:[#allocation1 + $0x20] sm:$0xff pattern:$0x75316420]  ;;  %5480 = vst [vmem:[#allocation41_spill] sm:$0xff] %v3948_v57  ;;  %3257 = vrot.lane.b32.xlu0 %v3256_v43, %s3317_s27  ;;  %v373_v57 = vrot.slane %v3952_v3, 2  ;;  %v3102_v7 = vrot.slane %v377_v20, 9 }
  0xde   : > { %1486 = vst [vmem:[#allocation1 + $0x20] ss:$2 sm:$0xff] %v3604_v18  ;;  %v380_v17 = vrot.slane %v319_v34, 4 }
  0xdf   : > { %1487 = vst [vmem:[#allocation1 + $0x21] ss:$2 sm:$0xff] %v3616_v35  ;;  %v1493_v5 = vld.sshfl [vmem:[#allocation1 + $0x30] sm:$0xff pattern:$0x75316420]  ;;  %1498 = vrot.lane.b32.xlu1 %v1480_v4, %s3317_s27  ;;  %v3097_v36 = vrot.slane %v373_v57, 9 }
  0xe0   : > { %5481 = vst [vmem:[#allocation42_spill] sm:$0xff] %v3958_v37  ;;  %v374_v37 = vrot.slane %v3952_v3, 4  ;;  %v3971_v8 = vpop.permute.xlu0 %1168 }
  0xe1   : > { %1530 = vst [vmem:[#allocation1 + $0x30] ss:$2 sm:$0xff] %v3851_v49  ;;  %v3964_v43 = vld.sshfl [vmem:[#allocation1 + $0x10] sm:$0xff pattern:$0x75316420]  ;;  %v381_v49 = vrot.slane %v319_v34, 6  ;;  %v674_v31 = vmax.f32 %v373_v57, %v3097_v36 }
  0xe2   : > { %1532 = vst [vmem:[#allocation1 + $0x31] ss:$2 sm:$0xff] %v3594_v15  ;;  %1500 = vrot.lane.b32.xlu2 %v1481_v21, %s3317_s27  ;;  %v3098_v21 = vrot.slane %v374_v37, 9  ;;  %v3106_v57 = vrot.slane %v380_v17, 9 }
  0xe3   : > { %1577 = vst [vmem:[#allocation1 + $0x10] ss:$2 sm:$0xff] %v3515_v53  ;;  %v3973_v4 = vld.sshfl [vmem:[#allocation1] sm:$0xff pattern:$0x75316420] }
  0xe4   : > { %1579 = vst [vmem:[#allocation1 + $0x11] ss:$2 sm:$0xff] %v3519_v59  ;;  %v3977_v32 = vpop.permute.xlu2 %1229  ;;  %v3997_v22 = vmax.f32 %v374_v37, %v3098_v21  ;;  %v3107_v21 = vrot.slane %v381_v49, 9 }
  0xe5   : > { %5482 = vst [vmem:[#allocation43_spill] sm:$0xff] %v3971_v8  ;;  %1502 = vrot.lane.b32.xlu0 %v3914_v11, %s3317_s27  ;;  %v3989_v11 = vpop.permute.xlu1 %3232  ;;  %v673_v8 = vmax.f32 %v3952_v3, %v3096_v12  ;;  %v3261_v3 = vpack.i.bf16 %v3929_v0, %v3938_v41  ;;  %v3104_v12 = vrot.slane %v319_v34, 9  ;;  %v679_v0 = vmax.f32 %v377_v20, %v3102_v7 }
  0xe6   : > { %1573 = vst [vmem:[#allocation1] ss:$2 sm:$0xff] %v5448_v55  ;;  %v1492_v27 = vld.sshfl [vmem:[#allocation1 + $0x20] sm:$0xff pattern:$0x75316420]  ;;  %v803_v33 = vperm.slane %v3997_v22, 0 }
  0xe7   : > { %5483 = vst [vmem:[#allocation44_spill] sm:$0xff] %v3977_v32  ;;  %1504 = vrot.lane.b32.xlu1 %v3909_v62, %s3317_s27  ;;  %v379_v32 = vrot.slane %v319_v34, 2  ;;  %v3100_v62 = vrot.slane %v318_v23, 9  ;;  %v801_v37 = vperm.slane %v673_v8, 0  ;;  %v681_v53 = vmax.f32 %v319_v34, %v3104_v12 }
  0xe8   : > { %1575 = vst [vmem:[#allocation1 + $0x1] ss:$2 sm:$0xff] %v3571_v26 }
  0xe9   : > { %1526 = vst [vmem:[#allocation1 + $0x20] ss:$2 sm:$0xff] %v3674_v44  ;;  %v3987_v60 = vld.sshfl [vmem:[#allocation1 + $0x30] sm:$0xff pattern:$0x75316420]  ;;  %v3105_v40 = vrot.slane %v379_v32, 9  ;;  %v677_v59 = vmax.f32 %v318_v23, %v3100_v62  ;;  %v683_v23 = vmax.f32 %v380_v17, %v3106_v57 }
  0xea   : > { %1528 = vst [vmem:[#allocation1 + $0x21] ss:$2 sm:$0xff] %v3682_v46  ;;  %1506 = vrot.lane.b32.xlu2 %v1492_v27, %s3317_s27  ;;  %v802_v27 = vperm.slane %v674_v31, 0  ;;  %v807_v31 = vperm.slane %v679_v0, 0  ;;  %v809_v22 = vperm.slane %v681_v53, 0 }
  0xeb   : > { %5484 = vst [vmem:[#allocation45_spill] sm:$0xff] %v3989_v11  ;;  %v3994_v28 = vld.sshfl [vmem:[#allocation1 + $0x10] sm:$0xff pattern:$0x75316420]  ;;  %v3103_v11 = vrot.slane %v378_v1, 9  ;;  %v682_v26 = vmax.f32 %v379_v32, %v3105_v40  ;;  %v805_v8 = vperm.slane %v677_v59, 0 }
  0xec   : > { %1543 = vst [vmem:[#allocation1 + $0x30] ss:$2 sm:$0xff] %v3867_v54  ;;  %v4000_v54 = vpop.permute.xlu0 %1178  ;;  %v4007_v58 = vpop.permute.xlu2 %3237  ;;  %v811_v40 = vperm.slane %v683_v23, 0 }
  0xed   : > { %1544 = vst [vmem:[#allocation1 + $0x31] ss:$2 sm:$0xff] %v3594_v15  ;;  %1508 = vrot.lane.b32.xlu0 %v1493_v5, %s3317_s27  ;;  %v680_v41 = vmax.f32 %v378_v1, %v3103_v11  ;;  %v684_v5 = vmax.f32 %v381_v49, %v3107_v21  ;;  %v810_v34 = vperm.slane %v682_v26, 0  ;;  %v4017_v32 = vpop.permute.xlu1 %1227 }
  0xee   : > { %1594 = vst [vmem:[#allocation1 + $0x10] ss:$2 sm:$0xff] %v3531_v9  ;;  %v3099_v9 = vrot.slane %v375_v50, 9 }
  0xef   : > { %5485 = vst [vmem:[#allocation46_spill] sm:$0xff] %v4000_v54  ;;  %v4005_v36 = vld.sshfl [vmem:[#allocation1] sm:$0xff pattern:$0x75316420]  ;;  %v678_v54 = vmax.f32 %v376_v38, %v3101_v42  ;;  %3262 = vrot.lane.b32.xlu1 %v3261_v3, %s3318_s28  ;;  %v808_v38 = vperm.slane %v680_v41, 0  ;;  %v812_v17 = vperm.slane %v684_v5, 0  ;;  %v862_v53 = vsel %vm817_vm3, %v810_v34, %v809_v22 }
  0xf0   : > { %1595 = vst [vmem:[#allocation1 + $0x11] ss:$2 sm:$0xff] %v3536_v25  ;;  %v676_v42 = vmax.f32 %v375_v50, %v3099_v9  ;;  %v856_v9 = vsel %vm817_vm3, %v802_v27, %v801_v37  ;;  %v863_v50 = vsel %vm819_vm4, %v811_v40, %v862_v53 }
  0xf1   : > { %1592 = vst [vmem:[#allocation1] ss:$2 sm:$0xff] %v5448_v55  ;;  %v1535_v25 = vld.sshfl [vmem:[#allocation1 + $0x20] sm:$0xff pattern:$0x75316420]  ;;  %v806_v62 = vperm.slane %v678_v54, 0  ;;  %v864_v3 = vsel %vm821_vm5, %v812_v17, %v863_v50  ;;  %v857_v57 = vsel %vm819_vm4, %v803_v33, %v856_v9 }
  0xf2   : > { %1593 = vst [vmem:[#allocation1 + $0x1] ss:$2 sm:$0xff] %v3607_v19  ;;  %1553 = vrot.lane.b32.xlu2 %v1535_v25, %s3318_s28  ;;  %v804_v11 = vperm.slane %v676_v42, 0  ;;  %v899_v37 = vsel %vm884_vm6, 0.0, %v864_v3 }
  0xf3   : > { %1541 = vst [vmem:[#allocation1 + $0x20] ss:$2 sm:$0xff] %v3717_v39  ;;  %v859_v59 = vsel %vm817_vm3, %v806_v62, %v805_v8  ;;  %v4052_v27 = vsel %vm901_vm7, %v899_v37, 0.0 }
  0xf4   : > { %1542 = vst [vmem:[#allocation1 + $0x21] ss:$2 sm:$0xff] %v3725_v45  ;;  %v1548_v7 = vld.sshfl [vmem:[#allocation1 + $0x30] sm:$0xff pattern:$0x75316420]  ;;  %v860_v49 = vsel %vm819_vm4, %v807_v31, %v859_v59  ;;  %v4028_v26 = vpop.permute.xlu0 %1225  ;;  %v4033_v1 = vpop.permute.xlu2 %1282  ;;  %v858_v33 = vsel %vm821_vm5, %v804_v11, %v857_v57  ;;  %v5383_v22 = vrot.slane %v4052_v27, 4 }
  0xf5   : > { %1585 = vst [vmem:[#allocation1 + $0x30] ss:$2 sm:$0xff] %v3441_v52  ;;  %v861_v54 = vsel %vm821_vm5, %v808_v38, %v860_v49  ;;  %1555 = vrot.lane.b32.xlu0 %v3987_v60, %s3318_s28  ;;  %v4062_v41 = vpop.permute.xlu1 %1233  ;;  %v897_v23 = vsel %vm884_vm6, 0.0, %v858_v33  ;;  %v264_v33 = vld [vmem:[%s3372_s20 + $0x1b8] sm:$0xff] }
  0xf6   : > { %5486 = vst [vmem:[#allocation47_spill] sm:$0xff] %v4017_v32  ;;  %v898_v12 = vsel %vm884_vm6, 0.0, %v861_v54  ;;  %v1070_v9 = vrot.slane %v5383_v22, 5 }
  0xf7   : > { %1587 = vst [vmem:[#allocation1 + $0x31] ss:$2 sm:$0xff] %v3450_v56  ;;  %v4020_v20 = vld.sshfl [vmem:[#allocation1 + $0x10] sm:$0xff pattern:$0x75316420]  ;;  %1557 = vrot.lane.b32.xlu1 %v3973_v4, %s3318_s28  ;;  %v4048_v60 = vsel %vm901_vm7, %v898_v12, 0.0 }
  0xf8   : > { %1632 = vst [vmem:[#allocation1 + $0x10] ss:$2 sm:$0xff] %v3559_v61  ;;  %v1058_v31 = vrot.slane %v4048_v60, 4  ;;  %v3139_v40 = vrot.slane %v4048_v60, 9 }
  0xf9   : > { %5487 = vst [vmem:[#allocation48_spill] sm:$0xff] %v4028_v26  ;;  %v4037_v25 = vld.sshfl [vmem:[#allocation1] sm:$0xff pattern:$0x75316420]  ;;  %v5515_v26 = vld [vmem:[#allocation28_spill] sm:$0xff] }
  0xfa   : > { %1634 = vst [vmem:[#allocation1 + $0x11] ss:$2 sm:$0xff] %v3564_v63  ;;  %1559 = vrot.lane.b32.xlu2 %v3964_v43, %s3318_s28  ;;  %v4076_v43 = vsel %vm901_vm7, %v897_v23, 0.0  ;;  %v1066_v17 = vrot.slane %v1058_v31, 5  ;;  %v271_v23 = vld [vmem:[%s3372_s20 + $0x1f0] sm:$0xff] }
  0xfb   : > { %5488 = vst [vmem:[#allocation49_spill] sm:$0xff] %v4033_v1  ;;  %v1547_v21 = vld.sshfl [vmem:[#allocation1 + $0x20] sm:$0xff pattern:$0x75316420]  ;;  %v5382_v50 = vrot.slane %v4076_v43, 4  ;;  %v3138_v57 = vrot.slane %v4076_v43, 9 }
  0xfc   : > { %1628 = vst [vmem:[#allocation1] ss:$2 sm:$0xff] %v3405_v29  ;;  %v4066_v5 = vpop.permute.xlu2 %1288  ;;  %v4113_v54 = vsel %vm3374_vm2, %v3139_v40, %v1066_v17 }
  0xfd   : > { %1630 = vst [vmem:[#allocation1 + $0x1] ss:$2 sm:$0xff] %v3661_v10  ;;  %1561 = vrot.lane.b32.xlu0 %v1547_v21, %s3318_s28  ;;  %v4070_v8 = vpop.permute.xlu0 %1231  ;;  %v4098_v59 = vpop.permute.xlu1 %1280  ;;  %v1062_v37 = vrot.slane %v5382_v50, 5 }
  0xfe   : > { %5489 = vst [vmem:[#allocation50_spill] sm:$0xff] %v4048_v60  ;;  %v1591_v0 = vld.sshfl [vmem:[#allocation1 + $0x30] sm:$0xff pattern:$0x75316420] }
  0xff   : > { %1581 = vst [vmem:[#allocation1 + $0x20] ss:$2 sm:$0xff] %v5448_v55  ;;  %1563 = vrot.lane.b32.xlu1 %v1548_v7, %s3318_s28  ;;  %v4147_v17 = vsel %vm3374_vm2, %v3138_v57, %v1062_v37 }
 0x100   : > { %5490 = vst [vmem:[#allocation51_spill] sm:$0xff] %v4052_v27 }
 0x101   : > { %1583 = vst [vmem:[#allocation1 + $0x21] ss:$2 sm:$0xff] %v3438_v51  ;;  %v4060_v4 = vld.sshfl [vmem:[#allocation1 + $0x10] sm:$0xff pattern:$0x75316420] }
 0x102   : > { %1598 = vst [vmem:[#allocation1 + $0x30] ss:$2 sm:$0xff] %v4048_v60  ;;  %1604 = vrot.lane.b32.xlu2 %v4005_v36, %s3319_s29  ;;  %v3140_v36 = vrot.slane %v4052_v27, 9 }
 0x103   : > { %1599 = vst [vmem:[#allocation1 + $0x31] ss:$2 sm:$0xff] %v4052_v27 }
 0x104   : > { %5491 = vst [vmem:[#allocation52_spill] sm:$0xff] %v4062_v41  ;;  %v4072_v62 = vld.sshfl [vmem:[#allocation1] sm:$0xff pattern:$0x75316420]  ;;  %v4090_v34 = vpop.permute.xlu2 %1335  ;;  %v4119_v11 = vsel %vm3374_vm2, %v3140_v36, %v1070_v9  ;;  %v272_v36 = vld [vmem:[%s3372_s20 + $0x1f8] sm:$0xff] }
 0x105   : > { %1649 = vst [vmem:[#allocation1 + $0x10] ss:$2 sm:$0xff] %v3604_v18  ;;  %1606 = vrot.lane.b32.xlu0 %v3994_v28, %s3319_s29  ;;  %v304_v50 = vmax.f32 %v264_v33, %v272_v36  ;;  %v5504_v36 = vrot.slane %v4052_v27, 4 }
 0x106   : > { %5492 = vst [vmem:[#allocation53_spill] sm:$0xff] %v4066_v5 }
 0x107   : > { %1650 = vst [vmem:[#allocation1 + $0x11] ss:$2 sm:$0xff] %v3616_v35  ;;  %v4104_v49 = vpop.permute.xlu0 %1278  ;;  %v1082_v1 = vrot.slane %v5504_v36, 6 }
 0x108   : > { %5493 = vst [vmem:[#allocation54_spill] sm:$0xff] %v4070_v8  ;;  %v1590_v42 = vld.sshfl [vmem:[#allocation1 + $0x20] sm:$0xff pattern:$0x75316420] }
 0x109   : > { %5494 = vst [vmem:[#allocation55_spill] sm:$0xff] %v4076_v43  ;;  %1608 = vrot.lane.b32.xlu1 %v1590_v42, %s3319_s29 }
 0x10a   : > { %1647 = vst [vmem:[#allocation1] ss:$2 sm:$0xff] %v3405_v29  ;;  %v1603_v38 = vld.sshfl [vmem:[#allocation1 + $0x30] sm:$0xff pattern:$0x75316420]  ;;  %1610 = vrot.lane.b32.xlu2 %v1591_v0, %s3319_s29 }
 0x10b   : > { %1648 = vst [vmem:[#allocation1 + $0x1] ss:$2 sm:$0xff] %v3702_v30  ;;  %v263_v0 = vld [vmem:[%s3372_s20 + $0x1b0] sm:$0xff] }
 0x10c   : > { %1596 = vst [vmem:[#allocation1 + $0x20] ss:$2 sm:$0xff] %v5448_v55  ;;  %v4126_v12 = vpop.permute.xlu2 %1341 }
 0x10d   : > { %1597 = vst [vmem:[#allocation1 + $0x21] ss:$2 sm:$0xff] %v4076_v43  ;;  %1612 = vrot.lane.b32.xlu0 %v4037_v25, %s3319_s29  ;;  %v303_v25 = vmax.f32 %v263_v0, %v271_v23 }
 0x10e   : > { %1640 = vst [vmem:[#allocation1 + $0x30] ss:$2 sm:$0xff] %v3470_v24  ;;  %v4088_v7 = vld.sshfl [vmem:[#allocation1 + $0x10] sm:$0xff pattern:$0x75316420] }
 0x10f   : > { %1642 = vst [vmem:[#allocation1 + $0x31] ss:$2 sm:$0xff] %v3480_v14  ;;  %v4134_v21 = vpop.permute.xlu0 %1284  ;;  %v320_v0 = vmax.f32 %v303_v25, %v304_v50  ;;  %v3142_v50 = vrot.slane %v4048_v60, 10  ;;  %v3143_v25 = vrot.slane %v4052_v27, 10 }
 0x110   : > { %5495 = vst [vmem:[#allocation56_spill] sm:$0xff] %v4090_v34  ;;  %v4141_v42 = vpop.permute.xlu1 %1286 }
 0x111   : > { %1687 = vst [vmem:[#allocation1 + $0x10] ss:$2 sm:$0xff] %v3674_v44  ;;  %1614 = vrot.lane.b32.xlu1 %v4020_v20, %s3319_s29  ;;  %v382_v37 = vrot.slane %v320_v0, 2  ;;  %v383_v33 = vrot.slane %v320_v0, 4  ;;  %v384_v32 = vrot.slane %v320_v0, 6 }
 0x112   : > { %5496 = vst [vmem:[#allocation57_spill] sm:$0xff] %v4098_v59  ;;  %v4107_v28 = vld.sshfl [vmem:[#allocation1] sm:$0xff pattern:$0x75316420]  ;;  %v5514_v59 = vld [vmem:[#allocation10_spill] sm:$0xff] }
 0x113   : > { %1689 = vst [vmem:[#allocation1 + $0x11] ss:$2 sm:$0xff] %v3682_v46  ;;  %v3111_v34 = vrot.slane %v384_v32, 9 }
 0x114   : > { %5497 = vst [vmem:[#allocation58_spill] sm:$0xff] %v4104_v49  ;;  %v1602_v53 = vld.sshfl [vmem:[#allocation1 + $0x20] sm:$0xff pattern:$0x75316420]  ;;  %v4159_v57 = vpop.permute.xlu2 %1388 }
 0x115   : > { %1683 = vst [vmem:[#allocation1] ss:$2 sm:$0xff] %v3594_v15  ;;  %1616 = vrot.lane.b32.xlu2 %v1602_v53, %s3319_s29  ;;  %1618 = vrot.lane.b32.xlu0 %v1603_v38, %s3319_s29  ;;  %v3108_v53 = vrot.slane %v320_v0, 9  ;;  %v1078_v38 = vrot.slane %v1058_v31, 6 }
 0x116   : > { %1685 = vst [vmem:[#allocation1 + $0x1] ss:$2 sm:$0xff] %v3743_v16  ;;  %v4123_v3 = vld.sshfl [vmem:[#allocation1 + $0x30] sm:$0xff pattern:$0x75316420] }
 0x117   : > { %5498 = vst [vmem:[#allocation59_spill] sm:$0xff] %v4113_v54  ;;  %v4164_v23 = vpop.permute.xlu0 %3242  ;;  %v4186_v36 = vsel %vm3587_vm10, %v3142_v50, %v1078_v38 }
 0x118   : > { %1636 = vst [vmem:[#allocation1 + $0x20] ss:$2 sm:$0xff] %v3405_v29 }
 0x119   : > { %5499 = vst [vmem:[#allocation60_spill] sm:$0xff] %v4119_v11  ;;  %1659 = vrot.lane.b32.xlu1 %v4072_v62, %s3320_s30  ;;  %v4176_v49 = vpop.permute.xlu1 %1333  ;;  %v3110_v62 = vrot.slane %v383_v33, 9 }
 0x11a   : > { %1638 = vst [vmem:[#allocation1 + $0x21] ss:$2 sm:$0xff] %v3576_v13  ;;  %v4154_v20 = vld.sshfl [vmem:[#allocation1 + $0x10] sm:$0xff pattern:$0x75316420] }
 0x11b   : > { %1653 = vst [vmem:[#allocation1 + $0x30] ss:$2 sm:$0xff] %v4113_v54 }
 0x11c   : > { %5500 = vst [vmem:[#allocation61_spill] sm:$0xff] %v4126_v12  ;;  %v5506_v12 = vld [vmem:[#allocation15_spill] sm:$0xff] }
 0x11d   : > { %1654 = vst [vmem:[#allocation1 + $0x31] ss:$2 sm:$0xff] %v4119_v11  ;;  %v4143_v40 = vld.sshfl [vmem:[#allocation1] sm:$0xff pattern:$0x75316420]  ;;  %1661 = vrot.lane.b32.xlu2 %v4060_v4, %s3320_s30 }
 0x11e   : > { %5501 = vst [vmem:[#allocation62_spill] sm:$0xff] %v4141_v42  ;;  %v5507_v42 = vld [vmem:[#allocation9_spill] sm:$0xff] }
 0x11f   : > { %5502 = vst [vmem:[#allocation63_spill] sm:$0xff] %v4147_v17  ;;  %v4199_v38 = vpop.permute.xlu0 %1337 }
 0x120   : > { %1702 = vst [vmem:[#allocation1] ss:$2 sm:$0xff] %v3594_v15 }
 0x121   : > { %v1645_v9 = vld.sshfl [vmem:[#allocation1 + $0x20] sm:$0xff pattern:$0x75316420]  ;;  %1703 = vst [vmem:[#allocation1 + $0x1] ss:$2 sm:$0xff] %v3772_v6  ;;  %1665 = vrot.lane.b32.xlu1 %v4123_v3, %s3320_s30 }
 0x122   : > { %1651 = vst [vmem:[#allocation1 + $0x20] ss:$2 sm:$0xff] %v3405_v29  ;;  %v685_v29 = vmax.f32 %v320_v0, %v3108_v53  ;;  %1663 = vrot.lane.b32.xlu0 %v1645_v9, %s3320_s30  ;;  %v5511_v0 = vld [vmem:[#allocation23_spill] sm:$0xff] }
 0x123   : > { %1652 = vst [vmem:[#allocation1 + $0x21] ss:$2 sm:$0xff] %v4147_v17 }
 0x124   : > { %v4156_v22 = vld.sshfl [vmem:[#allocation1 + $0x30] sm:$0xff pattern:$0x75316420]  ;;  %5503 = vst [vmem:[#allocation64_spill] sm:$0xff] %v4159_v57  ;;  %v3109_v57 = vrot.slane %v382_v37, 9  ;;  %v813_v53 = vperm.slane %v685_v29, 0 }
 0x125   : > { %1695 = vst [vmem:[#allocation1 + $0x30] ss:$2 sm:$0xff] %v3638_v47  ;;  %1667 = vrot.lane.b32.xlu2 %v4107_v28, %s3320_s30 }
 0x126   : > { %1697 = vst [vmem:[#allocation1 + $0x31] ss:$2 sm:$0xff] %v3642_v48  ;;  %v686_v41 = vmax.f32 %v382_v37, %v3109_v57  ;;  %v687_v57 = vmax.f32 %v383_v33, %v3110_v62  ;;  %v3141_v37 = vrot.slane %v4076_v43, 10  ;;  %v688_v33 = vmax.f32 %v384_v32, %v3111_v34  ;;  %v4209_v62 = vpop.permute.xlu1 %1339  ;;  %v5517_v32 = vld [vmem:[#allocation11_spill] sm:$0xff] }
 0x127   : > { %1704 = vst [vmem:[#allocation1 + $0x10] ss:$2 sm:$0xff] %v3717_v39 }
 0x128   : > { %1705 = vst [vmem:[#allocation1 + $0x11] ss:$2 sm:$0xff] %v3725_v45  ;;  %v4178_v5 = vld.sshfl [vmem:[#allocation1] sm:$0xff pattern:$0x75316420]  ;;  %v814_v50 = vperm.slane %v686_v41, 0 }
 0x129   : > { %5505 = vst [vmem:[#allocation65_spill] sm:$0xff] %v4176_v49  ;;  %v4191_v49 = vsel %vm3587_vm10, %v3143_v25, %v1082_v1  ;;  %v5513_v25 = vrot.slane %v4076_v43, 4  ;;  %v815_v29 = vperm.slane %v687_v57, 0  ;;  %v816_v34 = vperm.slane %v688_v33, 0  ;;  %v5519_v33 = vld [vmem:[#allocation12_spill] sm:$0xff] }
 0x12a   : > { %1738 = vst [vmem:[#allocation1] ss:$2 sm:$0xff] %v5506_v12  ;;  %v1657_v31 = vld.sshfl [vmem:[#allocation1 + $0x20] sm:$0xff pattern:$0x75316420]  ;;  %v4193_v12 = vpop.permute.xlu2 %1394  ;;  %1669 = vrot.lane.b32.xlu0 %v4088_v7, %s3320_s30 }
 0x12b   : > { %1740 = vst [vmem:[#allocation1 + $0x1] ss:$2 sm:$0xff] %v5507_v42  ;;  %v1074_v9 = vrot.slane %v5513_v25, 6  ;;  %1671 = vrot.lane.b32.xlu1 %v1657_v31, %s3320_s30 }
 0x12c   : > { %5509 = vst [vmem:[#allocation15_spill] sm:$0xff] %v4186_v36 }
 0x12d   : > { %1691 = vst [vmem:[#allocation1 + $0x20] ss:$2 sm:$0xff] %v3594_v15  ;;  %v1701_v4 = vld.sshfl [vmem:[#allocation1 + $0x30] sm:$0xff pattern:$0x75316420]  ;;  %v4219_v3 = vsel %vm3587_vm10, %v3141_v37, %v1074_v9  ;;  %v4230_v37 = vpop.permute.xlu0 %1343  ;;  %1673 = vrot.lane.b32.xlu2 %v4156_v22, %s3320_s30 }
 0x12e   : > { %5510 = vst [vmem:[#allocation9_spill] sm:$0xff] %v4191_v49  ;;  %v4238_v7 = vpop.permute.xlu1 %3247 }
 0x12f   : > { %1693 = vst [vmem:[#allocation1 + $0x21] ss:$2 sm:$0xff] %v5511_v0  ;;  %v4203_v1 = vld.sshfl [vmem:[#allocation1 + $0x10] sm:$0xff pattern:$0x75316420] }
 0x130   : > { %1708 = vst [vmem:[#allocation1 + $0x30] ss:$2 sm:$0xff] %v4186_v36 }
 0x131   : > { %5512 = vst [vmem:[#allocation17_spill] sm:$0xff] %v4199_v38  ;;  %v865_v38 = vsel %vm817_vm3, %v814_v50, %v813_v53  ;;  %v5518_v53 = vld [vmem:[#allocation27_spill] sm:$0xff]  ;;  %vm2030_vm3 = vcmask 293888  }
 0x132   : > { %1709 = vst [vmem:[#allocation1 + $0x31] ss:$2 sm:$0xff] %v4191_v49  ;;  %v4212_v41 = vld.sshfl [vmem:[#allocation1] sm:$0xff pattern:$0x75316420]  ;;  %v4223_v36 = vpop.permute.xlu2 %3252  ;;  %v866_v57 = vsel %vm819_vm4, %v815_v29, %v865_v38  ;;  %v5520_v38 = vld [vmem:[#allocation30_spill] sm:$0xff]  ;;  %1714 = vrot.lane.b32.xlu0 %v4143_v40, %s3321_s5 }
 0x133   : > { %1742 = vst [vmem:[#allocation1 + $0x10] ss:$2 sm:$0xff] %v5514_v59  ;;  %v867_v9 = vsel %vm821_vm5, %v816_v34, %v866_v57  ;;  %1716 = vrot.lane.b32.xlu1 %v4154_v20, %s3321_s5  ;;  %vm2039_vm4 = vcmask 326656   ;;  %vm2048_vm5 = vcmask 359424  }
 0x134   : > { %1744 = vst [vmem:[#allocation1 + $0x11] ss:$2 sm:$0xff] %v5515_v26  ;;  %v900_v31 = vsel %vm884_vm6, 0.0, %v867_v9 }
 0x135   : > { %5516 = vst [vmem:[#allocation10_spill] sm:$0xff] %v4219_v3  ;;  %v4255_v57 = vsel %vm901_vm7, %v900_v31, 0.0  ;;  %v4257_v22 = vpop.permute.xlu0 %1390  ;;  %v5523_v31 = vld [vmem:[#allocation32_spill] sm:$0xff]  ;;  %vm2057_vm7 = vcmask 392192  }
 0x136   : > { %1757 = vst [vmem:[#allocation1] ss:$2 sm:$0xff] %v3607_v19  ;;  %v1700_v25 = vld.sshfl [vmem:[#allocation1 + $0x20] sm:$0xff pattern:$0x75316420]  ;;  %v4263_v9 = vpop.permute.xlu1 %1392 }
 0x137   : > { %1758 = vst [vmem:[#allocation1 + $0x1] ss:$2 sm:$0xff] %v5517_v32  ;;  %1718 = vrot.lane.b32.xlu2 %v1700_v25, %s3321_s5 }
 0x138   : > { %1706 = vst [vmem:[#allocation1 + $0x20] ss:$2 sm:$0xff] %v3594_v15 }
 0x139   : > { %1707 = vst [vmem:[#allocation1 + $0x21] ss:$2 sm:$0xff] %v4219_v3  ;;  %v1713_v28 = vld.sshfl [vmem:[#allocation1 + $0x30] sm:$0xff pattern:$0x75316420] }
 0x13a   : > { %1750 = vst [vmem:[#allocation1 + $0x30] ss:$2 sm:$0xff] %v3450_v56  ;;  %v4248_v19 = vpop.permute.xlu2 %1447  ;;  %1720 = vrot.lane.b32.xlu0 %v1701_v4, %s3321_s5  ;;  %v5526_v4 = vld [vmem:[#allocation31_spill] sm:$0xff] }
 0x13b   : > { %1752 = vst [vmem:[#allocation1 + $0x31] ss:$2 sm:$0xff] %v5518_v53  ;;  %v4235_v50 = vld.sshfl [vmem:[#allocation1 + $0x10] sm:$0xff pattern:$0x75316420]  ;;  %1722 = vrot.lane.b32.xlu1 %v4178_v5, %s3321_s5  ;;  %v5527_v5 = vld [vmem:[#allocation33_spill] sm:$0xff] }
 0x13c   : > { %1759 = vst [vmem:[#allocation1 + $0x10] ss:$2 sm:$0xff] %v5519_v33 }
 0x13d   : > { %1760 = vst [vmem:[#allocation1 + $0x11] ss:$2 sm:$0xff] %v5520_v38  ;;  %v4278_v15 = vpop.permute.xlu0 %1396 }
 0x13e   : > { %v4244_v29 = vld.sshfl [vmem:[#allocation1] sm:$0xff pattern:$0x75316420]  ;;  %5521 = vst [vmem:[#allocation28_spill] sm:$0xff] %v4248_v19 }
 0x13f   : > { %1793 = vst [vmem:[#allocation1] ss:$2 sm:$0xff] %v3661_v10  ;;  %1724 = vrot.lane.b32.xlu2 %v4203_v1, %s3321_s5 }
 0x140   : > { %v1712_v34 = vld.sshfl [vmem:[#allocation1 + $0x20] sm:$0xff pattern:$0x75316420]  ;;  %1795 = vst [vmem:[#allocation1 + $0x1] ss:$2 sm:$0xff] %v3559_v61 }
 0x141   : > { %1746 = vst [vmem:[#allocation1 + $0x20] ss:$2 sm:$0xff] %v3438_v51 }
 0x142   : > { %1748 = vst [vmem:[#allocation1 + $0x21] ss:$2 sm:$0xff] %v3441_v52  ;;  %v1756_v10 = vld.sshfl [vmem:[#allocation1 + $0x30] sm:$0xff pattern:$0x75316420]  ;;  %v4273_v20 = vpop.permute.xlu2 %1453  ;;  %1726 = vrot.lane.b32.xlu0 %v1712_v34, %s3321_s5 }
 0x143   : > { %1763 = vst [vmem:[#allocation1 + $0x30] ss:$2 sm:$0xff] %v4052_v27  ;;  %1728 = vrot.lane.b32.xlu1 %v1713_v28, %s3321_s5 }
 0x144   : > { %5522 = vst [vmem:[#allocation11_spill] sm:$0xff] %v4263_v9  ;;  %v4265_v40 = vld.sshfl [vmem:[#allocation1 + $0x10] sm:$0xff pattern:$0x75316420]  ;;  %v1085_v9 = vrot.slane %v4255_v57, 4 }
 0x145   : > { %1764 = vst [vmem:[#allocation1 + $0x31] ss:$2 sm:$0xff] %v4255_v57 }
 0x146   : > { %1797 = vst [vmem:[#allocation1 + $0x10] ss:$2 sm:$0xff] %v3564_v63  ;;  %v1088_v27 = vrot.slane %v1085_v9, 5 }
 0x147   : > { %1799 = vst [vmem:[#allocation1 + $0x11] ss:$2 sm:$0xff] %v5523_v31  ;;  %v4271_v51 = vld.sshfl [vmem:[#allocation1] sm:$0xff pattern:$0x75316420]  ;;  %1769 = vrot.lane.b32.xlu2 %v4212_v41, %s3322_s6 }
 0x148   : > { %5524 = vst [vmem:[#allocation32_spill] sm:$0xff] %v4273_v20  ;;  %v4287_v20 = vpop.permute.xlu1 %1398 }
 0x149   : > { %1812 = vst [vmem:[#allocation1] ss:$2 sm:$0xff] %v3702_v30  ;;  %v1755_v19 = vld.sshfl [vmem:[#allocation1 + $0x20] sm:$0xff pattern:$0x75316420] }
 0x14a   : > { %1813 = vst [vmem:[#allocation1 + $0x1] ss:$2 sm:$0xff] %v3604_v18  ;;  %1771 = vrot.lane.b32.xlu0 %v4235_v50, %s3322_s6 }
 0x14b   : > { %1761 = vst [vmem:[#allocation1 + $0x20] ss:$2 sm:$0xff] %v4076_v43  ;;  %v3144_v43 = vrot.slane %v4255_v57, 9  ;;  %1773 = vrot.lane.b32.xlu1 %v1755_v19, %s3322_s6 }
 0x14c   : > { %1762 = vst [vmem:[#allocation1 + $0x21] ss:$2 sm:$0xff] %v4048_v60  ;;  %v4284_v25 = vld.sshfl [vmem:[#allocation1 + $0x30] sm:$0xff pattern:$0x75316420]  ;;  %v4298_v60 = vpop.permute.xlu2 %1500 }
 0x14d   : > { %5525 = vst [vmem:[#allocation66_spill] sm:$0xff] %v4287_v20 }
 0x14e   : > { %1805 = vst [vmem:[#allocation1 + $0x30] ss:$2 sm:$0xff] %v3480_v14  ;;  %v4291_v30 = vld.sshfl [vmem:[#allocation1 + $0x10] sm:$0xff pattern:$0x75316420]  ;;  %v4304_v14 = vpop.permute.xlu0 %1443 }
 0x14f   : > { %1807 = vst [vmem:[#allocation1 + $0x31] ss:$2 sm:$0xff] %v5526_v4  ;;  %1775 = vrot.lane.b32.xlu2 %v1756_v10, %s3322_s6 }
 0x150   : > { %1814 = vst [vmem:[#allocation1 + $0x10] ss:$2 sm:$0xff] %v3616_v35  ;;  %v4313_v4 = vpop.permute.xlu1 %1445 }
 0x151   : > { %1815 = vst [vmem:[#allocation1 + $0x11] ss:$2 sm:$0xff] %v5527_v5  ;;  %v4301_v20 = vld.sshfl [vmem:[#allocation1] sm:$0xff pattern:$0x75316420]  ;;  %v4311_v5 = vsel %vm3374_vm2, %v3144_v43, %v1088_v27  ;;  %v5528_v27 = vld [vmem:[#allocation35_spill] sm:$0xff] }
 0x152   : > { %1848 = vst [vmem:[#allocation1] ss:$2 sm:$0xff] %v3743_v16  ;;  %1777 = vrot.lane.b32.xlu0 %v4244_v29, %s3322_s6  ;;  %vm2021_vm2 = vcmask 261120  }
 0x153   : > { %v1767_v1 = vld.sshfl [vmem:[#allocation1 + $0x20] sm:$0xff pattern:$0x75316420]  ;;  %1850 = vst [vmem:[#allocation1 + $0x1] ss:$2 sm:$0xff] %v3674_v44  ;;  %1779 = vrot.lane.b32.xlu1 %v4265_v40, %s3322_s6  ;;  %v5535_v40 = vld [vmem:[#allocation44_spill] sm:$0xff] }
 0x154   : > { %1801 = vst [vmem:[#allocation1 + $0x20] ss:$2 sm:$0xff] %v3576_v13  ;;  %v4325_v2 = vpop.permute.xlu2 %1506 }
 0x155   : > { %1803 = vst [vmem:[#allocation1 + $0x21] ss:$2 sm:$0xff] %v3470_v24 }
 0x156   : > { %v4316_v34 = vld.sshfl [vmem:[#allocation1 + $0x30] sm:$0xff pattern:$0x75316420]  ;;  %v1450_v28 = vpop.permute.xlu0 %1449 }
 0x157   : > { %1818 = vst [vmem:[#allocation1 + $0x30] ss:$2 sm:$0xff] %v4119_v11  ;;  %v5529_v11 = vld [vmem:[#allocation34_spill] sm:$0xff]  ;;  %1781 = vrot.lane.b32.xlu2 %v1767_v1, %s3322_s6  ;;  %v5537_v1 = vld [vmem:[#allocation45_spill] sm:$0xff] }
 0x158   : > { %v4321_v16 = vld.sshfl [vmem:[#allocation1 + $0x10] sm:$0xff pattern:$0x75316420]  ;;  %1819 = vst [vmem:[#allocation1 + $0x31] ss:$2 sm:$0xff] %v4311_v5  ;;  %v4337_v13 = vpop.permute.xlu1 %1451 }
 0x159   : > { %1852 = vst [vmem:[#allocation1 + $0x10] ss:$2 sm:$0xff] %v3682_v46 }
 0x15a   : > { %1854 = vst [vmem:[#allocation1 + $0x11] ss:$2 sm:$0xff] %v5528_v27  ;;  %v4330_v43 = vld.sshfl [vmem:[#allocation1] sm:$0xff pattern:$0x75316420]  ;;  %v5533_v27 = vld [vmem:[#allocation8_spill] sm:$0xff]  ;;  %1783 = vrot.lane.b32.xlu0 %v4284_v25, %s3322_s6 }
 0x15b   : > { %1867 = vst [vmem:[#allocation1] ss:$2 sm:$0xff] %v3772_v6  ;;  %1824 = vrot.lane.b32.xlu1 %v4271_v51, %s3323_s7  ;;  %v5538_v25 = vld [vmem:[#allocation2_spill] sm:$0xff] }
 0x15c   : > { %v4334_v41 = vld.sshfl [vmem:[#allocation1 + $0x20] sm:$0xff pattern:$0x75316420]  ;;  %1868 = vst [vmem:[#allocation1 + $0x1] ss:$2 sm:$0xff] %v3717_v39  ;;  %v4348_v6 = vpop.permute.xlu2 %1553  ;;  %v1092_v39 = vrot.slane %v1085_v9, 6 }
 0x15d   : > { %1816 = vst [vmem:[#allocation1 + $0x20] ss:$2 sm:$0xff] %v4147_v17  ;;  %v5531_v17 = vld [vmem:[#allocation36_spill] sm:$0xff] }
 0x15e   : > { %1817 = vst [vmem:[#allocation1 + $0x21] ss:$2 sm:$0xff] %v4113_v54  ;;  %v3145_v54 = vrot.slane %v4255_v57, 10  ;;  %v4355_v10 = vpop.permute.xlu0 %3257 }
 0x15f   : > { %v4341_v50 = vld.sshfl [vmem:[#allocation1 + $0x30] sm:$0xff pattern:$0x75316420]  ;;  %5530 = vst [vmem:[#allocation67_spill] sm:$0xff] %v4348_v6  ;;  %1826 = vrot.lane.b32.xlu2 %v4291_v30, %s3323_s7  ;;  %v5542_v30 = vld [vmem:[#allocation48_spill] sm:$0xff] }
 0x160   : > { %1860 = vst [vmem:[#allocation1 + $0x30] ss:$2 sm:$0xff] %v3642_v48  ;;  %v4365_v29 = vpop.permute.xlu1 %1498  ;;  %v4373_v9 = vsel %vm3587_vm10, %v3145_v54, %v1092_v39  ;;  %vm2084_vm10 = vcmask 490496  }
 0x161   : > { %1862 = vst [vmem:[#allocation1 + $0x31] ss:$2 sm:$0xff] %v5529_v11  ;;  %v4346_v19 = vld.sshfl [vmem:[#allocation1 + $0x10] sm:$0xff pattern:$0x75316420]  ;;  %v5532_v11 = vld [vmem:[#allocation37_spill] sm:$0xff] }
 0x162   : > { %1869 = vst [vmem:[#allocation1 + $0x10] ss:$2 sm:$0xff] %v3725_v45  ;;  %v1964_v6 = vsel %vm1958_vm11, %v5533_v27, %v5532_v11  ;;  %v3234_v27 = vunpack.i.l.bf16 %v5537_v1  ;;  %1828 = vrot.lane.b32.xlu0 %v4334_v41, %s3323_s7  ;;  %v3259_v41 = vunpack.i.l.bf16 %v4355_v10 }
 0x163   : > { %1870 = vst [vmem:[#allocation1 + $0x11] ss:$2 sm:$0xff] %v5531_v17  ;;  %v4359_v48 = vld.sshfl [vmem:[#allocation1] sm:$0xff pattern:$0x75316420]  ;;  %v1973_v45 = vsel %vm1967_vm12, %v1964_v6, %v5535_v40  ;;  %1830 = vrot.lane.b32.xlu1 %v4316_v34, %s3323_s7  ;;  %v5546_v34 = vld [vmem:[#allocation22_spill] sm:$0xff] }
 0x164   : > { %1903 = vst [vmem:[#allocation1] ss:$2 sm:$0xff] %v5507_v42  ;;  %v5536_v42 = vld [vmem:[#allocation40_spill] sm:$0xff]  ;;  %v1560_v54 = vpop.permute.xlu2 %1559 }
 0x165   : > { %v4367_v17 = vld.sshfl [vmem:[#allocation1 + $0x20] sm:$0xff pattern:$0x75316420]  ;;  %1905 = vst [vmem:[#allocation1 + $0x1] ss:$2 sm:$0xff] %v5514_v59  ;;  %v1982_v59 = vsel %vm1976_vm13, %v1973_v45, %v4134_v21  ;;  %v3229_v8 = vunpack.i.l.bf16 %v5536_v42 }
 0x166   : > { %1856 = vst [vmem:[#allocation1 + $0x20] ss:$2 sm:$0xff] %v5511_v0  ;;  %v1991_v39 = vsel %vm1985_vm14, %v1982_v59, %v4209_v62  ;;  %v4394_v45 = vpop.permute.xlu0 %1502 }
 0x167   : > { %5534 = vst [vmem:[#allocation37_spill] sm:$0xff] %v4373_v9  ;;  %v2000_v21 = vsel %vm1994_vm15, %v1991_v39, %v4193_v12  ;;  %v1959_v40 = vsel %vm1958_vm11, %v5538_v25, %v3229_v8  ;;  %v3249_v8 = vunpack.i.l.bf16 %v4238_v7  ;;  %v5539_v39 = vld [vmem:[#allocation15_spill] sm:$0xff]  ;;  %1832 = vrot.lane.b32.xlu2 %v4301_v20, %s3323_s7 }
 0x168   : > { %1858 = vst [vmem:[#allocation1 + $0x21] ss:$2 sm:$0xff] %v3638_v47  ;;  %v4379_v11 = vld.sshfl [vmem:[#allocation1 + $0x30] sm:$0xff pattern:$0x75316420]  ;;  %v2009_v59 = vsel %vm2003_vm0, %v2000_v21, %v1450_v28  ;;  %v1505_v0 = vpop.permute.xlu1 %1504  ;;  %v1968_v51 = vsel %vm1967_vm12, %v1959_v40, %v3234_v27  ;;  %v5541_v21 = vld [vmem:[#allocation13_spill] sm:$0xff] }
 0x169   : > { %1873 = vst [vmem:[#allocation1 + $0x30] ss:$2 sm:$0xff] %v4191_v49  ;;  %v3244_v49 = vunpack.i.l.bf16 %v4164_v23 }
 0x16a   : > { %v4389_v6 = vld.sshfl [vmem:[#allocation1 + $0x10] sm:$0xff pattern:$0x75316420]  ;;  %1874 = vst [vmem:[#allocation1 + $0x31] ss:$2 sm:$0xff] %v4373_v9  ;;  %v2018_v9 = vsel %vm2012_vm1, %v2009_v59, %v1505_v0  ;;  %1834 = vrot.lane.b32.xlu0 %v4321_v16, %s3323_s7  ;;  %v3235_v16 = vunpack.i.h.bf16 %v5537_v1 }
 0x16b   : > { %1907 = vst [vmem:[#allocation1 + $0x10] ss:$2 sm:$0xff] %v5515_v26  ;;  %v3239_v26 = vunpack.i.l.bf16 %v4007_v58  ;;  %v4419_v28 = vsel %vm2021_vm2, %v2018_v9, %v1560_v54  ;;  %v5540_v0 = vld [vmem:[#allocation39_spill] sm:$0xff]  ;;  %1836 = vrot.lane.b32.xlu1 %v4367_v17, %s3323_s7 }
 0x16c   : > { %1909 = vst [vmem:[#allocation1 + $0x11] ss:$2 sm:$0xff] %v5448_v55  ;;  %v4401_v62 = vld.sshfl [vmem:[#allocation1] sm:$0xff pattern:$0x75316420]  ;;  %v1962_v25 = vsel %vm1958_vm11, %v5541_v21, %v5540_v0  ;;  %v1605_v59 = vpop.permute.xlu2 %1604 }
 0x16d   : > { %1922 = vst [vmem:[#allocation1] ss:$2 sm:$0xff] %v5517_v32  ;;  %v1977_v40 = vsel %vm1976_vm13, %v1968_v51, %v3239_v26  ;;  %v1971_v9 = vsel %vm1967_vm12, %v1962_v25, %v5542_v30  ;;  %v5543_v0 = vld [vmem:[#allocation57_spill] sm:$0xff] }
 0x16e   : > { %1923 = vst [vmem:[#allocation1 + $0x1] ss:$2 sm:$0xff] %v5519_v33  ;;  %v1986_v54 = vsel %vm1985_vm14, %v1977_v40, %v3244_v49  ;;  %v1980_v26 = vsel %vm1976_vm13, %v1971_v9, %v5543_v0  ;;  %v4442_v21 = vpop.permute.xlu0 %1508  ;;  %v5544_v40 = vld [vmem:[#allocation56_spill] sm:$0xff] }
 0x16f   : > { %v4411_v12 = vld.sshfl [vmem:[#allocation1 + $0x20] sm:$0xff pattern:$0x75316420]  ;;  %v1995_v51 = vsel %vm1994_vm15, %v1986_v54, %v3249_v8  ;;  %v1989_v30 = vsel %vm1985_vm14, %v1980_v26, %v5544_v40  ;;  %v5545_v54 = vld [vmem:[#allocation38_spill] sm:$0xff]  ;;  %1838 = vrot.lane.b32.xlu2 %v4341_v50, %s3323_s7 }
 0x170   : > { %1871 = vst [vmem:[#allocation1 + $0x20] ss:$2 sm:$0xff] %v4219_v3  ;;  %v3254_v3 = vunpack.i.l.bf16 %v4223_v36  ;;  %v4448_v49 = vpop.permute.xlu1 %3262  ;;  %v1965_v0 = vsel %vm1958_vm11, %v5546_v34, %v5545_v54  ;;  %v5551_v54 = vld [vmem:[#allocation52_spill] sm:$0xff] }
 0x171   : > { %1872 = vst [vmem:[#allocation1 + $0x21] ss:$2 sm:$0xff] %v5539_v39  ;;  %v4422_v27 = vld.sshfl [vmem:[#allocation1 + $0x30] sm:$0xff pattern:$0x75316420]  ;;  %v3264_v9 = vunpack.i.l.bf16 %v4448_v49 }
 0x172   : > { %1915 = vst [vmem:[#allocation1 + $0x30] ss:$2 sm:$0xff] %v5518_v53  ;;  %v2004_v8 = vsel %vm2003_vm0, %v1995_v51, %v3254_v3  ;;  %1879 = vrot.lane.b32.xlu0 %v4330_v43, %s3324_s8  ;;  %v5563_v43 = vld [vmem:[#allocation31_spill] sm:$0xff] }
 0x173   : > { %1917 = vst [vmem:[#allocation1 + $0x31] ss:$2 sm:$0xff] %v5448_v55  ;;  %v4436_v33 = vld.sshfl [vmem:[#allocation1 + $0x10] sm:$0xff pattern:$0x75316420]  ;;  %v2013_v53 = vsel %vm2012_vm1, %v2004_v8, %v3259_v41  ;;  %v5547_v41 = vld [vmem:[#allocation54_spill] sm:$0xff]  ;;  %1881 = vrot.lane.b32.xlu1 %v4346_v19, %s3324_s8  ;;  %v3255_v19 = vunpack.i.h.bf16 %v4223_v36  ;;  %v3265_v36 = vunpack.i.h.bf16 %v4448_v49 }
 0x174   : > { %1924 = vst [vmem:[#allocation1 + $0x10] ss:$2 sm:$0xff] %v5520_v38  ;;  %v1998_v38 = vsel %vm1994_vm15, %v1989_v30, %v4257_v22  ;;  %v1611_v51 = vpop.permute.xlu2 %1610  ;;  %v5550_v30 = vld [vmem:[#allocation62_spill] sm:$0xff] }
 0x175   : > { %1925 = vst [vmem:[#allocation1 + $0x11] ss:$2 sm:$0xff] %v5448_v55  ;;  %v4450_v25 = vld.sshfl [vmem:[#allocation1] sm:$0xff pattern:$0x75316420]  ;;  %v2007_v3 = vsel %vm2003_vm0, %v1998_v38, %v4313_v4  ;;  %v1974_v38 = vsel %vm1967_vm12, %v1965_v0, %v5547_v41  ;;  %v5548_v4 = vld [vmem:[#allocation46_spill] sm:$0xff] }
 0x176   : > { %2093 = vst [vmem:[#allocation1] ss:$2 sm:$0xff] %v3559_v61  ;;  %v2022_v61 = vsel %vm2021_vm2, %v2013_v53, %v3264_v9  ;;  %v5549_v53 = vld [vmem:[#allocation14_spill] sm:$0xff]  ;;  %v1983_v8 = vsel %vm1976_vm13, %v1974_v38, %v5550_v30  ;;  %v1556_v9 = vpop.permute.xlu0 %1555  ;;  %v5554_v41 = vld [vmem:[#allocation61_spill] sm:$0xff] }
 0x177   : > { %2095 = vst [vmem:[#allocation1 + $0x1] ss:$2 sm:$0xff] %v3564_v63  ;;  %v4478_v20 = vsel %vm2030_vm3, %v2022_v61, %v1605_v59  ;;  %v3230_v63 = vunpack.i.h.bf16 %v5536_v42  ;;  %v1966_v40 = vsel %vm1958_vm11, %v5549_v53, %v5548_v4  ;;  %v2016_v59 = vsel %vm2012_vm1, %v2007_v3, %v4298_v60  ;;  %v5552_v61 = vld [vmem:[#allocation3_spill] sm:$0xff]  ;;  %v5553_v3 = vld [vmem:[#allocation4_spill] sm:$0xff]  ;;  %1883 = vrot.lane.b32.xlu2 %v4411_v12, %s3324_s8 }
 0x178   : > { %v4465_v26 = vld.sshfl [vmem:[#allocation1 + $0x20] sm:$0xff pattern:$0x75316420]  ;;  %v1975_v34 = vsel %vm1967_vm12, %v1966_v40, %v5551_v54  ;;  %v2025_v0 = vsel %vm2021_vm2, %v2016_v59, %v1556_v9  ;;  %v4501_v1 = vpop.permute.xlu1 %1557  ;;  %v1992_v38 = vsel %vm1985_vm14, %v1983_v8, %v5554_v41  ;;  %v3240_v53 = vunpack.i.h.bf16 %v4007_v58 }
 0x179   : > { %1911 = vst [vmem:[#allocation1 + $0x20] ss:$2 sm:$0xff] %v3441_v52  ;;  %v4505_v60 = vsel %vm2030_vm3, %v2025_v0, %v1611_v51  ;;  %v1960_v17 = vsel %vm1958_vm11, %v5553_v3, %v3230_v63  ;;  %v2001_v59 = vsel %vm1994_vm15, %v1992_v38, %v4278_v15  ;;  %v5557_v51 = vld [vmem:[#allocation43_spill] sm:$0xff]  ;;  %v5558_v63 = vld [vmem:[#allocation20_spill] sm:$0xff]  ;;  %v3245_v9 = vunpack.i.h.bf16 %v4164_v23  ;;  %v5559_v15 = vld [vmem:[#allocation66_spill] sm:$0xff] }
 0x17a   : > { %1913 = vst [vmem:[#allocation1 + $0x21] ss:$2 sm:$0xff] %v3450_v56  ;;  %v4475_v22 = vld.sshfl [vmem:[#allocation1 + $0x30] sm:$0xff pattern:$0x75316420]  ;;  %v1969_v40 = vsel %vm1967_vm12, %v1960_v17, %v3235_v16  ;;  %v1961_v8 = vsel %vm1958_vm11, %v5558_v63, %v5557_v51  ;;  %v2010_v16 = vsel %vm2003_vm0, %v2001_v59, %v4337_v13  ;;  %v5560_v0 = vld [vmem:[#allocation50_spill] sm:$0xff]  ;;  %v3250_v23 = vunpack.i.h.bf16 %v4238_v7  ;;  %1885 = vrot.lane.b32.xlu0 %v4379_v11, %s3324_s8 }
 0x17b   : > { %1928 = vst [vmem:[#allocation1 + $0x30] ss:$2 sm:$0xff] %v4255_v57  ;;  %v5562_v13 = vld [vmem:[#allocation41_spill] sm:$0xff]  ;;  %v1978_v41 = vsel %vm1976_vm13, %v1969_v40, %v3240_v53  ;;  %v2019_v38 = vsel %vm2012_vm1, %v2010_v16, %v4325_v2  ;;  %v5565_v51 = vld [vmem:[#allocation32_spill] sm:$0xff]  ;;  %1887 = vrot.lane.b32.xlu1 %v4359_v48, %s3324_s8  ;;  %v5574_v11 = vld [vmem:[#allocation6_spill] sm:$0xff] }
 0x17c   : > { %1929 = vst [vmem:[#allocation1 + $0x31] ss:$2 sm:$0xff] %v5448_v55  ;;  %v4495_v42 = vld.sshfl [vmem:[#allocation1 + $0x10] sm:$0xff pattern:$0x75316420]  ;;  %v1970_v17 = vsel %vm1967_vm12, %v1961_v8, %v5562_v13  ;;  %v1987_v59 = vsel %vm1985_vm14, %v1978_v41, %v3245_v9  ;;  %v5567_v2 = vld [vmem:[#allocation65_spill] sm:$0xff]  ;;  %v3260_v13 = vunpack.i.h.bf16 %v4355_v10 }
 0x17d   : > { %2097 = vst [vmem:[#allocation1 + $0x10] ss:$2 sm:$0xff] %v5523_v31  ;;  %v5556_v31 = vld [vmem:[#allocation53_spill] sm:$0xff]  ;;  %v5570_v41 = vld [vmem:[#allocation42_spill] sm:$0xff]  ;;  %v5573_v10 = vld [vmem:[#allocation47_spill] sm:$0xff] }
 0x17e   : > { %2099 = vst [vmem:[#allocation1 + $0x11] ss:$2 sm:$0xff] %v5552_v61  ;;  %v4511_v4 = vld.sshfl [vmem:[#allocation1] sm:$0xff pattern:$0x75316420]  ;;  %v1984_v30 = vsel %vm1976_vm13, %v1975_v34, %v5556_v31  ;;  %v1617_v34 = vpop.permute.xlu2 %1616  ;;  %v1562_v31 = vpop.permute.xlu0 %1561 }
 0x17f   : > { %5555 = vst [vmem:[#allocation8_spill] sm:$0xff] %v4511_v4  ;;  %v1993_v58 = vsel %vm1985_vm14, %v1984_v30, %v4230_v37  ;;  %v5561_v37 = vld [vmem:[#allocation51_spill] sm:$0xff]  ;;  %v5564_v30 = vld [vmem:[#allocation58_spill] sm:$0xff]  ;;  %v2028_v8 = vsel %vm2021_vm2, %v2019_v38, %v1562_v31  ;;  %v5572_v31 = vld [vmem:[#allocation64_spill] sm:$0xff]  ;;  %1889 = vrot.lane.b32.xlu2 %v4389_v6, %s3324_s8 }
 0x180   : > { %2112 = vst [vmem:[#allocation1] ss:$2 sm:$0xff] %v3604_v18  ;;  %v2002_v50 = vsel %vm1994_vm15, %v1993_v58, %v5559_v15  ;;  %v1979_v7 = vsel %vm1976_vm13, %v1970_v17, %v5564_v30  ;;  %v1564_v16 = vpop.permute.xlu1 %1563  ;;  %v5568_v15 = vld [vmem:[#allocation33_spill] sm:$0xff]  ;;  %v4566_v9 = vsel %vm2030_vm3, %v2028_v8, %v1617_v34  ;;  %v5571_v38 = vld [vmem:[#allocation7_spill] sm:$0xff] }
 0x181   : > { %v4530_v54 = vld.sshfl [vmem:[#allocation1 + $0x20] sm:$0xff pattern:$0x75316420]  ;;  %2113 = vst [vmem:[#allocation1 + $0x1] ss:$2 sm:$0xff] %v3616_v35  ;;  %v2011_v63 = vsel %vm2003_vm0, %v2002_v50, %v5565_v51  ;;  %v1988_v40 = vsel %vm1985_vm14, %v1979_v7, %v5567_v2  ;;  %v1996_v50 = vsel %vm1994_vm15, %v1987_v59, %v3250_v23  ;;  %v1963_v34 = vsel %vm1958_vm11, %v5571_v38, %v5570_v41 }
 0x182   : > { %1926 = vst [vmem:[#allocation1 + $0x20] ss:$2 sm:$0xff] %v5560_v0  ;;  %v2020_v58 = vsel %vm2012_vm1, %v2011_v63, %v4442_v21  ;;  %v1997_v23 = vsel %vm1994_vm15, %v1988_v40, %v5572_v31  ;;  %v1972_v30 = vsel %vm1967_vm12, %v1963_v34, %v5573_v10  ;;  %v2005_v12 = vsel %vm2003_vm0, %v1996_v50, %v3255_v19  ;;  %v5576_v2 = vld [vmem:[#allocation49_spill] sm:$0xff]  ;;  %v5581_v34 = vld [vmem:[#allocation35_spill] sm:$0xff]  ;;  %v5582_v31 = vld [vmem:[#allocation18_spill] sm:$0xff] }
 0x183   : > { %1927 = vst [vmem:[#allocation1 + $0x21] ss:$2 sm:$0xff] %v5561_v37  ;;  %v4540_v3 = vld.sshfl [vmem:[#allocation1 + $0x30] sm:$0xff pattern:$0x75316420]  ;;  %v4571_v17 = vsel %vm2021_vm2, %v2020_v58, %v1564_v16  ;;  %v2006_v49 = vsel %vm2003_vm0, %v1997_v23, %v4304_v14  ;;  %v5577_v40 = vld [vmem:[#allocation17_spill] sm:$0xff]  ;;  %1891 = vrot.lane.b32.xlu0 %v4465_v26, %s3324_s8  ;;  %1893 = vrot.lane.b32.xlu1 %v4422_v27, %s3324_s8 }
 0x184   : > { %2105 = vst [vmem:[#allocation1 + $0x30] ss:$2 sm:$0xff] %v5563_v43  ;;  %v2015_v51 = vsel %vm2012_vm1, %v2006_v49, %v4365_v29  ;;  %v5578_v58 = vld [vmem:[#allocation67_spill] sm:$0xff]  ;;  %v5583_v10 = vld [vmem:[#allocation28_spill] sm:$0xff] }
 0x185   : > { %v4556_v53 = vld.sshfl [vmem:[#allocation1 + $0x10] sm:$0xff pattern:$0x75316420]  ;;  %2107 = vst [vmem:[#allocation1 + $0x31] ss:$2 sm:$0xff] %v5552_v61  ;;  %v2024_v16 = vsel %vm2021_vm2, %v2015_v51, %v5578_v58  ;;  %v5591_v27 = vld [vmem:[#allocation36_spill] sm:$0xff] }
 0x186   : > { %5566 = vst [vmem:[#allocation44_spill] sm:$0xff] %v4556_v53  ;;  %v1662_v7 = vpop.permute.xlu2 %1661  ;;  %v1607_v63 = vpop.permute.xlu0 %1606 }
 0x187   : > { %2114 = vst [vmem:[#allocation1 + $0x10] ss:$2 sm:$0xff] %v5568_v15  ;;  %1934 = vrot.lane.b32.xlu2 %v4401_v62, %s3325_s9 }
 0x188   : > { %2115 = vst [vmem:[#allocation1 + $0x11] ss:$2 sm:$0xff] %v5552_v61  ;;  %v4577_v21 = vld.sshfl [vmem:[#allocation1] sm:$0xff pattern:$0x75316420]  ;;  %v1609_v50 = vpop.permute.xlu1 %1608 }
 0x189   : > { %5569 = vst [vmem:[#allocation40_spill] sm:$0xff] %v4577_v21  ;;  %v2033_v38 = vsel %vm2030_vm3, %v2024_v16, %v1609_v50 }
 0x18a   : > { %2132 = vst [vmem:[#allocation1] ss:$2 sm:$0xff] %v3674_v44  ;;  %v4592_v59 = vld.sshfl [vmem:[#allocation1 + $0x20] sm:$0xff pattern:$0x75316420]  ;;  %v2014_v44 = vsel %vm2012_vm1, %v2005_v12, %v3260_v13 }
 0x18b   : > { %2134 = vst [vmem:[#allocation1 + $0x1] ss:$2 sm:$0xff] %v3682_v46  ;;  %v2023_v14 = vsel %vm2021_vm2, %v2014_v44, %v3265_v36  ;;  %v1981_v46 = vsel %vm1976_vm13, %v1972_v30, %v5576_v2  ;;  %v5580_v36 = vld [vmem:[#allocation11_spill] sm:$0xff]  ;;  %v5586_v44 = vld [vmem:[#allocation26_spill] sm:$0xff]  ;;  %v5588_v2 = vld [vmem:[#allocation60_spill] sm:$0xff]  ;;  %1936 = vrot.lane.b32.xlu0 %v4436_v33, %s3325_s9  ;;  %1938 = vrot.lane.b32.xlu1 %v4530_v54, %s3325_s9 }
 0x18c   : > { %2101 = vst [vmem:[#allocation1 + $0x20] ss:$2 sm:$0xff] %v3470_v24  ;;  %v4603_v8 = vld.sshfl [vmem:[#allocation1 + $0x30] sm:$0xff pattern:$0x75316420]  ;;  %v2032_v29 = vsel %vm2030_vm3, %v2023_v14, %v1607_v63  ;;  %v1990_v19 = vsel %vm1985_vm14, %v1981_v46, %v5577_v40  ;;  %v5595_v54 = vld [vmem:[#allocation37_spill] sm:$0xff] }
 0x18d   : > { %2103 = vst [vmem:[#allocation1 + $0x21] ss:$2 sm:$0xff] %v5574_v11  ;;  %v4617_v13 = vsel %vm2039_vm4, %v2032_v29, %v1662_v7  ;;  %v1999_v41 = vsel %vm1994_vm15, %v1990_v19, %v5580_v36  ;;  %v5584_v7 = vld [vmem:[#allocation25_spill] sm:$0xff]  ;;  %v5587_v63 = vld [vmem:[#allocation59_spill] sm:$0xff]  ;;  %v5590_v29 = vld [vmem:[#allocation34_spill] sm:$0xff] }
 0x18e   : > { %5575 = vst [vmem:[#allocation45_spill] sm:$0xff] %v4603_v8  ;;  %v2008_v30 = vsel %vm2003_vm0, %v1999_v41, %v5583_v10  ;;  %v1668_v49 = vpop.permute.xlu2 %1667  ;;  %v1613_v14 = vpop.permute.xlu0 %1612  ;;  %v5593_v36 = vld [vmem:[#allocation5_spill] sm:$0xff]  ;;  %v5601_v8 = vld [vmem:[#allocation63_spill] sm:$0xff] }
 0x18f   : > { %2118 = vst [vmem:[#allocation1 + $0x30] ss:$2 sm:$0xff] %v4311_v5  ;;  %v4614_v48 = vld.sshfl [vmem:[#allocation1 + $0x10] sm:$0xff pattern:$0x75316420]  ;;  %v2017_v12 = vsel %vm2012_vm1, %v2008_v30, %v4394_v45  ;;  %1940 = vrot.lane.b32.xlu2 %v4475_v22, %s3325_s9 }
 0x190   : > { %2119 = vst [vmem:[#allocation1 + $0x31] ss:$2 sm:$0xff] %v5552_v61  ;;  %v2026_v6 = vsel %vm2021_vm2, %v2017_v12, %v4501_v1  ;;  %v1615_v45 = vpop.permute.xlu1 %1614 }
 0x191   : > { %5579 = vst [vmem:[#allocation2_spill] sm:$0xff] %v4614_v48  ;;  %v2035_v26 = vsel %vm2030_vm3, %v2026_v6, %v1613_v14  ;;  %v2036_v1 = vsel %vm2030_vm3, %v4419_v28, %v1615_v45  ;;  %v5596_v14 = vld [vmem:[#allocation55_spill] sm:$0xff] }
 0x192   : > { %2136 = vst [vmem:[#allocation1 + $0x10] ss:$2 sm:$0xff] %v5581_v34  ;;  %v4626_v23 = vld.sshfl [vmem:[#allocation1] sm:$0xff pattern:$0x75316420]  ;;  %v4649_v40 = vsel %vm2039_vm4, %v2035_v26, %v1668_v49 }
 0x193   : > { %2138 = vst [vmem:[#allocation1 + $0x11] ss:$2 sm:$0xff] %v5582_v31  ;;  %v5594_v34 = vld [vmem:[#allocation21_spill] sm:$0xff]  ;;  %1942 = vrot.lane.b32.xlu0 %v4450_v25, %s3325_s9  ;;  %1944 = vrot.lane.b32.xlu1 %v4495_v42, %s3325_s9  ;;  %v5598_v42 = vld [vmem:[#allocation12_spill] sm:$0xff] }
 0x194   : > { %2151 = vst [vmem:[#allocation1] ss:$2 sm:$0xff] %v5584_v7  ;;  %v4635_v51 = vld.sshfl [vmem:[#allocation1 + $0x20] sm:$0xff pattern:$0x75316420] }
 0x195   : > { %5585 = vst [vmem:[#allocation15_spill] sm:$0xff] %v4635_v51  ;;  %v5604_v51 = vld [vmem:[#allocation10_spill] sm:$0xff] }
 0x196   : > { %2152 = vst [vmem:[#allocation1 + $0x1] ss:$2 sm:$0xff] %v5586_v44  ;;  %v1674_v58 = vpop.permute.xlu2 %1673  ;;  %v1619_v28 = vpop.permute.xlu0 %1618 }
 0x197   : > { %2116 = vst [vmem:[#allocation1 + $0x20] ss:$2 sm:$0xff] %v5587_v63  ;;  %v4645_v46 = vld.sshfl [vmem:[#allocation1 + $0x30] sm:$0xff pattern:$0x75316420]  ;;  %v2038_v62 = vsel %vm2030_vm3, %v4571_v17, %v1619_v28  ;;  %1946 = vrot.lane.b32.xlu2 %v4592_v59, %s3325_s9 }
 0x198   : > { %2117 = vst [vmem:[#allocation1 + $0x21] ss:$2 sm:$0xff] %v5588_v2  ;;  %v1660_v41 = vpop.permute.xlu1 %1659  ;;  %v4673_v10 = vsel %vm2039_vm4, %v2038_v62, %v1674_v58  ;;  %v5597_v58 = vld [vmem:[#allocation9_spill] sm:$0xff] }
 0x199   : > { %5589 = vst [vmem:[#allocation39_spill] sm:$0xff] %v4645_v46  ;;  %v2040_v30 = vsel %vm2039_vm4, %v4478_v20, %v1660_v41 }
 0x19a   : > { %2144 = vst [vmem:[#allocation1 + $0x30] ss:$2 sm:$0xff] %v5590_v29  ;;  %v2148_v19 = vld.sshfl [vmem:[#allocation1 + $0x10] sm:$0xff pattern:$0x75316420] }
 0x19b   : > { %2146 = vst [vmem:[#allocation1 + $0x31] ss:$2 sm:$0xff] %v5582_v31  ;;  %1948 = vrot.lane.b32.xlu0 %v4540_v3, %s3325_s9  ;;  %2163 = vrot.lane.b32.xlu1 %v4626_v23, %s3311_s21  ;;  %v5600_v23 = vld [vmem:[#allocation19_spill] sm:$0xff] }
 0x19c   : > { %2153 = vst [vmem:[#allocation1 + $0x10] ss:$2 sm:$0xff] %v5591_v27 }
 0x19d   : > { %2154 = vst [vmem:[#allocation1 + $0x11] ss:$2 sm:$0xff] %v5582_v31  ;;  %v4660_v16 = vld.sshfl [vmem:[#allocation1] sm:$0xff pattern:$0x75316420] }
 0x19e   : > { %2187 = vst [vmem:[#allocation1] ss:$2 sm:$0xff] %v5448_v55  ;;  %v1719_v49 = vpop.permute.xlu2 %1718  ;;  %v1664_v20 = vpop.permute.xlu0 %1663 }
 0x19f   : > { %v4665_v50 = vld.sshfl [vmem:[#allocation1 + $0x20] sm:$0xff pattern:$0x75316420]  ;;  %2189 = vst [vmem:[#allocation1 + $0x1] ss:$2 sm:$0xff] %v5593_v36  ;;  %v2042_v22 = vsel %vm2039_vm4, %v2033_v38, %v1664_v20  ;;  %v5599_v20 = vld [vmem:[#allocation16_spill] sm:$0xff]  ;;  %2165 = vrot.lane.b32.xlu2 %v2148_v19, %s3311_s21 }
 0x1a0   : > { %5592 = vst [vmem:[#allocation13_spill] sm:$0xff] %v4665_v50  ;;  %v1666_v26 = vpop.permute.xlu1 %1665  ;;  %v4694_v25 = vsel %vm2048_vm5, %v2042_v22, %v1719_v49 }
 0x1a1   : > { %2140 = vst [vmem:[#allocation1 + $0x20] ss:$2 sm:$0xff] %v3638_v47  ;;  %v2043_v45 = vsel %vm2039_vm4, %v4505_v60, %v1666_v26 }
 0x1a2   : > { %2142 = vst [vmem:[#allocation1 + $0x21] ss:$2 sm:$0xff] %v5594_v34  ;;  %v2150_v33 = vld.sshfl [vmem:[#allocation1 + $0x30] sm:$0xff pattern:$0x75316420] }
 0x1a3   : > { %2157 = vst [vmem:[#allocation1 + $0x30] ss:$2 sm:$0xff] %v5595_v54  ;;  %2169 = vrot.lane.b32.xlu1 %v2150_v33, %s3311_s21 }
 0x1a4   : > { %2158 = vst [vmem:[#allocation1 + $0x31] ss:$2 sm:$0xff] %v5582_v31  ;;  %v4681_v17 = vld.sshfl [vmem:[#allocation1 + $0x10] sm:$0xff pattern:$0x75316420] }
 0x1a5   : > { %2191 = vst [vmem:[#allocation1 + $0x10] ss:$2 sm:$0xff] %v3441_v52 }
 0x1a6   : > { %2193 = vst [vmem:[#allocation1 + $0x11] ss:$2 sm:$0xff] %v3450_v56  ;;  %v2202_v12 = vld.sshfl [vmem:[#allocation1] sm:$0xff pattern:$0x75316420]  ;;  %v1725_v62 = vpop.permute.xlu2 %1724  ;;  %v1670_v60 = vpop.permute.xlu0 %1669 }
 0x1a7   : > { %2206 = vst [vmem:[#allocation1] ss:$2 sm:$0xff] %v5448_v55  ;;  %v2045_v59 = vsel %vm2039_vm4, %v2036_v1, %v1670_v60  ;;  %2218 = vrot.lane.b32.xlu2 %v2202_v12, %s3312_s22 }
 0x1a8   : > { %2207 = vst [vmem:[#allocation1 + $0x1] ss:$2 sm:$0xff] %v5596_v14  ;;  %v1672_v49 = vpop.permute.xlu1 %1671  ;;  %v4719_v3 = vsel %vm2048_vm5, %v2045_v59, %v1725_v62 }
 0x1a9   : > { %v2149_v6 = vld.sshfl [vmem:[#allocation1 + $0x20] sm:$0xff pattern:$0x75316420]  ;;  %v2046_v26 = vsel %vm2039_vm4, %v4566_v9, %v1672_v49 }
 0x1aa   : > { %2155 = vst [vmem:[#allocation1 + $0x20] ss:$2 sm:$0xff] %v5539_v39  ;;  %2167 = vrot.lane.b32.xlu0 %v2149_v6, %s3311_s21 }
 0x1ab   : > { %2156 = vst [vmem:[#allocation1 + $0x21] ss:$2 sm:$0xff] %v5597_v58  ;;  %v4699_v28 = vld.sshfl [vmem:[#allocation1 + $0x30] sm:$0xff pattern:$0x75316420] }
 0x1ac   : > { %2199 = vst [vmem:[#allocation1 + $0x30] ss:$2 sm:$0xff] %v5517_v32 }
 0x1ad   : > { %2201 = vst [vmem:[#allocation1 + $0x31] ss:$2 sm:$0xff] %v5598_v42  ;;  %v4705_v38 = vld.sshfl [vmem:[#allocation1 + $0x10] sm:$0xff pattern:$0x75316420] }
 0x1ae   : > { %2208 = vst [vmem:[#allocation1 + $0x10] ss:$2 sm:$0xff] %v5560_v0  ;;  %v1770_v60 = vpop.permute.xlu2 %1769  ;;  %v1715_v9 = vpop.permute.xlu0 %1714 }
 0x1af   : > { %2209 = vst [vmem:[#allocation1 + $0x11] ss:$2 sm:$0xff] %v5561_v37  ;;  %v2214_v41 = vld.sshfl [vmem:[#allocation1] sm:$0xff pattern:$0x75316420]  ;;  %v2049_v19 = vsel %vm2048_vm5, %v2040_v30, %v1715_v9 }
 0x1b0   : > { %2242 = vst [vmem:[#allocation1] ss:$2 sm:$0xff] %v5552_v61  ;;  %v1717_v49 = vpop.permute.xlu1 %1716  ;;  %v4739_v6 = vsel %vm2057_vm7, %v2049_v19, %v1770_v60  ;;  %2226 = vrot.lane.b32.xlu2 %v2214_v41, %s3312_s22 }
 0x1b1   : > { %2244 = vst [vmem:[#allocation1 + $0x1] ss:$2 sm:$0xff] %v5599_v20  ;;  %v2050_v46 = vsel %vm2048_vm5, %v4617_v13, %v1717_v49 }
 0x1b2   : > { %v4716_v22 = vld.sshfl [vmem:[#allocation1 + $0x20] sm:$0xff pattern:$0x75316420]  ;;  %2171 = vrot.lane.b32.xlu0 %v4660_v16, %s3311_s21 }
 0x1b3   : > { %2195 = vst [vmem:[#allocation1 + $0x20] ss:$2 sm:$0xff] %v5448_v55 }
 0x1b4   : > { %2197 = vst [vmem:[#allocation1 + $0x21] ss:$2 sm:$0xff] %v5600_v23  ;;  %v4726_v1 = vld.sshfl [vmem:[#allocation1 + $0x30] sm:$0xff pattern:$0x75316420] }
 0x1b5   : > { %2212 = vst [vmem:[#allocation1 + $0x30] ss:$2 sm:$0xff] %v5448_v55 }
 0x1b6   : > { %2213 = vst [vmem:[#allocation1 + $0x31] ss:$2 sm:$0xff] %v5448_v55  ;;  %v4731_v62 = vld.sshfl [vmem:[#allocation1 + $0x10] sm:$0xff pattern:$0x75316420]  ;;  %v1776_v30 = vpop.permute.xlu2 %1775  ;;  %v1721_v13 = vpop.permute.xlu0 %1720 }
 0x1b7   : > { %2246 = vst [vmem:[#allocation1 + $0x10] ss:$2 sm:$0xff] %v3470_v24  ;;  %v2052_v12 = vsel %vm2048_vm5, %v2043_v45, %v1721_v13  ;;  %v5603_v13 = vld [vmem:[#allocation24_spill] sm:$0xff] }
 0x1b8   : > { %2248 = vst [vmem:[#allocation1 + $0x11] ss:$2 sm:$0xff] %v5574_v11  ;;  %v2257_v59 = vld.sshfl [vmem:[#allocation1] sm:$0xff pattern:$0x75316420]  ;;  %v1723_v9 = vpop.permute.xlu1 %1722  ;;  %v4758_v49 = vsel %vm2057_vm7, %v2052_v12, %v1776_v30  ;;  %2173 = vrot.lane.b32.xlu2 %v4681_v17, %s3311_s21 }
 0x1b9   : > { %2261 = vst [vmem:[#allocation1] ss:$2 sm:$0xff] %v5552_v61  ;;  %2273 = vrot.lane.b32.xlu1 %v2257_v59, %s3313_s23  ;;  %v2053_v16 = vsel %vm2048_vm5, %v4649_v40, %v1723_v9  ;;  %v5602_v59 = vld [vmem:[#allocation23_spill] sm:$0xff] }
 0x1ba   : > { %2262 = vst [vmem:[#allocation1 + $0x1] ss:$2 sm:$0xff] %v5601_v8 }
 0x1bb   : > { %v2204_v48 = vld.sshfl [vmem:[#allocation1 + $0x20] sm:$0xff pattern:$0x75316420] }
 0x1bc   : > { %2210 = vst [vmem:[#allocation1 + $0x20] ss:$2 sm:$0xff] %v5448_v55  ;;  %2222 = vrot.lane.b32.xlu0 %v2204_v48, %s3312_s22 }
 0x1bd   : > { %2211 = vst [vmem:[#allocation1 + $0x21] ss:$2 sm:$0xff] %v5448_v55  ;;  %v2217_v33 = vld.sshfl [vmem:[#allocation1 + $0x30] sm:$0xff pattern:$0x75316420] }
 0x1be   : > { %2254 = vst [vmem:[#allocation1 + $0x30] ss:$2 sm:$0xff] %v3604_v18  ;;  %v1782_v45 = vpop.permute.xlu2 %1781  ;;  %v1727_v40 = vpop.permute.xlu0 %1726 }
 0x1bf   : > { %2256 = vst [vmem:[#allocation1 + $0x31] ss:$2 sm:$0xff] %v3616_v35  ;;  %v4751_v60 = vld.sshfl [vmem:[#allocation1 + $0x10] sm:$0xff pattern:$0x75316420] }
 0x1c0   : > { %2263 = vst [vmem:[#allocation1 + $0x10] ss:$2 sm:$0xff] %v5587_v63 }
 0x1c1   : > { %2264 = vst [vmem:[#allocation1 + $0x11] ss:$2 sm:$0xff] %v5588_v2  ;;  %v2269_v19 = vld.sshfl [vmem:[#allocation1] sm:$0xff pattern:$0x75316420] }
 0x1c2   : > { %2297 = vst [vmem:[#allocation1] ss:$2 sm:$0xff] %v5582_v31 }
 0x1c3   : > { %2299 = vst [vmem:[#allocation1 + $0x1] ss:$2 sm:$0xff] %v5602_v59 }
 0x1c4   : > { %v2216_v53 = vld.sshfl [vmem:[#allocation1 + $0x20] sm:$0xff pattern:$0x75316420]  ;;  %2175 = vrot.lane.b32.xlu0 %v4716_v22, %s3311_s21 }
 0x1c5   : > { %v3266_v50 = vpack.i.bf16 %v2217_v33, %v2216_v53  ;;  %2250 = vst [vmem:[#allocation1 + $0x20] ss:$2 sm:$0xff] %v5552_v61  ;;  %v2055_v53 = vsel %vm2048_vm5, %v2046_v26, %v1727_v40  ;;  %v1729_v33 = vpop.permute.xlu1 %1728 }
 0x1c6   : > { %2252 = vst [vmem:[#allocation1 + $0x21] ss:$2 sm:$0xff] %v5603_v13  ;;  %v4768_v30 = vld.sshfl [vmem:[#allocation1 + $0x30] sm:$0xff pattern:$0x75316420]  ;;  %v4779_v48 = vsel %vm2057_vm7, %v2055_v53, %v1782_v45  ;;  %v2056_v12 = vsel %vm2048_vm5, %v4673_v10, %v1729_v33  ;;  %v1827_v26 = vpop.permute.xlu2 %1826  ;;  %v1772_v10 = vpop.permute.xlu0 %1771 }
 0x1c7   : > { %2267 = vst [vmem:[#allocation1 + $0x30] ss:$2 sm:$0xff] %v5552_v61  ;;  %3267 = vrot.lane.b32.xlu1 %v3266_v50, %s3312_s22  ;;  %v2059_v17 = vsel %vm2057_vm7, %v2050_v46, %v1772_v10 }
 0x1c8   : > { %2268 = vst [vmem:[#allocation1 + $0x31] ss:$2 sm:$0xff] %v5552_v61  ;;  %v4773_v41 = vld.sshfl [vmem:[#allocation1 + $0x10] sm:$0xff pattern:$0x75316420]  ;;  %v4797_v22 = vsel %vm2066_vm8, %v2059_v17, %v1827_v26  ;;  %v5605_v26 = vld [vmem:[#allocation29_spill] sm:$0xff] }
 0x1c9   : > { %2301 = vst [vmem:[#allocation1 + $0x10] ss:$2 sm:$0xff] %v3638_v47 }
 0x1ca   : > { %2303 = vst [vmem:[#allocation1 + $0x11] ss:$2 sm:$0xff] %v5594_v34  ;;  %v2312_v9 = vld.sshfl [vmem:[#allocation1] sm:$0xff pattern:$0x75316420] }
 0x1cb   : > { %2316 = vst [vmem:[#allocation1] ss:$2 sm:$0xff] %v5582_v31 }
 0x1cc   : > { %2317 = vst [vmem:[#allocation1 + $0x1] ss:$2 sm:$0xff] %v5604_v51  ;;  %2220 = vrot.lane.b32.xlu0 %v4705_v38, %s3312_s22 }
 0x1cd   : > { %v2259_v50 = vld.sshfl [vmem:[#allocation1 + $0x20] sm:$0xff pattern:$0x75316420]  ;;  %v1774_v53 = vpop.permute.xlu1 %1773 }
 0x1ce   : > { %2265 = vst [vmem:[#allocation1 + $0x20] ss:$2 sm:$0xff] %v5552_v61  ;;  %v2060_v33 = vsel %vm2057_vm7, %v4694_v25, %v1774_v53  ;;  %v1833_v4 = vpop.permute.xlu2 %1832  ;;  %v1778_v10 = vpop.permute.xlu0 %1777 }
 0x1cf   : > { %2266 = vst [vmem:[#allocation1 + $0x21] ss:$2 sm:$0xff] %v5552_v61  ;;  %v2272_v45 = vld.sshfl [vmem:[#allocation1 + $0x30] sm:$0xff pattern:$0x75316420]  ;;  %2281 = vrot.lane.b32.xlu1 %v2269_v19, %s3313_s23 }
 0x1d0   : > { %2309 = vst [vmem:[#allocation1 + $0x30] ss:$2 sm:$0xff] %v5584_v7 }
 0x1d1   : > { %2311 = vst [vmem:[#allocation1 + $0x31] ss:$2 sm:$0xff] %v5586_v44  ;;  %v2313_v40 = vld.sshfl [vmem:[#allocation1 + $0x10] sm:$0xff pattern:$0x75316420] }
 0x1d2   : > { %2318 = vst [vmem:[#allocation1 + $0x10] ss:$2 sm:$0xff] %v5539_v39 }
 0x1d3   : > { %2319 = vst [vmem:[#allocation1 + $0x11] ss:$2 sm:$0xff] %v5597_v58  ;;  %v2324_v21 = vld.sshfl [vmem:[#allocation1] sm:$0xff pattern:$0x75316420] }
 0x1d4   : > { %2352 = vst [vmem:[#allocation1] ss:$2 sm:$0xff] %v5593_v36  ;;  %v2062_v36 = vsel %vm2057_vm7, %v2053_v16, %v1778_v10  ;;  %2328 = vrot.lane.b32.xlu0 %v2312_v9, %s3314_s24 }
 0x1d5   : > { %2354 = vst [vmem:[#allocation1 + $0x1] ss:$2 sm:$0xff] %v3441_v52  ;;  %v1780_v17 = vpop.permute.xlu1 %1779 }
 0x1d6   : > { %v2271_v19 = vld.sshfl [vmem:[#allocation1 + $0x20] sm:$0xff pattern:$0x75316420]  ;;  %v2063_v53 = vsel %vm2057_vm7, %v4719_v3, %v1780_v17  ;;  %v1784_v10 = vpop.permute.xlu0 %1783  ;;  %v5607_v17 = vld [vmem:[#allocation30_spill] sm:$0xff] }
 0x1d7   : > { %v3271_v46 = vpack.i.bf16 %v2272_v45, %v2271_v19  ;;  %2305 = vst [vmem:[#allocation1 + $0x20] ss:$2 sm:$0xff] %v5582_v31  ;;  %2277 = vrot.lane.b32.xlu1 %v2259_v50, %s3313_s23  ;;  %v4818_v45 = vsel %vm2066_vm8, %v2062_v36, %v1833_v4  ;;  %v5606_v50 = vld [vmem:[#allocation27_spill] sm:$0xff]  ;;  %v2065_v4 = vsel %vm2057_vm7, %v2056_v12, %v1784_v10 }
 0x1d8   : > { %2307 = vst [vmem:[#allocation1 + $0x21] ss:$2 sm:$0xff] %v5605_v26  ;;  %v4809_v25 = vld.sshfl [vmem:[#allocation1 + $0x30] sm:$0xff pattern:$0x75316420] }
 0x1d9   : > { %3272 = vrot.lane.b32.xlu2 %v3271_v46, %s3313_s23  ;;  %2322 = vst [vmem:[#allocation1 + $0x30] ss:$2 sm:$0xff] %v5582_v31  ;;  %v1839_v46 = vpop.permute.xlu2 %1838 }
 0x1da   : > { %2323 = vst [vmem:[#allocation1 + $0x31] ss:$2 sm:$0xff] %v5582_v31  ;;  %v4815_v38 = vld.sshfl [vmem:[#allocation1 + $0x10] sm:$0xff pattern:$0x75316420] }
 0x1db   : > { %2356 = vst [vmem:[#allocation1 + $0x10] ss:$2 sm:$0xff] %v3450_v56 }
 0x1dc   : > { %2358 = vst [vmem:[#allocation1 + $0x11] ss:$2 sm:$0xff] %v5606_v50  ;;  %v2367_v19 = vld.sshfl [vmem:[#allocation1] sm:$0xff pattern:$0x75316420]  ;;  %2275 = vrot.lane.b32.xlu0 %v4751_v60, %s3313_s23 }
 0x1dd   : > { %2371 = vst [vmem:[#allocation1] ss:$2 sm:$0xff] %v5596_v14  ;;  %v1825_v36 = vpop.permute.xlu1 %1824  ;;  %v4835_v14 = vsel %vm2066_vm8, %v2065_v4, %v1839_v46 }
 0x1de   : > { %2372 = vst [vmem:[#allocation1 + $0x1] ss:$2 sm:$0xff] %v5560_v0  ;;  %v2067_v9 = vsel %vm2066_vm8, %v4739_v6, %v1825_v36  ;;  %v1829_v46 = vpop.permute.xlu0 %1828 }
 0x1df   : > { %v2314_v16 = vld.sshfl [vmem:[#allocation1 + $0x20] sm:$0xff pattern:$0x75316420]  ;;  %2228 = vrot.lane.b32.xlu1 %v4731_v62, %s3312_s22  ;;  %v2069_v10 = vsel %vm2066_vm8, %v2060_v33, %v1829_v46 }
 0x1e0   : > { %2320 = vst [vmem:[#allocation1 + $0x20] ss:$2 sm:$0xff] %v5582_v31 }
 0x1e1   : > { %2330 = vrot.lane.b32.xlu2 %v2313_v40, %s3314_s24  ;;  %2321 = vst [vmem:[#allocation1 + $0x21] ss:$2 sm:$0xff] %v5582_v31  ;;  %v2327_v3 = vld.sshfl [vmem:[#allocation1 + $0x30] sm:$0xff pattern:$0x75316420]  ;;  %v1884_v12 = vpop.permute.xlu2 %1883 }
 0x1e2   : > { %2364 = vst [vmem:[#allocation1 + $0x30] ss:$2 sm:$0xff] %v5598_v42 }
 0x1e3   : > { %2366 = vst [vmem:[#allocation1 + $0x31] ss:$2 sm:$0xff] %v5607_v17  ;;  %v2368_v62 = vld.sshfl [vmem:[#allocation1 + $0x10] sm:$0xff pattern:$0x75316420] }
 0x1e4   : > { %2373 = vst [vmem:[#allocation1 + $0x10] ss:$2 sm:$0xff] %v5561_v37  ;;  %2283 = vrot.lane.b32.xlu0 %v4773_v41, %s3313_s23 }
 0x1e5   : > { %2374 = vst [vmem:[#allocation1 + $0x11] ss:$2 sm:$0xff] %v4255_v57  ;;  %v2379_v40 = vld.sshfl [vmem:[#allocation1] sm:$0xff pattern:$0x75316420]  ;;  %v1831_v4 = vpop.permute.xlu1 %1830 }
 0x1e6   : > { %2407 = vst [vmem:[#allocation1] ss:$2 sm:$0xff] %v5599_v20  ;;  %v4854_v20 = vsel %vm2075_vm9, %v2069_v10, %v1884_v12  ;;  %v1835_v12 = vpop.permute.xlu0 %1834 }
 0x1e7   : > { %2336 = vrot.lane.b32.xlu1 %v2324_v21, %s3314_s24  ;;  %2409 = vst [vmem:[#allocation1 + $0x1] ss:$2 sm:$0xff] %v3470_v24  ;;  %v2070_v21 = vsel %vm2066_vm8, %v4758_v49, %v1831_v4  ;;  %v2072_v49 = vsel %vm2066_vm8, %v2063_v53, %v1835_v12 }
 0x1e8   : > { %v2326_v6 = vld.sshfl [vmem:[#allocation1 + $0x20] sm:$0xff pattern:$0x75316420] }
 0x1e9   : > { %2332 = vrot.lane.b32.xlu2 %v2314_v16, %s3314_s24  ;;  %2360 = vst [vmem:[#allocation1 + $0x20] ss:$2 sm:$0xff] %v5600_v23  ;;  %v3276_v36 = vpack.i.bf16 %v2327_v3, %v2326_v6  ;;  %v1890_v23 = vpop.permute.xlu2 %1889 }
 0x1ea   : > { %2362 = vst [vmem:[#allocation1 + $0x21] ss:$2 sm:$0xff] %v5517_v32  ;;  %v4851_v60 = vld.sshfl [vmem:[#allocation1 + $0x30] sm:$0xff pattern:$0x75316420]  ;;  %v4873_v41 = vsel %vm2075_vm9, %v2072_v49, %v1890_v23 }
 0x1eb   : > { %2377 = vst [vmem:[#allocation1 + $0x30] ss:$2 sm:$0xff] %v5448_v55 }
 0x1ec   : > { %2378 = vst [vmem:[#allocation1 + $0x31] ss:$2 sm:$0xff] %v5448_v55  ;;  %v4860_v16 = vld.sshfl [vmem:[#allocation1 + $0x10] sm:$0xff pattern:$0x75316420] }
 0x1ed   : > { %2411 = vst [vmem:[#allocation1 + $0x10] ss:$2 sm:$0xff] %v5574_v11  ;;  %v1837_v46 = vpop.permute.xlu1 %1836 }
 0x1ee   : > { %2413 = vst [vmem:[#allocation1 + $0x11] ss:$2 sm:$0xff] %v5563_v43  ;;  %v2422_v33 = vld.sshfl [vmem:[#allocation1] sm:$0xff pattern:$0x75316420]  ;;  %v2073_v6 = vsel %vm2066_vm8, %v4779_v48, %v1837_v46 }
 0x1ef   : > { %3277 = vrot.lane.b32.xlu1 %v3276_v36, %s3314_s24  ;;  %2426 = vst [vmem:[#allocation1] ss:$2 sm:$0xff] %v5601_v8 }
 0x1f0   : > { %2427 = vst [vmem:[#allocation1 + $0x1] ss:$2 sm:$0xff] %v5587_v63 }
 0x1f1   : > { %2383 = vrot.lane.b32.xlu2 %v2367_v19, %s3315_s25  ;;  %v2369_v3 = vld.sshfl [vmem:[#allocation1 + $0x20] sm:$0xff pattern:$0x75316420]  ;;  %v1935_v53 = vpop.permute.xlu2 %1934  ;;  %v1880_v19 = vpop.permute.xlu0 %1879 }
 0x1f2   : > { %2375 = vst [vmem:[#allocation1 + $0x20] ss:$2 sm:$0xff] %v5448_v55  ;;  %2387 = vrot.lane.b32.xlu0 %v2369_v3, %s3315_s25  ;;  %v2076_v4 = vsel %vm2075_vm9, %v2067_v9, %v1880_v19 }
 0x1f3   : > { %2376 = vst [vmem:[#allocation1 + $0x21] ss:$2 sm:$0xff] %v5448_v55  ;;  %v2382_v10 = vld.sshfl [vmem:[#allocation1 + $0x30] sm:$0xff pattern:$0x75316420]  ;;  %v4891_v12 = vsel %vm2084_vm10, %v2076_v4, %v1935_v53 }
 0x1f4   : > { %2419 = vst [vmem:[#allocation1 + $0x30] ss:$2 sm:$0xff] %v3616_v35 }
 0x1f5   : > { %2421 = vst [vmem:[#allocation1 + $0x31] ss:$2 sm:$0xff] %v5568_v15  ;;  %v4880_v8 = vld.sshfl [vmem:[#allocation1 + $0x10] sm:$0xff pattern:$0x75316420]  ;;  %v1882_v36 = vpop.permute.xlu1 %1881 }
 0x1f6   : > { %2428 = vst [vmem:[#allocation1 + $0x10] ss:$2 sm:$0xff] %v5588_v2  ;;  %v2077_v49 = vsel %vm2075_vm9, %v4797_v22, %v1882_v36 }
 0x1f7   : > { %2429 = vst [vmem:[#allocation1 + $0x11] ss:$2 sm:$0xff] %v4311_v5  ;;  %2385 = vrot.lane.b32.xlu1 %v2368_v62, %s3315_s25  ;;  %v2434_v48 = vld.sshfl [vmem:[#allocation1] sm:$0xff pattern:$0x75316420] }
 0x1f8   : > { %2462 = vst [vmem:[#allocation1] ss:$2 sm:$0xff] %v5602_v59 }
 0x1f9   : > { %2391 = vrot.lane.b32.xlu2 %v2379_v40, %s3315_s25  ;;  %2464 = vst [vmem:[#allocation1 + $0x1] ss:$2 sm:$0xff] %v3638_v47  ;;  %v1941_v59 = vpop.permute.xlu2 %1940  ;;  %v1886_v3 = vpop.permute.xlu0 %1885 }
 0x1fa   : > { %v2381_v23 = vld.sshfl [vmem:[#allocation1 + $0x20] sm:$0xff pattern:$0x75316420]  ;;  %2446 = vrot.lane.b32.xlu0 %v2434_v48, %s3316_s26 }
 0x1fb   : > { %2415 = vst [vmem:[#allocation1 + $0x20] ss:$2 sm:$0xff] %v5603_v13  ;;  %v3281_v62 = vpack.i.bf16 %v2382_v10, %v2381_v23  ;;  %v2079_v13 = vsel %vm2075_vm9, %v2070_v21, %v1886_v3 }
 0x1fc   : > { %2417 = vst [vmem:[#allocation1 + $0x21] ss:$2 sm:$0xff] %v3604_v18  ;;  %v4897_v40 = vld.sshfl [vmem:[#allocation1 + $0x30] sm:$0xff pattern:$0x75316420]  ;;  %v4911_v10 = vsel %vm2084_vm10, %v2079_v13, %v1941_v59 }
 0x1fd   : > { %2432 = vst [vmem:[#allocation1 + $0x30] ss:$2 sm:$0xff] %v5552_v61  ;;  %v1888_v46 = vpop.permute.xlu1 %1887 }
 0x1fe   : > { %2433 = vst [vmem:[#allocation1 + $0x31] ss:$2 sm:$0xff] %v5552_v61  ;;  %v4902_v9 = vld.sshfl [vmem:[#allocation1 + $0x10] sm:$0xff pattern:$0x75316420]  ;;  %v2080_v53 = vsel %vm2075_vm9, %v4818_v45, %v1888_v46 }
 0x1ff   : > { %2466 = vst [vmem:[#allocation1 + $0x10] ss:$2 sm:$0xff] %v5594_v34  ;;  %3282 = vrot.lane.b32.xlu1 %v3281_v62, %s3315_s25 }
 0x200   : > { %2468 = vst [vmem:[#allocation1 + $0x11] ss:$2 sm:$0xff] %v5590_v29  ;;  %v2477_v22 = vld.sshfl [vmem:[#allocation1] sm:$0xff pattern:$0x75316420] }
 0x201   : > { %2438 = vrot.lane.b32.xlu2 %v2422_v33, %s3316_s26  ;;  %2481 = vst [vmem:[#allocation1] ss:$2 sm:$0xff] %v5604_v51  ;;  %v1947_v48 = vpop.permute.xlu2 %1946  ;;  %v1892_v21 = vpop.permute.xlu0 %1891 }
 0x202   : > { %2482 = vst [vmem:[#allocation1 + $0x1] ss:$2 sm:$0xff] %v5539_v39  ;;  %2493 = vrot.lane.b32.xlu0 %v2477_v22, %s3317_s27  ;;  %v2082_v45 = vsel %vm2075_vm9, %v2073_v6, %v1892_v21 }
 0x203   : > { %v2424_v19 = vld.sshfl [vmem:[#allocation1 + $0x20] sm:$0xff pattern:$0x75316420]  ;;  %v4931_v23 = vsel %vm2084_vm10, %v2082_v45, %v1947_v48 }
 0x204   : > { %2430 = vst [vmem:[#allocation1 + $0x20] ss:$2 sm:$0xff] %v5552_v61 }
 0x205   : > { %2431 = vst [vmem:[#allocation1 + $0x21] ss:$2 sm:$0xff] %v5552_v61  ;;  %v2437_v33 = vld.sshfl [vmem:[#allocation1 + $0x30] sm:$0xff pattern:$0x75316420]  ;;  %v1894_v4 = vpop.permute.xlu1 %1893 }
 0x206   : > { %2474 = vst [vmem:[#allocation1 + $0x30] ss:$2 sm:$0xff] %v5586_v44  ;;  %v2083_v62 = vsel %vm2075_vm9, %v4835_v14, %v1894_v4 }
 0x207   : > { %2476 = vst [vmem:[#allocation1 + $0x31] ss:$2 sm:$0xff] %v5591_v27  ;;  %v4921_v51 = vld.sshfl [vmem:[#allocation1 + $0x10] sm:$0xff pattern:$0x75316420]  ;;  %2224 = vrot.lane.b32.xlu1 %v4726_v1, %s3312_s22 }
 0x208   : > { %2483 = vst [vmem:[#allocation1 + $0x10] ss:$2 sm:$0xff] %v5597_v58 }
 0x209   : > { %2338 = vrot.lane.b32.xlu2 %v4815_v38, %s3314_s24  ;;  %2484 = vst [vmem:[#allocation1 + $0x11] ss:$2 sm:$0xff] %v5595_v54  ;;  %v2489_v36 = vld.sshfl [vmem:[#allocation1] sm:$0xff pattern:$0x75316420]  ;;  %v4938_v38 = vpop.permute.xlu2 %2165  ;;  %v1937_v3 = vpop.permute.xlu0 %1936 }
 0x20a   : > { %2517 = vst [vmem:[#allocation1] ss:$2 sm:$0xff] %v3441_v52 }
 0x20b   : > { %2519 = vst [vmem:[#allocation1 + $0x1] ss:$2 sm:$0xff] %v3450_v56  ;;  %v4952_v56 = vsel %vm2084_vm10, %v2077_v49, %v1937_v3 }
 0x20c   : > { %v2436_v1 = vld.sshfl [vmem:[#allocation1 + $0x20] sm:$0xff pattern:$0x75316420] }
 0x20d   : > { %v3286_v59 = vpack.i.bf16 %v2437_v33, %v2436_v1  ;;  %2470 = vst [vmem:[#allocation1 + $0x20] ss:$2 sm:$0xff] %v5605_v26  ;;  %v1939_v26 = vpop.permute.xlu1 %1938 }
 0x20e   : > { %2472 = vst [vmem:[#allocation1 + $0x21] ss:$2 sm:$0xff] %v5584_v7  ;;  %v4941_v6 = vld.sshfl [vmem:[#allocation1 + $0x30] sm:$0xff pattern:$0x75316420]  ;;  %v4958_v14 = vsel %vm2084_vm10, %v4854_v20, %v1939_v26 }
 0x20f   : > { %3287 = vrot.lane.b32.xlu0 %v3286_v59, %s3316_s26  ;;  %2487 = vst [vmem:[#allocation1 + $0x30] ss:$2 sm:$0xff] %v5582_v31  ;;  %2279 = vrot.lane.b32.xlu1 %v4768_v30, %s3313_s23  ;;  %v5610_v26 = vld [vmem:[#allocation15_spill] sm:$0xff]  ;;  %s3047_s23 = sshll.u32 %s5617_s16, 1 }
 0x210   : > { %2488 = vst [vmem:[#allocation1 + $0x31] ss:$2 sm:$0xff] %v5582_v31  ;;  %v4948_v52 = vld.sshfl [vmem:[#allocation1 + $0x10] sm:$0xff pattern:$0x75316420] }
 0x211   : > { %2442 = vrot.lane.b32.xlu2 %v2424_v19, %s3316_s26  ;;  %2521 = vst [vmem:[#allocation1 + $0x10] ss:$2 sm:$0xff] %v5606_v50  ;;  %v2219_v22 = vpop.permute.xlu2 %2218  ;;  %v1943_v49 = vpop.permute.xlu0 %1942 }
 0x212   : > { %2523 = vst [vmem:[#allocation1 + $0x11] ss:$2 sm:$0xff] %v5448_v55  ;;  %v2532_v13 = vld.sshfl [vmem:[#allocation1] sm:$0xff pattern:$0x75316420] }
 0x213   : > { %2536 = vst [vmem:[#allocation1] ss:$2 sm:$0xff] %v5560_v0  ;;  %v4971_v0 = vsel %vm2084_vm10, %v2080_v53, %v1943_v49 }
 0x214   : > { %2537 = vst [vmem:[#allocation1 + $0x1] ss:$2 sm:$0xff] %v5561_v37 }
 0x215   : > { %v2479_v30 = vld.sshfl [vmem:[#allocation1 + $0x20] sm:$0xff pattern:$0x75316420]  ;;  %v1945_v20 = vpop.permute.xlu1 %1944 }
 0x216   : > { %2485 = vst [vmem:[#allocation1 + $0x20] ss:$2 sm:$0xff] %v5582_v31 }
 0x217   : > { %2440 = vrot.lane.b32.xlu0 %v4880_v8, %s3316_s26  ;;  %2486 = vst [vmem:[#allocation1 + $0x21] ss:$2 sm:$0xff] %v5582_v31  ;;  %v2492_v50 = vld.sshfl [vmem:[#allocation1 + $0x30] sm:$0xff pattern:$0x75316420]  ;;  %2501 = vrot.lane.b32.xlu1 %v2489_v36, %s3317_s27  ;;  %v4979_v8 = vsel %vm2084_vm10, %v4873_v41, %v1945_v20 }
 0x218   : > { %2529 = vst [vmem:[#allocation1 + $0x30] ss:$2 sm:$0xff] %v5607_v17 }
 0x219   : > { %2393 = vrot.lane.b32.xlu2 %v4860_v16, %s3315_s25  ;;  %2531 = vst [vmem:[#allocation1 + $0x31] ss:$2 sm:$0xff] %v5448_v55  ;;  %v4974_v37 = vld.sshfl [vmem:[#allocation1 + $0x10] sm:$0xff pattern:$0x75316420]  ;;  %v2227_v46 = vpop.permute.xlu2 %2226  ;;  %v1949_v53 = vpop.permute.xlu0 %1948 }
 0x21a   : > { %2538 = vst [vmem:[#allocation1 + $0x10] ss:$2 sm:$0xff] %v4255_v57 }
 0x21b   : > { %2539 = vst [vmem:[#allocation1 + $0x11] ss:$2 sm:$0xff] %v5448_v55  ;;  %v2544_v17 = vld.sshfl [vmem:[#allocation1] sm:$0xff pattern:$0x75316420] }
 0x21c   : > { %2572 = vst [vmem:[#allocation1] ss:$2 sm:$0xff] %v3470_v24  ;;  %v4993_v24 = vsel %vm2084_vm10, %v2083_v62, %v1949_v53  ;;  %v5609_v62 = vld [vmem:[#allocation40_spill] sm:$0xff] }
 0x21d   : > { %2574 = vst [vmem:[#allocation1 + $0x1] ss:$2 sm:$0xff] %v5574_v11  ;;  %v2164_v11 = vpop.permute.xlu1 %2163 }
 0x21e   : > { %v2491_v16 = vld.sshfl [vmem:[#allocation1 + $0x20] sm:$0xff pattern:$0x75316420] }
 0x21f   : > { %2177 = vrot.lane.b32.xlu0 %v4699_v28, %s3311_s21  ;;  %2525 = vst [vmem:[#allocation1 + $0x20] ss:$2 sm:$0xff] %v5517_v32  ;;  %2548 = vrot.lane.b32.xlu1 %v2532_v13, %s3318_s28  ;;  %v5608_v32 = vld [vmem:[#allocation8_spill] sm:$0xff] }
 0x220   : > { %v4988_v57 = vld.sshfl [vmem:[#allocation1 + $0x30] sm:$0xff pattern:$0x75316420]  ;;  %2527 = vst [vmem:[#allocation1 + $0x21] ss:$2 sm:$0xff] %v5598_v42  ;;  %v2682_v41 = vsel %vm1958_vm11, %v5608_v32, %v2164_v11  ;;  %v3291_v42 = vpack.i.bf16 %v2492_v50, %v2491_v16 }
 0x221   : > { %2497 = vrot.lane.b32.xlu2 %v2479_v30, %s3317_s27  ;;  %2542 = vst [vmem:[#allocation1 + $0x30] ss:$2 sm:$0xff] %v5448_v55  ;;  %v2690_v19 = vsel %vm1967_vm12, %v2682_v41, %v2219_v22  ;;  %v2168_v21 = vpop.permute.xlu0 %2167 }
 0x222   : > { %2543 = vst [vmem:[#allocation1 + $0x31] ss:$2 sm:$0xff] %v5448_v55  ;;  %v4997_v28 = vld.sshfl [vmem:[#allocation1 + $0x10] sm:$0xff pattern:$0x75316420]  ;;  %v2684_v13 = vsel %vm1958_vm11, %v5610_v26, %v2168_v21 }
 0x223   : > { %2576 = vst [vmem:[#allocation1 + $0x10] ss:$2 sm:$0xff] %v5563_v43  ;;  %v5010_v43 = vpop.permute.xlu2 %2173 }
 0x224   : > { %2578 = vst [vmem:[#allocation1 + $0x11] ss:$2 sm:$0xff] %v5552_v61  ;;  %v2587_v33 = vld.sshfl [vmem:[#allocation1] sm:$0xff pattern:$0x75316420] }
 0x225   : > { %2591 = vst [vmem:[#allocation1] ss:$2 sm:$0xff] %v5587_v63  ;;  %v5013_v4 = vpop.permute.xlu1 %2169 }
 0x226   : > { %2592 = vst [vmem:[#allocation1 + $0x1] ss:$2 sm:$0xff] %v5588_v2 }
 0x227   : > { %2556 = vrot.lane.b32.xlu0 %v2544_v17, %s3318_s28  ;;  %v2534_v48 = vld.sshfl [vmem:[#allocation1 + $0x20] sm:$0xff pattern:$0x75316420] }
 0x228   : > { %2552 = vrot.lane.b32.xlu1 %v2534_v48, %s3318_s28  ;;  %2540 = vst [vmem:[#allocation1 + $0x20] ss:$2 sm:$0xff] %v5448_v55  ;;  %v5611_v17 = vld [vmem:[#allocation13_spill] sm:$0xff] }
 0x229   : > { %3292 = vrot.lane.b32.xlu2 %v3291_v42, %s3317_s27  ;;  %2541 = vst [vmem:[#allocation1 + $0x21] ss:$2 sm:$0xff] %v5448_v55  ;;  %v2547_v45 = vld.sshfl [vmem:[#allocation1 + $0x30] sm:$0xff pattern:$0x75316420]  ;;  %v2172_v55 = vpop.permute.xlu0 %2171  ;;  %v5612_v42 = vld [vmem:[#allocation44_spill] sm:$0xff] }
 0x22a   : > { %2584 = vst [vmem:[#allocation1 + $0x30] ss:$2 sm:$0xff] %v5568_v15  ;;  %v2686_v15 = vsel %vm1958_vm11, %v5609_v62, %v2172_v55 }
 0x22b   : > { %2586 = vst [vmem:[#allocation1 + $0x31] ss:$2 sm:$0xff] %v5552_v61  ;;  %v2588_v63 = vld.sshfl [vmem:[#allocation1 + $0x10] sm:$0xff pattern:$0x75316420]  ;;  %v2694_v59 = vsel %vm1967_vm12, %v2686_v15, %v2227_v46 }
 0x22c   : > { %2593 = vst [vmem:[#allocation1 + $0x10] ss:$2 sm:$0xff] %v4311_v5 }
 0x22d   : > { %2594 = vst [vmem:[#allocation1 + $0x11] ss:$2 sm:$0xff] %v5552_v61  ;;  %v2599_v2 = vld.sshfl [vmem:[#allocation1] sm:$0xff pattern:$0x75316420]  ;;  %v2274_v5 = vpop.permute.xlu1 %2273 }
 0x22e   : > { %2627 = vst [vmem:[#allocation1] ss:$2 sm:$0xff] %v3638_v47  ;;  %v2698_v47 = vsel %vm1976_vm13, %v2690_v19, %v2274_v5 }
 0x22f   : > { %2611 = vrot.lane.b32.xlu0 %v2599_v2, %s3319_s29  ;;  %2629 = vst [vmem:[#allocation1 + $0x1] ss:$2 sm:$0xff] %v5594_v34 }
 0x230   : > { %v2546_v36 = vld.sshfl [vmem:[#allocation1 + $0x20] sm:$0xff pattern:$0x75316420] }
 0x231   : > { %2603 = vrot.lane.b32.xlu2 %v2587_v33, %s3319_s29  ;;  %v3296_v1 = vpack.i.bf16 %v2547_v45, %v2546_v36  ;;  %2580 = vst [vmem:[#allocation1 + $0x20] ss:$2 sm:$0xff] %v3604_v18  ;;  %v2223_v30 = vpop.permute.xlu0 %2222 }
 0x232   : > { %2582 = vst [vmem:[#allocation1 + $0x21] ss:$2 sm:$0xff] %v3616_v35  ;;  %v2692_v35 = vsel %vm1967_vm12, %v2684_v13, %v2223_v30  ;;  %v5053_v20 = vld.sshfl [vmem:[#allocation1 + $0x30] sm:$0xff pattern:$0x75316420] }
 0x233   : > { %v5028_v3 = vpop.permute.xlu2 %3272  ;;  %3297 = vrot.lane.b32.xlu1 %v3296_v1, %s3318_s28  ;;  %2597 = vst [vmem:[#allocation1 + $0x30] ss:$2 sm:$0xff] %v5552_v61 }
 0x234   : > { %v5043_v50 = vld.sshfl [vmem:[#allocation1 + $0x10] sm:$0xff pattern:$0x75316420]  ;;  %2598 = vst [vmem:[#allocation1 + $0x31] ss:$2 sm:$0xff] %v5552_v61 }
 0x235   : > { %2631 = vst [vmem:[#allocation1 + $0x10] ss:$2 sm:$0xff] %v5590_v29 }
 0x236   : > { %v2642_v34 = vld.sshfl [vmem:[#allocation1] sm:$0xff pattern:$0x75316420]  ;;  %2633 = vst [vmem:[#allocation1 + $0x11] ss:$2 sm:$0xff] %v5582_v31 }
 0x237   : > { %2646 = vst [vmem:[#allocation1] ss:$2 sm:$0xff] %v5539_v39 }
 0x238   : > { %2647 = vst [vmem:[#allocation1 + $0x1] ss:$2 sm:$0xff] %v5597_v58  ;;  %v3274_v58 = vunpack.i.l.bf16 %v5028_v3 }
 0x239   : > { %2334 = vrot.lane.b32.xlu2 %v4809_v25, %s3314_s24  ;;  %v2589_v18 = vld.sshfl [vmem:[#allocation1 + $0x20] sm:$0xff pattern:$0x75316420]  ;;  %v5041_v22 = vpop.permute.xlu1 %3267  ;;  %v2176_v25 = vpop.permute.xlu0 %2175 }
 0x23a   : > { %2607 = vrot.lane.b32.xlu0 %v2589_v18, %s3319_s29  ;;  %2595 = vst [vmem:[#allocation1 + $0x20] ss:$2 sm:$0xff] %v5552_v61  ;;  %v3269_v39 = vunpack.i.l.bf16 %v5041_v22  ;;  %v2688_v16 = vsel %vm1958_vm11, %v5611_v17, %v2176_v25 }
 0x23b   : > { %v5045_v49 = vpop.permute.xlu2 %2330  ;;  %2596 = vst [vmem:[#allocation1 + $0x21] ss:$2 sm:$0xff] %v5552_v61  ;;  %2658 = vrot.lane.b32.xlu1 %v2642_v34, %s3320_s30  ;;  %v2683_v61 = vsel %vm1958_vm11, %v5612_v42, %v4938_v38 }
 0x23c   : > { %v2696_v29 = vsel %vm1967_vm12, %v2688_v16, %v3269_v39 }
 0x23d   : > { %v2704_v32 = vsel %vm1976_vm13, %v2696_v29, %v3274_v58  ;;  %v2643_v19 = vld.sshfl [vmem:[#allocation1 + $0x10] sm:$0xff pattern:$0x75316420] }
 0x23e   : > { %2648 = vst [vmem:[#allocation1 + $0x10] ss:$2 sm:$0xff] %v5595_v54 }
 0x23f   : > { %2649 = vst [vmem:[#allocation1 + $0x11] ss:$2 sm:$0xff] %v5582_v31 }
 0x241   : > { %2605 = vrot.lane.b32.xlu2 %v2588_v63, %s3319_s29  ;;  %v2282_v53 = vpop.permute.xlu1 %2281  ;;  %v2221_v33 = vpop.permute.xlu0 %2220  ;;  %v5613_v63 = vld [vmem:[#allocation2_spill] sm:$0xff] }
 0x242   : > { %2495 = vrot.lane.b32.xlu0 %v4921_v51, %s3317_s27  ;;  %v2601_v46 = vld.sshfl [vmem:[#allocation1 + $0x20] sm:$0xff pattern:$0x75316420]  ;;  %v2702_v41 = vsel %vm1976_vm13, %v2694_v59, %v2282_v53  ;;  %v2691_v48 = vsel %vm1967_vm12, %v2683_v61, %v2221_v33 }
 0x243   : > { %v2333_v11 = vpop.permute.xlu2 %2332  ;;  %2615 = vrot.lane.b32.xlu1 %v2601_v46, %s3319_s29  ;;  %2635 = vst [vmem:[#allocation1 + $0x20] ss:$2 sm:$0xff] %v5584_v7  ;;  %v2654_v51 = vld.sshfl [vmem:[#allocation1] sm:$0xff pattern:$0x75316420] }
 0x244   : > { %2637 = vst [vmem:[#allocation1 + $0x21] ss:$2 sm:$0xff] %v5586_v44  ;;  %v2602_v7 = vld.sshfl [vmem:[#allocation1 + $0x30] sm:$0xff pattern:$0x75316420] }
 0x245   : > { %2639 = vst [vmem:[#allocation1 + $0x30] ss:$2 sm:$0xff] %v5591_v27 }
 0x246   : > { %2641 = vst [vmem:[#allocation1 + $0x31] ss:$2 sm:$0xff] %v5582_v31 }
 0x249   : > { %2666 = vrot.lane.b32.xlu2 %v2654_v51, %s3320_s30  ;;  %v2278_v44 = vpop.permute.xlu1 %2277 }
 0x24a   : > { %2448 = vrot.lane.b32.xlu0 %v4902_v9, %s3316_s26  ;;  %v2700_v21 = vsel %vm1976_vm13, %v2692_v35, %v2278_v44  ;;  %v2329_v9 = vpop.permute.xlu0 %2328  ;;  %v3270_v44 = vunpack.i.h.bf16 %v5041_v22 }
 0x24b   : > { %v2384_v54 = vpop.permute.xlu2 %2383  ;;  %2550 = vrot.lane.b32.xlu1 %v4974_v37, %s3318_s28  ;;  %v2644_v45 = vld.sshfl [vmem:[#allocation1 + $0x20] sm:$0xff pattern:$0x75316420]  ;;  %v5084_v38 = vsel %vm1985_vm14, %v2700_v21, %v2333_v11  ;;  %v2706_v27 = vsel %vm1985_vm14, %v2698_v47, %v2329_v9  ;;  %v2687_v37 = vsel %vm1958_vm11, %v5613_v63, %v5010_v43  ;;  %v3275_v21 = vunpack.i.h.bf16 %v5028_v3 }
 0x24c   : > { %2650 = vst [vmem:[#allocation1 + $0x20] ss:$2 sm:$0xff] %v5582_v31  ;;  %v2714_v55 = vsel %vm1994_vm15, %v2706_v27, %v2384_v54 }
 0x24d   : > { %2651 = vst [vmem:[#allocation1 + $0x21] ss:$2 sm:$0xff] %v5582_v31  ;;  %v2645_v36 = vld.sshfl [vmem:[#allocation1 + $0x30] sm:$0xff pattern:$0x75316420] }
 0x24e   : > { %2652 = vst [vmem:[#allocation1 + $0x30] ss:$2 sm:$0xff] %v5582_v31 }
 0x24f   : > { %2653 = vst [vmem:[#allocation1 + $0x31] ss:$2 sm:$0xff] %v5582_v31 }
 0x251   : > { %2662 = vrot.lane.b32.xlu2 %v2644_v45, %s3320_s30  ;;  %v2229_v2 = vpop.permute.xlu1 %2228  ;;  %v5615_v45 = vld [vmem:[#allocation39_spill] sm:$0xff] }
 0x252   : > { %2389 = vrot.lane.b32.xlu0 %v4851_v60, %s3315_s25  ;;  %v2695_v15 = vsel %vm1967_vm12, %v2687_v37, %v2229_v2  ;;  %v2276_v5 = vpop.permute.xlu0 %2275 }
 0x253   : > { %v2392_v62 = vpop.permute.xlu2 %2391  ;;  %2503 = vrot.lane.b32.xlu1 %v4948_v52, %s3317_s27  ;;  %v2699_v43 = vsel %vm1976_vm13, %v2691_v48, %v2276_v5 }
 0x254   : > { %v2656_v1 = vld.sshfl [vmem:[#allocation1 + $0x20] sm:$0xff pattern:$0x75316420]  ;;  %v2707_v59 = vsel %vm1985_vm14, %v2699_v43, %v5045_v49  ;;  %v2655_v49 = vld.sshfl [vmem:[#allocation1 + $0x10] sm:$0xff pattern:$0x75316420] }
 0x256   : > { %v2657_v17 = vld.sshfl [vmem:[#allocation1 + $0x30] sm:$0xff pattern:$0x75316420] }
 0x259   : > { %2670 = vrot.lane.b32.xlu2 %v2656_v1, %s3320_s30  ;;  %v2337_v60 = vpop.permute.xlu1 %2336 }
 0x25a   : > { %2444 = vrot.lane.b32.xlu0 %v4897_v40, %s3316_s26  ;;  %v2710_v47 = vsel %vm1985_vm14, %v2702_v41, %v2337_v60  ;;  %v2284_v26 = vpop.permute.xlu0 %2283  ;;  %s208_s26 = scalar_lea.vmem %s5342_s4, %s3047_s23 }
 0x25b   : > { %v2439_v52 = vpop.permute.xlu2 %2438  ;;  %2558 = vrot.lane.b32.xlu1 %v4997_v28, %s3318_s28  ;;  %v2718_v34 = vsel %vm1994_vm15, %v2710_v47, %v2392_v62  ;;  %v2703_v13 = vsel %vm1976_vm13, %v2695_v15, %v2284_v26 }
 0x25c   : > { %v5110_v31 = vsel %vm2003_vm0, %v2714_v55, %v2439_v52 }
 0x261   : > { %2660 = vrot.lane.b32.xlu2 %v2643_v19, %s3320_s30  ;;  %v3278_v40 = vpop.permute.xlu1 %3277 }
 0x262   : > { %2499 = vrot.lane.b32.xlu0 %v4941_v6, %s3317_s27  ;;  %v3279_v28 = vunpack.i.l.bf16 %v3278_v40  ;;  %v3280_v27 = vunpack.i.h.bf16 %v3278_v40 }
 0x263   : > { %v2339_v30 = vpop.permute.xlu2 %2338  ;;  %2613 = vrot.lane.b32.xlu1 %v5043_v50, %s3319_s29 }
 0x264   : > { %v2711_v18 = vsel %vm1985_vm14, %v2703_v13, %v2339_v30  ;;  %v5121_v35 = vsel %vm1985_vm14, %v2704_v32, %v3279_v28  ;;  %v2388_v39 = vpop.permute.xlu0 %2387 }
 0x269   : > { %2554 = vrot.lane.b32.xlu2 %v4988_v57, %s3318_s28  ;;  %v2386_v58 = vpop.permute.xlu1 %2385 }
 0x26a   : > { %2668 = vrot.lane.b32.xlu0 %v2655_v49, %s3320_s30  ;;  %v5129_v50 = vsel %vm1994_vm15, %v2707_v59, %v2386_v58  ;;  %v2716_v49 = vsel %vm1994_vm15, %v5084_v38, %v2388_v39 }
 0x26b   : > { %v2443_v6 = vpop.permute.xlu2 %2442  ;;  %2609 = vrot.lane.b32.xlu1 %v5053_v20, %s3319_s29  ;;  %v5614_v20 = vld [vmem:[#allocation45_spill] sm:$0xff] }
 0x26c   : > { %v2447_v25 = vpop.permute.xlu0 %2446  ;;  %v2685_v53 = vsel %vm1958_vm11, %v5614_v20, %v5013_v4  ;;  %v2724_v58 = vsel %vm2003_vm0, %v2716_v49, %v2443_v6 }
 0x26d   : > { %v2726_v52 = vsel %vm2003_vm0, %v2718_v34, %v2447_v25 }
 0x271   : > { %2664 = vrot.lane.b32.xlu2 %v2645_v36, %s3320_s30  ;;  %v5133_v16 = vpop.permute.xlu1 %3282 }
 0x272   : > { %2617 = vrot.lane.b32.xlu0 %v2602_v7, %s3319_s29  ;;  %v3285_v2 = vunpack.i.h.bf16 %v5133_v16  ;;  %v3284_v20 = vunpack.i.l.bf16 %v5133_v16 }
 0x273   : > { %v2394_v29 = vpop.permute.xlu2 %2393  ;;  %2672 = vrot.lane.b32.xlu1 %v2657_v17, %s3320_s30 }
 0x274   : > { %v5137_v57 = vsel %vm1994_vm15, %v2711_v18, %v2394_v29  ;;  %v2494_v46 = vpop.permute.xlu0 %2493  ;;  %v2720_v16 = vsel %vm1994_vm15, %v5121_v35, %v3284_v20 }
 0x275   : > { %v2730_v34 = vsel %vm2012_vm1, %v5110_v31, %v2494_v46 }
 0x279   : > { %v2225_v11 = vpop.permute.xlu1 %2224 }
 0x27a   : > { %v2693_v41 = vsel %vm1967_vm12, %v2685_v53, %v2225_v11 }
 0x27b   : > { %v2498_v32 = vpop.permute.xlu2 %2497 }
 0x27c   : > { %v2732_v17 = vsel %vm2012_vm1, %v2724_v58, %v2498_v32 }
 0x281   : > { %v3288_v19 = vpop.permute.xlu0 %3287  ;;  %v2280_v51 = vpop.permute.xlu1 %2279 }
 0x282   : > { %v2701_v61 = vsel %vm1976_vm13, %v2693_v41, %v2280_v51  ;;  %v3290_v22 = vunpack.i.h.bf16 %v3288_v19  ;;  %v3289_v41 = vunpack.i.l.bf16 %v3288_v19 }
 0x283   : > { %v3293_v42 = vpop.permute.xlu2 %3292 }
 0x284   : > { %v3295_v55 = vunpack.i.h.bf16 %v3293_v42  ;;  %v3294_v46 = vunpack.i.l.bf16 %v3293_v42  ;;  %v2728_v32 = vsel %vm2003_vm0, %v2720_v16, %v3289_v41 }
 0x289   : > { %v5144_v33 = vpop.permute.xlu0 %2440  ;;  %v2502_v48 = vpop.permute.xlu1 %2501 }
 0x28a   : > { %v2734_v47 = vsel %vm2012_vm1, %v2726_v52, %v2502_v48  ;;  %v2723_v35 = vsel %vm2003_vm0, %v5129_v50, %v5144_v33  ;;  %v2815_v50 = vld [vmem:[%s5339_s1 + $0x60] sm:$0xff]  ;;  %v2814_v33 = vld [vmem:[%s5339_s1 + $0x58] sm:$0xff]  ;;  %v2809_v52 = vld [vmem:[%s5339_s1 + $0x30] sm:$0xff] }
 0x28b   : > { %v2604_v7 = vpop.permute.xlu2 %2603 }
 0x291   : > { %v2178_v54 = vpop.permute.xlu0 %2177  ;;  %v2549_v9 = vpop.permute.xlu1 %2548 }
 0x292   : > { %v2689_v4 = vsel %vm1958_vm11, %v5615_v45, %v2178_v54  ;;  %v2738_v25 = vsel %vm2021_vm2, %v2730_v34, %v2549_v9  ;;  %vm2846_vm11 = vcmask 1043456  }
 0x293   : > { %v2335_v63 = vpop.permute.xlu2 %2334  ;;  %v2697_v37 = vsel %vm1967_vm12, %v2689_v4, %v3270_v44  ;;  %v2746_v38 = vsel %vm2030_vm3, %v2738_v25, %v2604_v7  ;;  %v2736_v7 = vsel %vm2012_vm1, %v2728_v32, %v3294_v46 }
 0x294   : > { %v5153_v36 = vsel %vm1985_vm14, %v2701_v61, %v2335_v63  ;;  %v2705_v62 = vsel %vm1976_vm13, %v2697_v37, %v3275_v21  ;;  %vm2794_vm13 = vcmask 523264  }
 0x295   : > { %v2713_v15 = vsel %vm1985_vm14, %v2705_v62, %v3280_v27  ;;  %vm2821_vm14 = vcmask 883712  }
 0x296   : > { %v2721_v3 = vsel %vm1994_vm15, %v2713_v15, %v3285_v2  ;;  %v2813_v15 = vld [vmem:[%s5339_s1 + $0x50] sm:$0xff] }
 0x297   : > { %v2729_v1 = vsel %vm2003_vm0, %v2721_v3, %v3290_v22  ;;  %v2816_v22 = vld [vmem:[%s5339_s1 + $0x68] sm:$0xf] }
 0x298   : > { %v5160_v5 = vsel %vm2012_vm1, %v2729_v1, %v3295_v55  ;;  %3146 = vmatpush.msk.msra.mxu0 %vm2846_vm11, %v2816_v22  ;;  %3161 = vmatpush.msk.msra.mxu3 %vm2846_vm11, %v2816_v22 }
 0x299   : > { %v2557_v43 = vpop.permute.xlu0 %2556  ;;  %3160 = vmatpush.msk.msra.mxu2 %vm2846_vm11, %v2816_v22  ;;  %3159 = vmatpush.msk.msra.mxu1 %vm2846_vm11, %v2816_v22 }
 0x29a   : > { %v2553_v59 = vpop.permute.xlu1 %2552  ;;  %v2742_v26 = vsel %vm2021_vm2, %v2734_v47, %v2557_v43  ;;  %2853 = vmatpush.msra.mxu0 %v2815_v50  ;;  %3164 = vmatpush.msra.mxu3 %v2815_v50  ;;  %v2812_v43 = vld [vmem:[%s5339_s1 + $0x48] sm:$0xff] }
 0x29b   : > { %v2606_v60 = vpop.permute.xlu2 %2605  ;;  %v2740_v53 = vsel %vm2021_vm2, %v2732_v17, %v2553_v59  ;;  %3163 = vmatpush.msra.mxu2 %v2815_v50  ;;  %3162 = vmatpush.msra.mxu1 %v2815_v50  ;;  %v2810_v59 = vld [vmem:[%s5339_s1 + $0x38] sm:$0xff] }
 0x29c   : > { %2854 = vmatpush.msra.mxu0 %v2814_v33  ;;  %3167 = vmatpush.msra.mxu3 %v2814_v33 }
 0x29d   : > { %3166 = vmatpush.msra.mxu2 %v2814_v33  ;;  %3165 = vmatpush.msra.mxu1 %v2814_v33 }
 0x29e   : > { %2855 = vmatpush.msra.mxu0 %v2813_v15  ;;  %3170 = vmatpush.msra.mxu3 %v2813_v15 }
 0x29f   : > { %3169 = vmatpush.msra.mxu2 %v2813_v15  ;;  %3168 = vmatpush.msra.mxu1 %v2813_v15 }
 0x2a0   : > { %2856 = vmatpush.msra.mxu0 %v2812_v43  ;;  %3173 = vmatpush.msra.mxu3 %v2812_v43 }
 0x2a1   : > { %v2612_v13 = vpop.permute.xlu0 %2611  ;;  %3172 = vmatpush.msra.mxu2 %v2812_v43  ;;  %3171 = vmatpush.msra.mxu1 %v2812_v43 }
 0x2a2   : > { %v2750_v40 = vsel %vm2030_vm3, %v2742_v26, %v2612_v13 }
 0x2a3   : > { %v2667_v30 = vpop.permute.xlu2 %2666 }
 0x2a4   : > { %v2758_v28 = vsel %vm2039_vm4, %v2750_v40, %v2667_v30  ;;  %v2808_v40 = vld [vmem:[%s5339_s1 + $0x28] sm:$0xff] }
 0x2a5   : > { %2778 = vrot.lane.b32.xlu0 %v2758_v28, %s3326_s10  ;;  %v5168_v18 = vpop.permute.xlu1 %3297  ;;  %v2807_v28 = vld [vmem:[%s5339_s1 + $0x20] sm:$0xff] }
 0x2a6   : > { %v3299_v19 = vunpack.i.l.bf16 %v5168_v18 }
 0x2a8   : > { %v2744_v44 = vsel %vm2021_vm2, %v2736_v7, %v3299_v19 }
 0x2ab   : > { %v2663_v29 = vpop.permute.xlu2 %2662 }
 0x2ac   : > { %v2608_v11 = vpop.permute.xlu0 %2607 }
 0x2ad   : > { %v2748_v51 = vsel %vm2030_vm3, %v2740_v53, %v2608_v11  ;;  %v2659_v39 = vpop.permute.xlu1 %2658 }
 0x2ae   : > { %v2756_v31 = vsel %vm2039_vm4, %v2748_v51, %v2663_v29  ;;  %v2754_v6 = vsel %vm2039_vm4, %v2746_v38, %v2659_v39  ;;  %v2804_v38 = vld [vmem:[%s5339_s1 + $0x8] sm:$0xff] }
 0x2af   : > { %2774 = vrot.lane.b32.xlu1 %v2756_v31, %s3326_s10  ;;  %2770 = vrot.lane.b32.xlu2 %v2754_v6, %s3326_s10  ;;  %v3300_v6 = vunpack.i.h.bf16 %v5168_v18  ;;  %v2803_v18 = vld [vmem:[%s5339_s1] sm:$0xff] }
 0x2b1   : > { %v2745_v16 = vsel %vm2021_vm2, %v5160_v5, %v3300_v6 }
 0x2b3   : > { %v2671_v61 = vpop.permute.xlu2 %2670 }
 0x2b4   : > { %v2496_v48 = vpop.permute.xlu0 %2495 }
 0x2b5   : > { %v2616_v54 = vpop.permute.xlu1 %2615  ;;  %v2731_v4 = vsel %vm2012_vm1, %v2723_v35, %v2496_v48 }
 0x2b6   : > { %v2752_v21 = vsel %vm2030_vm3, %v2744_v44, %v2616_v54 }
 0x2b7   : > { %v2760_v45 = vsel %vm2039_vm4, %v2752_v21, %v2671_v61 }
 0x2b8   : > { %2782 = vrot.lane.b32.xlu2 %v2760_v45, %s3326_s10 }
 0x2bb   : > { %v2661_v27 = vpop.permute.xlu2 %2660 }
 0x2bc   : > { %v2449_v42 = vpop.permute.xlu0 %2448 }
 0x2bd   : > { %v2551_v9 = vpop.permute.xlu1 %2550  ;;  %v2727_v30 = vsel %vm2003_vm0, %v5137_v57, %v2449_v42  ;;  %v2806_v57 = vld [vmem:[%s5339_s1 + $0x18] sm:$0xff] }
 0x2be   : > { %v2739_v63 = vsel %vm2021_vm2, %v2731_v4, %v2551_v9 }
 0x2bf   : > { %v2747_v37 = vsel %vm2030_vm3, %v2739_v63, %v2606_v60  ;;  %v2811_v60 = vld [vmem:[%s5339_s1 + $0x40] sm:$0xff] }
 0x2c0   : > { %v2755_v2 = vsel %vm2039_vm4, %v2747_v37, %v2661_v27  ;;  %2857 = vmatpush.msra.mxu0 %v2811_v60  ;;  %3176 = vmatpush.msra.mxu3 %v2811_v60 }
 0x2c1   : > { %2772 = vrot.lane.b32.xlu0 %v2755_v2, %s3326_s10  ;;  %3175 = vmatpush.msra.mxu2 %v2811_v60 }
 0x2c2   : > { %3174 = vmatpush.msra.mxu1 %v2811_v60  ;;  %2858 = vmatpush.msra.mxu0 %v2810_v59 }
 0x2c3   : > { %v2555_v26 = vpop.permute.xlu2 %2554  ;;  %3179 = vmatpush.msra.mxu3 %v2810_v59  ;;  %3178 = vmatpush.msra.mxu2 %v2810_v59 }
 0x2c4   : > { %v2390_v55 = vpop.permute.xlu0 %2389  ;;  %3177 = vmatpush.msra.mxu1 %v2810_v59  ;;  %2859 = vmatpush.msra.mxu0 %v2809_v52 }
 0x2c5   : > { %v2504_v62 = vpop.permute.xlu1 %2503  ;;  %3182 = vmatpush.msra.mxu3 %v2809_v52  ;;  %3181 = vmatpush.msra.mxu2 %v2809_v52  ;;  %v2717_v49 = vsel %vm1994_vm15, %v5153_v36, %v2390_v55  ;;  %v2805_v36 = vld [vmem:[%s5339_s1 + $0x10] sm:$0xff]  ;;  %vm2942_vm15 = vcmask 58368  }
 0x2c6   : > { %3180 = vmatpush.msra.mxu1 %v2809_v52  ;;  %v2735_v34 = vsel %vm2012_vm1, %v2727_v30, %v2504_v62  ;;  %2860 = vmatpush.msra.mxu0 %v2808_v40 }
 0x2c7   : > { %3185 = vmatpush.msra.mxu3 %v2808_v40  ;;  %3184 = vmatpush.msra.mxu2 %v2808_v40 }
 0x2c8   : > { %3183 = vmatpush.msra.mxu1 %v2808_v40  ;;  %2861 = vmatpush.msra.mxu0 %v2807_v28 }
 0x2c9   : > { %3188 = vmatpush.msra.mxu3 %v2807_v28  ;;  %3187 = vmatpush.msra.mxu2 %v2807_v28 }
 0x2ca   : > { %3186 = vmatpush.msra.mxu1 %v2807_v28  ;;  %2862 = vmatpush.msra.mxu0 %v2806_v57 }
 0x2cb   : > { %v2665_v53 = vpop.permute.xlu2 %2664  ;;  %3191 = vmatpush.msra.mxu3 %v2806_v57  ;;  %3190 = vmatpush.msra.mxu2 %v2806_v57 }
 0x2cc   : > { %v2445_v3 = vpop.permute.xlu0 %2444  ;;  %3189 = vmatpush.msra.mxu1 %v2806_v57  ;;  %2863 = vmatpush.msra.mxu0 %v2805_v36 }
 0x2cd   : > { %v2559_v1 = vpop.permute.xlu1 %2558  ;;  %v2725_v58 = vsel %vm2003_vm0, %v2717_v49, %v2445_v3  ;;  %3194 = vmatpush.msra.mxu3 %v2805_v36  ;;  %3193 = vmatpush.msra.mxu2 %v2805_v36 }
 0x2ce   : > { %v2743_v25 = vsel %vm2021_vm2, %v2735_v34, %v2559_v1  ;;  %2864 = vmatpush.msra.mxu0 %v2804_v38  ;;  %3192 = vmatpush.msra.mxu1 %v2805_v36 }
 0x2cf   : > { %3197 = vmatpush.msra.mxu3 %v2804_v38  ;;  %3196 = vmatpush.msra.mxu2 %v2804_v38 }
 0x2d0   : > { %3195 = vmatpush.msra.mxu1 %v2804_v38  ;;  %2865 = vmatpush.msra.mxu0 %v2803_v18 }
 0x2d1   : > { %3200 = vmatpush.msra.mxu3 %v2803_v18  ;;  %3199 = vmatpush.msra.mxu2 %v2803_v18 }
 0x2d2   : > { %3198 = vmatpush.msra.mxu1 %v2803_v18 }
 0x2d4   : > { %v2500_v47 = vpop.permute.xlu0 %2499 }
 0x2d5   : > { %v2614_v13 = vpop.permute.xlu1 %2613  ;;  %v2733_v17 = vsel %vm2012_vm1, %v2725_v58, %v2500_v47 }
 0x2d6   : > { %v2751_v29 = vsel %vm2030_vm3, %v2743_v25, %v2614_v13  ;;  %v2741_v11 = vsel %vm2021_vm2, %v2733_v17, %v2555_v26 }
 0x2dc   : > { %v2669_v20 = vpop.permute.xlu0 %2668 }
 0x2dd   : > { %v2759_v41 = vsel %vm2039_vm4, %v2751_v29, %v2669_v20  ;;  %v2610_v51 = vpop.permute.xlu1 %2609 }
 0x2de   : > { %2780 = vrot.lane.b32.xlu1 %v2759_v41, %s3326_s10  ;;  %v2749_v39 = vsel %vm2030_vm3, %v2741_v11, %v2610_v51 }
 0x2df   : > { %v2757_v31 = vsel %vm2039_vm4, %v2749_v39, %v2665_v53 }
 0x2e0   : > { %2776 = vrot.lane.b32.xlu2 %v2757_v31, %s3326_s10 }
 0x2e4   : > { %v2618_v46 = vpop.permute.xlu0 %2617 }
 0x2e5   : > { %v2753_v32 = vsel %vm2030_vm3, %v2745_v16, %v2618_v46  ;;  %v2673_v19 = vpop.permute.xlu1 %2672 }
 0x2e6   : > { %v2761_v61 = vsel %vm2039_vm4, %v2753_v32, %v2673_v19 }
 0x2e7   : > { %2784 = vrot.lane.b32.xlu0 %v2761_v61, %s3326_s10  ;;  %s3158_s10 = sshll.u32 %s5617_s16, 6 }
 0x2e8   : > { %s5296_s22 = scalar_lea.vmem %s5341_s3, %s3158_s10 }
 0x309   : > { %v2771_v5 = vpop.permute.xlu2 %2770 }
 0x30a   : > { %v2795_v48 = vsel %vm2794_vm13, %v4891_v12, %v2771_v5 }
 0x30b   : > { %3147 = vmatmul.msk.f32.vlgmr.msra.gmra.mxu0 %vm2821_vm14, %v2795_v48 }
 0x312   : > { %v2783_v7 = vpop.permute.xlu2 %2782 }
 0x313   : > { %v2801_v44 = vsel %vm2794_vm13, %v4931_v23, %v2783_v7 }
 0x314   : > { %3153 = vmatmul.msk.f32.vlgmr.msra.gmra.mxu3 %vm2821_vm14, %v2801_v44 }
 0x317   : > { %v2779_v54 = vpop.permute.xlu0 %2778 }
 0x318   : > { %v2799_v21 = vsel %vm2794_vm13, %v4971_v0, %v2779_v54 }
 0x319   : > { %3151 = vmatmul.msk.f32.vlgmr.msra.gmra.mxu2 %vm2821_vm14, %v2799_v21 }
 0x321   : > { %v2775_v45 = vpop.permute.xlu1 %2774 }
 0x322   : > { %v2797_v35 = vsel %vm2794_vm13, %v4958_v14, %v2775_v45 }
 0x323   : > { %3149 = vmatmul.msk.f32.vlgmr.msra.gmra.mxu1 %vm2821_vm14, %v2797_v35 }
 0x333   : > { %v2773_v12 = vpop.permute.xlu0 %2772 }
 0x334   : > { %v2796_v42 = vsel %vm2794_vm13, %v4952_v56, %v2773_v12  ;;  %v3301_v56 = vld [vmem:[%s5340_s2] ss:$0 sm:$0xff] }
 0x335   : > { %3148 = vmatmul.msk.f32.gmra.mxu0 %vm2821_vm14, %v2796_v42 }
 0x33a   : > { %v2777_v23 = vpop.permute.xlu2 %2776 }
 0x33b   : > { %v2798_v4 = vsel %vm2794_vm13, %v4911_v10, %v2777_v23 }
 0x33c   : > { %3150 = vmatmul.msk.f32.gmra.mxu1 %vm2821_vm14, %v2798_v4 }
 0x350   : > { %v2781_v0 = vpop.permute.xlu1 %2780 }
 0x351   : > { %v2800_v9 = vsel %vm2794_vm13, %v4979_v8, %v2781_v0 }
 0x352   : > { %3152 = vmatmul.msk.f32.gmra.mxu2 %vm2821_vm14, %v2800_v9 }
 0x359   : > { %v2785_v14 = vpop.permute.xlu0 %2784 }
 0x35a   : > { %v2802_v27 = vsel %vm2794_vm13, %v4993_v24, %v2785_v14 }
 0x35b   : > { %3154 = vmatmul.msk.f32.gmra.mxu3 %vm2821_vm14, %v2802_v27 }
 0x388   : > { %v2867_v10 = vpop.f32.mrf.mxu0 }
 0x389   : > { %v2868_v8 = vadd.f32 %v3301_v56, %v2867_v10 }
 0x38b   : > { %2944 = vst.msk [vmem:[%s5296_s22] sm:$0xff] %vm1967_vm12, %v2868_v8  ;;  %v2912_v1 = vmul.f32 %v2868_v8, %v2868_v8  ;;  %v2891_v60 = vsel %vm1967_vm12, %v2868_v8, 0.0 }
 0x38d   : > { %v2920_v47 = vsel %vm1967_vm12, %v2912_v1, 0.0 }
 0x397   : > { %v2885_v24 = vpop.f32.mrf.mxu3 }
 0x398   : > { %v2886_v63 = vadd.f32 %v3301_v56, %v2885_v24 }
 0x39a   : > { %2950 = vst.msk [vmem:[%s5296_s22 + $0x30] sm:$0xff] %vm1967_vm12, %v2886_v63  ;;  %v2918_v41 = vmul.f32 %v2886_v63, %v2886_v63  ;;  %v2902_v16 = vsel %vm1967_vm12, %v2886_v63, 0.0 }
 0x39c   : > { %v2879_v37 = vpop.f32.mrf.mxu2  ;;  %v2931_v61 = vsel %vm1967_vm12, %v2918_v41, 0.0 }
 0x39d   : > { %v2880_v2 = vadd.f32 %v3301_v56, %v2879_v37 }
 0x39f   : > { %2948 = vst.msk [vmem:[%s5296_s22 + $0x20] sm:$0xff] %vm1967_vm12, %v2880_v2  ;;  %v2916_v17 = vmul.f32 %v2880_v2, %v2880_v2  ;;  %v2898_v20 = vsel %vm1967_vm12, %v2880_v2, 0.0 }
 0x3a0   : > { %v2873_v55 = vpop.f32.mrf.mxu1 }
 0x3a1   : > { %v2874_v62 = vadd.f32 %v3301_v56, %v2873_v55  ;;  %v2927_v51 = vsel %vm1967_vm12, %v2916_v17, 0.0 }
 0x3a3   : > { %2946 = vst.msk [vmem:[%s5296_s22 + $0x10] sm:$0xff] %vm1967_vm12, %v2874_v62  ;;  %v2914_v26 = vmul.f32 %v2874_v62, %v2874_v62  ;;  %v2894_v30 = vsel %vm1967_vm12, %v2874_v62, 0.0 }
 0x3a5   : > { %v2923_v34 = vsel %vm1967_vm12, %v2914_v26, 0.0 }
 0x3b2   : > { %v2870_v22 = vpop.f32.mrf.mxu0 }
 0x3b3   : > { %v2871_v50 = vadd.f32 %v3301_v56, %v2870_v22 }
 0x3b5   : > { %2945 = vst.msk [vmem:[%s5296_s22 + $0x8] sm:$0xff] %vm1967_vm12, %v2871_v50  ;;  %v2913_v3 = vmul.f32 %v2871_v50, %v2871_v50  ;;  %v2892_v43 = vsel %vm1967_vm12, %v2871_v50, 0.0 }
 0x3b6   : > { %v2893_v52 = vadd.f32 %v2892_v43, %v2891_v60 }
 0x3b7   : > { %v2921_v59 = vsel %vm1967_vm12, %v2913_v3, 0.0 }
 0x3b8   : > { %v2922_v40 = vadd.f32 %v2921_v59, %v2920_v47  ;;  %v2895_v49 = vadd.f32 %v2894_v30, %v2893_v52 }
 0x3b9   : > { %v2876_v33 = vpop.f32.mrf.mxu1 }
 0x3ba   : > { %v2877_v15 = vadd.f32 %v3301_v56, %v2876_v33  ;;  %v2924_v57 = vadd.f32 %v2923_v34, %v2922_v40 }
 0x3bc   : > { %2947 = vst.msk [vmem:[%s5296_s22 + $0x18] sm:$0xff] %vm1967_vm12, %v2877_v15  ;;  %v2915_v13 = vmul.f32 %v2877_v15, %v2877_v15  ;;  %v2896_v28 = vsel %vm1967_vm12, %v2877_v15, 0.0 }
 0x3bd   : > { %v2897_v25 = vadd.f32 %v2896_v28, %v2895_v49 }
 0x3be   : > { %v2925_v58 = vsel %vm1967_vm12, %v2915_v13, 0.0 }
 0x3bf   : > { %v2926_v29 = vadd.f32 %v2925_v58, %v2924_v57  ;;  %v2899_v11 = vadd.f32 %v2898_v20, %v2897_v25 }
 0x3c1   : > { %v2928_v6 = vadd.f32 %v2927_v51, %v2926_v29 }
 0x3d5   : > { %v2882_v36 = vpop.f32.mrf.mxu2 }
 0x3d6   : > { %v2883_v53 = vadd.f32 %v3301_v56, %v2882_v36 }
 0x3d8   : > { %v2900_v38 = vsel %vm1967_vm12, %v2883_v53, 0.0  ;;  %v2917_v39 = vmul.f32 %v2883_v53, %v2883_v53  ;;  %2949 = vst.msk [vmem:[%s5296_s22 + $0x28] sm:$0xff] %vm1967_vm12, %v2883_v53 }
 0x3d9   : > { %v2901_v31 = vadd.f32 %v2900_v38, %v2899_v11 }
 0x3da   : > { %v2929_v46 = vsel %vm1967_vm12, %v2917_v39, 0.0 }
 0x3db   : > { %v2930_v32 = vadd.f32 %v2929_v46, %v2928_v6  ;;  %v2903_v19 = vadd.f32 %v2902_v16, %v2901_v31 }
 0x3dd   : > { %v2932_v18 = vadd.f32 %v2931_v61, %v2930_v32 }
 0x3de   : > { %v2888_v5 = vpop.f32.mrf.mxu3 }
 0x3df   : > { %v2889_v48 = vadd.f32 %v3301_v56, %v2888_v5 }
 0x3e1   : > { %v2904_v7 = vsel %vm1967_vm12, %v2889_v48, 0.0  ;;  %v2919_v44 = vmul.f32 %v2889_v48, %v2889_v48  ;;  %2951 = vst.msk [vmem:[%s5296_s22 + $0x38] sm:$0xff] %vm1967_vm12, %v2889_v48 }
 0x3e2   : > { %v2905_v54 = vadd.f32 %v2904_v7, %v2903_v19 }
 0x3e3   : > { %v2933_v21 = vsel %vm1967_vm12, %v2919_v44, 0.0 }
 0x3e4   : > { %v2906_v45 = vrot.slane %v2905_v54, 4  ;;  %v2934_v35 = vadd.f32 %v2933_v21, %v2932_v18 }
 0x3e6   : > { %v2907_v12 = vadd.f32 %v2906_v45, %v2905_v54  ;;  %v2935_v42 = vrot.slane %v2934_v35, 4 }
 0x3e8   : > { %v2908_v23 = vrot.slane %v2907_v12, 2  ;;  %v2936_v4 = vadd.f32 %v2935_v42, %v2934_v35 }
 0x3ea   : > { %v2909_v0 = vadd.f32 %v2908_v23, %v2907_v12  ;;  %v2937_v9 = vrot.slane %v2936_v4, 2 }
 0x3ec   : > { %v2910_v14 = vrot.slane %v2909_v0, 1  ;;  %v2938_v27 = vadd.f32 %v2937_v9, %v2936_v4 }
 0x3ee   : > { %v2939_v56 = vrot.slane %v2938_v27, 1  ;;  %v2911_v10 = vadd.f32 %v2910_v14, %v2909_v0 }
 0x3f0   : > { %v2940_v8 = vadd.f32 %v2939_v56, %v2938_v27 }
 0x3f2   : > { %v2941_v24 = vsel %vm884_vm6, %v2911_v10, %v2940_v8 }
 0x3f3   : > { %2943 = vst.msk [vmem:[%s208_s26] sm:$0x3] %vm2942_vm15, %v2941_v24 }
 0x3f4 PF: > { %s15_s15 = sadd.s32 1, %s3308_s15  }
 0x3f5   : > { %p12_p4 = scmp.ge.s32.totalorder %s15_s15, 4  }
 0x3f7   :  { %14 = sbr.rel (!%p12_p4) target bundleno = 1 (0x1), region = 263 }

</bundles_post_ra>
